<compile_context>
chip_gen: v6e
topology: v6e:2x2x1
jax: 0.10.0
libtpu: 0.0.40
codegen_flags: <defaults>
</compile_context>

<pallas_src>
import math

import jax
import jax.numpy as jnp
from jax.experimental import pallas as pl
from jax.experimental.pallas import tpu as pltpu


C = 128            # padded lane width for every channel dimension
HALO = 3           # max conv halo: (7 - 1) // 2
LEAD = 8           # sublane-aligned leading halo offset (>= HALO, multiple of 8)
VOCAB = 8000
EMB = 100
BN_EPS = 1e-5
# conv order: convst, (conv1, conv2) x 6 blocks, convfin, fc
CONV_KS = (5, 3, 3, 3, 3, 5, 5, 5, 5, 7, 7, 7, 7, 1, 1)


def _round_up(x, m):
    return (x + m - 1) // m * m


# ----------------------------------------------------------------------------
# Fused Pallas kernel (whole network after the embedding gather)
# ----------------------------------------------------------------------------
def _make_fused_kernel(B, L):
    N = B * L
    # static row offsets of each conv's (K*C, C) weight slab inside w_all
    offs = []
    acc = 0
    for k in CONV_KS:
        offs.append(acc)
        acc += k * C

    def kernel(emb_ref, w_ref, b_ref, g_ref, beta_ref, out_ref, xp_ref):
        # Zero the sequence-halo scratch once; halo rows are never written
        # again, so every conv sees exact zero 'same' padding.
        xp_ref[...] = jnp.zeros_like(xp_ref)

        def conv(idx, x):
            """1-D 'same' conv along the sequence as one im2col MXU matmul."""
            K = CONV_KS[idx]
            off = offs[idx]
            w = w_ref[off:off + K * C, :]                       # (K*C, C)
            if K == 1:
                lhs = x                                         # (N, C)
            else:
                p = (K - 1) // 2
                # Sublane-aligned interior write (offset LEAD = 8).
                xp_ref[:, LEAD:LEAD + L, :] = x.reshape(B, L, C)
                cols = [
                    xp_ref[:, LEAD - p + k:LEAD - p + k + L, :].reshape(N, C)
                    for k in range(K)
                ]
                lhs = jnp.concatenate(cols, axis=-1)            # (N, K*C)
            y = jnp.dot(lhs, w, preferred_element_type=jnp.float32)
            return y + b_ref[idx:idx + 1, :]

        def bn_relu(idx, x):
            """Training-mode BatchNorm (per-channel stats over B*L) + ReLU."""
            mean = jnp.mean(x, axis=0, keepdims=True)
            var = jnp.mean(jnp.square(x - mean), axis=0, keepdims=True)
            y = (x - mean) * jax.lax.rsqrt(var + BN_EPS)
            y = y * g_ref[idx:idx + 1, :] + beta_ref[idx:idx + 1, :]
            return jnp.maximum(y, 0.0)

        x = jnp.maximum(emb_ref[...], 0.0)        # F.relu(embedding)
        x = conv(0, x)                            # convst

        ci = 1
        for blk in range(6):                      # residual blocks
            h = bn_relu(2 * blk, x)
            h = conv(ci, h)
            h = bn_relu(2 * blk + 1, h)
            x = x + conv(ci + 1, h)
            ci += 2

        x = conv(13, x)                           # convfin (1x1)
        x = bn_relu(12, x)                        # BNfin + ReLU
        x = conv(14, x)                           # fc (per-position, see TODO)
        out_ref[...] = x.astype(out_ref.dtype)

    return kernel


# ----------------------------------------------------------------------------
# Parameter construction (deterministic, mirrors weightini in the module)
# ----------------------------------------------------------------------------
def init_params(key):
    keys = iter(jax.random.split(key, 32))
    p = {}

    # nn.Embedding default init: N(0, 1)
    p["embedding"] = jax.random.normal(next(keys), (VOCAB, EMB), jnp.float32)

    def conv_w(k, K, cin, cout, nl):
        std = math.sqrt(2.0 / nl)
        return jax.random.normal(k, (K, cin, cout), jnp.float32) * std

    # convst: Conv2d(1, 100, (5, 100)) -> (K=5, Cin=100(emb), Cout=100)
    p["convst_w"] = conv_w(next(keys), 5, 100, 100, 50000)
    p["convst_b"] = jnp.zeros((100,), jnp.float32)

    block_cfg = [(3, 300), (3, 300), (5, 500), (5, 500), (7, 700), (7, 700)]
    p["blocks"] = []
    for K, nl in block_cfg:
        blk = {
            "bn1_g": jnp.ones((100,), jnp.float32),
            "bn1_b": jnp.zeros((100,), jnp.float32),
            "w1": conv_w(next(keys), K, 100, 100, nl),
            "b1": jnp.zeros((100,), jnp.float32),
            "bn2_g": jnp.ones((100,), jnp.float32),
            "bn2_b": jnp.zeros((100,), jnp.float32),
            "w2": conv_w(next(keys), K, 100, 100, nl),
            "b2": jnp.zeros((100,), jnp.float32),
        }
        p["blocks"].append(blk)

    # convfin: Conv2d(100, 80, (1, 1))
    p["convfin_w"] = conv_w(next(keys), 1, 100, 80, 80)
    p["convfin_b"] = jnp.zeros((80,), jnp.float32)
    p["bnfin_g"] = jnp.ones((80,), jnp.float32)
    p["bnfin_b"] = jnp.zeros((80,), jnp.float32)

    # fc: Linear(80, 81) expressed as a K=1 conv: (1, 80, 81)
    p["fc_w"] = conv_w(next(keys), 1, 80, 81, 6480)
    p["fc_b"] = jnp.zeros((81,), jnp.float32)
    return p


def pack_params(p):
    """Pad every channel dim to 128 lanes and pack:
       conv weights -> one (sum_K*128, 128) slab, biases -> (15, 128),
       BN gammas/betas -> (13, 128), embedding -> (8000, 128).
       Done once, outside the hot path."""
    def pad_w(w):
        K, cin, cout = w.shape
        wp = jnp.zeros((K, C, C), jnp.float32).at[:, :cin, :cout].set(w)
        return wp.reshape(K * C, C)

    def pad_vec(v):
        return jnp.zeros((C,), jnp.float32).at[:v.shape[0]].set(v)

    ws = [pad_w(p["convst_w"])]
    bs = [pad_vec(p["convst_b"])]
    gs, betas = [], []
    for blk in p["blocks"]:
        ws += [pad_w(blk["w1"]), pad_w(blk["w2"])]
        bs += [pad_vec(blk["b1"]), pad_vec(blk["b2"])]
        gs += [pad_vec(blk["bn1_g"]), pad_vec(blk["bn2_g"])]
        betas += [pad_vec(blk["bn1_b"]), pad_vec(blk["bn2_b"])]
    ws.append(pad_w(p["convfin_w"]))
    bs.append(pad_vec(p["convfin_b"]))
    gs.append(pad_vec(p["bnfin_g"]))
    betas.append(pad_vec(p["bnfin_b"]))
    ws.append(pad_w(p["fc_w"]))
    bs.append(pad_vec(p["fc_b"]))

    # lane-padded embedding table: gather rows directly into the kernel layout
    emb_pad = jnp.zeros((VOCAB, C), jnp.float32).at[:, :EMB].set(p["embedding"])

    return {
        "embedding": emb_pad,                      # (8000, 128)
        "w_all": jnp.concatenate(ws, axis=0),      # (8576, 128)
        "b_all": jnp.stack(bs, axis=0),            # (15, 128)
        "g_all": jnp.stack(gs, axis=0),            # (13, 128)
        "beta_all": jnp.stack(betas, axis=0),      # (13, 128)
    }


# ----------------------------------------------------------------------------
# Forward pass
# ----------------------------------------------------------------------------
@jax.jit
def net_forward(packed, ids):
    B, L = ids.shape
    # interior at sublane-aligned offset LEAD, >=HALO trailing zeros, 8-aligned
    Lpad = LEAD + _round_up(L + HALO, 8)

    # embedding gather on the lane-padded table -> already (B*L, 128)
    emb_p = jnp.take(packed["embedding"], ids.reshape(-1), axis=0)

    kernel = _make_fused_kernel(B, L)
    out = pl.pallas_call(
        kernel,
        out_shape=jax.ShapeDtypeStruct((B * L, C), jnp.float32),
        scratch_shapes=[pltpu.VMEM((B, Lpad, C), jnp.float32)],
        compiler_params=pltpu.CompilerParams(
            vmem_limit_bytes=32 * 1024 * 1024),
    )(emb_p, packed["w_all"], packed["b_all"], packed["g_all"],
      packed["beta_all"])

    logits = out[:, :81]                           # drop lane padding
    y = jnp.argmax(logits, axis=-1)                # torch.max(x, -1) indices
    return logits, y


# ----------------------------------------------------------------------------
if __name__ == "__main__":
    key = jax.random.PRNGKey(0)
    k_param, k_ids = jax.random.split(key)

    params = init_params(k_param)
    packed = pack_params(params)

    B, L = 2, 16
    ids = jax.random.randint(k_ids, (B, L), 0, VOCAB, dtype=jnp.int32)

    logits, y = net_forward(packed, ids)
    jax.block_until_ready((logits, y))

    assert logits.shape == (B * L, 81) and y.shape == (B * L,)
    assert bool(jnp.all(jnp.isfinite(logits)))
    print("KERNEL_OK")
</pallas_src>

<mosaic_0001>
module attributes {stable_mosaic.version = 11 : i64} {
  func.func @kernel(%arg0: memref<32x128xf32, #tpu.memory_space<vmem>>, %arg1: memref<8576x128xf32, #tpu.memory_space<vmem>>, %arg2: memref<15x128xf32, #tpu.memory_space<vmem>>, %arg3: memref<13x128xf32, #tpu.memory_space<vmem>>, %arg4: memref<13x128xf32, #tpu.memory_space<vmem>>, %arg5: memref<32x128xf32, #tpu.memory_space<vmem>>, %arg6: memref<2x32x128xf32, #tpu.memory_space<vmem>>) attributes {dimension_semantics = [], scalar_prefetch = 0 : i64, scratch_operands = 1 : i64, tpu.core_type = #tpu.core_type<tc>} {
    %cst = arith.constant 0.000000e+00 : f32
    %0 = vector.broadcast %cst : f32 to vector<2x32x128xf32>
    %c0 = arith.constant 0 : index
    %c0_0 = arith.constant 0 : index
    %c0_1 = arith.constant 0 : index
    %1 = vector.load %arg6[%c0, %c0_0, %c0_1] : memref<2x32x128xf32, #tpu.memory_space<vmem>>, vector<2x32x128xf32>
    tpu.vector_store %arg6[%c0, %c0_0, %c0_1], %0 {strides = array<i32>} : memref<2x32x128xf32, #tpu.memory_space<vmem>>, vector<2x32x128xf32>,
    %c0_2 = arith.constant 0 : index
    %c0_3 = arith.constant 0 : index
    %2 = vector.load %arg0[%c0_2, %c0_3] : memref<32x128xf32, #tpu.memory_space<vmem>>, vector<32x128xf32>
    %cst_4 = arith.constant 0.000000e+00 : f32
    %3 = vector.broadcast %cst_4 : f32 to vector<32x128xf32>
    %4 = arith.maximumf %2, %3 : vector<32x128xf32>
    %c0_5 = arith.constant 0 : index
    %c0_6 = arith.constant 0 : index
    %5 = vector.load %arg1[%c0_5, %c0_6] : memref<8576x128xf32, #tpu.memory_space<vmem>>, vector<640x128xf32>
    %6 = vector.shape_cast %4 : vector<32x128xf32> to vector<2x16x128xf32>
    %c0_7 = arith.constant 0 : index
    %c8 = arith.constant 8 : index
    %c0_8 = arith.constant 0 : index
    %7 = vector.load %arg6[%c0_7, %c8, %c0_8] : memref<2x32x128xf32, #tpu.memory_space<vmem>>, vector<2x16x128xf32>
    tpu.vector_store %arg6[%c0_7, %c8, %c0_8], %6 {strides = array<i32>} : memref<2x32x128xf32, #tpu.memory_space<vmem>>, vector<2x16x128xf32>,
    %c0_9 = arith.constant 0 : index
    %c6 = arith.constant 6 : index
    %c0_10 = arith.constant 0 : index
    %8 = vector.load %arg6[%c0_9, %c6, %c0_10] : memref<2x32x128xf32, #tpu.memory_space<vmem>>, vector<2x16x128xf32>
    %9 = vector.shape_cast %8 : vector<2x16x128xf32> to vector<32x128xf32>
    %c0_11 = arith.constant 0 : index
    %c7 = arith.constant 7 : index
    %c0_12 = arith.constant 0 : index
    %10 = vector.load %arg6[%c0_11, %c7, %c0_12] : memref<2x32x128xf32, #tpu.memory_space<vmem>>, vector<2x16x128xf32>
    %11 = vector.shape_cast %10 : vector<2x16x128xf32> to vector<32x128xf32>
    %c0_13 = arith.constant 0 : index
    %c8_14 = arith.constant 8 : index
    %c0_15 = arith.constant 0 : index
    %12 = vector.load %arg6[%c0_13, %c8_14, %c0_15] : memref<2x32x128xf32, #tpu.memory_space<vmem>>, vector<2x16x128xf32>
    %13 = vector.shape_cast %12 : vector<2x16x128xf32> to vector<32x128xf32>
    %c0_16 = arith.constant 0 : index
    %c9 = arith.constant 9 : index
    %c0_17 = arith.constant 0 : index
    %14 = vector.load %arg6[%c0_16, %c9, %c0_17] : memref<2x32x128xf32, #tpu.memory_space<vmem>>, vector<2x16x128xf32>
    %15 = vector.shape_cast %14 : vector<2x16x128xf32> to vector<32x128xf32>
    %c0_18 = arith.constant 0 : index
    %c10 = arith.constant 10 : index
    %c0_19 = arith.constant 0 : index
    %16 = vector.load %arg6[%c0_18, %c10, %c0_19] : memref<2x32x128xf32, #tpu.memory_space<vmem>>, vector<2x16x128xf32>
    %17 = vector.shape_cast %16 : vector<2x16x128xf32> to vector<32x128xf32>
    %18 = tpu.concatenate %9, %11, %13, %15, %17 in 1 : vector<32x128xf32>, vector<32x128xf32>, vector<32x128xf32>, vector<32x128xf32>, vector<32x128xf32> -> vector<32x640xf32>
    %cst_20 = arith.constant dense<0.000000e+00> : vector<32x128xf32>
    %19 = tpu.matmul %18, %5, %cst_20 {dimension_numbers = #tpu.dot_dimension_numbers<[1], [0], [0], [1], [0, 0, 1, 1], [], []>} : vector<32x640xf32>, vector<640x128xf32>, vector<32x128xf32> -> vector<32x128xf32>
    %c0_21 = arith.constant 0 : index
    %c0_22 = arith.constant 0 : index
    %20 = vector.load %arg2[%c0_21, %c0_22] : memref<15x128xf32, #tpu.memory_space<vmem>>, vector<1x128xf32>
    %21 = vector.broadcast %20 : vector<1x128xf32> to vector<32x128xf32>
    %22 = arith.addf %19, %21 : vector<32x128xf32>
    %cst_23 = arith.constant dense<0.000000e+00> : vector<128xf32>
    %23 = vector.multi_reduction <add>, %22, %cst_23 [0] : vector<32x128xf32> to vector<128xf32>
    %24 = vector.shape_cast %23 : vector<128xf32> to vector<1x128xf32>
    %cst_24 = arith.constant 3.200000e+01 : f32
    %25 = vector.broadcast %cst_24 : f32 to vector<1x128xf32>
    %26 = arith.divf %24, %25 : vector<1x128xf32>
    %27 = vector.broadcast %26 : vector<1x128xf32> to vector<32x128xf32>
    %28 = arith.subf %22, %27 : vector<32x128xf32>
    %29 = arith.mulf %28, %28 : vector<32x128xf32>
    %cst_25 = arith.constant dense<0.000000e+00> : vector<128xf32>
    %30 = vector.multi_reduction <add>, %29, %cst_25 [0] : vector<32x128xf32> to vector<128xf32>
    %31 = vector.shape_cast %30 : vector<128xf32> to vector<1x128xf32>
    %cst_26 = arith.constant 3.200000e+01 : f32
    %32 = vector.broadcast %cst_26 : f32 to vector<1x128xf32>
    %33 = arith.divf %31, %32 : vector<1x128xf32>
    %34 = vector.broadcast %26 : vector<1x128xf32> to vector<32x128xf32>
    %35 = arith.subf %22, %34 : vector<32x128xf32>
    %cst_27 = arith.constant 9.99999974E-6 : f32
    %36 = vector.broadcast %cst_27 : f32 to vector<1x128xf32>
    %37 = arith.addf %33, %36 : vector<1x128xf32>
    %38 = math.rsqrt %37 : vector<1x128xf32>
    %39 = vector.broadcast %38 : vector<1x128xf32> to vector<32x128xf32>
    %40 = arith.mulf %35, %39 : vector<32x128xf32>
    %c0_28 = arith.constant 0 : index
    %c0_29 = arith.constant 0 : index
    %41 = vector.load %arg3[%c0_28, %c0_29] : memref<13x128xf32, #tpu.memory_space<vmem>>, vector<1x128xf32>
    %42 = vector.broadcast %41 : vector<1x128xf32> to vector<32x128xf32>
    %43 = arith.mulf %40, %42 : vector<32x128xf32>
    %c0_30 = arith.constant 0 : index
    %c0_31 = arith.constant 0 : index
    %44 = vector.load %arg4[%c0_30, %c0_31] : memref<13x128xf32, #tpu.memory_space<vmem>>, vector<1x128xf32>
    %45 = vector.broadcast %44 : vector<1x128xf32> to vector<32x128xf32>
    %46 = arith.addf %43, %45 : vector<32x128xf32>
    %cst_32 = arith.constant 0.000000e+00 : f32
    %47 = vector.broadcast %cst_32 : f32 to vector<32x128xf32>
    %48 = arith.maximumf %46, %47 : vector<32x128xf32>
    %c640 = arith.constant 640 : index
    %c0_33 = arith.constant 0 : index
    %49 = vector.load %arg1[%c640, %c0_33] : memref<8576x128xf32, #tpu.memory_space<vmem>>, vector<384x128xf32>
    %50 = vector.shape_cast %48 : vector<32x128xf32> to vector<2x16x128xf32>
    %c0_34 = arith.constant 0 : index
    %c8_35 = arith.constant 8 : index
    %c0_36 = arith.constant 0 : index
    %51 = vector.load %arg6[%c0_34, %c8_35, %c0_36] : memref<2x32x128xf32, #tpu.memory_space<vmem>>, vector<2x16x128xf32>
    tpu.vector_store %arg6[%c0_34, %c8_35, %c0_36], %50 {strides = array<i32>} : memref<2x32x128xf32, #tpu.memory_space<vmem>>, vector<2x16x128xf32>,
    %c0_37 = arith.constant 0 : index
    %c7_38 = arith.constant 7 : index
    %c0_39 = arith.constant 0 : index
    %52 = vector.load %arg6[%c0_37, %c7_38, %c0_39] : memref<2x32x128xf32, #tpu.memory_space<vmem>>, vector<2x16x128xf32>
    %53 = vector.shape_cast %52 : vector<2x16x128xf32> to vector<32x128xf32>
    %c0_40 = arith.constant 0 : index
    %c8_41 = arith.constant 8 : index
    %c0_42 = arith.constant 0 : index
    %54 = vector.load %arg6[%c0_40, %c8_41, %c0_42] : memref<2x32x128xf32, #tpu.memory_space<vmem>>, vector<2x16x128xf32>
    %55 = vector.shape_cast %54 : vector<2x16x128xf32> to vector<32x128xf32>
    %c0_43 = arith.constant 0 : index
    %c9_44 = arith.constant 9 : index
    %c0_45 = arith.constant 0 : index
    %56 = vector.load %arg6[%c0_43, %c9_44, %c0_45] : memref<2x32x128xf32, #tpu.memory_space<vmem>>, vector<2x16x128xf32>
    %57 = vector.shape_cast %56 : vector<2x16x128xf32> to vector<32x128xf32>
    %58 = tpu.concatenate %53, %55, %57 in 1 : vector<32x128xf32>, vector<32x128xf32>, vector<32x128xf32> -> vector<32x384xf32>
    %cst_46 = arith.constant dense<0.000000e+00> : vector<32x128xf32>
    %59 = tpu.matmul %58, %49, %cst_46 {dimension_numbers = #tpu.dot_dimension_numbers<[1], [0], [0], [1], [0, 0, 1, 1], [], []>} : vector<32x384xf32>, vector<384x128xf32>, vector<32x128xf32> -> vector<32x128xf32>
    %c1 = arith.constant 1 : index
    %c0_47 = arith.constant 0 : index
    %60 = vector.load %arg2[%c1, %c0_47] : memref<15x128xf32, #tpu.memory_space<vmem>>, vector<1x128xf32>
    %61 = vector.broadcast %60 : vector<1x128xf32> to vector<32x128xf32>
    %62 = arith.addf %59, %61 : vector<32x128xf32>
    %cst_48 = arith.constant dense<0.000000e+00> : vector<128xf32>
    %63 = vector.multi_reduction <add>, %62, %cst_48 [0] : vector<32x128xf32> to vector<128xf32>
    %64 = vector.shape_cast %63 : vector<128xf32> to vector<1x128xf32>
    %cst_49 = arith.constant 3.200000e+01 : f32
    %65 = vector.broadcast %cst_49 : f32 to vector<1x128xf32>
    %66 = arith.divf %64, %65 : vector<1x128xf32>
    %67 = vector.broadcast %66 : vector<1x128xf32> to vector<32x128xf32>
    %68 = arith.subf %62, %67 : vector<32x128xf32>
    %69 = arith.mulf %68, %68 : vector<32x128xf32>
    %cst_50 = arith.constant dense<0.000000e+00> : vector<128xf32>
    %70 = vector.multi_reduction <add>, %69, %cst_50 [0] : vector<32x128xf32> to vector<128xf32>
    %71 = vector.shape_cast %70 : vector<128xf32> to vector<1x128xf32>
    %cst_51 = arith.constant 3.200000e+01 : f32
    %72 = vector.broadcast %cst_51 : f32 to vector<1x128xf32>
    %73 = arith.divf %71, %72 : vector<1x128xf32>
    %74 = vector.broadcast %66 : vector<1x128xf32> to vector<32x128xf32>
    %75 = arith.subf %62, %74 : vector<32x128xf32>
    %cst_52 = arith.constant 9.99999974E-6 : f32
    %76 = vector.broadcast %cst_52 : f32 to vector<1x128xf32>
    %77 = arith.addf %73, %76 : vector<1x128xf32>
    %78 = math.rsqrt %77 : vector<1x128xf32>
    %79 = vector.broadcast %78 : vector<1x128xf32> to vector<32x128xf32>
    %80 = arith.mulf %75, %79 : vector<32x128xf32>
    %c1_53 = arith.constant 1 : index
    %c0_54 = arith.constant 0 : index
    %81 = vector.load %arg3[%c1_53, %c0_54] : memref<13x128xf32, #tpu.memory_space<vmem>>, vector<1x128xf32>
    %82 = vector.broadcast %81 : vector<1x128xf32> to vector<32x128xf32>
    %83 = arith.mulf %80, %82 : vector<32x128xf32>
    %c1_55 = arith.constant 1 : index
    %c0_56 = arith.constant 0 : index
    %84 = vector.load %arg4[%c1_55, %c0_56] : memref<13x128xf32, #tpu.memory_space<vmem>>, vector<1x128xf32>
    %85 = vector.broadcast %84 : vector<1x128xf32> to vector<32x128xf32>
    %86 = arith.addf %83, %85 : vector<32x128xf32>
    %cst_57 = arith.constant 0.000000e+00 : f32
    %87 = vector.broadcast %cst_57 : f32 to vector<32x128xf32>
    %88 = arith.maximumf %86, %87 : vector<32x128xf32>
    %c1024 = arith.constant 1024 : index
    %c0_58 = arith.constant 0 : index
    %89 = vector.load %arg1[%c1024, %c0_58] : memref<8576x128xf32, #tpu.memory_space<vmem>>, vector<384x128xf32>
    %90 = vector.shape_cast %88 : vector<32x128xf32> to vector<2x16x128xf32>
    %c0_59 = arith.constant 0 : index
    %c8_60 = arith.constant 8 : index
    %c0_61 = arith.constant 0 : index
    %91 = vector.load %arg6[%c0_59, %c8_60, %c0_61] : memref<2x32x128xf32, #tpu.memory_space<vmem>>, vector<2x16x128xf32>
    tpu.vector_store %arg6[%c0_59, %c8_60, %c0_61], %90 {strides = array<i32>} : memref<2x32x128xf32, #tpu.memory_space<vmem>>, vector<2x16x128xf32>,
    %c0_62 = arith.constant 0 : index
    %c7_63 = arith.constant 7 : index
    %c0_64 = arith.constant 0 : index
    %92 = vector.load %arg6[%c0_62, %c7_63, %c0_64] : memref<2x32x128xf32, #tpu.memory_space<vmem>>, vector<2x16x128xf32>
    %93 = vector.shape_cast %92 : vector<2x16x128xf32> to vector<32x128xf32>
    %c0_65 = arith.constant 0 : index
    %c8_66 = arith.constant 8 : index
    %c0_67 = arith.constant 0 : index
    %94 = vector.load %arg6[%c0_65, %c8_66, %c0_67] : memref<2x32x128xf32, #tpu.memory_space<vmem>>, vector<2x16x128xf32>
    %95 = vector.shape_cast %94 : vector<2x16x128xf32> to vector<32x128xf32>
    %c0_68 = arith.constant 0 : index
    %c9_69 = arith.constant 9 : index
    %c0_70 = arith.constant 0 : index
    %96 = vector.load %arg6[%c0_68, %c9_69, %c0_70] : memref<2x32x128xf32, #tpu.memory_space<vmem>>, vector<2x16x128xf32>
    %97 = vector.shape_cast %96 : vector<2x16x128xf32> to vector<32x128xf32>
    %98 = tpu.concatenate %93, %95, %97 in 1 : vector<32x128xf32>, vector<32x128xf32>, vector<32x128xf32> -> vector<32x384xf32>
    %cst_71 = arith.constant dense<0.000000e+00> : vector<32x128xf32>
    %99 = tpu.matmul %98, %89, %cst_71 {dimension_numbers = #tpu.dot_dimension_numbers<[1], [0], [0], [1], [0, 0, 1, 1], [], []>} : vector<32x384xf32>, vector<384x128xf32>, vector<32x128xf32> -> vector<32x128xf32>
    %c2 = arith.constant 2 : index
    %c0_72 = arith.constant 0 : index
    %100 = vector.load %arg2[%c2, %c0_72] : memref<15x128xf32, #tpu.memory_space<vmem>>, vector<1x128xf32>
    %101 = vector.broadcast %100 : vector<1x128xf32> to vector<32x128xf32>
    %102 = arith.addf %99, %101 : vector<32x128xf32>
    %103 = arith.addf %22, %102 : vector<32x128xf32>
    %cst_73 = arith.constant dense<0.000000e+00> : vector<128xf32>
    %104 = vector.multi_reduction <add>, %103, %cst_73 [0] : vector<32x128xf32> to vector<128xf32>
    %105 = vector.shape_cast %104 : vector<128xf32> to vector<1x128xf32>
    %cst_74 = arith.constant 3.200000e+01 : f32
    %106 = vector.broadcast %cst_74 : f32 to vector<1x128xf32>
    %107 = arith.divf %105, %106 : vector<1x128xf32>
    %108 = vector.broadcast %107 : vector<1x128xf32> to vector<32x128xf32>
    %109 = arith.subf %103, %108 : vector<32x128xf32>
    %110 = arith.mulf %109, %109 : vector<32x128xf32>
    %cst_75 = arith.constant dense<0.000000e+00> : vector<128xf32>
    %111 = vector.multi_reduction <add>, %110, %cst_75 [0] : vector<32x128xf32> to vector<128xf32>
    %112 = vector.shape_cast %111 : vector<128xf32> to vector<1x128xf32>
    %cst_76 = arith.constant 3.200000e+01 : f32
    %113 = vector.broadcast %cst_76 : f32 to vector<1x128xf32>
    %114 = arith.divf %112, %113 : vector<1x128xf32>
    %115 = vector.broadcast %107 : vector<1x128xf32> to vector<32x128xf32>
    %116 = arith.subf %103, %115 : vector<32x128xf32>
    %cst_77 = arith.constant 9.99999974E-6 : f32
    %117 = vector.broadcast %cst_77 : f32 to vector<1x128xf32>
    %118 = arith.addf %114, %117 : vector<1x128xf32>
    %119 = math.rsqrt %118 : vector<1x128xf32>
    %120 = vector.broadcast %119 : vector<1x128xf32> to vector<32x128xf32>
    %121 = arith.mulf %116, %120 : vector<32x128xf32>
    %c2_78 = arith.constant 2 : index
    %c0_79 = arith.constant 0 : index
    %122 = vector.load %arg3[%c2_78, %c0_79] : memref<13x128xf32, #tpu.memory_space<vmem>>, vector<1x128xf32>
    %123 = vector.broadcast %122 : vector<1x128xf32> to vector<32x128xf32>
    %124 = arith.mulf %121, %123 : vector<32x128xf32>
    %c2_80 = arith.constant 2 : index
    %c0_81 = arith.constant 0 : index
    %125 = vector.load %arg4[%c2_80, %c0_81] : memref<13x128xf32, #tpu.memory_space<vmem>>, vector<1x128xf32>
    %126 = vector.broadcast %125 : vector<1x128xf32> to vector<32x128xf32>
    %127 = arith.addf %124, %126 : vector<32x128xf32>
    %cst_82 = arith.constant 0.000000e+00 : f32
    %128 = vector.broadcast %cst_82 : f32 to vector<32x128xf32>
    %129 = arith.maximumf %127, %128 : vector<32x128xf32>
    %c1408 = arith.constant 1408 : index
    %c0_83 = arith.constant 0 : index
    %130 = vector.load %arg1[%c1408, %c0_83] : memref<8576x128xf32, #tpu.memory_space<vmem>>, vector<384x128xf32>
    %131 = vector.shape_cast %129 : vector<32x128xf32> to vector<2x16x128xf32>
    %c0_84 = arith.constant 0 : index
    %c8_85 = arith.constant 8 : index
    %c0_86 = arith.constant 0 : index
    %132 = vector.load %arg6[%c0_84, %c8_85, %c0_86] : memref<2x32x128xf32, #tpu.memory_space<vmem>>, vector<2x16x128xf32>
    tpu.vector_store %arg6[%c0_84, %c8_85, %c0_86], %131 {strides = array<i32>} : memref<2x32x128xf32, #tpu.memory_space<vmem>>, vector<2x16x128xf32>,
    %c0_87 = arith.constant 0 : index
    %c7_88 = arith.constant 7 : index
    %c0_89 = arith.constant 0 : index
    %133 = vector.load %arg6[%c0_87, %c7_88, %c0_89] : memref<2x32x128xf32, #tpu.memory_space<vmem>>, vector<2x16x128xf32>
    %134 = vector.shape_cast %133 : vector<2x16x128xf32> to vector<32x128xf32>
    %c0_90 = arith.constant 0 : index
    %c8_91 = arith.constant 8 : index
    %c0_92 = arith.constant 0 : index
    %135 = vector.load %arg6[%c0_90, %c8_91, %c0_92] : memref<2x32x128xf32, #tpu.memory_space<vmem>>, vector<2x16x128xf32>
    %136 = vector.shape_cast %135 : vector<2x16x128xf32> to vector<32x128xf32>
    %c0_93 = arith.constant 0 : index
    %c9_94 = arith.constant 9 : index
    %c0_95 = arith.constant 0 : index
    %137 = vector.load %arg6[%c0_93, %c9_94, %c0_95] : memref<2x32x128xf32, #tpu.memory_space<vmem>>, vector<2x16x128xf32>
    %138 = vector.shape_cast %137 : vector<2x16x128xf32> to vector<32x128xf32>
    %139 = tpu.concatenate %134, %136, %138 in 1 : vector<32x128xf32>, vector<32x128xf32>, vector<32x128xf32> -> vector<32x384xf32>
    %cst_96 = arith.constant dense<0.000000e+00> : vector<32x128xf32>
    %140 = tpu.matmul %139, %130, %cst_96 {dimension_numbers = #tpu.dot_dimension_numbers<[1], [0], [0], [1], [0, 0, 1, 1], [], []>} : vector<32x384xf32>, vector<384x128xf32>, vector<32x128xf32> -> vector<32x128xf32>
    %c3 = arith.constant 3 : index
    %c0_97 = arith.constant 0 : index
    %141 = vector.load %arg2[%c3, %c0_97] : memref<15x128xf32, #tpu.memory_space<vmem>>, vector<1x128xf32>
    %142 = vector.broadcast %141 : vector<1x128xf32> to vector<32x128xf32>
    %143 = arith.addf %140, %142 : vector<32x128xf32>
    %cst_98 = arith.constant dense<0.000000e+00> : vector<128xf32>
    %144 = vector.multi_reduction <add>, %143, %cst_98 [0] : vector<32x128xf32> to vector<128xf32>
    %145 = vector.shape_cast %144 : vector<128xf32> to vector<1x128xf32>
    %cst_99 = arith.constant 3.200000e+01 : f32
    %146 = vector.broadcast %cst_99 : f32 to vector<1x128xf32>
    %147 = arith.divf %145, %146 : vector<1x128xf32>
    %148 = vector.broadcast %147 : vector<1x128xf32> to vector<32x128xf32>
    %149 = arith.subf %143, %148 : vector<32x128xf32>
    %150 = arith.mulf %149, %149 : vector<32x128xf32>
    %cst_100 = arith.constant dense<0.000000e+00> : vector<128xf32>
    %151 = vector.multi_reduction <add>, %150, %cst_100 [0] : vector<32x128xf32> to vector<128xf32>
    %152 = vector.shape_cast %151 : vector<128xf32> to vector<1x128xf32>
    %cst_101 = arith.constant 3.200000e+01 : f32
    %153 = vector.broadcast %cst_101 : f32 to vector<1x128xf32>
    %154 = arith.divf %152, %153 : vector<1x128xf32>
    %155 = vector.broadcast %147 : vector<1x128xf32> to vector<32x128xf32>
    %156 = arith.subf %143, %155 : vector<32x128xf32>
    %cst_102 = arith.constant 9.99999974E-6 : f32
    %157 = vector.broadcast %cst_102 : f32 to vector<1x128xf32>
    %158 = arith.addf %154, %157 : vector<1x128xf32>
    %159 = math.rsqrt %158 : vector<1x128xf32>
    %160 = vector.broadcast %159 : vector<1x128xf32> to vector<32x128xf32>
    %161 = arith.mulf %156, %160 : vector<32x128xf32>
    %c3_103 = arith.constant 3 : index
    %c0_104 = arith.constant 0 : index
    %162 = vector.load %arg3[%c3_103, %c0_104] : memref<13x128xf32, #tpu.memory_space<vmem>>, vector<1x128xf32>
    %163 = vector.broadcast %162 : vector<1x128xf32> to vector<32x128xf32>
    %164 = arith.mulf %161, %163 : vector<32x128xf32>
    %c3_105 = arith.constant 3 : index
    %c0_106 = arith.constant 0 : index
    %165 = vector.load %arg4[%c3_105, %c0_106] : memref<13x128xf32, #tpu.memory_space<vmem>>, vector<1x128xf32>
    %166 = vector.broadcast %165 : vector<1x128xf32> to vector<32x128xf32>
    %167 = arith.addf %164, %166 : vector<32x128xf32>
    %cst_107 = arith.constant 0.000000e+00 : f32
    %168 = vector.broadcast %cst_107 : f32 to vector<32x128xf32>
    %169 = arith.maximumf %167, %168 : vector<32x128xf32>
    %c1792 = arith.constant 1792 : index
    %c0_108 = arith.constant 0 : index
    %170 = vector.load %arg1[%c1792, %c0_108] : memref<8576x128xf32, #tpu.memory_space<vmem>>, vector<384x128xf32>
    %171 = vector.shape_cast %169 : vector<32x128xf32> to vector<2x16x128xf32>
    %c0_109 = arith.constant 0 : index
    %c8_110 = arith.constant 8 : index
    %c0_111 = arith.constant 0 : index
    %172 = vector.load %arg6[%c0_109, %c8_110, %c0_111] : memref<2x32x128xf32, #tpu.memory_space<vmem>>, vector<2x16x128xf32>
    tpu.vector_store %arg6[%c0_109, %c8_110, %c0_111], %171 {strides = array<i32>} : memref<2x32x128xf32, #tpu.memory_space<vmem>>, vector<2x16x128xf32>,
    %c0_112 = arith.constant 0 : index
    %c7_113 = arith.constant 7 : index
    %c0_114 = arith.constant 0 : index
    %173 = vector.load %arg6[%c0_112, %c7_113, %c0_114] : memref<2x32x128xf32, #tpu.memory_space<vmem>>, vector<2x16x128xf32>
    %174 = vector.shape_cast %173 : vector<2x16x128xf32> to vector<32x128xf32>
    %c0_115 = arith.constant 0 : index
    %c8_116 = arith.constant 8 : index
    %c0_117 = arith.constant 0 : index
    %175 = vector.load %arg6[%c0_115, %c8_116, %c0_117] : memref<2x32x128xf32, #tpu.memory_space<vmem>>, vector<2x16x128xf32>
    %176 = vector.shape_cast %175 : vector<2x16x128xf32> to vector<32x128xf32>
    %c0_118 = arith.constant 0 : index
    %c9_119 = arith.constant 9 : index
    %c0_120 = arith.constant 0 : index
    %177 = vector.load %arg6[%c0_118, %c9_119, %c0_120] : memref<2x32x128xf32, #tpu.memory_space<vmem>>, vector<2x16x128xf32>
    %178 = vector.shape_cast %177 : vector<2x16x128xf32> to vector<32x128xf32>
    %179 = tpu.concatenate %174, %176, %178 in 1 : vector<32x128xf32>, vector<32x128xf32>, vector<32x128xf32> -> vector<32x384xf32>
    %cst_121 = arith.constant dense<0.000000e+00> : vector<32x128xf32>
    %180 = tpu.matmul %179, %170, %cst_121 {dimension_numbers = #tpu.dot_dimension_numbers<[1], [0], [0], [1], [0, 0, 1, 1], [], []>} : vector<32x384xf32>, vector<384x128xf32>, vector<32x128xf32> -> vector<32x128xf32>
    %c4 = arith.constant 4 : index
    %c0_122 = arith.constant 0 : index
    %181 = vector.load %arg2[%c4, %c0_122] : memref<15x128xf32, #tpu.memory_space<vmem>>, vector<1x128xf32>
    %182 = vector.broadcast %181 : vector<1x128xf32> to vector<32x128xf32>
    %183 = arith.addf %180, %182 : vector<32x128xf32>
    %184 = arith.addf %103, %183 : vector<32x128xf32>
    %cst_123 = arith.constant dense<0.000000e+00> : vector<128xf32>
    %185 = vector.multi_reduction <add>, %184, %cst_123 [0] : vector<32x128xf32> to vector<128xf32>
    %186 = vector.shape_cast %185 : vector<128xf32> to vector<1x128xf32>
    %cst_124 = arith.constant 3.200000e+01 : f32
    %187 = vector.broadcast %cst_124 : f32 to vector<1x128xf32>
    %188 = arith.divf %186, %187 : vector<1x128xf32>
    %189 = vector.broadcast %188 : vector<1x128xf32> to vector<32x128xf32>
    %190 = arith.subf %184, %189 : vector<32x128xf32>
    %191 = arith.mulf %190, %190 : vector<32x128xf32>
    %cst_125 = arith.constant dense<0.000000e+00> : vector<128xf32>
    %192 = vector.multi_reduction <add>, %191, %cst_125 [0] : vector<32x128xf32> to vector<128xf32>
    %193 = vector.shape_cast %192 : vector<128xf32> to vector<1x128xf32>
    %cst_126 = arith.constant 3.200000e+01 : f32
    %194 = vector.broadcast %cst_126 : f32 to vector<1x128xf32>
    %195 = arith.divf %193, %194 : vector<1x128xf32>
    %196 = vector.broadcast %188 : vector<1x128xf32> to vector<32x128xf32>
    %197 = arith.subf %184, %196 : vector<32x128xf32>
    %cst_127 = arith.constant 9.99999974E-6 : f32
    %198 = vector.broadcast %cst_127 : f32 to vector<1x128xf32>
    %199 = arith.addf %195, %198 : vector<1x128xf32>
    %200 = math.rsqrt %199 : vector<1x128xf32>
    %201 = vector.broadcast %200 : vector<1x128xf32> to vector<32x128xf32>
    %202 = arith.mulf %197, %201 : vector<32x128xf32>
    %c4_128 = arith.constant 4 : index
    %c0_129 = arith.constant 0 : index
    %203 = vector.load %arg3[%c4_128, %c0_129] : memref<13x128xf32, #tpu.memory_space<vmem>>, vector<1x128xf32>
    %204 = vector.broadcast %203 : vector<1x128xf32> to vector<32x128xf32>
    %205 = arith.mulf %202, %204 : vector<32x128xf32>
    %c4_130 = arith.constant 4 : index
    %c0_131 = arith.constant 0 : index
    %206 = vector.load %arg4[%c4_130, %c0_131] : memref<13x128xf32, #tpu.memory_space<vmem>>, vector<1x128xf32>
    %207 = vector.broadcast %206 : vector<1x128xf32> to vector<32x128xf32>
    %208 = arith.addf %205, %207 : vector<32x128xf32>
    %cst_132 = arith.constant 0.000000e+00 : f32
    %209 = vector.broadcast %cst_132 : f32 to vector<32x128xf32>
    %210 = arith.maximumf %208, %209 : vector<32x128xf32>
    %c2176 = arith.constant 2176 : index
    %c0_133 = arith.constant 0 : index
    %211 = vector.load %arg1[%c2176, %c0_133] : memref<8576x128xf32, #tpu.memory_space<vmem>>, vector<640x128xf32>
    %212 = vector.shape_cast %210 : vector<32x128xf32> to vector<2x16x128xf32>
    %c0_134 = arith.constant 0 : index
    %c8_135 = arith.constant 8 : index
    %c0_136 = arith.constant 0 : index
    %213 = vector.load %arg6[%c0_134, %c8_135, %c0_136] : memref<2x32x128xf32, #tpu.memory_space<vmem>>, vector<2x16x128xf32>
    tpu.vector_store %arg6[%c0_134, %c8_135, %c0_136], %212 {strides = array<i32>} : memref<2x32x128xf32, #tpu.memory_space<vmem>>, vector<2x16x128xf32>,
    %c0_137 = arith.constant 0 : index
    %c6_138 = arith.constant 6 : index
    %c0_139 = arith.constant 0 : index
    %214 = vector.load %arg6[%c0_137, %c6_138, %c0_139] : memref<2x32x128xf32, #tpu.memory_space<vmem>>, vector<2x16x128xf32>
    %215 = vector.shape_cast %214 : vector<2x16x128xf32> to vector<32x128xf32>
    %c0_140 = arith.constant 0 : index
    %c7_141 = arith.constant 7 : index
    %c0_142 = arith.constant 0 : index
    %216 = vector.load %arg6[%c0_140, %c7_141, %c0_142] : memref<2x32x128xf32, #tpu.memory_space<vmem>>, vector<2x16x128xf32>
    %217 = vector.shape_cast %216 : vector<2x16x128xf32> to vector<32x128xf32>
    %c0_143 = arith.constant 0 : index
    %c8_144 = arith.constant 8 : index
    %c0_145 = arith.constant 0 : index
    %218 = vector.load %arg6[%c0_143, %c8_144, %c0_145] : memref<2x32x128xf32, #tpu.memory_space<vmem>>, vector<2x16x128xf32>
    %219 = vector.shape_cast %218 : vector<2x16x128xf32> to vector<32x128xf32>
    %c0_146 = arith.constant 0 : index
    %c9_147 = arith.constant 9 : index
    %c0_148 = arith.constant 0 : index
    %220 = vector.load %arg6[%c0_146, %c9_147, %c0_148] : memref<2x32x128xf32, #tpu.memory_space<vmem>>, vector<2x16x128xf32>
    %221 = vector.shape_cast %220 : vector<2x16x128xf32> to vector<32x128xf32>
    %c0_149 = arith.constant 0 : index
    %c10_150 = arith.constant 10 : index
    %c0_151 = arith.constant 0 : index
    %222 = vector.load %arg6[%c0_149, %c10_150, %c0_151] : memref<2x32x128xf32, #tpu.memory_space<vmem>>, vector<2x16x128xf32>
    %223 = vector.shape_cast %222 : vector<2x16x128xf32> to vector<32x128xf32>
    %224 = tpu.concatenate %215, %217, %219, %221, %223 in 1 : vector<32x128xf32>, vector<32x128xf32>, vector<32x128xf32>, vector<32x128xf32>, vector<32x128xf32> -> vector<32x640xf32>
    %cst_152 = arith.constant dense<0.000000e+00> : vector<32x128xf32>
    %225 = tpu.matmul %224, %211, %cst_152 {dimension_numbers = #tpu.dot_dimension_numbers<[1], [0], [0], [1], [0, 0, 1, 1], [], []>} : vector<32x640xf32>, vector<640x128xf32>, vector<32x128xf32> -> vector<32x128xf32>
    %c5 = arith.constant 5 : index
    %c0_153 = arith.constant 0 : index
    %226 = vector.load %arg2[%c5, %c0_153] : memref<15x128xf32, #tpu.memory_space<vmem>>, vector<1x128xf32>
    %227 = vector.broadcast %226 : vector<1x128xf32> to vector<32x128xf32>
    %228 = arith.addf %225, %227 : vector<32x128xf32>
    %cst_154 = arith.constant dense<0.000000e+00> : vector<128xf32>
    %229 = vector.multi_reduction <add>, %228, %cst_154 [0] : vector<32x128xf32> to vector<128xf32>
    %230 = vector.shape_cast %229 : vector<128xf32> to vector<1x128xf32>
    %cst_155 = arith.constant 3.200000e+01 : f32
    %231 = vector.broadcast %cst_155 : f32 to vector<1x128xf32>
    %232 = arith.divf %230, %231 : vector<1x128xf32>
    %233 = vector.broadcast %232 : vector<1x128xf32> to vector<32x128xf32>
    %234 = arith.subf %228, %233 : vector<32x128xf32>
    %235 = arith.mulf %234, %234 : vector<32x128xf32>
    %cst_156 = arith.constant dense<0.000000e+00> : vector<128xf32>
    %236 = vector.multi_reduction <add>, %235, %cst_156 [0] : vector<32x128xf32> to vector<128xf32>
    %237 = vector.shape_cast %236 : vector<128xf32> to vector<1x128xf32>
    %cst_157 = arith.constant 3.200000e+01 : f32
    %238 = vector.broadcast %cst_157 : f32 to vector<1x128xf32>
    %239 = arith.divf %237, %238 : vector<1x128xf32>
    %240 = vector.broadcast %232 : vector<1x128xf32> to vector<32x128xf32>
    %241 = arith.subf %228, %240 : vector<32x128xf32>
    %cst_158 = arith.constant 9.99999974E-6 : f32
    %242 = vector.broadcast %cst_158 : f32 to vector<1x128xf32>
    %243 = arith.addf %239, %242 : vector<1x128xf32>
    %244 = math.rsqrt %243 : vector<1x128xf32>
    %245 = vector.broadcast %244 : vector<1x128xf32> to vector<32x128xf32>
    %246 = arith.mulf %241, %245 : vector<32x128xf32>
    %c5_159 = arith.constant 5 : index
    %c0_160 = arith.constant 0 : index
    %247 = vector.load %arg3[%c5_159, %c0_160] : memref<13x128xf32, #tpu.memory_space<vmem>>, vector<1x128xf32>
    %248 = vector.broadcast %247 : vector<1x128xf32> to vector<32x128xf32>
    %249 = arith.mulf %246, %248 : vector<32x128xf32>
    %c5_161 = arith.constant 5 : index
    %c0_162 = arith.constant 0 : index
    %250 = vector.load %arg4[%c5_161, %c0_162] : memref<13x128xf32, #tpu.memory_space<vmem>>, vector<1x128xf32>
    %251 = vector.broadcast %250 : vector<1x128xf32> to vector<32x128xf32>
    %252 = arith.addf %249, %251 : vector<32x128xf32>
    %cst_163 = arith.constant 0.000000e+00 : f32
    %253 = vector.broadcast %cst_163 : f32 to vector<32x128xf32>
    %254 = arith.maximumf %252, %253 : vector<32x128xf32>
    %c2816 = arith.constant 2816 : index
    %c0_164 = arith.constant 0 : index
    %255 = vector.load %arg1[%c2816, %c0_164] : memref<8576x128xf32, #tpu.memory_space<vmem>>, vector<640x128xf32>
    %256 = vector.shape_cast %254 : vector<32x128xf32> to vector<2x16x128xf32>
    %c0_165 = arith.constant 0 : index
    %c8_166 = arith.constant 8 : index
    %c0_167 = arith.constant 0 : index
    %257 = vector.load %arg6[%c0_165, %c8_166, %c0_167] : memref<2x32x128xf32, #tpu.memory_space<vmem>>, vector<2x16x128xf32>
    tpu.vector_store %arg6[%c0_165, %c8_166, %c0_167], %256 {strides = array<i32>} : memref<2x32x128xf32, #tpu.memory_space<vmem>>, vector<2x16x128xf32>,
    %c0_168 = arith.constant 0 : index
    %c6_169 = arith.constant 6 : index
    %c0_170 = arith.constant 0 : index
    %258 = vector.load %arg6[%c0_168, %c6_169, %c0_170] : memref<2x32x128xf32, #tpu.memory_space<vmem>>, vector<2x16x128xf32>
    %259 = vector.shape_cast %258 : vector<2x16x128xf32> to vector<32x128xf32>
    %c0_171 = arith.constant 0 : index
    %c7_172 = arith.constant 7 : index
    %c0_173 = arith.constant 0 : index
    %260 = vector.load %arg6[%c0_171, %c7_172, %c0_173] : memref<2x32x128xf32, #tpu.memory_space<vmem>>, vector<2x16x128xf32>
    %261 = vector.shape_cast %260 : vector<2x16x128xf32> to vector<32x128xf32>
    %c0_174 = arith.constant 0 : index
    %c8_175 = arith.constant 8 : index
    %c0_176 = arith.constant 0 : index
    %262 = vector.load %arg6[%c0_174, %c8_175, %c0_176] : memref<2x32x128xf32, #tpu.memory_space<vmem>>, vector<2x16x128xf32>
    %263 = vector.shape_cast %262 : vector<2x16x128xf32> to vector<32x128xf32>
    %c0_177 = arith.constant 0 : index
    %c9_178 = arith.constant 9 : index
    %c0_179 = arith.constant 0 : index
    %264 = vector.load %arg6[%c0_177, %c9_178, %c0_179] : memref<2x32x128xf32, #tpu.memory_space<vmem>>, vector<2x16x128xf32>
    %265 = vector.shape_cast %264 : vector<2x16x128xf32> to vector<32x128xf32>
    %c0_180 = arith.constant 0 : index
    %c10_181 = arith.constant 10 : index
    %c0_182 = arith.constant 0 : index
    %266 = vector.load %arg6[%c0_180, %c10_181, %c0_182] : memref<2x32x128xf32, #tpu.memory_space<vmem>>, vector<2x16x128xf32>
    %267 = vector.shape_cast %266 : vector<2x16x128xf32> to vector<32x128xf32>
    %268 = tpu.concatenate %259, %261, %263, %265, %267 in 1 : vector<32x128xf32>, vector<32x128xf32>, vector<32x128xf32>, vector<32x128xf32>, vector<32x128xf32> -> vector<32x640xf32>
    %cst_183 = arith.constant dense<0.000000e+00> : vector<32x128xf32>
    %269 = tpu.matmul %268, %255, %cst_183 {dimension_numbers = #tpu.dot_dimension_numbers<[1], [0], [0], [1], [0, 0, 1, 1], [], []>} : vector<32x640xf32>, vector<640x128xf32>, vector<32x128xf32> -> vector<32x128xf32>
    %c6_184 = arith.constant 6 : index
    %c0_185 = arith.constant 0 : index
    %270 = vector.load %arg2[%c6_184, %c0_185] : memref<15x128xf32, #tpu.memory_space<vmem>>, vector<1x128xf32>
    %271 = vector.broadcast %270 : vector<1x128xf32> to vector<32x128xf32>
    %272 = arith.addf %269, %271 : vector<32x128xf32>
    %273 = arith.addf %184, %272 : vector<32x128xf32>
    %cst_186 = arith.constant dense<0.000000e+00> : vector<128xf32>
    %274 = vector.multi_reduction <add>, %273, %cst_186 [0] : vector<32x128xf32> to vector<128xf32>
    %275 = vector.shape_cast %274 : vector<128xf32> to vector<1x128xf32>
    %cst_187 = arith.constant 3.200000e+01 : f32
    %276 = vector.broadcast %cst_187 : f32 to vector<1x128xf32>
    %277 = arith.divf %275, %276 : vector<1x128xf32>
    %278 = vector.broadcast %277 : vector<1x128xf32> to vector<32x128xf32>
    %279 = arith.subf %273, %278 : vector<32x128xf32>
    %280 = arith.mulf %279, %279 : vector<32x128xf32>
    %cst_188 = arith.constant dense<0.000000e+00> : vector<128xf32>
    %281 = vector.multi_reduction <add>, %280, %cst_188 [0] : vector<32x128xf32> to vector<128xf32>
    %282 = vector.shape_cast %281 : vector<128xf32> to vector<1x128xf32>
    %cst_189 = arith.constant 3.200000e+01 : f32
    %283 = vector.broadcast %cst_189 : f32 to vector<1x128xf32>
    %284 = arith.divf %282, %283 : vector<1x128xf32>
    %285 = vector.broadcast %277 : vector<1x128xf32> to vector<32x128xf32>
    %286 = arith.subf %273, %285 : vector<32x128xf32>
    %cst_190 = arith.constant 9.99999974E-6 : f32
    %287 = vector.broadcast %cst_190 : f32 to vector<1x128xf32>
    %288 = arith.addf %284, %287 : vector<1x128xf32>
    %289 = math.rsqrt %288 : vector<1x128xf32>
    %290 = vector.broadcast %289 : vector<1x128xf32> to vector<32x128xf32>
    %291 = arith.mulf %286, %290 : vector<32x128xf32>
    %c6_191 = arith.constant 6 : index
    %c0_192 = arith.constant 0 : index
    %292 = vector.load %arg3[%c6_191, %c0_192] : memref<13x128xf32, #tpu.memory_space<vmem>>, vector<1x128xf32>
    %293 = vector.broadcast %292 : vector<1x128xf32> to vector<32x128xf32>
    %294 = arith.mulf %291, %293 : vector<32x128xf32>
    %c6_193 = arith.constant 6 : index
    %c0_194 = arith.constant 0 : index
    %295 = vector.load %arg4[%c6_193, %c0_194] : memref<13x128xf32, #tpu.memory_space<vmem>>, vector<1x128xf32>
    %296 = vector.broadcast %295 : vector<1x128xf32> to vector<32x128xf32>
    %297 = arith.addf %294, %296 : vector<32x128xf32>
    %cst_195 = arith.constant 0.000000e+00 : f32
    %298 = vector.broadcast %cst_195 : f32 to vector<32x128xf32>
    %299 = arith.maximumf %297, %298 : vector<32x128xf32>
    %c3456 = arith.constant 3456 : index
    %c0_196 = arith.constant 0 : index
    %300 = vector.load %arg1[%c3456, %c0_196] : memref<8576x128xf32, #tpu.memory_space<vmem>>, vector<640x128xf32>
    %301 = vector.shape_cast %299 : vector<32x128xf32> to vector<2x16x128xf32>
    %c0_197 = arith.constant 0 : index
    %c8_198 = arith.constant 8 : index
    %c0_199 = arith.constant 0 : index
    %302 = vector.load %arg6[%c0_197, %c8_198, %c0_199] : memref<2x32x128xf32, #tpu.memory_space<vmem>>, vector<2x16x128xf32>
    tpu.vector_store %arg6[%c0_197, %c8_198, %c0_199], %301 {strides = array<i32>} : memref<2x32x128xf32, #tpu.memory_space<vmem>>, vector<2x16x128xf32>,
    %c0_200 = arith.constant 0 : index
    %c6_201 = arith.constant 6 : index
    %c0_202 = arith.constant 0 : index
    %303 = vector.load %arg6[%c0_200, %c6_201, %c0_202] : memref<2x32x128xf32, #tpu.memory_space<vmem>>, vector<2x16x128xf32>
    %304 = vector.shape_cast %303 : vector<2x16x128xf32> to vector<32x128xf32>
    %c0_203 = arith.constant 0 : index
    %c7_204 = arith.constant 7 : index
    %c0_205 = arith.constant 0 : index
    %305 = vector.load %arg6[%c0_203, %c7_204, %c0_205] : memref<2x32x128xf32, #tpu.memory_space<vmem>>, vector<2x16x128xf32>
    %306 = vector.shape_cast %305 : vector<2x16x128xf32> to vector<32x128xf32>
    %c0_206 = arith.constant 0 : index
    %c8_207 = arith.constant 8 : index
    %c0_208 = arith.constant 0 : index
    %307 = vector.load %arg6[%c0_206, %c8_207, %c0_208] : memref<2x32x128xf32, #tpu.memory_space<vmem>>, vector<2x16x128xf32>
    %308 = vector.shape_cast %307 : vector<2x16x128xf32> to vector<32x128xf32>
    %c0_209 = arith.constant 0 : index
    %c9_210 = arith.constant 9 : index
    %c0_211 = arith.constant 0 : index
    %309 = vector.load %arg6[%c0_209, %c9_210, %c0_211] : memref<2x32x128xf32, #tpu.memory_space<vmem>>, vector<2x16x128xf32>
    %310 = vector.shape_cast %309 : vector<2x16x128xf32> to vector<32x128xf32>
    %c0_212 = arith.constant 0 : index
    %c10_213 = arith.constant 10 : index
    %c0_214 = arith.constant 0 : index
    %311 = vector.load %arg6[%c0_212, %c10_213, %c0_214] : memref<2x32x128xf32, #tpu.memory_space<vmem>>, vector<2x16x128xf32>
    %312 = vector.shape_cast %311 : vector<2x16x128xf32> to vector<32x128xf32>
    %313 = tpu.concatenate %304, %306, %308, %310, %312 in 1 : vector<32x128xf32>, vector<32x128xf32>, vector<32x128xf32>, vector<32x128xf32>, vector<32x128xf32> -> vector<32x640xf32>
    %cst_215 = arith.constant dense<0.000000e+00> : vector<32x128xf32>
    %314 = tpu.matmul %313, %300, %cst_215 {dimension_numbers = #tpu.dot_dimension_numbers<[1], [0], [0], [1], [0, 0, 1, 1], [], []>} : vector<32x640xf32>, vector<640x128xf32>, vector<32x128xf32> -> vector<32x128xf32>
    %c7_216 = arith.constant 7 : index
    %c0_217 = arith.constant 0 : index
    %315 = vector.load %arg2[%c7_216, %c0_217] : memref<15x128xf32, #tpu.memory_space<vmem>>, vector<1x128xf32>
    %316 = vector.broadcast %315 : vector<1x128xf32> to vector<32x128xf32>
    %317 = arith.addf %314, %316 : vector<32x128xf32>
    %cst_218 = arith.constant dense<0.000000e+00> : vector<128xf32>
    %318 = vector.multi_reduction <add>, %317, %cst_218 [0] : vector<32x128xf32> to vector<128xf32>
    %319 = vector.shape_cast %318 : vector<128xf32> to vector<1x128xf32>
    %cst_219 = arith.constant 3.200000e+01 : f32
    %320 = vector.broadcast %cst_219 : f32 to vector<1x128xf32>
    %321 = arith.divf %319, %320 : vector<1x128xf32>
    %322 = vector.broadcast %321 : vector<1x128xf32> to vector<32x128xf32>
    %323 = arith.subf %317, %322 : vector<32x128xf32>
    %324 = arith.mulf %323, %323 : vector<32x128xf32>
    %cst_220 = arith.constant dense<0.000000e+00> : vector<128xf32>
    %325 = vector.multi_reduction <add>, %324, %cst_220 [0] : vector<32x128xf32> to vector<128xf32>
    %326 = vector.shape_cast %325 : vector<128xf32> to vector<1x128xf32>
    %cst_221 = arith.constant 3.200000e+01 : f32
    %327 = vector.broadcast %cst_221 : f32 to vector<1x128xf32>
    %328 = arith.divf %326, %327 : vector<1x128xf32>
    %329 = vector.broadcast %321 : vector<1x128xf32> to vector<32x128xf32>
    %330 = arith.subf %317, %329 : vector<32x128xf32>
    %cst_222 = arith.constant 9.99999974E-6 : f32
    %331 = vector.broadcast %cst_222 : f32 to vector<1x128xf32>
    %332 = arith.addf %328, %331 : vector<1x128xf32>
    %333 = math.rsqrt %332 : vector<1x128xf32>
    %334 = vector.broadcast %333 : vector<1x128xf32> to vector<32x128xf32>
    %335 = arith.mulf %330, %334 : vector<32x128xf32>
    %c7_223 = arith.constant 7 : index
    %c0_224 = arith.constant 0 : index
    %336 = vector.load %arg3[%c7_223, %c0_224] : memref<13x128xf32, #tpu.memory_space<vmem>>, vector<1x128xf32>
    %337 = vector.broadcast %336 : vector<1x128xf32> to vector<32x128xf32>
    %338 = arith.mulf %335, %337 : vector<32x128xf32>
    %c7_225 = arith.constant 7 : index
    %c0_226 = arith.constant 0 : index
    %339 = vector.load %arg4[%c7_225, %c0_226] : memref<13x128xf32, #tpu.memory_space<vmem>>, vector<1x128xf32>
    %340 = vector.broadcast %339 : vector<1x128xf32> to vector<32x128xf32>
    %341 = arith.addf %338, %340 : vector<32x128xf32>
    %cst_227 = arith.constant 0.000000e+00 : f32
    %342 = vector.broadcast %cst_227 : f32 to vector<32x128xf32>
    %343 = arith.maximumf %341, %342 : vector<32x128xf32>
    %c4096 = arith.constant 4096 : index
    %c0_228 = arith.constant 0 : index
    %344 = vector.load %arg1[%c4096, %c0_228] : memref<8576x128xf32, #tpu.memory_space<vmem>>, vector<640x128xf32>
    %345 = vector.shape_cast %343 : vector<32x128xf32> to vector<2x16x128xf32>
    %c0_229 = arith.constant 0 : index
    %c8_230 = arith.constant 8 : index
    %c0_231 = arith.constant 0 : index
    %346 = vector.load %arg6[%c0_229, %c8_230, %c0_231] : memref<2x32x128xf32, #tpu.memory_space<vmem>>, vector<2x16x128xf32>
    tpu.vector_store %arg6[%c0_229, %c8_230, %c0_231], %345 {strides = array<i32>} : memref<2x32x128xf32, #tpu.memory_space<vmem>>, vector<2x16x128xf32>,
    %c0_232 = arith.constant 0 : index
    %c6_233 = arith.constant 6 : index
    %c0_234 = arith.constant 0 : index
    %347 = vector.load %arg6[%c0_232, %c6_233, %c0_234] : memref<2x32x128xf32, #tpu.memory_space<vmem>>, vector<2x16x128xf32>
    %348 = vector.shape_cast %347 : vector<2x16x128xf32> to vector<32x128xf32>
    %c0_235 = arith.constant 0 : index
    %c7_236 = arith.constant 7 : index
    %c0_237 = arith.constant 0 : index
    %349 = vector.load %arg6[%c0_235, %c7_236, %c0_237] : memref<2x32x128xf32, #tpu.memory_space<vmem>>, vector<2x16x128xf32>
    %350 = vector.shape_cast %349 : vector<2x16x128xf32> to vector<32x128xf32>
    %c0_238 = arith.constant 0 : index
    %c8_239 = arith.constant 8 : index
    %c0_240 = arith.constant 0 : index
    %351 = vector.load %arg6[%c0_238, %c8_239, %c0_240] : memref<2x32x128xf32, #tpu.memory_space<vmem>>, vector<2x16x128xf32>
    %352 = vector.shape_cast %351 : vector<2x16x128xf32> to vector<32x128xf32>
    %c0_241 = arith.constant 0 : index
    %c9_242 = arith.constant 9 : index
    %c0_243 = arith.constant 0 : index
    %353 = vector.load %arg6[%c0_241, %c9_242, %c0_243] : memref<2x32x128xf32, #tpu.memory_space<vmem>>, vector<2x16x128xf32>
    %354 = vector.shape_cast %353 : vector<2x16x128xf32> to vector<32x128xf32>
    %c0_244 = arith.constant 0 : index
    %c10_245 = arith.constant 10 : index
    %c0_246 = arith.constant 0 : index
    %355 = vector.load %arg6[%c0_244, %c10_245, %c0_246] : memref<2x32x128xf32, #tpu.memory_space<vmem>>, vector<2x16x128xf32>
    %356 = vector.shape_cast %355 : vector<2x16x128xf32> to vector<32x128xf32>
    %357 = tpu.concatenate %348, %350, %352, %354, %356 in 1 : vector<32x128xf32>, vector<32x128xf32>, vector<32x128xf32>, vector<32x128xf32>, vector<32x128xf32> -> vector<32x640xf32>
    %cst_247 = arith.constant dense<0.000000e+00> : vector<32x128xf32>
    %358 = tpu.matmul %357, %344, %cst_247 {dimension_numbers = #tpu.dot_dimension_numbers<[1], [0], [0], [1], [0, 0, 1, 1], [], []>} : vector<32x640xf32>, vector<640x128xf32>, vector<32x128xf32> -> vector<32x128xf32>
    %c8_248 = arith.constant 8 : index
    %c0_249 = arith.constant 0 : index
    %359 = vector.load %arg2[%c8_248, %c0_249] : memref<15x128xf32, #tpu.memory_space<vmem>>, vector<1x128xf32>
    %360 = vector.broadcast %359 : vector<1x128xf32> to vector<32x128xf32>
    %361 = arith.addf %358, %360 : vector<32x128xf32>
    %362 = arith.addf %273, %361 : vector<32x128xf32>
    %cst_250 = arith.constant dense<0.000000e+00> : vector<128xf32>
    %363 = vector.multi_reduction <add>, %362, %cst_250 [0] : vector<32x128xf32> to vector<128xf32>
    %364 = vector.shape_cast %363 : vector<128xf32> to vector<1x128xf32>
    %cst_251 = arith.constant 3.200000e+01 : f32
    %365 = vector.broadcast %cst_251 : f32 to vector<1x128xf32>
    %366 = arith.divf %364, %365 : vector<1x128xf32>
    %367 = vector.broadcast %366 : vector<1x128xf32> to vector<32x128xf32>
    %368 = arith.subf %362, %367 : vector<32x128xf32>
    %369 = arith.mulf %368, %368 : vector<32x128xf32>
    %cst_252 = arith.constant dense<0.000000e+00> : vector<128xf32>
    %370 = vector.multi_reduction <add>, %369, %cst_252 [0] : vector<32x128xf32> to vector<128xf32>
    %371 = vector.shape_cast %370 : vector<128xf32> to vector<1x128xf32>
    %cst_253 = arith.constant 3.200000e+01 : f32
    %372 = vector.broadcast %cst_253 : f32 to vector<1x128xf32>
    %373 = arith.divf %371, %372 : vector<1x128xf32>
    %374 = vector.broadcast %366 : vector<1x128xf32> to vector<32x128xf32>
    %375 = arith.subf %362, %374 : vector<32x128xf32>
    %cst_254 = arith.constant 9.99999974E-6 : f32
    %376 = vector.broadcast %cst_254 : f32 to vector<1x128xf32>
    %377 = arith.addf %373, %376 : vector<1x128xf32>
    %378 = math.rsqrt %377 : vector<1x128xf32>
    %379 = vector.broadcast %378 : vector<1x128xf32> to vector<32x128xf32>
    %380 = arith.mulf %375, %379 : vector<32x128xf32>
    %c8_255 = arith.constant 8 : index
    %c0_256 = arith.constant 0 : index
    %381 = vector.load %arg3[%c8_255, %c0_256] : memref<13x128xf32, #tpu.memory_space<vmem>>, vector<1x128xf32>
    %382 = vector.broadcast %381 : vector<1x128xf32> to vector<32x128xf32>
    %383 = arith.mulf %380, %382 : vector<32x128xf32>
    %c8_257 = arith.constant 8 : index
    %c0_258 = arith.constant 0 : index
    %384 = vector.load %arg4[%c8_257, %c0_258] : memref<13x128xf32, #tpu.memory_space<vmem>>, vector<1x128xf32>
    %385 = vector.broadcast %384 : vector<1x128xf32> to vector<32x128xf32>
    %386 = arith.addf %383, %385 : vector<32x128xf32>
    %cst_259 = arith.constant 0.000000e+00 : f32
    %387 = vector.broadcast %cst_259 : f32 to vector<32x128xf32>
    %388 = arith.maximumf %386, %387 : vector<32x128xf32>
    %c4736 = arith.constant 4736 : index
    %c0_260 = arith.constant 0 : index
    %389 = vector.load %arg1[%c4736, %c0_260] : memref<8576x128xf32, #tpu.memory_space<vmem>>, vector<896x128xf32>
    %390 = vector.shape_cast %388 : vector<32x128xf32> to vector<2x16x128xf32>
    %c0_261 = arith.constant 0 : index
    %c8_262 = arith.constant 8 : index
    %c0_263 = arith.constant 0 : index
    %391 = vector.load %arg6[%c0_261, %c8_262, %c0_263] : memref<2x32x128xf32, #tpu.memory_space<vmem>>, vector<2x16x128xf32>
    tpu.vector_store %arg6[%c0_261, %c8_262, %c0_263], %390 {strides = array<i32>} : memref<2x32x128xf32, #tpu.memory_space<vmem>>, vector<2x16x128xf32>,
    %c0_264 = arith.constant 0 : index
    %c5_265 = arith.constant 5 : index
    %c0_266 = arith.constant 0 : index
    %392 = vector.load %arg6[%c0_264, %c5_265, %c0_266] : memref<2x32x128xf32, #tpu.memory_space<vmem>>, vector<2x16x128xf32>
    %393 = vector.shape_cast %392 : vector<2x16x128xf32> to vector<32x128xf32>
    %c0_267 = arith.constant 0 : index
    %c6_268 = arith.constant 6 : index
    %c0_269 = arith.constant 0 : index
    %394 = vector.load %arg6[%c0_267, %c6_268, %c0_269] : memref<2x32x128xf32, #tpu.memory_space<vmem>>, vector<2x16x128xf32>
    %395 = vector.shape_cast %394 : vector<2x16x128xf32> to vector<32x128xf32>
    %c0_270 = arith.constant 0 : index
    %c7_271 = arith.constant 7 : index
    %c0_272 = arith.constant 0 : index
    %396 = vector.load %arg6[%c0_270, %c7_271, %c0_272] : memref<2x32x128xf32, #tpu.memory_space<vmem>>, vector<2x16x128xf32>
    %397 = vector.shape_cast %396 : vector<2x16x128xf32> to vector<32x128xf32>
    %c0_273 = arith.constant 0 : index
    %c8_274 = arith.constant 8 : index
    %c0_275 = arith.constant 0 : index
    %398 = vector.load %arg6[%c0_273, %c8_274, %c0_275] : memref<2x32x128xf32, #tpu.memory_space<vmem>>, vector<2x16x128xf32>
    %399 = vector.shape_cast %398 : vector<2x16x128xf32> to vector<32x128xf32>
    %c0_276 = arith.constant 0 : index
    %c9_277 = arith.constant 9 : index
    %c0_278 = arith.constant 0 : index
    %400 = vector.load %arg6[%c0_276, %c9_277, %c0_278] : memref<2x32x128xf32, #tpu.memory_space<vmem>>, vector<2x16x128xf32>
    %401 = vector.shape_cast %400 : vector<2x16x128xf32> to vector<32x128xf32>
    %c0_279 = arith.constant 0 : index
    %c10_280 = arith.constant 10 : index
    %c0_281 = arith.constant 0 : index
    %402 = vector.load %arg6[%c0_279, %c10_280, %c0_281] : memref<2x32x128xf32, #tpu.memory_space<vmem>>, vector<2x16x128xf32>
    %403 = vector.shape_cast %402 : vector<2x16x128xf32> to vector<32x128xf32>
    %c0_282 = arith.constant 0 : index
    %c11 = arith.constant 11 : index
    %c0_283 = arith.constant 0 : index
    %404 = vector.load %arg6[%c0_282, %c11, %c0_283] : memref<2x32x128xf32, #tpu.memory_space<vmem>>, vector<2x16x128xf32>
    %405 = vector.shape_cast %404 : vector<2x16x128xf32> to vector<32x128xf32>
    %406 = tpu.concatenate %393, %395, %397, %399, %401, %403, %405 in 1 : vector<32x128xf32>, vector<32x128xf32>, vector<32x128xf32>, vector<32x128xf32>, vector<32x128xf32>, vector<32x128xf32>, vector<32x128xf32> -> vector<32x896xf32>
    %cst_284 = arith.constant dense<0.000000e+00> : vector<32x128xf32>
    %407 = tpu.matmul %406, %389, %cst_284 {dimension_numbers = #tpu.dot_dimension_numbers<[1], [0], [0], [1], [0, 0, 1, 1], [], []>} : vector<32x896xf32>, vector<896x128xf32>, vector<32x128xf32> -> vector<32x128xf32>
    %c9_285 = arith.constant 9 : index
    %c0_286 = arith.constant 0 : index
    %408 = vector.load %arg2[%c9_285, %c0_286] : memref<15x128xf32, #tpu.memory_space<vmem>>, vector<1x128xf32>
    %409 = vector.broadcast %408 : vector<1x128xf32> to vector<32x128xf32>
    %410 = arith.addf %407, %409 : vector<32x128xf32>
    %cst_287 = arith.constant dense<0.000000e+00> : vector<128xf32>
    %411 = vector.multi_reduction <add>, %410, %cst_287 [0] : vector<32x128xf32> to vector<128xf32>
    %412 = vector.shape_cast %411 : vector<128xf32> to vector<1x128xf32>
    %cst_288 = arith.constant 3.200000e+01 : f32
    %413 = vector.broadcast %cst_288 : f32 to vector<1x128xf32>
    %414 = arith.divf %412, %413 : vector<1x128xf32>
    %415 = vector.broadcast %414 : vector<1x128xf32> to vector<32x128xf32>
    %416 = arith.subf %410, %415 : vector<32x128xf32>
    %417 = arith.mulf %416, %416 : vector<32x128xf32>
    %cst_289 = arith.constant dense<0.000000e+00> : vector<128xf32>
    %418 = vector.multi_reduction <add>, %417, %cst_289 [0] : vector<32x128xf32> to vector<128xf32>
    %419 = vector.shape_cast %418 : vector<128xf32> to vector<1x128xf32>
    %cst_290 = arith.constant 3.200000e+01 : f32
    %420 = vector.broadcast %cst_290 : f32 to vector<1x128xf32>
    %421 = arith.divf %419, %420 : vector<1x128xf32>
    %422 = vector.broadcast %414 : vector<1x128xf32> to vector<32x128xf32>
    %423 = arith.subf %410, %422 : vector<32x128xf32>
    %cst_291 = arith.constant 9.99999974E-6 : f32
    %424 = vector.broadcast %cst_291 : f32 to vector<1x128xf32>
    %425 = arith.addf %421, %424 : vector<1x128xf32>
    %426 = math.rsqrt %425 : vector<1x128xf32>
    %427 = vector.broadcast %426 : vector<1x128xf32> to vector<32x128xf32>
    %428 = arith.mulf %423, %427 : vector<32x128xf32>
    %c9_292 = arith.constant 9 : index
    %c0_293 = arith.constant 0 : index
    %429 = vector.load %arg3[%c9_292, %c0_293] : memref<13x128xf32, #tpu.memory_space<vmem>>, vector<1x128xf32>
    %430 = vector.broadcast %429 : vector<1x128xf32> to vector<32x128xf32>
    %431 = arith.mulf %428, %430 : vector<32x128xf32>
    %c9_294 = arith.constant 9 : index
    %c0_295 = arith.constant 0 : index
    %432 = vector.load %arg4[%c9_294, %c0_295] : memref<13x128xf32, #tpu.memory_space<vmem>>, vector<1x128xf32>
    %433 = vector.broadcast %432 : vector<1x128xf32> to vector<32x128xf32>
    %434 = arith.addf %431, %433 : vector<32x128xf32>
    %cst_296 = arith.constant 0.000000e+00 : f32
    %435 = vector.broadcast %cst_296 : f32 to vector<32x128xf32>
    %436 = arith.maximumf %434, %435 : vector<32x128xf32>
    %c5632 = arith.constant 5632 : index
    %c0_297 = arith.constant 0 : index
    %437 = vector.load %arg1[%c5632, %c0_297] : memref<8576x128xf32, #tpu.memory_space<vmem>>, vector<896x128xf32>
    %438 = vector.shape_cast %436 : vector<32x128xf32> to vector<2x16x128xf32>
    %c0_298 = arith.constant 0 : index
    %c8_299 = arith.constant 8 : index
    %c0_300 = arith.constant 0 : index
    %439 = vector.load %arg6[%c0_298, %c8_299, %c0_300] : memref<2x32x128xf32, #tpu.memory_space<vmem>>, vector<2x16x128xf32>
    tpu.vector_store %arg6[%c0_298, %c8_299, %c0_300], %438 {strides = array<i32>} : memref<2x32x128xf32, #tpu.memory_space<vmem>>, vector<2x16x128xf32>,
    %c0_301 = arith.constant 0 : index
    %c5_302 = arith.constant 5 : index
    %c0_303 = arith.constant 0 : index
    %440 = vector.load %arg6[%c0_301, %c5_302, %c0_303] : memref<2x32x128xf32, #tpu.memory_space<vmem>>, vector<2x16x128xf32>
    %441 = vector.shape_cast %440 : vector<2x16x128xf32> to vector<32x128xf32>
    %c0_304 = arith.constant 0 : index
    %c6_305 = arith.constant 6 : index
    %c0_306 = arith.constant 0 : index
    %442 = vector.load %arg6[%c0_304, %c6_305, %c0_306] : memref<2x32x128xf32, #tpu.memory_space<vmem>>, vector<2x16x128xf32>
    %443 = vector.shape_cast %442 : vector<2x16x128xf32> to vector<32x128xf32>
    %c0_307 = arith.constant 0 : index
    %c7_308 = arith.constant 7 : index
    %c0_309 = arith.constant 0 : index
    %444 = vector.load %arg6[%c0_307, %c7_308, %c0_309] : memref<2x32x128xf32, #tpu.memory_space<vmem>>, vector<2x16x128xf32>
    %445 = vector.shape_cast %444 : vector<2x16x128xf32> to vector<32x128xf32>
    %c0_310 = arith.constant 0 : index
    %c8_311 = arith.constant 8 : index
    %c0_312 = arith.constant 0 : index
    %446 = vector.load %arg6[%c0_310, %c8_311, %c0_312] : memref<2x32x128xf32, #tpu.memory_space<vmem>>, vector<2x16x128xf32>
    %447 = vector.shape_cast %446 : vector<2x16x128xf32> to vector<32x128xf32>
    %c0_313 = arith.constant 0 : index
    %c9_314 = arith.constant 9 : index
    %c0_315 = arith.constant 0 : index
    %448 = vector.load %arg6[%c0_313, %c9_314, %c0_315] : memref<2x32x128xf32, #tpu.memory_space<vmem>>, vector<2x16x128xf32>
    %449 = vector.shape_cast %448 : vector<2x16x128xf32> to vector<32x128xf32>
    %c0_316 = arith.constant 0 : index
    %c10_317 = arith.constant 10 : index
    %c0_318 = arith.constant 0 : index
    %450 = vector.load %arg6[%c0_316, %c10_317, %c0_318] : memref<2x32x128xf32, #tpu.memory_space<vmem>>, vector<2x16x128xf32>
    %451 = vector.shape_cast %450 : vector<2x16x128xf32> to vector<32x128xf32>
    %c0_319 = arith.constant 0 : index
    %c11_320 = arith.constant 11 : index
    %c0_321 = arith.constant 0 : index
    %452 = vector.load %arg6[%c0_319, %c11_320, %c0_321] : memref<2x32x128xf32, #tpu.memory_space<vmem>>, vector<2x16x128xf32>
    %453 = vector.shape_cast %452 : vector<2x16x128xf32> to vector<32x128xf32>
    %454 = tpu.concatenate %441, %443, %445, %447, %449, %451, %453 in 1 : vector<32x128xf32>, vector<32x128xf32>, vector<32x128xf32>, vector<32x128xf32>, vector<32x128xf32>, vector<32x128xf32>, vector<32x128xf32> -> vector<32x896xf32>
    %cst_322 = arith.constant dense<0.000000e+00> : vector<32x128xf32>
    %455 = tpu.matmul %454, %437, %cst_322 {dimension_numbers = #tpu.dot_dimension_numbers<[1], [0], [0], [1], [0, 0, 1, 1], [], []>} : vector<32x896xf32>, vector<896x128xf32>, vector<32x128xf32> -> vector<32x128xf32>
    %c10_323 = arith.constant 10 : index
    %c0_324 = arith.constant 0 : index
    %456 = vector.load %arg2[%c10_323, %c0_324] : memref<15x128xf32, #tpu.memory_space<vmem>>, vector<1x128xf32>
    %457 = vector.broadcast %456 : vector<1x128xf32> to vector<32x128xf32>
    %458 = arith.addf %455, %457 : vector<32x128xf32>
    %459 = arith.addf %362, %458 : vector<32x128xf32>
    %cst_325 = arith.constant dense<0.000000e+00> : vector<128xf32>
    %460 = vector.multi_reduction <add>, %459, %cst_325 [0] : vector<32x128xf32> to vector<128xf32>
    %461 = vector.shape_cast %460 : vector<128xf32> to vector<1x128xf32>
    %cst_326 = arith.constant 3.200000e+01 : f32
    %462 = vector.broadcast %cst_326 : f32 to vector<1x128xf32>
    %463 = arith.divf %461, %462 : vector<1x128xf32>
    %464 = vector.broadcast %463 : vector<1x128xf32> to vector<32x128xf32>
    %465 = arith.subf %459, %464 : vector<32x128xf32>
    %466 = arith.mulf %465, %465 : vector<32x128xf32>
    %cst_327 = arith.constant dense<0.000000e+00> : vector<128xf32>
    %467 = vector.multi_reduction <add>, %466, %cst_327 [0] : vector<32x128xf32> to vector<128xf32>
    %468 = vector.shape_cast %467 : vector<128xf32> to vector<1x128xf32>
    %cst_328 = arith.constant 3.200000e+01 : f32
    %469 = vector.broadcast %cst_328 : f32 to vector<1x128xf32>
    %470 = arith.divf %468, %469 : vector<1x128xf32>
    %471 = vector.broadcast %463 : vector<1x128xf32> to vector<32x128xf32>
    %472 = arith.subf %459, %471 : vector<32x128xf32>
    %cst_329 = arith.constant 9.99999974E-6 : f32
    %473 = vector.broadcast %cst_329 : f32 to vector<1x128xf32>
    %474 = arith.addf %470, %473 : vector<1x128xf32>
    %475 = math.rsqrt %474 : vector<1x128xf32>
    %476 = vector.broadcast %475 : vector<1x128xf32> to vector<32x128xf32>
    %477 = arith.mulf %472, %476 : vector<32x128xf32>
    %c10_330 = arith.constant 10 : index
    %c0_331 = arith.constant 0 : index
    %478 = vector.load %arg3[%c10_330, %c0_331] : memref<13x128xf32, #tpu.memory_space<vmem>>, vector<1x128xf32>
    %479 = vector.broadcast %478 : vector<1x128xf32> to vector<32x128xf32>
    %480 = arith.mulf %477, %479 : vector<32x128xf32>
    %c10_332 = arith.constant 10 : index
    %c0_333 = arith.constant 0 : index
    %481 = vector.load %arg4[%c10_332, %c0_333] : memref<13x128xf32, #tpu.memory_space<vmem>>, vector<1x128xf32>
    %482 = vector.broadcast %481 : vector<1x128xf32> to vector<32x128xf32>
    %483 = arith.addf %480, %482 : vector<32x128xf32>
    %cst_334 = arith.constant 0.000000e+00 : f32
    %484 = vector.broadcast %cst_334 : f32 to vector<32x128xf32>
    %485 = arith.maximumf %483, %484 : vector<32x128xf32>
    %c6528 = arith.constant 6528 : index
    %c0_335 = arith.constant 0 : index
    %486 = vector.load %arg1[%c6528, %c0_335] : memref<8576x128xf32, #tpu.memory_space<vmem>>, vector<896x128xf32>
    %487 = vector.shape_cast %485 : vector<32x128xf32> to vector<2x16x128xf32>
    %c0_336 = arith.constant 0 : index
    %c8_337 = arith.constant 8 : index
    %c0_338 = arith.constant 0 : index
    %488 = vector.load %arg6[%c0_336, %c8_337, %c0_338] : memref<2x32x128xf32, #tpu.memory_space<vmem>>, vector<2x16x128xf32>
    tpu.vector_store %arg6[%c0_336, %c8_337, %c0_338], %487 {strides = array<i32>} : memref<2x32x128xf32, #tpu.memory_space<vmem>>, vector<2x16x128xf32>,
    %c0_339 = arith.constant 0 : index
    %c5_340 = arith.constant 5 : index
    %c0_341 = arith.constant 0 : index
    %489 = vector.load %arg6[%c0_339, %c5_340, %c0_341] : memref<2x32x128xf32, #tpu.memory_space<vmem>>, vector<2x16x128xf32>
    %490 = vector.shape_cast %489 : vector<2x16x128xf32> to vector<32x128xf32>
    %c0_342 = arith.constant 0 : index
    %c6_343 = arith.constant 6 : index
    %c0_344 = arith.constant 0 : index
    %491 = vector.load %arg6[%c0_342, %c6_343, %c0_344] : memref<2x32x128xf32, #tpu.memory_space<vmem>>, vector<2x16x128xf32>
    %492 = vector.shape_cast %491 : vector<2x16x128xf32> to vector<32x128xf32>
    %c0_345 = arith.constant 0 : index
    %c7_346 = arith.constant 7 : index
    %c0_347 = arith.constant 0 : index
    %493 = vector.load %arg6[%c0_345, %c7_346, %c0_347] : memref<2x32x128xf32, #tpu.memory_space<vmem>>, vector<2x16x128xf32>
    %494 = vector.shape_cast %493 : vector<2x16x128xf32> to vector<32x128xf32>
    %c0_348 = arith.constant 0 : index
    %c8_349 = arith.constant 8 : index
    %c0_350 = arith.constant 0 : index
    %495 = vector.load %arg6[%c0_348, %c8_349, %c0_350] : memref<2x32x128xf32, #tpu.memory_space<vmem>>, vector<2x16x128xf32>
    %496 = vector.shape_cast %495 : vector<2x16x128xf32> to vector<32x128xf32>
    %c0_351 = arith.constant 0 : index
    %c9_352 = arith.constant 9 : index
    %c0_353 = arith.constant 0 : index
    %497 = vector.load %arg6[%c0_351, %c9_352, %c0_353] : memref<2x32x128xf32, #tpu.memory_space<vmem>>, vector<2x16x128xf32>
    %498 = vector.shape_cast %497 : vector<2x16x128xf32> to vector<32x128xf32>
    %c0_354 = arith.constant 0 : index
    %c10_355 = arith.constant 10 : index
    %c0_356 = arith.constant 0 : index
    %499 = vector.load %arg6[%c0_354, %c10_355, %c0_356] : memref<2x32x128xf32, #tpu.memory_space<vmem>>, vector<2x16x128xf32>
    %500 = vector.shape_cast %499 : vector<2x16x128xf32> to vector<32x128xf32>
    %c0_357 = arith.constant 0 : index
    %c11_358 = arith.constant 11 : index
    %c0_359 = arith.constant 0 : index
    %501 = vector.load %arg6[%c0_357, %c11_358, %c0_359] : memref<2x32x128xf32, #tpu.memory_space<vmem>>, vector<2x16x128xf32>
    %502 = vector.shape_cast %501 : vector<2x16x128xf32> to vector<32x128xf32>
    %503 = tpu.concatenate %490, %492, %494, %496, %498, %500, %502 in 1 : vector<32x128xf32>, vector<32x128xf32>, vector<32x128xf32>, vector<32x128xf32>, vector<32x128xf32>, vector<32x128xf32>, vector<32x128xf32> -> vector<32x896xf32>
    %cst_360 = arith.constant dense<0.000000e+00> : vector<32x128xf32>
    %504 = tpu.matmul %503, %486, %cst_360 {dimension_numbers = #tpu.dot_dimension_numbers<[1], [0], [0], [1], [0, 0, 1, 1], [], []>} : vector<32x896xf32>, vector<896x128xf32>, vector<32x128xf32> -> vector<32x128xf32>
    %c11_361 = arith.constant 11 : index
    %c0_362 = arith.constant 0 : index
    %505 = vector.load %arg2[%c11_361, %c0_362] : memref<15x128xf32, #tpu.memory_space<vmem>>, vector<1x128xf32>
    %506 = vector.broadcast %505 : vector<1x128xf32> to vector<32x128xf32>
    %507 = arith.addf %504, %506 : vector<32x128xf32>
    %cst_363 = arith.constant dense<0.000000e+00> : vector<128xf32>
    %508 = vector.multi_reduction <add>, %507, %cst_363 [0] : vector<32x128xf32> to vector<128xf32>
    %509 = vector.shape_cast %508 : vector<128xf32> to vector<1x128xf32>
    %cst_364 = arith.constant 3.200000e+01 : f32
    %510 = vector.broadcast %cst_364 : f32 to vector<1x128xf32>
    %511 = arith.divf %509, %510 : vector<1x128xf32>
    %512 = vector.broadcast %511 : vector<1x128xf32> to vector<32x128xf32>
    %513 = arith.subf %507, %512 : vector<32x128xf32>
    %514 = arith.mulf %513, %513 : vector<32x128xf32>
    %cst_365 = arith.constant dense<0.000000e+00> : vector<128xf32>
    %515 = vector.multi_reduction <add>, %514, %cst_365 [0] : vector<32x128xf32> to vector<128xf32>
    %516 = vector.shape_cast %515 : vector<128xf32> to vector<1x128xf32>
    %cst_366 = arith.constant 3.200000e+01 : f32
    %517 = vector.broadcast %cst_366 : f32 to vector<1x128xf32>
    %518 = arith.divf %516, %517 : vector<1x128xf32>
    %519 = vector.broadcast %511 : vector<1x128xf32> to vector<32x128xf32>
    %520 = arith.subf %507, %519 : vector<32x128xf32>
    %cst_367 = arith.constant 9.99999974E-6 : f32
    %521 = vector.broadcast %cst_367 : f32 to vector<1x128xf32>
    %522 = arith.addf %518, %521 : vector<1x128xf32>
    %523 = math.rsqrt %522 : vector<1x128xf32>
    %524 = vector.broadcast %523 : vector<1x128xf32> to vector<32x128xf32>
    %525 = arith.mulf %520, %524 : vector<32x128xf32>
    %c11_368 = arith.constant 11 : index
    %c0_369 = arith.constant 0 : index
    %526 = vector.load %arg3[%c11_368, %c0_369] : memref<13x128xf32, #tpu.memory_space<vmem>>, vector<1x128xf32>
    %527 = vector.broadcast %526 : vector<1x128xf32> to vector<32x128xf32>
    %528 = arith.mulf %525, %527 : vector<32x128xf32>
    %c11_370 = arith.constant 11 : index
    %c0_371 = arith.constant 0 : index
    %529 = vector.load %arg4[%c11_370, %c0_371] : memref<13x128xf32, #tpu.memory_space<vmem>>, vector<1x128xf32>
    %530 = vector.broadcast %529 : vector<1x128xf32> to vector<32x128xf32>
    %531 = arith.addf %528, %530 : vector<32x128xf32>
    %cst_372 = arith.constant 0.000000e+00 : f32
    %532 = vector.broadcast %cst_372 : f32 to vector<32x128xf32>
    %533 = arith.maximumf %531, %532 : vector<32x128xf32>
    %c7424 = arith.constant 7424 : index
    %c0_373 = arith.constant 0 : index
    %534 = vector.load %arg1[%c7424, %c0_373] : memref<8576x128xf32, #tpu.memory_space<vmem>>, vector<896x128xf32>
    %535 = vector.shape_cast %533 : vector<32x128xf32> to vector<2x16x128xf32>
    %c0_374 = arith.constant 0 : index
    %c8_375 = arith.constant 8 : index
    %c0_376 = arith.constant 0 : index
    %536 = vector.load %arg6[%c0_374, %c8_375, %c0_376] : memref<2x32x128xf32, #tpu.memory_space<vmem>>, vector<2x16x128xf32>
    tpu.vector_store %arg6[%c0_374, %c8_375, %c0_376], %535 {strides = array<i32>} : memref<2x32x128xf32, #tpu.memory_space<vmem>>, vector<2x16x128xf32>,
    %c0_377 = arith.constant 0 : index
    %c5_378 = arith.constant 5 : index
    %c0_379 = arith.constant 0 : index
    %537 = vector.load %arg6[%c0_377, %c5_378, %c0_379] : memref<2x32x128xf32, #tpu.memory_space<vmem>>, vector<2x16x128xf32>
    %538 = vector.shape_cast %537 : vector<2x16x128xf32> to vector<32x128xf32>
    %c0_380 = arith.constant 0 : index
    %c6_381 = arith.constant 6 : index
    %c0_382 = arith.constant 0 : index
    %539 = vector.load %arg6[%c0_380, %c6_381, %c0_382] : memref<2x32x128xf32, #tpu.memory_space<vmem>>, vector<2x16x128xf32>
    %540 = vector.shape_cast %539 : vector<2x16x128xf32> to vector<32x128xf32>
    %c0_383 = arith.constant 0 : index
    %c7_384 = arith.constant 7 : index
    %c0_385 = arith.constant 0 : index
    %541 = vector.load %arg6[%c0_383, %c7_384, %c0_385] : memref<2x32x128xf32, #tpu.memory_space<vmem>>, vector<2x16x128xf32>
    %542 = vector.shape_cast %541 : vector<2x16x128xf32> to vector<32x128xf32>
    %c0_386 = arith.constant 0 : index
    %c8_387 = arith.constant 8 : index
    %c0_388 = arith.constant 0 : index
    %543 = vector.load %arg6[%c0_386, %c8_387, %c0_388] : memref<2x32x128xf32, #tpu.memory_space<vmem>>, vector<2x16x128xf32>
    %544 = vector.shape_cast %543 : vector<2x16x128xf32> to vector<32x128xf32>
    %c0_389 = arith.constant 0 : index
    %c9_390 = arith.constant 9 : index
    %c0_391 = arith.constant 0 : index
    %545 = vector.load %arg6[%c0_389, %c9_390, %c0_391] : memref<2x32x128xf32, #tpu.memory_space<vmem>>, vector<2x16x128xf32>
    %546 = vector.shape_cast %545 : vector<2x16x128xf32> to vector<32x128xf32>
    %c0_392 = arith.constant 0 : index
    %c10_393 = arith.constant 10 : index
    %c0_394 = arith.constant 0 : index
    %547 = vector.load %arg6[%c0_392, %c10_393, %c0_394] : memref<2x32x128xf32, #tpu.memory_space<vmem>>, vector<2x16x128xf32>
    %548 = vector.shape_cast %547 : vector<2x16x128xf32> to vector<32x128xf32>
    %c0_395 = arith.constant 0 : index
    %c11_396 = arith.constant 11 : index
    %c0_397 = arith.constant 0 : index
    %549 = vector.load %arg6[%c0_395, %c11_396, %c0_397] : memref<2x32x128xf32, #tpu.memory_space<vmem>>, vector<2x16x128xf32>
    %550 = vector.shape_cast %549 : vector<2x16x128xf32> to vector<32x128xf32>
    %551 = tpu.concatenate %538, %540, %542, %544, %546, %548, %550 in 1 : vector<32x128xf32>, vector<32x128xf32>, vector<32x128xf32>, vector<32x128xf32>, vector<32x128xf32>, vector<32x128xf32>, vector<32x128xf32> -> vector<32x896xf32>
    %cst_398 = arith.constant dense<0.000000e+00> : vector<32x128xf32>
    %552 = tpu.matmul %551, %534, %cst_398 {dimension_numbers = #tpu.dot_dimension_numbers<[1], [0], [0], [1], [0, 0, 1, 1], [], []>} : vector<32x896xf32>, vector<896x128xf32>, vector<32x128xf32> -> vector<32x128xf32>
    %c12 = arith.constant 12 : index
    %c0_399 = arith.constant 0 : index
    %553 = vector.load %arg2[%c12, %c0_399] : memref<15x128xf32, #tpu.memory_space<vmem>>, vector<1x128xf32>
    %554 = vector.broadcast %553 : vector<1x128xf32> to vector<32x128xf32>
    %555 = arith.addf %552, %554 : vector<32x128xf32>
    %556 = arith.addf %459, %555 : vector<32x128xf32>
    %c8320 = arith.constant 8320 : index
    %c0_400 = arith.constant 0 : index
    %557 = vector.load %arg1[%c8320, %c0_400] : memref<8576x128xf32, #tpu.memory_space<vmem>>, vector<128x128xf32>
    %cst_401 = arith.constant dense<0.000000e+00> : vector<32x128xf32>
    %558 = tpu.matmul %556, %557, %cst_401 {dimension_numbers = #tpu.dot_dimension_numbers<[1], [0], [0], [1], [0, 0, 1, 1], [], []>} : vector<32x128xf32>, vector<128x128xf32>, vector<32x128xf32> -> vector<32x128xf32>
    %c13 = arith.constant 13 : index
    %c0_402 = arith.constant 0 : index
    %559 = vector.load %arg2[%c13, %c0_402] : memref<15x128xf32, #tpu.memory_space<vmem>>, vector<1x128xf32>
    %560 = vector.broadcast %559 : vector<1x128xf32> to vector<32x128xf32>
    %561 = arith.addf %558, %560 : vector<32x128xf32>
    %cst_403 = arith.constant dense<0.000000e+00> : vector<128xf32>
    %562 = vector.multi_reduction <add>, %561, %cst_403 [0] : vector<32x128xf32> to vector<128xf32>
    %563 = vector.shape_cast %562 : vector<128xf32> to vector<1x128xf32>
    %cst_404 = arith.constant 3.200000e+01 : f32
    %564 = vector.broadcast %cst_404 : f32 to vector<1x128xf32>
    %565 = arith.divf %563, %564 : vector<1x128xf32>
    %566 = vector.broadcast %565 : vector<1x128xf32> to vector<32x128xf32>
    %567 = arith.subf %561, %566 : vector<32x128xf32>
    %568 = arith.mulf %567, %567 : vector<32x128xf32>
    %cst_405 = arith.constant dense<0.000000e+00> : vector<128xf32>
    %569 = vector.multi_reduction <add>, %568, %cst_405 [0] : vector<32x128xf32> to vector<128xf32>
    %570 = vector.shape_cast %569 : vector<128xf32> to vector<1x128xf32>
    %cst_406 = arith.constant 3.200000e+01 : f32
    %571 = vector.broadcast %cst_406 : f32 to vector<1x128xf32>
    %572 = arith.divf %570, %571 : vector<1x128xf32>
    %573 = vector.broadcast %565 : vector<1x128xf32> to vector<32x128xf32>
    %574 = arith.subf %561, %573 : vector<32x128xf32>
    %cst_407 = arith.constant 9.99999974E-6 : f32
    %575 = vector.broadcast %cst_407 : f32 to vector<1x128xf32>
    %576 = arith.addf %572, %575 : vector<1x128xf32>
    %577 = math.rsqrt %576 : vector<1x128xf32>
    %578 = vector.broadcast %577 : vector<1x128xf32> to vector<32x128xf32>
    %579 = arith.mulf %574, %578 : vector<32x128xf32>
    %c12_408 = arith.constant 12 : index
    %c0_409 = arith.constant 0 : index
    %580 = vector.load %arg3[%c12_408, %c0_409] : memref<13x128xf32, #tpu.memory_space<vmem>>, vector<1x128xf32>
    %581 = vector.broadcast %580 : vector<1x128xf32> to vector<32x128xf32>
    %582 = arith.mulf %579, %581 : vector<32x128xf32>
    %c12_410 = arith.constant 12 : index
    %c0_411 = arith.constant 0 : index
    %583 = vector.load %arg4[%c12_410, %c0_411] : memref<13x128xf32, #tpu.memory_space<vmem>>, vector<1x128xf32>
    %584 = vector.broadcast %583 : vector<1x128xf32> to vector<32x128xf32>
    %585 = arith.addf %582, %584 : vector<32x128xf32>
    %cst_412 = arith.constant 0.000000e+00 : f32
    %586 = vector.broadcast %cst_412 : f32 to vector<32x128xf32>
    %587 = arith.maximumf %585, %586 : vector<32x128xf32>
    %c8448 = arith.constant 8448 : index
    %c0_413 = arith.constant 0 : index
    %588 = vector.load %arg1[%c8448, %c0_413] : memref<8576x128xf32, #tpu.memory_space<vmem>>, vector<128x128xf32>
    %cst_414 = arith.constant dense<0.000000e+00> : vector<32x128xf32>
    %589 = tpu.matmul %587, %588, %cst_414 {dimension_numbers = #tpu.dot_dimension_numbers<[1], [0], [0], [1], [0, 0, 1, 1], [], []>} : vector<32x128xf32>, vector<128x128xf32>, vector<32x128xf32> -> vector<32x128xf32>
    %c14 = arith.constant 14 : index
    %c0_415 = arith.constant 0 : index
    %590 = vector.load %arg2[%c14, %c0_415] : memref<15x128xf32, #tpu.memory_space<vmem>>, vector<1x128xf32>
    %591 = vector.broadcast %590 : vector<1x128xf32> to vector<32x128xf32>
    %592 = arith.addf %589, %591 : vector<32x128xf32>
    %c0_416 = arith.constant 0 : index
    %c0_417 = arith.constant 0 : index
    %593 = vector.load %arg5[%c0_416, %c0_417] : memref<32x128xf32, #tpu.memory_space<vmem>>, vector<32x128xf32>
    tpu.vector_store %arg5[%c0_416, %c0_417], %592 {strides = array<i32>} : memref<32x128xf32, #tpu.memory_space<vmem>>, vector<32x128xf32>,
    return
  }
}

</mosaic_0001>

<bundles_post_ra>
// kernel: net_forward.1
= control target key start
LH: loop header
LB: loop body
LE: loop exit
PB: predicated region body
PF: predicated region fallthrough
CT: control target
= control target key end

     0   :  { %10 = vsyncpa [#allocation4], 0  ;;  %s8274_s0 = inlined_call_operand.vmem [shape: f32[32,128], index: 0, kind: input, shape index: {}]   ;;  %s8275_s1 = inlined_call_operand.hbm [shape: f32[8576,128], index: 1, kind: input, shape index: {}]   ;;  %s8276_s2 = inlined_call_operand.hbm [shape: f32[15,128], index: 2, kind: input, shape index: {}]   ;;  %s8277_s3 = inlined_call_operand.hbm [shape: f32[13,128], index: 3, kind: input, shape index: {}]   ;;  %s8278_s4 = inlined_call_operand.hbm [shape: f32[13,128], index: 4, kind: input, shape index: {}]   ;;  %s8279_s5 = inlined_call_operand.vmem [shape: f32[32,128], index: 5, kind: output, shape index: {}]  }
   0x1   :  { %11 = vsyncpa [#allocation6], 0 }
   0x2   :  { %12 = vsyncpa [#allocation9], 0  ;;  %s8005_s18 = smov [#allocation5]   ;;  %s8006_s20 = smov [#allocation3]  }
   0x3   :  { %s32_s19 = sshll.u32 %s8005_s18, 4  ;;  %s20_s21 = sshll.u32 %s8006_s20, 4  ;;  %s33_s19 = int_to_ptr.vmem [resolvable:$true] %s32_s19  ;;  %s21_s21 = int_to_ptr.vmem [resolvable:$true] %s20_s21 }
   0x4   :  { %s7927_s22 = scalar_lea.vmem %s33_s19, 256  ;;  %p7932_p1 = scmp.lt.s32.totalorder %s33_s19, %s33_s19 }
   0x5   :  { %p7928_p0 = scmp.ne.s32.totalorder %s33_s19, %s7927_s22  ;;  %p7933_p2 = scmp.lt.s32.totalorder %s7927_s22, %s7927_s22 }
   0x7   :  { %p7934_p3 = por %p7933_p2, %p7932_p1 }
   0x9   :  { %p7935_p4 = pnand %p7934_p3, %p7928_p0 }
   0xb   :  { %7938 = shalt.err (!%p7935_p4)
}
   0xc   :  { %s8007_s23 = smov 128   ;;  %s8008_s24 = smov 8  }
   0xd   :  { %38 = dma.hbm_to_vmem [thread:$0]  %s8276_s2, 256, %s33_s19, [#allocation6], %s8007_s23, %s8007_s23, %s8008_s24  }
   0xe   :  { %s7947_s27 = scalar_lea.vmem %s21_s21, 137216  ;;  %p7952_p6 = scmp.lt.s32.totalorder %s21_s21, %s21_s21 }
   0xf   :  { %p7948_p5 = scmp.ne.s32.totalorder %s21_s21, %s7947_s27  ;;  %p7953_p7 = scmp.lt.s32.totalorder %s7947_s27, %s7947_s27 }
  0x11   :  { %p7954_p8 = por %p7953_p7, %p7952_p6 }
  0x13   :  { %p7955_p9 = pnand %p7954_p8, %p7948_p5 }
  0x15   :  { %7958 = shalt.err (!%p7955_p9)
}
  0x16   :  { %26 = dma.hbm_to_vmem [thread:$0]  %s8275_s1, 137216, %s21_s21, [#allocation4], %s8007_s23, %s8007_s23, %s8008_s24  }
  0x17   :  { %s8009_s30 = smov [#allocation7]   ;;  %s8010_s7 = smov [#allocation8]  }
  0x18   :  { %s44_s6 = sshll.u32 %s8009_s30, 4  ;;  %s56_s8 = sshll.u32 %s8010_s7, 4  ;;  %s45_s6 = int_to_ptr.vmem [resolvable:$true] %s44_s6  ;;  %s57_s8 = int_to_ptr.vmem [resolvable:$true] %s56_s8 }
  0x19   :  { %s7967_s2 = scalar_lea.vmem %s45_s6, 256  ;;  %p7972_p11 = scmp.lt.s32.totalorder %s45_s6, %s45_s6 }
  0x1a   :  { %p7968_p10 = scmp.ne.s32.totalorder %s45_s6, %s7967_s2  ;;  %p7973_p12 = scmp.lt.s32.totalorder %s7967_s2, %s7967_s2 }
  0x1c   :  { %p7974_p13 = por %p7973_p12, %p7972_p11 }
  0x1e   :  { %p7975_p0 = pnand %p7974_p13, %p7968_p10 }
  0x20   :  { %7978 = shalt.err (!%p7975_p0)
}
  0x21   :  { %50 = dma.hbm_to_vmem [thread:$0]  %s8277_s3, 256, %s45_s6, [#allocation6], %s8007_s23, %s8007_s23, %s8008_s24  }
  0x22   :  { %s7987_s1 = scalar_lea.vmem %s57_s8, 256  ;;  %p7992_p2 = scmp.lt.s32.totalorder %s57_s8, %s57_s8 }
  0x23   :  { %p7988_p1 = scmp.ne.s32.totalorder %s57_s8, %s7987_s1  ;;  %p7993_p3 = scmp.lt.s32.totalorder %s7987_s1, %s7987_s1 }
  0x25   :  { %p7994_p4 = por %p7993_p3, %p7992_p2 }
  0x27   :  { %p7995_p5 = pnand %p7994_p4, %p7988_p1 }
  0x29   :  { %7998 = shalt.err (!%p7995_p5)
}
  0x2a   :  { %62 = dma.hbm_to_vmem [thread:$0]  %s8278_s4, 256, %s57_s8, [#allocation9], %s8007_s23, %s8007_s23, %s8008_s24  }
  0x2b   :  { %7999 = dma.done.wait [#allocation4], 137216  }
  0x2c   :  { %8000 = vsyncadd [#allocation4], 4294830080 }
  0x2d   :  { %8001 = dma.done.wait [#allocation6], 512  }
  0x2e   :  { %8002 = vsyncadd [#allocation6], 4294966784 }
  0x2f   :  { %8003 = dma.done.wait [#allocation9], 256  }
  0x30   :  { %8004 = vsyncadd [#allocation9], 4294967040  ;;  %v8011_v0 = vmov 0.0   ;;  %v122_v1 = vld [vmem:[#allocation3 + $0xf8] sm:$0xff]  ;;  %v121_v3 = vld [vmem:[#allocation3 + $0xf0] sm:$0xff] }
  0x31   :  { %75 = vst [vmem:[#allocation2] sm:$0xff] %v8011_v0  ;;  %78 = vst [vmem:[#allocation2 + $0x18] sm:$0xff] %v8011_v0  ;;  %v106_v2 = vld [vmem:[#allocation3 + $0x78] sm:$0xff]  ;;  %5840 = vmatprep.subr.mxu0 %v122_v1  ;;  %v105_v5 = vld [vmem:[#allocation3 + $0x70] sm:$0xff] }
  0x32   :  { %79 = vst [vmem:[#allocation2 + $0x20] sm:$0xff] %v8011_v0  ;;  %82 = vst [vmem:[#allocation2 + $0x38] sm:$0xff] %v8011_v0  ;;  %v154_v4 = vld [vmem:[#allocation3 + $0x1f8] sm:$0xff]  ;;  %5841 = vmatpush3.msra.mxu0 %v106_v2  ;;  %v120_v7 = vld [vmem:[#allocation3 + $0xe8] sm:$0xff] }
  0x33   :  { %v138_v6 = vld [vmem:[#allocation3 + $0x178] sm:$0xff]  ;;  %5884 = vmatprep.subr.mxu1 %v154_v4  ;;  %v153_v8 = vld [vmem:[#allocation3 + $0x1f0] sm:$0xff]  ;;  %5842 = vmatprep.subr.mxu0 %v121_v3  ;;  %v104_v9 = vld [vmem:[#allocation3 + $0x68] sm:$0xff] }
  0x34   :  { %5885 = vmatpush3.msra.mxu1 %v138_v6  ;;  %v137_v10 = vld [vmem:[#allocation3 + $0x170] sm:$0xff]  ;;  %v152_v11 = vld [vmem:[#allocation3 + $0x1e8] sm:$0xff]  ;;  %5843 = vmatpush3.msra.mxu0 %v105_v5  ;;  %v119_v12 = vld [vmem:[#allocation3 + $0xe0] sm:$0xff] }
  0x35   :  { %5886 = vmatprep.subr.mxu1 %v153_v8  ;;  %v136_v13 = vld [vmem:[#allocation3 + $0x168] sm:$0xff]  ;;  %5844 = vmatprep.subr.mxu0 %v120_v7  ;;  %v103_v14 = vld [vmem:[#allocation3 + $0x60] sm:$0xff]  ;;  %v118_v16 = vld [vmem:[#allocation3 + $0xd8] sm:$0xff] }
  0x36   :  { %5887 = vmatpush3.msra.mxu1 %v137_v10  ;;  %v151_v15 = vld [vmem:[#allocation3 + $0x1e0] sm:$0xff]  ;;  %5845 = vmatpush3.msra.mxu0 %v104_v9  ;;  %v102_v18 = vld [vmem:[#allocation3 + $0x58] sm:$0xff]  ;;  %v117_v20 = vld [vmem:[#allocation3 + $0xd0] sm:$0xff] }
  0x37   :  { %5888 = vmatprep.subr.mxu1 %v152_v11  ;;  %v135_v17 = vld [vmem:[#allocation3 + $0x160] sm:$0xff]  ;;  %5846 = vmatprep.subr.mxu0 %v119_v12  ;;  %v150_v19 = vld [vmem:[#allocation3 + $0x1d8] sm:$0xff]  ;;  %v101_v22 = vld [vmem:[#allocation3 + $0x50] sm:$0xff] }
  0x38   :  { %5889 = vmatpush3.msra.mxu1 %v136_v13  ;;  %5847 = vmatpush3.msra.mxu0 %v103_v14  ;;  %v134_v21 = vld [vmem:[#allocation3 + $0x158] sm:$0xff]  ;;  %v149_v23 = vld [vmem:[#allocation3 + $0x1d0] sm:$0xff]  ;;  %v116_v24 = vld [vmem:[#allocation3 + $0xc8] sm:$0xff] }
  0x39   :  { %5890 = vmatprep.subr.mxu1 %v151_v15  ;;  %5848 = vmatprep.subr.mxu0 %v118_v16  ;;  %v133_v25 = vld [vmem:[#allocation3 + $0x150] sm:$0xff]  ;;  %v100_v26 = vld [vmem:[#allocation3 + $0x48] sm:$0xff]  ;;  %v115_v28 = vld [vmem:[#allocation3 + $0xc0] sm:$0xff] }
  0x3a   :  { %5891 = vmatpush3.msra.mxu1 %v135_v17  ;;  %5849 = vmatpush3.msra.mxu0 %v102_v18  ;;  %v148_v27 = vld [vmem:[#allocation3 + $0x1c8] sm:$0xff]  ;;  %v99_v30 = vld [vmem:[#allocation3 + $0x40] sm:$0xff]  ;;  %v114_v32 = vld [vmem:[#allocation3 + $0xb8] sm:$0xff] }
  0x3b   :  { %5892 = vmatprep.subr.mxu1 %v150_v19  ;;  %5850 = vmatprep.subr.mxu0 %v117_v20  ;;  %v132_v29 = vld [vmem:[#allocation3 + $0x148] sm:$0xff]  ;;  %v147_v31 = vld [vmem:[#allocation3 + $0x1c0] sm:$0xff]  ;;  %v98_v34 = vld [vmem:[#allocation3 + $0x38] sm:$0xff] }
  0x3c   :  { %5893 = vmatpush3.msra.mxu1 %v134_v21  ;;  %5851 = vmatpush3.msra.mxu0 %v101_v22  ;;  %v131_v33 = vld [vmem:[#allocation3 + $0x140] sm:$0xff]  ;;  %v146_v35 = vld [vmem:[#allocation3 + $0x1b8] sm:$0xff]  ;;  %v113_v36 = vld [vmem:[#allocation3 + $0xb0] sm:$0xff] }
  0x3d   :  { %5894 = vmatprep.subr.mxu1 %v149_v23  ;;  %5852 = vmatprep.subr.mxu0 %v116_v24  ;;  %v130_v37 = vld [vmem:[#allocation3 + $0x138] sm:$0xff]  ;;  %v97_v38 = vld [vmem:[#allocation3 + $0x30] sm:$0xff]  ;;  %v112_v40 = vld [vmem:[#allocation3 + $0xa8] sm:$0xff] }
  0x3e   :  { %5895 = vmatpush3.msra.mxu1 %v133_v25  ;;  %5853 = vmatpush3.msra.mxu0 %v100_v26  ;;  %v145_v39 = vld [vmem:[#allocation3 + $0x1b0] sm:$0xff]  ;;  %v96_v42 = vld [vmem:[#allocation3 + $0x28] sm:$0xff]  ;;  %v111_v43 = vld [vmem:[#allocation3 + $0xa0] sm:$0xff] }
  0x3f   :  { %5896 = vmatprep.subr.mxu1 %v148_v27  ;;  %5854 = vmatprep.subr.mxu0 %v115_v28  ;;  %v129_v41 = vld [vmem:[#allocation3 + $0x130] sm:$0xff]  ;;  %v144_v44 = vld [vmem:[#allocation3 + $0x1a8] sm:$0xff]  ;;  %v8069_v46 = vld [vmem:[%s8274_s0] sm:$0xff] }
  0x40   :  { %5897 = vmatpush3.msra.mxu1 %v132_v29  ;;  %5855 = vmatpush3.msra.mxu0 %v99_v30  ;;  %v128_v45 = vld [vmem:[#allocation3 + $0x128] sm:$0xff]  ;;  %v95_v48 = vld [vmem:[#allocation3 + $0x20] sm:$0xff]  ;;  %v8079_v50 = vld [vmem:[%s8274_s0 + $0x18] sm:$0xff]  ;;  %v87_v51 = vmax.f32 %v8069_v46, 0.0 }
  0x41   :  { %5898 = vmatprep.subr.mxu1 %v147_v31  ;;  %5856 = vmatprep.subr.mxu0 %v114_v32  ;;  %v8074_v47 = vld [vmem:[%s8274_s0 + $0x8] sm:$0xff]  ;;  %v143_v49 = vld [vmem:[#allocation3 + $0x1a0] sm:$0xff]  ;;  %v110_v53 = vld [vmem:[#allocation3 + $0x98] sm:$0xff]  ;;  %v90_v55 = vmax.f32 %v8079_v50, 0.0 }
  0x42   :  { %5899 = vmatpush3.msra.mxu1 %v131_v33  ;;  %5857 = vmatpush3.msra.mxu0 %v98_v34  ;;  %v88_v52 = vmax.f32 %v8074_v47, 0.0  ;;  %v127_v54 = vld [vmem:[#allocation3 + $0x120] sm:$0xff]  ;;  %v94_v56 = vld [vmem:[#allocation3 + $0x18] sm:$0xff]  ;;  %171 = vst [vmem:[#allocation2 + $0x8] sm:$0xff] %v87_v51  ;;  %v109_v58 = vld [vmem:[#allocation3 + $0x90] sm:$0xff] }
  0x43   :  { %5900 = vmatprep.subr.mxu1 %v146_v35  ;;  %5858 = vmatprep.subr.mxu0 %v113_v36  ;;  %v142_v57 = vld [vmem:[#allocation3 + $0x198] sm:$0xff]  ;;  %174 = vst [vmem:[#allocation2 + $0x30] sm:$0xff] %v90_v55  ;;  %v93_v60 = vld [vmem:[#allocation3 + $0x10] sm:$0xff]  ;;  %v108_v62 = vld [vmem:[#allocation3 + $0x88] sm:$0xff] }
  0x44   :  { %5901 = vmatpush3.msra.mxu1 %v130_v37  ;;  %5859 = vmatpush3.msra.mxu0 %v97_v38  ;;  %172 = vst [vmem:[#allocation2 + $0x10] sm:$0xff] %v88_v52  ;;  %v126_v59 = vld [vmem:[#allocation3 + $0x118] sm:$0xff]  ;;  %v141_v61 = vld [vmem:[#allocation3 + $0x190] sm:$0xff]  ;;  %v92_v1 = vld [vmem:[#allocation3 + $0x8] sm:$0xff] }
  0x45   :  { %5902 = vmatprep.subr.mxu1 %v145_v39  ;;  %5860 = vmatprep.subr.mxu0 %v112_v40  ;;  %v125_v63 = vld [vmem:[#allocation3 + $0x110] sm:$0xff]  ;;  %v140_v2 = vld [vmem:[#allocation3 + $0x188] sm:$0xff]  ;;  %v107_v4 = vld [vmem:[#allocation3 + $0x80] sm:$0xff] }
  0x46   :  { %5903 = vmatpush3.msra.mxu1 %v129_v41  ;;  %5861 = vmatpush3.msra.mxu0 %v96_v42  ;;  %v8091_v0 = vld [vmem:[%s8274_s0 + $0x10] sm:$0xff]  ;;  %v91_v5 = vld [vmem:[#allocation3] sm:$0xff]  ;;  %v124_v6 = vld [vmem:[#allocation3 + $0x108] sm:$0xff] }
  0x47   :  { %5904 = vmatprep.subr.mxu1 %v144_v44  ;;  %5862 = vmatprep.subr.mxu0 %v111_v43  ;;  %v89_v3 = vmax.f32 %v8091_v0, 0.0  ;;  %v139_v8 = vld [vmem:[#allocation3 + $0x180] sm:$0xff]  ;;  %v170_v10 = vld [vmem:[#allocation3 + $0x278] sm:$0xff]  ;;  %v169_v13 = vld [vmem:[#allocation3 + $0x270] sm:$0xff] }
  0x48   :  { %5905 = vmatpush3.msra.mxu1 %v128_v45  ;;  %5863 = vmatpush3.msra.mxu0 %v95_v48  ;;  %v123_v11 = vld [vmem:[#allocation3 + $0x100] sm:$0xff]  ;;  %v168_v16 = vld [vmem:[#allocation3 + $0x268] sm:$0xff]  ;;  %v166_v20 = vld [vmem:[#allocation3 + $0x258] sm:$0xff] }
  0x49   :  { %5906 = vmatprep.subr.mxu1 %v143_v49  ;;  %5864 = vmatprep.subr.mxu0 %v110_v53  ;;  %173 = vst [vmem:[#allocation2 + $0x28] sm:$0xff] %v89_v3  ;;  %v179_v7 = vld [vmem:[#allocation2 + $0x7] sm:$0xff]  ;;  %v165_v23 = vld [vmem:[#allocation3 + $0x250] sm:$0xff]  ;;  %v162_v30 = vld [vmem:[#allocation3 + $0x238] sm:$0xff] }
  0x4a   :  { %5907 = vmatpush3.msra.mxu1 %v127_v54  ;;  %5865 = vmatpush3.msra.mxu0 %v94_v56  ;;  %v175_v9 = vld [vmem:[#allocation2 + $0x6] sm:$0xff]  ;;  %v190_v27 = vld [vmem:[#allocation2 + $0x31] sm:$0xff] }
  0x4b   :  { %5908 = vmatprep.subr.mxu1 %v142_v57  ;;  %5866 = vmatprep.subr.mxu0 %v109_v58  ;;  %v187_v12 = vld [vmem:[#allocation2 + $0x9] sm:$0xff]  ;;  %v188_v17 = vld [vmem:[#allocation2 + $0x11] sm:$0xff]  ;;  %v167_v18 = vld [vmem:[#allocation3 + $0x260] sm:$0xff] }
  0x4c   :  { %5909 = vmatpush3.msra.mxu1 %v126_v59  ;;  %5867 = vmatpush3.msra.mxu0 %v93_v60  ;;  %v180_v14 = vld [vmem:[#allocation2 + $0xf] sm:$0xff]  ;;  %v163_v28 = vld [vmem:[#allocation3 + $0x240] sm:$0xff]  ;;  %v158_v34 = vld [vmem:[#allocation3 + $0x218] sm:$0xff] }
  0x4d   :  { %5910 = vmatprep.subr.mxu1 %v141_v61  ;;  %5868 = vmatprep.subr.mxu0 %v108_v62  ;;  %v176_v15 = vld [vmem:[#allocation2 + $0xe] sm:$0xff]  ;;  %v159_v33 = vld [vmem:[#allocation3 + $0x220] sm:$0xff]  ;;  %v543_v41 = vld [vmem:[#allocation3 + $0x378] sm:$0xff] }
  0x4e   :  { %5911 = vmatpush3.msra.mxu1 %v125_v63  ;;  %5869 = vmatpush3.msra.mxu0 %v92_v1  ;;  %v164_v25 = vld [vmem:[#allocation3 + $0x248] sm:$0xff]  ;;  %v161_v31 = vld [vmem:[#allocation3 + $0x230] sm:$0xff]  ;;  %v155_v37 = vld [vmem:[#allocation3 + $0x200] sm:$0xff] }
  0x4f   :  { %5912 = vmatprep.subr.mxu1 %v140_v2  ;;  %5870 = vmatprep.subr.mxu0 %v107_v4  ;;  %v191_v29 = vld [vmem:[#allocation2 + $0xa] sm:$0xff]  ;;  %v192_v38 = vld [vmem:[#allocation2 + $0x12] sm:$0xff]  ;;  %v540_v50 = vld [vmem:[#allocation3 + $0x360] sm:$0xff] }
  0x50   :  { %264 = vmatprep.mubr.f32.mxu0 %v179_v7  ;;  %5871 = vmatpush3.msra.mxu0 %v91_v5  ;;  %v181_v19 = vld [vmem:[#allocation2 + $0x27] sm:$0xff]  ;;  %v182_v24 = vld [vmem:[#allocation2 + $0x2f] sm:$0xff]  ;;  %v559_v42 = vld [vmem:[#allocation3 + $0x3f8] sm:$0xff] }
  0x51   :  { %5913 = vmatpush3.msra.mxu1 %v124_v6  ;;  %265 = vmatmul.mubr.f32.vlgmr.msra.gmra.mxu0 %v175_v9  ;;  %v177_v21 = vld [vmem:[#allocation2 + $0x26] sm:$0xff]  ;;  %v178_v26 = vld [vmem:[#allocation2 + $0x2e] sm:$0xff]  ;;  %v527_v43 = vld [vmem:[#allocation3 + $0x2f8] sm:$0xff] }
  0x52   :  { %5914 = vmatprep.subr.mxu1 %v139_v8  ;;  %7284 = vmatprep.subr.mxu0 %v170_v10  ;;  %v189_v22 = vld [vmem:[#allocation2 + $0x29] sm:$0xff]  ;;  %v194_v40 = vld [vmem:[#allocation2 + $0x32] sm:$0xff]  ;;  %v536_v62 = vld [vmem:[#allocation3 + $0x340] sm:$0xff] }
  0x53   :  { %5915 = vmatpush3.msra.mxu1 %v123_v11  ;;  %349 = vmatprep.mubr.f32.mxu1 %v187_v12  ;;  %v160_v32 = vld [vmem:[#allocation3 + $0x228] sm:$0xff]  ;;  %v157_v35 = vld [vmem:[#allocation3 + $0x210] sm:$0xff]  ;;  %v539_v53 = vld [vmem:[#allocation3 + $0x358] sm:$0xff] }
  0x54   :  { %7285 = vmatpush3.msra.mxu0 %v170_v10  ;;  %350 = vmatmul.mubr.f32.vlgmr.msra.gmra.mxu1 %v87_v51  ;;  %v156_v36 = vld [vmem:[#allocation3 + $0x208] sm:$0xff]  ;;  %v542_v44 = vld [vmem:[#allocation3 + $0x370] sm:$0xff]  ;;  %v556_v51 = vld [vmem:[#allocation3 + $0x3e0] sm:$0xff] }
  0x55   :  { %7286 = vmatprep.subr.mxu0 %v169_v13  ;;  %269 = vmatprep.mubr.f32.mxu0 %v180_v14  ;;  %v193_v39 = vld [vmem:[#allocation2 + $0x2a] sm:$0xff]  ;;  %v555_v54 = vld [vmem:[#allocation3 + $0x3d8] sm:$0xff]  ;;  %v552_v63 = vld [vmem:[#allocation3 + $0x3c0] sm:$0xff] }
  0x56   :  { %7287 = vmatpush3.msra.mxu0 %v169_v13  ;;  %354 = vmatprep.mubr.f32.mxu1 %v188_v17  ;;  %v558_v45 = vld [vmem:[#allocation3 + $0x3f0] sm:$0xff]  ;;  %v541_v47 = vld [vmem:[#allocation3 + $0x368] sm:$0xff]  ;;  %v520_v0 = vld [vmem:[#allocation3 + $0x2c0] sm:$0xff] }
  0x57   :  { %7288 = vmatprep.subr.mxu0 %v168_v16  ;;  %270 = vmatmul.mubr.f32.gmra.mxu0 %v176_v15  ;;  %v526_v46 = vld [vmem:[#allocation3 + $0x2f0] sm:$0xff]  ;;  %v557_v48 = vld [vmem:[#allocation3 + $0x3e8] sm:$0xff]  ;;  %v535_v1 = vld [vmem:[#allocation3 + $0x338] sm:$0xff] }
  0x58   :  { %7289 = vmatpush3.msra.mxu0 %v168_v16  ;;  %355 = vmatmul.mubr.f32.gmra.mxu1 %v88_v52  ;;  %v525_v49 = vld [vmem:[#allocation3 + $0x2e8] sm:$0xff]  ;;  %v524_v52 = vld [vmem:[#allocation3 + $0x2e0] sm:$0xff]  ;;  %v538_v56 = vld [vmem:[#allocation3 + $0x350] sm:$0xff] }
  0x59   :  { %7290 = vmatprep.subr.mxu0 %v167_v18  ;;  %274 = vmatprep.mubr.f32.mxu0 %v181_v19  ;;  %v554_v57 = vld [vmem:[#allocation3 + $0x3d0] sm:$0xff]  ;;  %v537_v59 = vld [vmem:[#allocation3 + $0x348] sm:$0xff]  ;;  %v551_v2 = vld [vmem:[#allocation3 + $0x3b8] sm:$0xff] }
  0x5a   :  { %7291 = vmatpush3.msra.mxu0 %v167_v18  ;;  %359 = vmatprep.mubr.f32.mxu1 %v189_v22  ;;  %v522_v58 = vld [vmem:[#allocation3 + $0x2d0] sm:$0xff]  ;;  %v553_v60 = vld [vmem:[#allocation3 + $0x3c8] sm:$0xff]  ;;  %v532_v10 = vld [vmem:[#allocation3 + $0x320] sm:$0xff] }
  0x5b   :  { %7292 = vmatprep.subr.mxu0 %v166_v20  ;;  %275 = vmatmul.mubr.f32.gmra.mxu0 %v177_v21  ;;  %v521_v61 = vld [vmem:[#allocation3 + $0x2c8] sm:$0xff]  ;;  %v534_v4 = vld [vmem:[#allocation3 + $0x330] sm:$0xff]  ;;  %v548_v11 = vld [vmem:[#allocation3 + $0x3a0] sm:$0xff] }
  0x5c   :  { %7293 = vmatpush3.msra.mxu0 %v166_v20  ;;  %360 = vmatmul.mubr.f32.gmra.mxu1 %v89_v3  ;;  %v519_v3 = vld [vmem:[#allocation3 + $0x2b8] sm:$0xff]  ;;  %v550_v5 = vld [vmem:[#allocation3 + $0x3b0] sm:$0xff]  ;;  %v533_v7 = vld [vmem:[#allocation3 + $0x328] sm:$0xff] }
  0x5d   :  { %7294 = vmatprep.subr.mxu0 %v165_v23  ;;  %279 = vmatprep.mubr.f32.mxu0 %v182_v24  ;;  %v518_v6 = vld [vmem:[#allocation3 + $0x2b0] sm:$0xff]  ;;  %v549_v8 = vld [vmem:[#allocation3 + $0x3a8] sm:$0xff]  ;;  %v516_v12 = vld [vmem:[#allocation3 + $0x2a0] sm:$0xff] }
  0x5e   :  { %7295 = vmatpush3.msra.mxu0 %v165_v23  ;;  %364 = vmatprep.mubr.f32.mxu1 %v190_v27  ;;  %v517_v9 = vld [vmem:[#allocation3 + $0x2a8] sm:$0xff]  ;;  %v531_v13 = vld [vmem:[#allocation3 + $0x318] sm:$0xff]  ;;  %v530_v16 = vld [vmem:[#allocation3 + $0x310] sm:$0xff] }
  0x5f   :  { %7296 = vmatprep.subr.mxu0 %v164_v25  ;;  %280 = vmatmul.mubr.f32.gmra.mxu0 %v178_v26  ;;  %v547_v14 = vld [vmem:[#allocation3 + $0x398] sm:$0xff]  ;;  %v546_v17 = vld [vmem:[#allocation3 + $0x390] sm:$0xff]  ;;  %v529_v19 = vld [vmem:[#allocation3 + $0x308] sm:$0xff] }
  0x60   :  { %7297 = vmatpush3.msra.mxu0 %v164_v25  ;;  %365 = vmatmul.mubr.f32.gmra.mxu1 %v90_v55  ;;  %v523_v55 = vld [vmem:[#allocation3 + $0x2d8] sm:$0xff]  ;;  %v514_v18 = vld [vmem:[#allocation3 + $0x290] sm:$0xff]  ;;  %v545_v20 = vld [vmem:[#allocation3 + $0x388] sm:$0xff] }
  0x61   :  { %7298 = vmatprep.subr.mxu0 %v163_v28  ;;  %7316 = vmatprep.mubr.f32.mxu0 %v191_v29  ;;  %v515_v15 = vld [vmem:[#allocation3 + $0x298] sm:$0xff]  ;;  %v513_v21 = vld [vmem:[#allocation3 + $0x288] sm:$0xff]  ;;  %v528_v22 = vld [vmem:[#allocation3 + $0x300] sm:$0xff] }
  0x62   :  { %7299 = vmatpush3.msra.mxu0 %v163_v28  ;;  %5948 = vmatprep.subr.mxu1 %v543_v41  ;;  %v544_v23 = vld [vmem:[#allocation3 + $0x380] sm:$0xff] }
  0x63   :  { %7300 = vmatprep.subr.mxu0 %v162_v30  ;;  %5949 = vmatpush3.msra.mxu1 %v527_v43  ;;  %v512_v24 = vld [vmem:[#allocation3 + $0x280] sm:$0xff] }
  0x64   :  { %7301 = vmatpush3.msra.mxu0 %v162_v30  ;;  %5950 = vmatprep.subr.mxu1 %v542_v44 }
  0x65   :  { %7302 = vmatprep.subr.mxu0 %v161_v31  ;;  %5951 = vmatpush3.msra.mxu1 %v526_v46 }
  0x66   :  { %7303 = vmatpush3.msra.mxu0 %v161_v31  ;;  %5952 = vmatprep.subr.mxu1 %v541_v47 }
  0x67   :  { %7304 = vmatprep.subr.mxu0 %v160_v32  ;;  %5953 = vmatpush3.msra.mxu1 %v525_v49 }
  0x68   :  { %7305 = vmatpush3.msra.mxu0 %v160_v32  ;;  %5954 = vmatprep.subr.mxu1 %v540_v50 }
  0x69   :  { %7306 = vmatprep.subr.mxu0 %v159_v33  ;;  %5955 = vmatpush3.msra.mxu1 %v524_v52 }
  0x6a   :  { %7307 = vmatpush3.msra.mxu0 %v159_v33  ;;  %5956 = vmatprep.subr.mxu1 %v539_v53 }
  0x6b   :  { %7308 = vmatprep.subr.mxu0 %v158_v34  ;;  %5957 = vmatpush3.msra.mxu1 %v523_v55 }
  0x6c   :  { %7309 = vmatpush3.msra.mxu0 %v158_v34  ;;  %5958 = vmatprep.subr.mxu1 %v538_v56 }
  0x6d   :  { %7310 = vmatprep.subr.mxu0 %v157_v35  ;;  %5959 = vmatpush3.msra.mxu1 %v522_v58 }
  0x6e   :  { %7311 = vmatpush3.msra.mxu0 %v157_v35  ;;  %5960 = vmatprep.subr.mxu1 %v537_v59 }
  0x6f   :  { %7312 = vmatprep.subr.mxu0 %v156_v36  ;;  %5961 = vmatpush3.msra.mxu1 %v521_v61 }
  0x70   :  { %7313 = vmatpush3.msra.mxu0 %v156_v36  ;;  %5962 = vmatprep.subr.mxu1 %v536_v62 }
  0x71   :  { %7314 = vmatprep.subr.mxu0 %v155_v37  ;;  %5963 = vmatpush3.msra.mxu1 %v520_v0 }
  0x72   :  { %7315 = vmatpush3.msra.mxu0 %v155_v37  ;;  %5964 = vmatprep.subr.mxu1 %v535_v1 }
  0x73   :  { %7317 = vmatmul.mubr.f32.vlgmr.msra.gmra.mxu0 %v192_v38  ;;  %7322 = vmatprep.subr.mxu0 %v559_v42 }
  0x74   :  { %7319 = vmatprep.mubr.f32.mxu0 %v193_v39  ;;  %7323 = vmatpush3.msra.mxu0 %v559_v42  ;;  %v5799_v39 = vld [vmem:[#allocation5] ss:$0 sm:$0xff] }
  0x75   :  { %7324 = vmatprep.subr.mxu0 %v558_v45  ;;  %5965 = vmatpush3.msra.mxu1 %v519_v3 }
  0x76   :  { %7325 = vmatpush3.msra.mxu0 %v558_v45  ;;  %5966 = vmatprep.subr.mxu1 %v534_v4 }
  0x77   :  { %7320 = vmatmul.mubr.f32.gmra.mxu0 %v194_v40  ;;  %7326 = vmatprep.subr.mxu0 %v557_v48 }
  0x78   :  { %7327 = vmatpush3.msra.mxu0 %v557_v48  ;;  %5967 = vmatpush3.msra.mxu1 %v518_v6 }
  0x79   :  { %7328 = vmatprep.subr.mxu0 %v556_v51  ;;  %5968 = vmatprep.subr.mxu1 %v533_v7 }
  0x7a   :  { %7329 = vmatpush3.msra.mxu0 %v556_v51  ;;  %5969 = vmatpush3.msra.mxu1 %v517_v9 }
  0x7b   :  { %7330 = vmatprep.subr.mxu0 %v555_v54  ;;  %5970 = vmatprep.subr.mxu1 %v532_v10 }
  0x7c   :  { %7331 = vmatpush3.msra.mxu0 %v555_v54  ;;  %5971 = vmatpush3.msra.mxu1 %v516_v12 }
  0x7d   :  { %7332 = vmatprep.subr.mxu0 %v554_v57  ;;  %5972 = vmatprep.subr.mxu1 %v531_v13 }
  0x7e   :  { %7333 = vmatpush3.msra.mxu0 %v554_v57  ;;  %5973 = vmatpush3.msra.mxu1 %v515_v15 }
  0x7f   :  { %7334 = vmatprep.subr.mxu0 %v553_v60  ;;  %5974 = vmatprep.subr.mxu1 %v530_v16 }
  0x80   :  { %7335 = vmatpush3.msra.mxu0 %v553_v60  ;;  %5975 = vmatpush3.msra.mxu1 %v514_v18 }
  0x81   :  { %7336 = vmatprep.subr.mxu0 %v552_v63  ;;  %5976 = vmatprep.subr.mxu1 %v529_v19 }
  0x82   :  { %7337 = vmatpush3.msra.mxu0 %v552_v63  ;;  %5977 = vmatpush3.msra.mxu1 %v513_v21 }
  0x83   :  { %7338 = vmatprep.subr.mxu0 %v551_v2  ;;  %5978 = vmatprep.subr.mxu1 %v528_v22 }
  0x84   :  { %7339 = vmatpush3.msra.mxu0 %v551_v2  ;;  %5979 = vmatpush3.msra.mxu1 %v512_v24 }
  0x85   :  { %7340 = vmatprep.subr.mxu0 %v550_v5 }
  0x86   :  { %7341 = vmatpush3.msra.mxu0 %v550_v5 }
  0x87   :  { %7342 = vmatprep.subr.mxu0 %v549_v8 }
  0x88   :  { %7343 = vmatpush3.msra.mxu0 %v549_v8 }
  0x89   :  { %7344 = vmatprep.subr.mxu0 %v548_v11 }
  0x8a   :  { %7345 = vmatpush3.msra.mxu0 %v548_v11 }
  0x8b   :  { %7346 = vmatprep.subr.mxu0 %v547_v14 }
  0x8c   :  { %7347 = vmatpush3.msra.mxu0 %v547_v14 }
  0x8d   :  { %7348 = vmatprep.subr.mxu0 %v546_v17 }
  0x8e   :  { %7349 = vmatpush3.msra.mxu0 %v546_v17 }
  0x8f   :  { %7350 = vmatprep.subr.mxu0 %v545_v20 }
  0x90   :  { %7351 = vmatpush3.msra.mxu0 %v545_v20 }
  0x91   :  { %7352 = vmatprep.subr.mxu0 %v544_v23 }
  0x92   :  { %7353 = vmatpush3.msra.mxu0 %v544_v23 }
 0x111   :  { %v5872_v25 = vpop.f32.mrf.mxu0 }
 0x113   :  { %v5873_v26 = vpop.f32.mrf.mxu0 }
 0x114   :  { %v5916_v27 = vpop.f32.mrf.mxu1  ;;  %v5874_v38 = vadd.f32 %v5873_v26, %v5872_v25 }
 0x116   :  { %v5917_v29 = vpop.f32.mrf.mxu1  ;;  %v267_v43 = vadd.f32 %v5874_v38, %v5799_v39 }
 0x117   :  { %v5875_v28 = vpop.f32.mrf.mxu0  ;;  %v5918_v44 = vadd.f32 %v5917_v29, %v5916_v27 }
 0x118   :  { %v5919_v31 = vpop.f32.mrf.mxu1 }
 0x119   :  { %v5876_v30 = vpop.f32.mrf.mxu0  ;;  %v352_v53 = vadd.f32 %v5918_v44, %v267_v43 }
 0x11a   :  { %v5920_v33 = vpop.f32.mrf.mxu1  ;;  %v5877_v40 = vadd.f32 %v5876_v30, %v5875_v28 }
 0x11b   :  { %v5878_v32 = vpop.f32.mrf.mxu0  ;;  %v5921_v47 = vadd.f32 %v5920_v33, %v5919_v31 }
 0x11c   :  { %v5922_v35 = vpop.f32.mrf.mxu1  ;;  %v272_v46 = vadd.f32 %v5877_v40, %v5799_v39 }
 0x11d   :  { %v5879_v34 = vpop.f32.mrf.mxu0 }
 0x11e   :  { %v5923_v37 = vpop.f32.mrf.mxu1  ;;  %v5880_v45 = vadd.f32 %v5879_v34, %v5878_v32  ;;  %v357_v57 = vadd.f32 %v5921_v47, %v272_v46  ;;  %v5800_v32 = vld [vmem:[#allocation7] ss:$0 sm:$0xff] }
 0x11f   :  { %v5881_v36 = vpop.f32.mrf.mxu0  ;;  %v5924_v52 = vadd.f32 %v5923_v37, %v5922_v35  ;;  %v5801_v37 = vld [vmem:[#allocation8] ss:$0 sm:$0xff] }
 0x120   :  { %v5925_v42 = vpop.f32.mrf.mxu1  ;;  %v277_v51 = vadd.f32 %v5880_v45, %v5799_v39 }
 0x121   :  { %v5882_v41 = vpop.f32.mrf.mxu0 }
 0x122   :  { %v5883_v48 = vadd.f32 %v5882_v41, %v5881_v36  ;;  %v5926_v49 = vpop.f32.mrf.mxu1  ;;  %v362_v61 = vadd.f32 %v5924_v52, %v277_v51 }
 0x123   :  { %v5927_v56 = vadd.f32 %v5926_v49, %v5925_v42 }
 0x124   :  { %v282_v55 = vadd.f32 %v5883_v48, %v5799_v39 }
 0x126   :  { %v367_v0 = vadd.f32 %v5927_v56, %v282_v55 }
 0x133   :  { %v7318_v50 = vpop.f32.mrf.mxu0 }
 0x134   :  { %v8100_v60 = vadd.f32 %v7318_v50, %v357_v57 }
 0x135   :  { %v436_v54 = vpop.f32.mrf.mxu0 }
 0x136   :  { %v8098_v58 = vadd.f32 %v436_v54, %v352_v53 }
 0x137   :  { %v7321_v59 = vpop.f32.mrf.mxu0 }
 0x138   :  { %v455_v63 = vadd.f32 %v8100_v60, %v8098_v58  ;;  %v8106_v2 = vadd.f32 %v7321_v59, %v367_v0  ;;  %v838_v59 = vld [vmem:[#allocation3 + $0x4f8] sm:$0xff]  ;;  %v853_v0 = vld [vmem:[#allocation3 + $0x570] sm:$0xff] }
 0x139   :  { %v446_v62 = vpop.f32.mrf.mxu0  ;;  %6012 = vmatprep.subr.mxu1 %v838_v59 }
 0x13a   :  { %v8104_v1 = vadd.f32 %v446_v62, %v362_v61  ;;  %v854_v61 = vld [vmem:[#allocation3 + $0x578] sm:$0xff] }
 0x13b   :  { %v822_v62 = vld [vmem:[#allocation3 + $0x478] sm:$0xff]  ;;  %7360 = vmatprep.subr.mxu0 %v854_v61 }
 0x13c   :  { %v456_v3 = vadd.f32 %v455_v63, %v8104_v1  ;;  %v837_v63 = vld [vmem:[#allocation3 + $0x4f0] sm:$0xff] }
 0x13e   :  { %v457_v4 = vadd.f32 %v456_v3, %v8106_v2  ;;  %v821_v3 = vld [vmem:[#allocation3 + $0x470] sm:$0xff] }
 0x140   :  { %v458_v5 = vrot.slane %v457_v4, 4 }
 0x142   :  { %v459_v6 = vadd.f32 %v458_v5, %v457_v4  ;;  %v836_v4 = vld [vmem:[#allocation3 + $0x4e8] sm:$0xff] }
 0x143   :  { %v852_v5 = vld [vmem:[#allocation3 + $0x568] sm:$0xff] }
 0x144   :  { %v460_v7 = vrot.slane %v459_v6, 2 }
 0x146   :  { %v461_v8 = vadd.f32 %v460_v7, %v459_v6  ;;  %v820_v6 = vld [vmem:[#allocation3 + $0x468] sm:$0xff]  ;;  %v835_v7 = vld [vmem:[#allocation3 + $0x4e0] sm:$0xff] }
 0x148   :  { %v462_v9 = vrot.slane %v461_v8, 1 }
 0x14a   :  { %v463_v10 = vadd.f32 %v462_v9, %v461_v8  ;;  %v851_v8 = vld [vmem:[#allocation3 + $0x560] sm:$0xff] }
 0x14b   :  { %v819_v9 = vld [vmem:[#allocation3 + $0x460] sm:$0xff] }
 0x14c   :  { %v465_v11 = vmul.f32 0.03125, %v463_v10  ;;  %v834_v10 = vld [vmem:[#allocation3 + $0x4d8] sm:$0xff] }
 0x14e   :  { %v466_v12 = vsub.f32 %v8098_v58, %v465_v11  ;;  %v467_v13 = vsub.f32 %v8100_v60, %v465_v11  ;;  %v468_v14 = vsub.f32 %v8104_v1, %v465_v11  ;;  %v469_v15 = vsub.f32 %v8106_v2, %v465_v11  ;;  %v850_v11 = vld [vmem:[#allocation3 + $0x558] sm:$0xff] }
 0x150   :  { %v470_v16 = vmul.f32 %v466_v12, %v466_v12  ;;  %v471_v17 = vmul.f32 %v467_v13, %v467_v13  ;;  %v472_v18 = vmul.f32 %v468_v14, %v468_v14  ;;  %v473_v20 = vmul.f32 %v469_v15, %v469_v15 }
 0x152   :  { %v474_v19 = vadd.f32 %v471_v17, %v470_v16  ;;  %v832_v16 = vld [vmem:[#allocation3 + $0x4c8] sm:$0xff] }
 0x153   :  { %v848_v17 = vld [vmem:[#allocation3 + $0x548] sm:$0xff] }
 0x154   :  { %v475_v21 = vadd.f32 %v474_v19, %v472_v18  ;;  %v816_v18 = vld [vmem:[#allocation3 + $0x448] sm:$0xff]  ;;  %v831_v19 = vld [vmem:[#allocation3 + $0x4c0] sm:$0xff] }
 0x156   :  { %v476_v22 = vadd.f32 %v475_v21, %v473_v20  ;;  %v847_v20 = vld [vmem:[#allocation3 + $0x540] sm:$0xff] }
 0x157   :  { %v815_v21 = vld [vmem:[#allocation3 + $0x440] sm:$0xff] }
 0x158   :  { %v477_v23 = vrot.slane %v476_v22, 4 }
 0x15a   :  { %v478_v24 = vadd.f32 %v477_v23, %v476_v22  ;;  %v830_v22 = vld [vmem:[#allocation3 + $0x4b8] sm:$0xff] }
 0x15b   :  { %v846_v23 = vld [vmem:[#allocation3 + $0x538] sm:$0xff] }
 0x15c   :  { %v479_v25 = vrot.slane %v478_v24, 2 }
 0x15e   :  { %v480_v26 = vadd.f32 %v479_v25, %v478_v24  ;;  %v814_v24 = vld [vmem:[#allocation3 + $0x438] sm:$0xff]  ;;  %v829_v25 = vld [vmem:[#allocation3 + $0x4b0] sm:$0xff] }
 0x160   :  { %v481_v27 = vrot.slane %v480_v26, 1 }
 0x162   :  { %v482_v28 = vadd.f32 %v481_v27, %v480_v26  ;;  %v845_v26 = vld [vmem:[#allocation3 + $0x530] sm:$0xff] }
 0x163   :  { %v813_v27 = vld [vmem:[#allocation3 + $0x430] sm:$0xff] }
 0x164   :  { %v483_v29 = vmul.f32 0.03125, %v482_v28  ;;  %v828_v28 = vld [vmem:[#allocation3 + $0x4a8] sm:$0xff] }
 0x166   :  { %v484_v30 = vadd.f32 1e-05, %v483_v29  ;;  %v844_v29 = vld [vmem:[#allocation3 + $0x528] sm:$0xff] }
 0x168   :  { %7893 = vrsqrt.f32 %v484_v30  ;;  %v812_v30 = vld [vmem:[#allocation3 + $0x428] sm:$0xff] }
 0x175   :  { %v7894_v31 = vpop.eup %7893 }
 0x176   :  { %v486_v33 = vmul.f32 %v7894_v31, %v466_v12  ;;  %v487_v34 = vmul.f32 %v7894_v31, %v467_v13  ;;  %v488_v35 = vmul.f32 %v7894_v31, %v468_v14  ;;  %v489_v36 = vmul.f32 %v7894_v31, %v469_v15  ;;  %v818_v12 = vld [vmem:[#allocation3 + $0x458] sm:$0xff]  ;;  %v833_v13 = vld [vmem:[#allocation3 + $0x4d0] sm:$0xff]  ;;  %v827_v31 = vld [vmem:[#allocation3 + $0x4a0] sm:$0xff] }
 0x177   :  { %v849_v14 = vld [vmem:[#allocation3 + $0x550] sm:$0xff] }
 0x178   :  { %v495_v38 = vmul.f32 %v5800_v32, %v486_v33  ;;  %v496_v39 = vmul.f32 %v5800_v32, %v487_v34  ;;  %v497_v40 = vmul.f32 %v5800_v32, %v488_v35  ;;  %v498_v41 = vmul.f32 %v5800_v32, %v489_v36  ;;  %v817_v15 = vld [vmem:[#allocation3 + $0x450] sm:$0xff]  ;;  %v843_v32 = vld [vmem:[#allocation3 + $0x520] sm:$0xff]  ;;  %v826_v34 = vld [vmem:[#allocation3 + $0x498] sm:$0xff] }
 0x179   :  { %v811_v33 = vld [vmem:[#allocation3 + $0x420] sm:$0xff]  ;;  %v842_v35 = vld [vmem:[#allocation3 + $0x518] sm:$0xff] }
 0x17a   :  { %v504_v42 = vadd.f32 %v5801_v37, %v495_v38  ;;  %v505_v43 = vadd.f32 %v5801_v37, %v496_v39  ;;  %v506_v44 = vadd.f32 %v5801_v37, %v497_v40  ;;  %v507_v45 = vadd.f32 %v5801_v37, %v498_v41  ;;  %v810_v36 = vld [vmem:[#allocation3 + $0x418] sm:$0xff]  ;;  %v825_v37 = vld [vmem:[#allocation3 + $0x490] sm:$0xff]  ;;  %v824_v40 = vld [vmem:[#allocation3 + $0x488] sm:$0xff] }
 0x17b   :  { %v841_v38 = vld [vmem:[#allocation3 + $0x510] sm:$0xff]  ;;  %v840_v41 = vld [vmem:[#allocation3 + $0x508] sm:$0xff] }
 0x17c   :  { %v508_v46 = vmax.f32 %v504_v42, 0.0  ;;  %v509_v47 = vmax.f32 %v505_v43, 0.0  ;;  %v510_v48 = vmax.f32 %v506_v44, 0.0  ;;  %v511_v49 = vmax.f32 %v507_v45, 0.0  ;;  %v809_v39 = vld [vmem:[#allocation3 + $0x410] sm:$0xff]  ;;  %v808_v42 = vld [vmem:[#allocation3 + $0x408] sm:$0xff] }
 0x17d   :  { %v823_v43 = vld [vmem:[#allocation3 + $0x480] sm:$0xff] }
 0x17e   :  { %561 = vst [vmem:[#allocation2 + $0x10] sm:$0xff] %v509_v47  ;;  %562 = vst [vmem:[#allocation2 + $0x28] sm:$0xff] %v510_v48  ;;  %645 = vmatprep.mubr.f32.mxu1 %v508_v46  ;;  %v839_v44 = vld [vmem:[#allocation3 + $0x500] sm:$0xff] }
 0x17f   :  { %563 = vst [vmem:[#allocation2 + $0x30] sm:$0xff] %v511_v49  ;;  %560 = vst [vmem:[#allocation2 + $0x8] sm:$0xff] %v508_v46  ;;  %v807_v45 = vld [vmem:[#allocation3 + $0x400] sm:$0xff] }
 0x185   :  { %v573_v52 = vld [vmem:[#allocation2 + $0x11] sm:$0xff]  ;;  %v566_v56 = vld [vmem:[#allocation2 + $0x27] sm:$0xff] }
 0x186   :  { %v572_v50 = vld [vmem:[#allocation2 + $0x9] sm:$0xff]  ;;  %v575_v55 = vld [vmem:[#allocation2 + $0x31] sm:$0xff] }
 0x187   :  { %v564_v51 = vld [vmem:[#allocation2 + $0x7] sm:$0xff]  ;;  %7354 = vmatprep.mubr.f32.mxu0 %v572_v50  ;;  %v565_v54 = vld [vmem:[#allocation2 + $0xf] sm:$0xff] }
 0x188   :  { %646 = vmatmul.mubr.f32.vlgmr.msra.gmra.mxu1 %v564_v51  ;;  %v574_v53 = vld [vmem:[#allocation2 + $0x29] sm:$0xff]  ;;  %7355 = vmatmul.mubr.f32.vlgmr.msra.gmra.mxu0 %v573_v52 }
 0x189   :  { %650 = vmatprep.mubr.f32.mxu1 %v509_v47  ;;  %7357 = vmatprep.mubr.f32.mxu0 %v574_v53  ;;  %v567_v57 = vld [vmem:[#allocation2 + $0x2f] sm:$0xff] }
 0x18a   :  { %6013 = vmatpush3.msra.mxu1 %v822_v62  ;;  %7361 = vmatpush3.msra.mxu0 %v854_v61 }
 0x18b   :  { %6014 = vmatprep.subr.mxu1 %v837_v63  ;;  %7362 = vmatprep.subr.mxu0 %v853_v0 }
 0x18c   :  { %651 = vmatmul.mubr.f32.gmra.mxu1 %v565_v54  ;;  %7358 = vmatmul.mubr.f32.gmra.mxu0 %v575_v55  ;;  %v5802_v54 = vld [vmem:[#allocation5 + $0x1] ss:$0 sm:$0xff] }
 0x18d   :  { %655 = vmatprep.mubr.f32.mxu1 %v510_v48  ;;  %6015 = vmatpush3.msra.mxu1 %v821_v3 }
 0x18e   :  { %7363 = vmatpush3.msra.mxu0 %v853_v0  ;;  %6016 = vmatprep.subr.mxu1 %v836_v4 }
 0x18f   :  { %7364 = vmatprep.subr.mxu0 %v852_v5  ;;  %6017 = vmatpush3.msra.mxu1 %v820_v6 }
 0x190   :  { %656 = vmatmul.mubr.f32.gmra.mxu1 %v566_v56  ;;  %7365 = vmatpush3.msra.mxu0 %v852_v5 }
 0x191   :  { %660 = vmatprep.mubr.f32.mxu1 %v511_v49  ;;  %6018 = vmatprep.subr.mxu1 %v835_v7 }
 0x192   :  { %7366 = vmatprep.subr.mxu0 %v851_v8  ;;  %6019 = vmatpush3.msra.mxu1 %v819_v9 }
 0x193   :  { %7367 = vmatpush3.msra.mxu0 %v851_v8  ;;  %6020 = vmatprep.subr.mxu1 %v834_v10 }
 0x194   :  { %661 = vmatmul.mubr.f32.gmra.mxu1 %v567_v57  ;;  %7368 = vmatprep.subr.mxu0 %v850_v11 }
 0x195   :  { %6021 = vmatpush3.msra.mxu1 %v818_v12  ;;  %7369 = vmatpush3.msra.mxu0 %v850_v11 }
 0x196   :  { %6022 = vmatprep.subr.mxu1 %v833_v13  ;;  %7370 = vmatprep.subr.mxu0 %v849_v14 }
 0x197   :  { %6023 = vmatpush3.msra.mxu1 %v817_v15  ;;  %7371 = vmatpush3.msra.mxu0 %v849_v14 }
 0x198   :  { %6024 = vmatprep.subr.mxu1 %v832_v16  ;;  %7372 = vmatprep.subr.mxu0 %v848_v17 }
 0x199   :  { %6025 = vmatpush3.msra.mxu1 %v816_v18  ;;  %7373 = vmatpush3.msra.mxu0 %v848_v17 }
 0x19a   :  { %6026 = vmatprep.subr.mxu1 %v831_v19  ;;  %7374 = vmatprep.subr.mxu0 %v847_v20 }
 0x19b   :  { %6027 = vmatpush3.msra.mxu1 %v815_v21  ;;  %7375 = vmatpush3.msra.mxu0 %v847_v20 }
 0x19c   :  { %6028 = vmatprep.subr.mxu1 %v830_v22  ;;  %7376 = vmatprep.subr.mxu0 %v846_v23 }
 0x19d   :  { %6029 = vmatpush3.msra.mxu1 %v814_v24  ;;  %7377 = vmatpush3.msra.mxu0 %v846_v23 }
 0x19e   :  { %6030 = vmatprep.subr.mxu1 %v829_v25  ;;  %7378 = vmatprep.subr.mxu0 %v845_v26 }
 0x19f   :  { %6031 = vmatpush3.msra.mxu1 %v813_v27  ;;  %7379 = vmatpush3.msra.mxu0 %v845_v26 }
 0x1a0   :  { %6032 = vmatprep.subr.mxu1 %v828_v28  ;;  %7380 = vmatprep.subr.mxu0 %v844_v29 }
 0x1a1   :  { %6033 = vmatpush3.msra.mxu1 %v812_v30  ;;  %7381 = vmatpush3.msra.mxu0 %v844_v29 }
 0x1a2   :  { %6034 = vmatprep.subr.mxu1 %v827_v31  ;;  %7382 = vmatprep.subr.mxu0 %v843_v32 }
 0x1a3   :  { %6035 = vmatpush3.msra.mxu1 %v811_v33  ;;  %7383 = vmatpush3.msra.mxu0 %v843_v32 }
 0x1a4   :  { %6036 = vmatprep.subr.mxu1 %v826_v34  ;;  %7384 = vmatprep.subr.mxu0 %v842_v35 }
 0x1a5   :  { %6037 = vmatpush3.msra.mxu1 %v810_v36  ;;  %7385 = vmatpush3.msra.mxu0 %v842_v35 }
 0x1a6   :  { %6038 = vmatprep.subr.mxu1 %v825_v37  ;;  %7386 = vmatprep.subr.mxu0 %v841_v38 }
 0x1a7   :  { %6039 = vmatpush3.msra.mxu1 %v809_v39  ;;  %7387 = vmatpush3.msra.mxu0 %v841_v38 }
 0x1a8   :  { %6040 = vmatprep.subr.mxu1 %v824_v40  ;;  %7388 = vmatprep.subr.mxu0 %v840_v41 }
 0x1a9   :  { %6041 = vmatpush3.msra.mxu1 %v808_v42  ;;  %7389 = vmatpush3.msra.mxu0 %v840_v41  ;;  %v5803_v41 = vld [vmem:[#allocation7 + $0x1] ss:$0 sm:$0xff] }
 0x1aa   :  { %6042 = vmatprep.subr.mxu1 %v823_v43  ;;  %7390 = vmatprep.subr.mxu0 %v839_v44 }
 0x1ab   :  { %6043 = vmatpush3.msra.mxu1 %v807_v45  ;;  %7391 = vmatpush3.msra.mxu0 %v839_v44 }
 0x248   :  { %v5980_v46 = vpop.f32.mrf.mxu1  ;;  %v7356_v47 = vpop.f32.mrf.mxu0 }
 0x24a   :  { %v5981_v48 = vpop.f32.mrf.mxu1  ;;  %v732_v50 = vpop.f32.mrf.mxu0 }
 0x24b   :  { %v5982_v52 = vadd.f32 %v5981_v48, %v5980_v46  ;;  %v5804_v46 = vld [vmem:[#allocation8 + $0x1] ss:$0 sm:$0xff] }
 0x24c   :  { %v5983_v49 = vpop.f32.mrf.mxu1  ;;  %v7359_v57 = vpop.f32.mrf.mxu0 }
 0x24d   :  { %v648_v61 = vadd.f32 %v5982_v52, %v5802_v54 }
 0x24e   :  { %v5984_v51 = vpop.f32.mrf.mxu1  ;;  %v742_v4 = vpop.f32.mrf.mxu0 }
 0x24f   :  { %v5985_v53 = vadd.f32 %v5984_v51, %v5983_v49  ;;  %v733_v6 = vadd.f32 %v732_v50, %v648_v61 }
 0x250   :  { %v5986_v55 = vpop.f32.mrf.mxu1 }
 0x251   :  { %v653_v56 = vadd.f32 %v5985_v53, %v5802_v54 }
 0x252   :  { %v5987_v59 = vpop.f32.mrf.mxu1 }
 0x253   :  { %v5988_v62 = vadd.f32 %v5987_v59, %v5986_v55  ;;  %v738_v0 = vadd.f32 %v7356_v47, %v653_v56 }
 0x254   :  { %v5989_v63 = vpop.f32.mrf.mxu1 }
 0x255   :  { %v658_v3 = vadd.f32 %v5988_v62, %v5802_v54  ;;  %v751_v9 = vadd.f32 %v738_v0, %v733_v6 }
 0x256   :  { %v5990_v5 = vpop.f32.mrf.mxu1 }
 0x257   :  { %v743_v7 = vadd.f32 %v742_v4, %v658_v3  ;;  %v5991_v8 = vadd.f32 %v5990_v5, %v5989_v63 }
 0x259   :  { %v663_v10 = vadd.f32 %v5991_v8, %v5802_v54  ;;  %v752_v11 = vadd.f32 %v751_v9, %v743_v7  ;;  %v1153_v8 = vld [vmem:[#allocation3 + $0x6f8] sm:$0xff] }
 0x25a   :  { %v1121_v9 = vld [vmem:[#allocation3 + $0x5f8] sm:$0xff]  ;;  %7398 = vmatprep.subr.mxu0 %v1153_v8 }
 0x25b   :  { %v748_v12 = vadd.f32 %v7359_v57, %v663_v10  ;;  %v1136_v10 = vld [vmem:[#allocation3 + $0x670] sm:$0xff] }
 0x25d   :  { %v753_v13 = vadd.f32 %v752_v11, %v748_v12  ;;  %v1152_v11 = vld [vmem:[#allocation3 + $0x6f0] sm:$0xff] }
 0x25f   :  { %v754_v14 = vrot.slane %v753_v13, 4 }
 0x261   :  { %v755_v15 = vadd.f32 %v754_v14, %v753_v13  ;;  %v1135_v13 = vld [vmem:[#allocation3 + $0x668] sm:$0xff] }
 0x262   :  { %v1151_v14 = vld [vmem:[#allocation3 + $0x6e8] sm:$0xff] }
 0x263   :  { %v756_v16 = vrot.slane %v755_v15, 2 }
 0x265   :  { %v757_v17 = vadd.f32 %v756_v16, %v755_v15  ;;  %v1119_v15 = vld [vmem:[#allocation3 + $0x5e8] sm:$0xff]  ;;  %v1134_v16 = vld [vmem:[#allocation3 + $0x660] sm:$0xff] }
 0x267   :  { %v758_v18 = vrot.slane %v757_v17, 1 }
 0x269   :  { %v759_v19 = vadd.f32 %v758_v18, %v757_v17  ;;  %v1150_v17 = vld [vmem:[#allocation3 + $0x6e0] sm:$0xff] }
 0x26a   :  { %v1118_v18 = vld [vmem:[#allocation3 + $0x5e0] sm:$0xff] }
 0x26b   :  { %v760_v20 = vmul.f32 0.03125, %v759_v19  ;;  %v1133_v19 = vld [vmem:[#allocation3 + $0x658] sm:$0xff] }
 0x26d   :  { %v761_v21 = vsub.f32 %v733_v6, %v760_v20  ;;  %v762_v22 = vsub.f32 %v738_v0, %v760_v20  ;;  %v763_v23 = vsub.f32 %v743_v7, %v760_v20  ;;  %v764_v24 = vsub.f32 %v748_v12, %v760_v20  ;;  %v1137_v7 = vld [vmem:[#allocation3 + $0x678] sm:$0xff]  ;;  %v1120_v12 = vld [vmem:[#allocation3 + $0x5f0] sm:$0xff] }
 0x26e   :  { %6076 = vmatprep.subr.mxu1 %v1137_v7  ;;  %v1149_v20 = vld [vmem:[#allocation3 + $0x6d8] sm:$0xff] }
 0x26f   :  { %v765_v25 = vmul.f32 %v761_v21, %v761_v21  ;;  %v766_v26 = vmul.f32 %v762_v22, %v762_v22  ;;  %v767_v27 = vmul.f32 %v763_v23, %v763_v23  ;;  %v768_v29 = vmul.f32 %v764_v24, %v764_v24 }
 0x271   :  { %v769_v28 = vadd.f32 %v766_v26, %v765_v25  ;;  %v1131_v25 = vld [vmem:[#allocation3 + $0x648] sm:$0xff] }
 0x272   :  { %v1147_v26 = vld [vmem:[#allocation3 + $0x6c8] sm:$0xff] }
 0x273   :  { %v770_v30 = vadd.f32 %v769_v28, %v767_v27  ;;  %v1115_v27 = vld [vmem:[#allocation3 + $0x5c8] sm:$0xff]  ;;  %v1130_v28 = vld [vmem:[#allocation3 + $0x640] sm:$0xff] }
 0x275   :  { %v771_v31 = vadd.f32 %v770_v30, %v768_v29  ;;  %v1146_v29 = vld [vmem:[#allocation3 + $0x6c0] sm:$0xff] }
 0x276   :  { %v1114_v30 = vld [vmem:[#allocation3 + $0x5c0] sm:$0xff] }
 0x277   :  { %v772_v32 = vrot.slane %v771_v31, 4 }
 0x279   :  { %v773_v33 = vadd.f32 %v772_v32, %v771_v31  ;;  %v1129_v31 = vld [vmem:[#allocation3 + $0x638] sm:$0xff] }
 0x27a   :  { %v1145_v32 = vld [vmem:[#allocation3 + $0x6b8] sm:$0xff] }
 0x27b   :  { %v774_v34 = vrot.slane %v773_v33, 2 }
 0x27d   :  { %v775_v35 = vadd.f32 %v774_v34, %v773_v33  ;;  %v1113_v33 = vld [vmem:[#allocation3 + $0x5b8] sm:$0xff]  ;;  %v1128_v34 = vld [vmem:[#allocation3 + $0x630] sm:$0xff] }
 0x27f   :  { %v776_v36 = vrot.slane %v775_v35, 1 }
 0x281   :  { %v777_v37 = vadd.f32 %v776_v36, %v775_v35  ;;  %v1144_v35 = vld [vmem:[#allocation3 + $0x6b0] sm:$0xff] }
 0x282   :  { %v1112_v36 = vld [vmem:[#allocation3 + $0x5b0] sm:$0xff] }
 0x283   :  { %v778_v38 = vmul.f32 0.03125, %v777_v37  ;;  %v1127_v37 = vld [vmem:[#allocation3 + $0x628] sm:$0xff] }
 0x285   :  { %v779_v39 = vadd.f32 1e-05, %v778_v38  ;;  %v1143_v38 = vld [vmem:[#allocation3 + $0x6a8] sm:$0xff] }
 0x287   :  { %7895 = vrsqrt.f32 %v779_v39  ;;  %v1111_v39 = vld [vmem:[#allocation3 + $0x5a8] sm:$0xff] }
 0x294   :  { %v7896_v40 = vpop.eup %7895 }
 0x295   :  { %v781_v42 = vmul.f32 %v7896_v40, %v761_v21  ;;  %v782_v43 = vmul.f32 %v7896_v40, %v762_v22  ;;  %v783_v44 = vmul.f32 %v7896_v40, %v763_v23  ;;  %v784_v45 = vmul.f32 %v7896_v40, %v764_v24  ;;  %v1117_v21 = vld [vmem:[#allocation3 + $0x5d8] sm:$0xff]  ;;  %v1132_v22 = vld [vmem:[#allocation3 + $0x650] sm:$0xff]  ;;  %v1126_v40 = vld [vmem:[#allocation3 + $0x620] sm:$0xff] }
 0x296   :  { %v1148_v23 = vld [vmem:[#allocation3 + $0x6d0] sm:$0xff] }
 0x297   :  { %v790_v47 = vmul.f32 %v5803_v41, %v781_v42  ;;  %v791_v48 = vmul.f32 %v5803_v41, %v782_v43  ;;  %v792_v49 = vmul.f32 %v5803_v41, %v783_v44  ;;  %v793_v50 = vmul.f32 %v5803_v41, %v784_v45  ;;  %v1116_v24 = vld [vmem:[#allocation3 + $0x5d0] sm:$0xff]  ;;  %v1142_v41 = vld [vmem:[#allocation3 + $0x6a0] sm:$0xff]  ;;  %v1125_v43 = vld [vmem:[#allocation3 + $0x618] sm:$0xff] }
 0x298   :  { %v1110_v42 = vld [vmem:[#allocation3 + $0x5a0] sm:$0xff]  ;;  %v1141_v44 = vld [vmem:[#allocation3 + $0x698] sm:$0xff] }
 0x299   :  { %v799_v51 = vadd.f32 %v5804_v46, %v790_v47  ;;  %v800_v52 = vadd.f32 %v5804_v46, %v791_v48  ;;  %v801_v53 = vadd.f32 %v5804_v46, %v792_v49  ;;  %v802_v54 = vadd.f32 %v5804_v46, %v793_v50  ;;  %v1109_v45 = vld [vmem:[#allocation3 + $0x598] sm:$0xff]  ;;  %v1124_v46 = vld [vmem:[#allocation3 + $0x610] sm:$0xff]  ;;  %v1123_v49 = vld [vmem:[#allocation3 + $0x608] sm:$0xff] }
 0x29a   :  { %v1140_v47 = vld [vmem:[#allocation3 + $0x690] sm:$0xff]  ;;  %v1139_v50 = vld [vmem:[#allocation3 + $0x688] sm:$0xff] }
 0x29b   :  { %v803_v55 = vmax.f32 %v799_v51, 0.0  ;;  %v804_v56 = vmax.f32 %v800_v52, 0.0  ;;  %v805_v57 = vmax.f32 %v801_v53, 0.0  ;;  %v806_v59 = vmax.f32 %v802_v54, 0.0  ;;  %v1108_v48 = vld [vmem:[#allocation3 + $0x590] sm:$0xff]  ;;  %v1107_v51 = vld [vmem:[#allocation3 + $0x588] sm:$0xff] }
 0x29c   :  { %v1122_v52 = vld [vmem:[#allocation3 + $0x600] sm:$0xff] }
 0x29d   :  { %857 = vst [vmem:[#allocation2 + $0x28] sm:$0xff] %v805_v57  ;;  %858 = vst [vmem:[#allocation2 + $0x30] sm:$0xff] %v806_v59  ;;  %940 = vmatprep.mubr.f32.mxu1 %v803_v55  ;;  %v1138_v53 = vld [vmem:[#allocation3 + $0x680] sm:$0xff] }
 0x29e   :  { %855 = vst [vmem:[#allocation2 + $0x8] sm:$0xff] %v803_v55  ;;  %856 = vst [vmem:[#allocation2 + $0x10] sm:$0xff] %v804_v56  ;;  %v1106_v54 = vld [vmem:[#allocation3 + $0x580] sm:$0xff] }
 0x2a4   :  { %v869_v0 = vld [vmem:[#allocation2 + $0x29] sm:$0xff]  ;;  %v870_v4 = vld [vmem:[#allocation2 + $0x31] sm:$0xff] }
 0x2a5   :  { %v867_v61 = vld [vmem:[#allocation2 + $0x9] sm:$0xff]  ;;  %v868_v63 = vld [vmem:[#allocation2 + $0x11] sm:$0xff] }
 0x2a6   :  { %v859_v62 = vld [vmem:[#allocation2 + $0x7] sm:$0xff]  ;;  %7392 = vmatprep.mubr.f32.mxu0 %v867_v61  ;;  %v860_v3 = vld [vmem:[#allocation2 + $0xf] sm:$0xff] }
 0x2a7   :  { %941 = vmatmul.mubr.f32.vlgmr.msra.gmra.mxu1 %v859_v62  ;;  %7393 = vmatmul.mubr.f32.vlgmr.msra.gmra.mxu0 %v868_v63  ;;  %v861_v5 = vld [vmem:[#allocation2 + $0x27] sm:$0xff]  ;;  %v862_v6 = vld [vmem:[#allocation2 + $0x2f] sm:$0xff]  ;;  %v5805_v62 = vld [vmem:[#allocation5 + $0x2] ss:$0 sm:$0xff] }
 0x2a8   :  { %945 = vmatprep.mubr.f32.mxu1 %v804_v56  ;;  %7395 = vmatprep.mubr.f32.mxu0 %v869_v0 }
 0x2a9   :  { %6077 = vmatpush3.msra.mxu1 %v1121_v9  ;;  %7399 = vmatpush3.msra.mxu0 %v1153_v8 }
 0x2aa   :  { %6078 = vmatprep.subr.mxu1 %v1136_v10  ;;  %7400 = vmatprep.subr.mxu0 %v1152_v11 }
 0x2ab   :  { %946 = vmatmul.mubr.f32.gmra.mxu1 %v860_v3  ;;  %7396 = vmatmul.mubr.f32.gmra.mxu0 %v870_v4 }
 0x2ac   :  { %950 = vmatprep.mubr.f32.mxu1 %v805_v57  ;;  %6079 = vmatpush3.msra.mxu1 %v1120_v12 }
 0x2ad   :  { %7401 = vmatpush3.msra.mxu0 %v1152_v11  ;;  %6080 = vmatprep.subr.mxu1 %v1135_v13 }
 0x2ae   :  { %7402 = vmatprep.subr.mxu0 %v1151_v14  ;;  %6081 = vmatpush3.msra.mxu1 %v1119_v15 }
 0x2af   :  { %951 = vmatmul.mubr.f32.gmra.mxu1 %v861_v5  ;;  %7403 = vmatpush3.msra.mxu0 %v1151_v14 }
 0x2b0   :  { %955 = vmatprep.mubr.f32.mxu1 %v806_v59  ;;  %6082 = vmatprep.subr.mxu1 %v1134_v16 }
 0x2b1   :  { %7404 = vmatprep.subr.mxu0 %v1150_v17  ;;  %6083 = vmatpush3.msra.mxu1 %v1118_v18 }
 0x2b2   :  { %7405 = vmatpush3.msra.mxu0 %v1150_v17  ;;  %6084 = vmatprep.subr.mxu1 %v1133_v19 }
 0x2b3   :  { %956 = vmatmul.mubr.f32.gmra.mxu1 %v862_v6  ;;  %7406 = vmatprep.subr.mxu0 %v1149_v20 }
 0x2b4   :  { %6085 = vmatpush3.msra.mxu1 %v1117_v21  ;;  %7407 = vmatpush3.msra.mxu0 %v1149_v20 }
 0x2b5   :  { %6086 = vmatprep.subr.mxu1 %v1132_v22  ;;  %7408 = vmatprep.subr.mxu0 %v1148_v23 }
 0x2b6   :  { %6087 = vmatpush3.msra.mxu1 %v1116_v24  ;;  %7409 = vmatpush3.msra.mxu0 %v1148_v23 }
 0x2b7   :  { %6088 = vmatprep.subr.mxu1 %v1131_v25  ;;  %7410 = vmatprep.subr.mxu0 %v1147_v26 }
 0x2b8   :  { %6089 = vmatpush3.msra.mxu1 %v1115_v27  ;;  %7411 = vmatpush3.msra.mxu0 %v1147_v26 }
 0x2b9   :  { %6090 = vmatprep.subr.mxu1 %v1130_v28  ;;  %7412 = vmatprep.subr.mxu0 %v1146_v29 }
 0x2ba   :  { %6091 = vmatpush3.msra.mxu1 %v1114_v30  ;;  %7413 = vmatpush3.msra.mxu0 %v1146_v29 }
 0x2bb   :  { %6092 = vmatprep.subr.mxu1 %v1129_v31  ;;  %7414 = vmatprep.subr.mxu0 %v1145_v32 }
 0x2bc   :  { %6093 = vmatpush3.msra.mxu1 %v1113_v33  ;;  %7415 = vmatpush3.msra.mxu0 %v1145_v32 }
 0x2bd   :  { %6094 = vmatprep.subr.mxu1 %v1128_v34  ;;  %7416 = vmatprep.subr.mxu0 %v1144_v35 }
 0x2be   :  { %6095 = vmatpush3.msra.mxu1 %v1112_v36  ;;  %7417 = vmatpush3.msra.mxu0 %v1144_v35 }
 0x2bf   :  { %6096 = vmatprep.subr.mxu1 %v1127_v37  ;;  %7418 = vmatprep.subr.mxu0 %v1143_v38 }
 0x2c0   :  { %6097 = vmatpush3.msra.mxu1 %v1111_v39  ;;  %7419 = vmatpush3.msra.mxu0 %v1143_v38 }
 0x2c1   :  { %6098 = vmatprep.subr.mxu1 %v1126_v40  ;;  %7420 = vmatprep.subr.mxu0 %v1142_v41 }
 0x2c2   :  { %6099 = vmatpush3.msra.mxu1 %v1110_v42  ;;  %7421 = vmatpush3.msra.mxu0 %v1142_v41 }
 0x2c3   :  { %6100 = vmatprep.subr.mxu1 %v1125_v43  ;;  %7422 = vmatprep.subr.mxu0 %v1141_v44 }
 0x2c4   :  { %6101 = vmatpush3.msra.mxu1 %v1109_v45  ;;  %7423 = vmatpush3.msra.mxu0 %v1141_v44 }
 0x2c5   :  { %6102 = vmatprep.subr.mxu1 %v1124_v46  ;;  %7424 = vmatprep.subr.mxu0 %v1140_v47 }
 0x2c6   :  { %6103 = vmatpush3.msra.mxu1 %v1108_v48  ;;  %7425 = vmatpush3.msra.mxu0 %v1140_v47 }
 0x2c7   :  { %6104 = vmatprep.subr.mxu1 %v1123_v49  ;;  %7426 = vmatprep.subr.mxu0 %v1139_v50 }
 0x2c8   :  { %6105 = vmatpush3.msra.mxu1 %v1107_v51  ;;  %7427 = vmatpush3.msra.mxu0 %v1139_v50  ;;  %v5806_v50 = vld [vmem:[#allocation7 + $0x2] ss:$0 sm:$0xff] }
 0x2c9   :  { %6106 = vmatprep.subr.mxu1 %v1122_v52  ;;  %7428 = vmatprep.subr.mxu0 %v1138_v53 }
 0x2ca   :  { %6107 = vmatpush3.msra.mxu1 %v1106_v54  ;;  %7429 = vmatpush3.msra.mxu0 %v1138_v53 }
 0x367   :  { %v6044_v55 = vpop.f32.mrf.mxu1  ;;  %v7394_v56 = vpop.f32.mrf.mxu0 }
 0x369   :  { %v6045_v57 = vpop.f32.mrf.mxu1  ;;  %v1027_v63 = vpop.f32.mrf.mxu0 }
 0x36a   :  { %v6046_v61 = vadd.f32 %v6045_v57, %v6044_v55  ;;  %v5807_v55 = vld [vmem:[#allocation8 + $0x2] ss:$0 sm:$0xff] }
 0x36b   :  { %v6047_v59 = vpop.f32.mrf.mxu1  ;;  %v7397_v7 = vpop.f32.mrf.mxu0 }
 0x36c   :  { %v943_v5 = vadd.f32 %v6046_v61, %v5805_v62 }
 0x36d   :  { %v6048_v0 = vpop.f32.mrf.mxu1  ;;  %v1037_v14 = vpop.f32.mrf.mxu0 }
 0x36e   :  { %v6049_v3 = vadd.f32 %v6048_v0, %v6047_v59  ;;  %v1028_v12 = vadd.f32 %v1027_v63, %v943_v5 }
 0x36f   :  { %v6050_v4 = vpop.f32.mrf.mxu1 }
 0x370   :  { %v948_v6 = vadd.f32 %v6049_v3, %v5805_v62  ;;  %v8118_v19 = vadd.f32 %v1028_v12, %v8098_v58 }
 0x371   :  { %v6051_v8 = vpop.f32.mrf.mxu1 }
 0x372   :  { %v1033_v9 = vadd.f32 %v7394_v56, %v948_v6  ;;  %v6052_v10 = vadd.f32 %v6051_v8, %v6050_v4 }
 0x373   :  { %v6053_v11 = vpop.f32.mrf.mxu1 }
 0x374   :  { %v953_v13 = vadd.f32 %v6052_v10, %v5805_v62  ;;  %v8115_v16 = vadd.f32 %v1033_v9, %v8100_v60 }
 0x375   :  { %v6054_v15 = vpop.f32.mrf.mxu1 }
 0x376   :  { %v1038_v17 = vadd.f32 %v1037_v14, %v953_v13  ;;  %v6055_v18 = vadd.f32 %v6054_v15, %v6053_v11  ;;  %v1050_v22 = vadd.f32 %v8115_v16, %v8118_v19 }
 0x378   :  { %v8121_v20 = vadd.f32 %v1038_v17, %v8104_v1  ;;  %v958_v21 = vadd.f32 %v6055_v18, %v5805_v62  ;;  %v1432_v17 = vld [vmem:[#allocation3 + $0x7f8] sm:$0xff] }
 0x379   :  { %6140 = vmatprep.subr.mxu1 %v1432_v17  ;;  %v1448_v18 = vld [vmem:[#allocation3 + $0x878] sm:$0xff] }
 0x37a   :  { %v1043_v23 = vadd.f32 %v7397_v7, %v958_v21  ;;  %v1051_v24 = vadd.f32 %v1050_v22, %v8121_v20  ;;  %v1416_v21 = vld [vmem:[#allocation3 + $0x778] sm:$0xff]  ;;  %7436 = vmatprep.subr.mxu0 %v1448_v18  ;;  %v1431_v22 = vld [vmem:[#allocation3 + $0x7f0] sm:$0xff] }
 0x37c   :  { %v8127_v25 = vadd.f32 %v1043_v23, %v8106_v2  ;;  %v1447_v23 = vld [vmem:[#allocation3 + $0x870] sm:$0xff] }
 0x37e   :  { %v1052_v60 = vadd.f32 %v1051_v24, %v8127_v25  ;;  %v1415_v24 = vld [vmem:[#allocation3 + $0x770] sm:$0xff] }
 0x380   :  { %v1053_v26 = vrot.slane %v1052_v60, 4 }
 0x382   :  { %v1054_v27 = vadd.f32 %v1053_v26, %v1052_v60  ;;  %v1430_v60 = vld [vmem:[#allocation3 + $0x7e8] sm:$0xff] }
 0x383   :  { %v1446_v26 = vld [vmem:[#allocation3 + $0x868] sm:$0xff] }
 0x384   :  { %v1055_v28 = vrot.slane %v1054_v27, 2 }
 0x386   :  { %v1056_v58 = vadd.f32 %v1055_v28, %v1054_v27  ;;  %v1414_v27 = vld [vmem:[#allocation3 + $0x768] sm:$0xff]  ;;  %v1429_v28 = vld [vmem:[#allocation3 + $0x7e0] sm:$0xff] }
 0x388   :  { %v1057_v29 = vrot.slane %v1056_v58, 1 }
 0x38a   :  { %v1058_v30 = vadd.f32 %v1057_v29, %v1056_v58  ;;  %v1445_v58 = vld [vmem:[#allocation3 + $0x860] sm:$0xff] }
 0x38b   :  { %v1413_v29 = vld [vmem:[#allocation3 + $0x760] sm:$0xff] }
 0x38c   :  { %v1059_v1 = vmul.f32 0.03125, %v1058_v30  ;;  %v1428_v30 = vld [vmem:[#allocation3 + $0x7d8] sm:$0xff] }
 0x38e   :  { %v1060_v31 = vsub.f32 %v8118_v19, %v1059_v1  ;;  %v1061_v32 = vsub.f32 %v8115_v16, %v1059_v1  ;;  %v1062_v33 = vsub.f32 %v8121_v20, %v1059_v1  ;;  %v1063_v34 = vsub.f32 %v8127_v25, %v1059_v1  ;;  %v1444_v1 = vld [vmem:[#allocation3 + $0x858] sm:$0xff] }
 0x390   :  { %v1064_v35 = vmul.f32 %v1060_v31, %v1060_v31  ;;  %v1065_v2 = vmul.f32 %v1061_v32, %v1061_v32  ;;  %v1066_v36 = vmul.f32 %v1062_v33, %v1062_v33  ;;  %v1067_v38 = vmul.f32 %v1063_v34, %v1063_v34 }
 0x392   :  { %v1068_v37 = vadd.f32 %v1065_v2, %v1064_v35  ;;  %v1426_v35 = vld [vmem:[#allocation3 + $0x7c8] sm:$0xff] }
 0x393   :  { %v1442_v2 = vld [vmem:[#allocation3 + $0x848] sm:$0xff] }
 0x394   :  { %v1069_v39 = vadd.f32 %v1068_v37, %v1066_v36  ;;  %v1410_v36 = vld [vmem:[#allocation3 + $0x748] sm:$0xff]  ;;  %v1425_v37 = vld [vmem:[#allocation3 + $0x7c0] sm:$0xff] }
 0x396   :  { %v1070_v40 = vadd.f32 %v1069_v39, %v1067_v38  ;;  %v1441_v38 = vld [vmem:[#allocation3 + $0x840] sm:$0xff] }
 0x397   :  { %v1409_v39 = vld [vmem:[#allocation3 + $0x740] sm:$0xff] }
 0x398   :  { %v1071_v41 = vrot.slane %v1070_v40, 4 }
 0x39a   :  { %v1072_v42 = vadd.f32 %v1071_v41, %v1070_v40  ;;  %v1424_v40 = vld [vmem:[#allocation3 + $0x7b8] sm:$0xff] }
 0x39b   :  { %v1440_v41 = vld [vmem:[#allocation3 + $0x838] sm:$0xff] }
 0x39c   :  { %v1073_v43 = vrot.slane %v1072_v42, 2 }
 0x39e   :  { %v1074_v44 = vadd.f32 %v1073_v43, %v1072_v42  ;;  %v1408_v42 = vld [vmem:[#allocation3 + $0x738] sm:$0xff]  ;;  %v1423_v43 = vld [vmem:[#allocation3 + $0x7b0] sm:$0xff] }
 0x3a0   :  { %v1075_v45 = vrot.slane %v1074_v44, 1 }
 0x3a2   :  { %v1076_v46 = vadd.f32 %v1075_v45, %v1074_v44  ;;  %v1439_v44 = vld [vmem:[#allocation3 + $0x830] sm:$0xff] }
 0x3a3   :  { %v1407_v45 = vld [vmem:[#allocation3 + $0x730] sm:$0xff] }
 0x3a4   :  { %v1077_v47 = vmul.f32 0.03125, %v1076_v46  ;;  %v1422_v46 = vld [vmem:[#allocation3 + $0x7a8] sm:$0xff] }
 0x3a6   :  { %v1078_v48 = vadd.f32 1e-05, %v1077_v47  ;;  %v1438_v47 = vld [vmem:[#allocation3 + $0x828] sm:$0xff] }
 0x3a8   :  { %7897 = vrsqrt.f32 %v1078_v48  ;;  %v1406_v48 = vld [vmem:[#allocation3 + $0x728] sm:$0xff] }
 0x3b5   :  { %v7898_v49 = vpop.eup %7897 }
 0x3b6   :  { %v1080_v51 = vmul.f32 %v7898_v49, %v1060_v31  ;;  %v1081_v52 = vmul.f32 %v7898_v49, %v1061_v32  ;;  %v1082_v53 = vmul.f32 %v7898_v49, %v1062_v33  ;;  %v1083_v54 = vmul.f32 %v7898_v49, %v1063_v34  ;;  %v1412_v31 = vld [vmem:[#allocation3 + $0x758] sm:$0xff]  ;;  %v1427_v32 = vld [vmem:[#allocation3 + $0x7d0] sm:$0xff]  ;;  %v1421_v49 = vld [vmem:[#allocation3 + $0x7a0] sm:$0xff] }
 0x3b7   :  { %v1443_v33 = vld [vmem:[#allocation3 + $0x850] sm:$0xff] }
 0x3b8   :  { %v1089_v56 = vmul.f32 %v5806_v50, %v1080_v51  ;;  %v1090_v57 = vmul.f32 %v5806_v50, %v1081_v52  ;;  %v1091_v59 = vmul.f32 %v5806_v50, %v1082_v53  ;;  %v1092_v61 = vmul.f32 %v5806_v50, %v1083_v54  ;;  %v1411_v34 = vld [vmem:[#allocation3 + $0x750] sm:$0xff]  ;;  %v1437_v50 = vld [vmem:[#allocation3 + $0x820] sm:$0xff]  ;;  %v1420_v52 = vld [vmem:[#allocation3 + $0x798] sm:$0xff] }
 0x3b9   :  { %v1405_v51 = vld [vmem:[#allocation3 + $0x720] sm:$0xff]  ;;  %v1436_v53 = vld [vmem:[#allocation3 + $0x818] sm:$0xff] }
 0x3ba   :  { %v1098_v62 = vadd.f32 %v5807_v55, %v1089_v56  ;;  %v1099_v63 = vadd.f32 %v5807_v55, %v1090_v57  ;;  %v1100_v0 = vadd.f32 %v5807_v55, %v1091_v59  ;;  %v1101_v3 = vadd.f32 %v5807_v55, %v1092_v61  ;;  %v1404_v54 = vld [vmem:[#allocation3 + $0x718] sm:$0xff]  ;;  %v1419_v55 = vld [vmem:[#allocation3 + $0x790] sm:$0xff]  ;;  %v1418_v59 = vld [vmem:[#allocation3 + $0x788] sm:$0xff] }
 0x3bb   :  { %v1435_v56 = vld [vmem:[#allocation3 + $0x810] sm:$0xff]  ;;  %v1434_v61 = vld [vmem:[#allocation3 + $0x808] sm:$0xff] }
 0x3bc   :  { %v1102_v4 = vmax.f32 %v1098_v62, 0.0  ;;  %v1103_v5 = vmax.f32 %v1099_v63, 0.0  ;;  %v1104_v6 = vmax.f32 %v1100_v0, 0.0  ;;  %v1105_v7 = vmax.f32 %v1101_v3, 0.0  ;;  %v1403_v57 = vld [vmem:[#allocation3 + $0x710] sm:$0xff]  ;;  %v1402_v62 = vld [vmem:[#allocation3 + $0x708] sm:$0xff] }
 0x3bd   :  { %v1417_v63 = vld [vmem:[#allocation3 + $0x780] sm:$0xff] }
 0x3be   :  { %1154 = vst [vmem:[#allocation2 + $0x8] sm:$0xff] %v1102_v4  ;;  %1155 = vst [vmem:[#allocation2 + $0x10] sm:$0xff] %v1103_v5  ;;  %1239 = vmatprep.mubr.f32.mxu1 %v1102_v4  ;;  %v1433_v0 = vld [vmem:[#allocation3 + $0x800] sm:$0xff] }
 0x3bf   :  { %1156 = vst [vmem:[#allocation2 + $0x28] sm:$0xff] %v1104_v6  ;;  %1157 = vst [vmem:[#allocation2 + $0x30] sm:$0xff] %v1105_v7  ;;  %v1401_v3 = vld [vmem:[#allocation3 + $0x700] sm:$0xff] }
 0x3c5   :  { %v1166_v8 = vld [vmem:[#allocation2 + $0x9] sm:$0xff]  ;;  %v1167_v10 = vld [vmem:[#allocation2 + $0x11] sm:$0xff] }
 0x3c6   :  { %v1158_v9 = vld [vmem:[#allocation2 + $0x7] sm:$0xff]  ;;  %7430 = vmatprep.mubr.f32.mxu0 %v1166_v8  ;;  %v1159_v12 = vld [vmem:[#allocation2 + $0xf] sm:$0xff] }
 0x3c7   :  { %1240 = vmatmul.mubr.f32.vlgmr.msra.gmra.mxu1 %v1158_v9  ;;  %7431 = vmatmul.mubr.f32.vlgmr.msra.gmra.mxu0 %v1167_v10  ;;  %v1168_v11 = vld [vmem:[#allocation2 + $0x29] sm:$0xff]  ;;  %v1169_v13 = vld [vmem:[#allocation2 + $0x31] sm:$0xff] }
 0x3c8   :  { %1244 = vmatprep.mubr.f32.mxu1 %v1103_v5  ;;  %7433 = vmatprep.mubr.f32.mxu0 %v1168_v11  ;;  %v1160_v14 = vld [vmem:[#allocation2 + $0x27] sm:$0xff]  ;;  %v1161_v15 = vld [vmem:[#allocation2 + $0x2f] sm:$0xff] }
 0x3c9   :  { %6141 = vmatpush3.msra.mxu1 %v1416_v21  ;;  %7437 = vmatpush3.msra.mxu0 %v1448_v18 }
 0x3ca   :  { %6142 = vmatprep.subr.mxu1 %v1431_v22  ;;  %7438 = vmatprep.subr.mxu0 %v1447_v23 }
 0x3cb   :  { %1245 = vmatmul.mubr.f32.gmra.mxu1 %v1159_v12  ;;  %7434 = vmatmul.mubr.f32.gmra.mxu0 %v1169_v13  ;;  %v5808_v12 = vld [vmem:[#allocation5 + $0x3] ss:$0 sm:$0xff] }
 0x3cc   :  { %1249 = vmatprep.mubr.f32.mxu1 %v1104_v6  ;;  %6143 = vmatpush3.msra.mxu1 %v1415_v24 }
 0x3cd   :  { %7439 = vmatpush3.msra.mxu0 %v1447_v23  ;;  %6144 = vmatprep.subr.mxu1 %v1430_v60 }
 0x3ce   :  { %7440 = vmatprep.subr.mxu0 %v1446_v26  ;;  %6145 = vmatpush3.msra.mxu1 %v1414_v27 }
 0x3cf   :  { %1250 = vmatmul.mubr.f32.gmra.mxu1 %v1160_v14  ;;  %7441 = vmatpush3.msra.mxu0 %v1446_v26 }
 0x3d0   :  { %1254 = vmatprep.mubr.f32.mxu1 %v1105_v7  ;;  %6146 = vmatprep.subr.mxu1 %v1429_v28 }
 0x3d1   :  { %7442 = vmatprep.subr.mxu0 %v1445_v58  ;;  %6147 = vmatpush3.msra.mxu1 %v1413_v29 }
 0x3d2   :  { %7443 = vmatpush3.msra.mxu0 %v1445_v58  ;;  %6148 = vmatprep.subr.mxu1 %v1428_v30 }
 0x3d3   :  { %1255 = vmatmul.mubr.f32.gmra.mxu1 %v1161_v15  ;;  %7444 = vmatprep.subr.mxu0 %v1444_v1 }
 0x3d4   :  { %6149 = vmatpush3.msra.mxu1 %v1412_v31  ;;  %7445 = vmatpush3.msra.mxu0 %v1444_v1 }
 0x3d5   :  { %6150 = vmatprep.subr.mxu1 %v1427_v32  ;;  %7446 = vmatprep.subr.mxu0 %v1443_v33 }
 0x3d6   :  { %6151 = vmatpush3.msra.mxu1 %v1411_v34  ;;  %7447 = vmatpush3.msra.mxu0 %v1443_v33 }
 0x3d7   :  { %6152 = vmatprep.subr.mxu1 %v1426_v35  ;;  %7448 = vmatprep.subr.mxu0 %v1442_v2 }
 0x3d8   :  { %6153 = vmatpush3.msra.mxu1 %v1410_v36  ;;  %7449 = vmatpush3.msra.mxu0 %v1442_v2 }
 0x3d9   :  { %6154 = vmatprep.subr.mxu1 %v1425_v37  ;;  %7450 = vmatprep.subr.mxu0 %v1441_v38 }
 0x3da   :  { %6155 = vmatpush3.msra.mxu1 %v1409_v39  ;;  %7451 = vmatpush3.msra.mxu0 %v1441_v38 }
 0x3db   :  { %6156 = vmatprep.subr.mxu1 %v1424_v40  ;;  %7452 = vmatprep.subr.mxu0 %v1440_v41 }
 0x3dc   :  { %6157 = vmatpush3.msra.mxu1 %v1408_v42  ;;  %7453 = vmatpush3.msra.mxu0 %v1440_v41 }
 0x3dd   :  { %6158 = vmatprep.subr.mxu1 %v1423_v43  ;;  %7454 = vmatprep.subr.mxu0 %v1439_v44 }
 0x3de   :  { %6159 = vmatpush3.msra.mxu1 %v1407_v45  ;;  %7455 = vmatpush3.msra.mxu0 %v1439_v44 }
 0x3df   :  { %6160 = vmatprep.subr.mxu1 %v1422_v46  ;;  %7456 = vmatprep.subr.mxu0 %v1438_v47 }
 0x3e0   :  { %6161 = vmatpush3.msra.mxu1 %v1406_v48  ;;  %7457 = vmatpush3.msra.mxu0 %v1438_v47 }
 0x3e1   :  { %6162 = vmatprep.subr.mxu1 %v1421_v49  ;;  %7458 = vmatprep.subr.mxu0 %v1437_v50 }
 0x3e2   :  { %6163 = vmatpush3.msra.mxu1 %v1405_v51  ;;  %7459 = vmatpush3.msra.mxu0 %v1437_v50 }
 0x3e3   :  { %6164 = vmatprep.subr.mxu1 %v1420_v52  ;;  %7460 = vmatprep.subr.mxu0 %v1436_v53 }
 0x3e4   :  { %6165 = vmatpush3.msra.mxu1 %v1404_v54  ;;  %7461 = vmatpush3.msra.mxu0 %v1436_v53 }
 0x3e5   :  { %6166 = vmatprep.subr.mxu1 %v1419_v55  ;;  %7462 = vmatprep.subr.mxu0 %v1435_v56 }
 0x3e6   :  { %6167 = vmatpush3.msra.mxu1 %v1403_v57  ;;  %7463 = vmatpush3.msra.mxu0 %v1435_v56 }
 0x3e7   :  { %6168 = vmatprep.subr.mxu1 %v1418_v59  ;;  %7464 = vmatprep.subr.mxu0 %v1434_v61 }
 0x3e8   :  { %6169 = vmatpush3.msra.mxu1 %v1402_v62  ;;  %7465 = vmatpush3.msra.mxu0 %v1434_v61  ;;  %v5809_v61 = vld [vmem:[#allocation7 + $0x3] ss:$0 sm:$0xff] }
 0x3e9   :  { %6170 = vmatprep.subr.mxu1 %v1417_v63  ;;  %7466 = vmatprep.subr.mxu0 %v1433_v0 }
 0x3ea   :  { %6171 = vmatpush3.msra.mxu1 %v1401_v3  ;;  %7467 = vmatpush3.msra.mxu0 %v1433_v0 }
 0x487   :  { %v6108_v4 = vpop.f32.mrf.mxu1  ;;  %v7432_v5 = vpop.f32.mrf.mxu0 }
 0x489   :  { %v6109_v6 = vpop.f32.mrf.mxu1  ;;  %v1326_v8 = vpop.f32.mrf.mxu0 }
 0x48a   :  { %v6110_v10 = vadd.f32 %v6109_v6, %v6108_v4  ;;  %v5810_v4 = vld [vmem:[#allocation8 + $0x3] ss:$0 sm:$0xff] }
 0x48b   :  { %v6111_v7 = vpop.f32.mrf.mxu1  ;;  %v7435_v15 = vpop.f32.mrf.mxu0 }
 0x48c   :  { %v1242_v18 = vadd.f32 %v6110_v10, %v5808_v12 }
 0x48d   :  { %v6112_v9 = vpop.f32.mrf.mxu1  ;;  %v1336_v60 = vpop.f32.mrf.mxu0 }
 0x48e   :  { %v6113_v11 = vadd.f32 %v6112_v9, %v6111_v7  ;;  %v1327_v27 = vadd.f32 %v1326_v8, %v1242_v18 }
 0x48f   :  { %v6114_v13 = vpop.f32.mrf.mxu1 }
 0x490   :  { %v1247_v14 = vadd.f32 %v6113_v11, %v5808_v12 }
 0x491   :  { %v6115_v17 = vpop.f32.mrf.mxu1 }
 0x492   :  { %v6116_v21 = vadd.f32 %v6115_v17, %v6114_v13  ;;  %v1332_v23 = vadd.f32 %v7432_v5, %v1247_v14 }
 0x493   :  { %v6117_v22 = vpop.f32.mrf.mxu1 }
 0x494   :  { %v1252_v24 = vadd.f32 %v6116_v21, %v5808_v12  ;;  %v1345_v29 = vadd.f32 %v1332_v23, %v1327_v27 }
 0x495   :  { %v6118_v26 = vpop.f32.mrf.mxu1 }
 0x496   :  { %v1337_v28 = vadd.f32 %v1336_v60, %v1252_v24  ;;  %v6119_v58 = vadd.f32 %v6118_v26, %v6117_v22 }
 0x498   :  { %v1257_v30 = vadd.f32 %v6119_v58, %v5808_v12  ;;  %v1346_v1 = vadd.f32 %v1345_v29, %v1337_v28  ;;  %v1715_v58 = vld [vmem:[#allocation3 + $0x8f8] sm:$0xff] }
 0x499   :  { %v1763_v29 = vld [vmem:[#allocation3 + $0xa78] sm:$0xff] }
 0x49a   :  { %v1342_v31 = vadd.f32 %v7435_v15, %v1257_v30  ;;  %6248 = vmatprep.subr.mxu0 %v1763_v29  ;;  %v1730_v30 = vld [vmem:[#allocation3 + $0x970] sm:$0xff]  ;;  %v1748_v29 = vld [vmem:[#allocation3 + $0xa00] sm:$0xff] }
 0x49c   :  { %v1347_v32 = vadd.f32 %v1346_v1, %v1342_v31  ;;  %v1747_v1 = vld [vmem:[#allocation3 + $0x9f8] sm:$0xff] }
 0x49e   :  { %v1348_v33 = vrot.slane %v1347_v32, 4 }
 0x4a0   :  { %v1349_v34 = vadd.f32 %v1348_v33, %v1347_v32  ;;  %v1762_v32 = vld [vmem:[#allocation3 + $0xa70] sm:$0xff]  ;;  %v1729_v33 = vld [vmem:[#allocation3 + $0x968] sm:$0xff] }
 0x4a2   :  { %v1350_v35 = vrot.slane %v1349_v34, 2 }
 0x4a4   :  { %v1351_v2 = vadd.f32 %v1350_v35, %v1349_v34  ;;  %v1746_v34 = vld [vmem:[#allocation3 + $0x9f0] sm:$0xff]  ;;  %v1713_v35 = vld [vmem:[#allocation3 + $0x8e8] sm:$0xff] }
 0x4a6   :  { %v1352_v36 = vrot.slane %v1351_v2, 1 }
 0x4a8   :  { %v1353_v37 = vadd.f32 %v1352_v36, %v1351_v2  ;;  %v1761_v2 = vld [vmem:[#allocation3 + $0xa68] sm:$0xff]  ;;  %v1728_v36 = vld [vmem:[#allocation3 + $0x960] sm:$0xff] }
 0x4aa   :  { %v1354_v38 = vmul.f32 0.03125, %v1353_v37  ;;  %v1745_v37 = vld [vmem:[#allocation3 + $0x9e8] sm:$0xff] }
 0x4ac   :  { %v1355_v39 = vsub.f32 %v1327_v27, %v1354_v38  ;;  %v1356_v40 = vsub.f32 %v1332_v23, %v1354_v38  ;;  %v1357_v41 = vsub.f32 %v1337_v28, %v1354_v38  ;;  %v1358_v42 = vsub.f32 %v1342_v31, %v1354_v38  ;;  %v1731_v28 = vld [vmem:[#allocation3 + $0x978] sm:$0xff]  ;;  %v1714_v31 = vld [vmem:[#allocation3 + $0x8f0] sm:$0xff]  ;;  %v1712_v38 = vld [vmem:[#allocation3 + $0x8e0] sm:$0xff] }
 0x4ad   :  { %6204 = vmatprep.subr.mxu1 %v1731_v28  ;;  %v1733_v28 = vld [vmem:[#allocation3 + $0x988] sm:$0xff] }
 0x4ae   :  { %v1359_v43 = vmul.f32 %v1355_v39, %v1355_v39  ;;  %v1360_v44 = vmul.f32 %v1356_v40, %v1356_v40  ;;  %v1361_v45 = vmul.f32 %v1357_v41, %v1357_v41  ;;  %v1362_v47 = vmul.f32 %v1358_v42, %v1358_v42 }
 0x4b0   :  { %v1363_v46 = vadd.f32 %v1360_v44, %v1359_v43  ;;  %v1759_v43 = vld [vmem:[#allocation3 + $0xa58] sm:$0xff]  ;;  %v1726_v44 = vld [vmem:[#allocation3 + $0x950] sm:$0xff] }
 0x4b2   :  { %v1364_v48 = vadd.f32 %v1363_v46, %v1361_v45  ;;  %v1743_v45 = vld [vmem:[#allocation3 + $0x9d8] sm:$0xff]  ;;  %v1710_v46 = vld [vmem:[#allocation3 + $0x8d0] sm:$0xff] }
 0x4b4   :  { %v1365_v49 = vadd.f32 %v1364_v48, %v1362_v47  ;;  %v1758_v47 = vld [vmem:[#allocation3 + $0xa50] sm:$0xff]  ;;  %v1725_v48 = vld [vmem:[#allocation3 + $0x948] sm:$0xff] }
 0x4b6   :  { %v1366_v50 = vrot.slane %v1365_v49, 4 }
 0x4b8   :  { %v1367_v51 = vadd.f32 %v1366_v50, %v1365_v49  ;;  %v1742_v49 = vld [vmem:[#allocation3 + $0x9d0] sm:$0xff]  ;;  %v1709_v50 = vld [vmem:[#allocation3 + $0x8c8] sm:$0xff] }
 0x4ba   :  { %v1368_v52 = vrot.slane %v1367_v51, 2 }
 0x4bc   :  { %v1369_v53 = vadd.f32 %v1368_v52, %v1367_v51  ;;  %v1757_v51 = vld [vmem:[#allocation3 + $0xa48] sm:$0xff]  ;;  %v1724_v52 = vld [vmem:[#allocation3 + $0x940] sm:$0xff] }
 0x4be   :  { %v1370_v54 = vrot.slane %v1369_v53, 1 }
 0x4c0   :  { %v1371_v55 = vadd.f32 %v1370_v54, %v1369_v53  ;;  %v1741_v53 = vld [vmem:[#allocation3 + $0x9c8] sm:$0xff]  ;;  %v1708_v54 = vld [vmem:[#allocation3 + $0x8c0] sm:$0xff] }
 0x4c2   :  { %v1372_v56 = vmul.f32 0.03125, %v1371_v55  ;;  %v1756_v55 = vld [vmem:[#allocation3 + $0xa40] sm:$0xff] }
 0x4c4   :  { %v1373_v57 = vadd.f32 1e-05, %v1372_v56  ;;  %v1723_v56 = vld [vmem:[#allocation3 + $0x938] sm:$0xff] }
 0x4c6   :  { %7899 = vrsqrt.f32 %v1373_v57  ;;  %v1740_v57 = vld [vmem:[#allocation3 + $0x9c0] sm:$0xff] }
 0x4d3   :  { %v7900_v59 = vpop.eup %7899 }
 0x4d4   :  { %v1375_v62 = vmul.f32 %v7900_v59, %v1355_v39  ;;  %v1376_v63 = vmul.f32 %v7900_v59, %v1356_v40  ;;  %v1377_v0 = vmul.f32 %v7900_v59, %v1357_v41  ;;  %v1378_v3 = vmul.f32 %v7900_v59, %v1358_v42  ;;  %v1760_v39 = vld [vmem:[#allocation3 + $0xa60] sm:$0xff]  ;;  %v1727_v40 = vld [vmem:[#allocation3 + $0x958] sm:$0xff] }
 0x4d5   :  { %v1744_v41 = vld [vmem:[#allocation3 + $0x9e0] sm:$0xff]  ;;  %v1711_v42 = vld [vmem:[#allocation3 + $0x8d8] sm:$0xff] }
 0x4d6   :  { %v1384_v5 = vmul.f32 %v5809_v61, %v1375_v62  ;;  %v1385_v6 = vmul.f32 %v5809_v61, %v1376_v63  ;;  %v1386_v7 = vmul.f32 %v5809_v61, %v1377_v0  ;;  %v1387_v8 = vmul.f32 %v5809_v61, %v1378_v3  ;;  %v1707_v59 = vld [vmem:[#allocation3 + $0x8b8] sm:$0xff]  ;;  %v1722_v62 = vld [vmem:[#allocation3 + $0x930] sm:$0xff] }
 0x4d7   :  { %v1755_v61 = vld [vmem:[#allocation3 + $0xa38] sm:$0xff]  ;;  %v1706_v0 = vld [vmem:[#allocation3 + $0x8b0] sm:$0xff] }
 0x4d8   :  { %v1393_v9 = vadd.f32 %v5810_v4, %v1384_v5  ;;  %v1394_v10 = vadd.f32 %v5810_v4, %v1385_v6  ;;  %v1395_v11 = vadd.f32 %v5810_v4, %v1386_v7  ;;  %v1396_v12 = vadd.f32 %v5810_v4, %v1387_v8  ;;  %v1739_v63 = vld [vmem:[#allocation3 + $0x9b8] sm:$0xff]  ;;  %v1754_v3 = vld [vmem:[#allocation3 + $0xa30] sm:$0xff]  ;;  %v1721_v4 = vld [vmem:[#allocation3 + $0x928] sm:$0xff] }
 0x4d9   :  { %v1738_v5 = vld [vmem:[#allocation3 + $0x9b0] sm:$0xff]  ;;  %v1705_v6 = vld [vmem:[#allocation3 + $0x8a8] sm:$0xff]  ;;  %v1720_v8 = vld [vmem:[#allocation3 + $0x920] sm:$0xff] }
 0x4da   :  { %v1397_v13 = vmax.f32 %v1393_v9, 0.0  ;;  %v1398_v14 = vmax.f32 %v1394_v10, 0.0  ;;  %v1399_v15 = vmax.f32 %v1395_v11, 0.0  ;;  %v1400_v17 = vmax.f32 %v1396_v12, 0.0  ;;  %v1753_v7 = vld [vmem:[#allocation3 + $0xa28] sm:$0xff]  ;;  %v1704_v10 = vld [vmem:[#allocation3 + $0x8a0] sm:$0xff] }
 0x4db   :  { %v1737_v9 = vld [vmem:[#allocation3 + $0x9a8] sm:$0xff]  ;;  %v1752_v11 = vld [vmem:[#allocation3 + $0xa20] sm:$0xff]  ;;  %v1719_v12 = vld [vmem:[#allocation3 + $0x918] sm:$0xff] }
 0x4dc   :  { %1449 = vst [vmem:[#allocation2 + $0x8] sm:$0xff] %v1397_v13  ;;  %1450 = vst [vmem:[#allocation2 + $0x10] sm:$0xff] %v1398_v14  ;;  %1534 = vmatprep.mubr.f32.mxu1 %v1397_v13  ;;  %v1736_v13 = vld [vmem:[#allocation3 + $0x9a0] sm:$0xff] }
 0x4dd   :  { %1451 = vst [vmem:[#allocation2 + $0x28] sm:$0xff] %v1399_v15  ;;  %1452 = vst [vmem:[#allocation2 + $0x30] sm:$0xff] %v1400_v17 }
 0x4e3   :  { %v1461_v18 = vld [vmem:[#allocation2 + $0x9] sm:$0xff]  ;;  %v1462_v22 = vld [vmem:[#allocation2 + $0x11] sm:$0xff] }
 0x4e4   :  { %v1453_v21 = vld [vmem:[#allocation2 + $0x7] sm:$0xff]  ;;  %7468 = vmatprep.mubr.f32.mxu0 %v1461_v18  ;;  %v1454_v24 = vld [vmem:[#allocation2 + $0xf] sm:$0xff]  ;;  %v1735_v18 = vld [vmem:[#allocation3 + $0x998] sm:$0xff] }
 0x4e5   :  { %1535 = vmatmul.mubr.f32.vlgmr.msra.gmra.mxu1 %v1453_v21  ;;  %7469 = vmatmul.mubr.f32.vlgmr.msra.gmra.mxu0 %v1462_v22  ;;  %v1463_v23 = vld [vmem:[#allocation2 + $0x29] sm:$0xff]  ;;  %v1464_v60 = vld [vmem:[#allocation2 + $0x31] sm:$0xff] }
 0x4e6   :  { %1539 = vmatprep.mubr.f32.mxu1 %v1398_v14  ;;  %7471 = vmatprep.mubr.f32.mxu0 %v1463_v23  ;;  %v1455_v26 = vld [vmem:[#allocation2 + $0x27] sm:$0xff]  ;;  %v1456_v27 = vld [vmem:[#allocation2 + $0x2f] sm:$0xff]  ;;  %v1703_v14 = vld [vmem:[#allocation3 + $0x898] sm:$0xff] }
 0x4e7   :  { %6205 = vmatpush3.msra.mxu1 %v1715_v58  ;;  %6249 = vmatpush3.msra.mxu0 %v1747_v1  ;;  %v1702_v21 = vld [vmem:[#allocation3 + $0x890] sm:$0xff]  ;;  %v1717_v23 = vld [vmem:[#allocation3 + $0x908] sm:$0xff]  ;;  %v1700_v58 = vld [vmem:[#allocation3 + $0x880] sm:$0xff] }
 0x4e8   :  { %6206 = vmatprep.subr.mxu1 %v1730_v30  ;;  %6250 = vmatprep.subr.mxu0 %v1762_v32  ;;  %v1750_v22 = vld [vmem:[#allocation3 + $0xa10] sm:$0xff]  ;;  %v1732_v30 = vld [vmem:[#allocation3 + $0x980] sm:$0xff]  ;;  %v8134_v1 = vld [vmem:[#allocation3 + $0xaf8] sm:$0xff] }
 0x4e9   :  { %1540 = vmatmul.mubr.f32.gmra.mxu1 %v1454_v24  ;;  %7472 = vmatmul.mubr.f32.gmra.mxu0 %v1464_v60  ;;  %v1734_v24 = vld [vmem:[#allocation3 + $0x990] sm:$0xff]  ;;  %v1701_v60 = vld [vmem:[#allocation3 + $0x888] sm:$0xff] }
 0x4ea   :  { %1544 = vmatprep.mubr.f32.mxu1 %v1399_v15  ;;  %6207 = vmatpush3.msra.mxu1 %v1714_v31  ;;  %v1751_v15 = vld [vmem:[#allocation3 + $0xa18] sm:$0xff] }
 0x4eb   :  { %6208 = vmatprep.subr.mxu1 %v1729_v33  ;;  %6251 = vmatpush3.msra.mxu0 %v1746_v34 }
 0x4ec   :  { %6209 = vmatpush3.msra.mxu1 %v1713_v35  ;;  %6252 = vmatprep.subr.mxu0 %v1761_v2  ;;  %v5811_v2 = vld [vmem:[#allocation5 + $0x4] ss:$0 sm:$0xff] }
 0x4ed   :  { %1545 = vmatmul.mubr.f32.gmra.mxu1 %v1455_v26  ;;  %6210 = vmatprep.subr.mxu1 %v1728_v36  ;;  %v1749_v26 = vld [vmem:[#allocation3 + $0xa08] sm:$0xff] }
 0x4ee   :  { %1549 = vmatprep.mubr.f32.mxu1 %v1400_v17  ;;  %6253 = vmatpush3.msra.mxu0 %v1745_v37  ;;  %v1718_v17 = vld [vmem:[#allocation3 + $0x910] sm:$0xff] }
 0x4ef   :  { %6211 = vmatpush3.msra.mxu1 %v1712_v38  ;;  %6254 = vmatprep.subr.mxu0 %v1760_v39 }
 0x4f0   :  { %6212 = vmatprep.subr.mxu1 %v1727_v40  ;;  %6255 = vmatpush3.msra.mxu0 %v1744_v41 }
 0x4f1   :  { %1550 = vmatmul.mubr.f32.gmra.mxu1 %v1456_v27  ;;  %6256 = vmatprep.subr.mxu0 %v1759_v43  ;;  %v1716_v27 = vld [vmem:[#allocation3 + $0x900] sm:$0xff] }
 0x4f2   :  { %6213 = vmatpush3.msra.mxu1 %v1711_v42  ;;  %6257 = vmatpush3.msra.mxu0 %v1743_v45 }
 0x4f3   :  { %6214 = vmatprep.subr.mxu1 %v1726_v44  ;;  %6258 = vmatprep.subr.mxu0 %v1758_v47 }
 0x4f4   :  { %6215 = vmatpush3.msra.mxu1 %v1710_v46  ;;  %6259 = vmatpush3.msra.mxu0 %v1742_v49 }
 0x4f5   :  { %6216 = vmatprep.subr.mxu1 %v1725_v48  ;;  %6260 = vmatprep.subr.mxu0 %v1757_v51 }
 0x4f6   :  { %6217 = vmatpush3.msra.mxu1 %v1709_v50  ;;  %6261 = vmatpush3.msra.mxu0 %v1741_v53 }
 0x4f7   :  { %6218 = vmatprep.subr.mxu1 %v1724_v52  ;;  %6262 = vmatprep.subr.mxu0 %v1756_v55 }
 0x4f8   :  { %6219 = vmatpush3.msra.mxu1 %v1708_v54  ;;  %6263 = vmatpush3.msra.mxu0 %v1740_v57 }
 0x4f9   :  { %6220 = vmatprep.subr.mxu1 %v1723_v56  ;;  %6264 = vmatprep.subr.mxu0 %v1755_v61 }
 0x4fa   :  { %6221 = vmatpush3.msra.mxu1 %v1707_v59  ;;  %6265 = vmatpush3.msra.mxu0 %v1739_v63 }
 0x4fb   :  { %6222 = vmatprep.subr.mxu1 %v1722_v62  ;;  %6266 = vmatprep.subr.mxu0 %v1754_v3 }
 0x4fc   :  { %6223 = vmatpush3.msra.mxu1 %v1706_v0  ;;  %6267 = vmatpush3.msra.mxu0 %v1738_v5 }
 0x4fd   :  { %6224 = vmatprep.subr.mxu1 %v1721_v4  ;;  %6268 = vmatprep.subr.mxu0 %v1753_v7 }
 0x4fe   :  { %6225 = vmatpush3.msra.mxu1 %v1705_v6  ;;  %6269 = vmatpush3.msra.mxu0 %v1737_v9 }
 0x4ff   :  { %6226 = vmatprep.subr.mxu1 %v1720_v8  ;;  %6270 = vmatprep.subr.mxu0 %v1752_v11 }
 0x500   :  { %6227 = vmatpush3.msra.mxu1 %v1704_v10  ;;  %6271 = vmatpush3.msra.mxu0 %v1736_v13 }
 0x501   :  { %6228 = vmatprep.subr.mxu1 %v1719_v12  ;;  %6272 = vmatprep.subr.mxu0 %v1751_v15 }
 0x502   :  { %6229 = vmatpush3.msra.mxu1 %v1703_v14  ;;  %6273 = vmatpush3.msra.mxu0 %v1735_v18 }
 0x503   :  { %6230 = vmatprep.subr.mxu1 %v1718_v17  ;;  %6274 = vmatprep.subr.mxu0 %v1750_v22 }
 0x504   :  { %6231 = vmatpush3.msra.mxu1 %v1702_v21  ;;  %6275 = vmatpush3.msra.mxu0 %v1734_v24 }
 0x505   :  { %6232 = vmatprep.subr.mxu1 %v1717_v23  ;;  %6276 = vmatprep.subr.mxu0 %v1749_v26 }
 0x506   :  { %6233 = vmatpush3.msra.mxu1 %v1701_v60  ;;  %6277 = vmatpush3.msra.mxu0 %v1733_v28  ;;  %v5812_v28 = vld [vmem:[#allocation7 + $0x4] ss:$0 sm:$0xff] }
 0x507   :  { %6234 = vmatprep.subr.mxu1 %v1716_v27  ;;  %6278 = vmatprep.subr.mxu0 %v1748_v29 }
 0x508   :  { %6235 = vmatpush3.msra.mxu1 %v1700_v58  ;;  %6279 = vmatpush3.msra.mxu0 %v1732_v30 }
 0x509   :  { %7474 = vmatprep.subr.mxu1 %v8134_v1 }
 0x5a5   :  { %v6172_v31 = vpop.f32.mrf.mxu1  ;;  %v7470_v32 = vpop.f32.mrf.mxu0 }
 0x5a7   :  { %v6173_v33 = vpop.f32.mrf.mxu1  ;;  %v1621_v36 = vpop.f32.mrf.mxu0 }
 0x5a8   :  { %v6174_v35 = vadd.f32 %v6173_v33, %v6172_v31 }
 0x5a9   :  { %v6175_v34 = vpop.f32.mrf.mxu1  ;;  %v7473_v42 = vpop.f32.mrf.mxu0 }
 0x5aa   :  { %v1537_v40 = vadd.f32 %v6174_v35, %v5811_v2 }
 0x5ab   :  { %v6176_v37 = vpop.f32.mrf.mxu1  ;;  %v1631_v49 = vpop.f32.mrf.mxu0 }
 0x5ac   :  { %v6177_v38 = vadd.f32 %v6176_v37, %v6175_v34  ;;  %v1622_v47 = vadd.f32 %v1621_v36, %v1537_v40 }
 0x5ad   :  { %v6178_v39 = vpop.f32.mrf.mxu1 }
 0x5ae   :  { %v1542_v41 = vadd.f32 %v6177_v38, %v5811_v2  ;;  %v8141_v54 = vadd.f32 %v1622_v47, %v8118_v19  ;;  %v1778_v47 = vld [vmem:[#allocation3 + $0xaf0] sm:$0xff] }
 0x5af   :  { %v6179_v43 = vpop.f32.mrf.mxu1 }
 0x5b0   :  { %v1627_v44 = vadd.f32 %v7470_v32, %v1542_v41  ;;  %v6180_v45 = vadd.f32 %v6179_v43, %v6178_v39  ;;  %v5813_v32 = vld [vmem:[#allocation8 + $0x4] ss:$0 sm:$0xff] }
 0x5b1   :  { %v6181_v46 = vpop.f32.mrf.mxu1 }
 0x5b2   :  { %v1547_v48 = vadd.f32 %v6180_v45, %v5811_v2  ;;  %v8138_v51 = vadd.f32 %v1627_v44, %v8115_v16 }
 0x5b3   :  { %v6182_v50 = vpop.f32.mrf.mxu1 }
 0x5b4   :  { %v1632_v52 = vadd.f32 %v1631_v49, %v1547_v48  ;;  %v6183_v53 = vadd.f32 %v6182_v50, %v6181_v46  ;;  %v1644_v57 = vadd.f32 %v8138_v51, %v8141_v54  ;;  %v1777_v50 = vld [vmem:[#allocation3 + $0xae8] sm:$0xff] }
 0x5b6   :  { %v8144_v55 = vadd.f32 %v1632_v52, %v8121_v20  ;;  %v1552_v56 = vadd.f32 %v6183_v53, %v5811_v2  ;;  %v1776_v53 = vld [vmem:[#allocation3 + $0xae0] sm:$0xff] }
 0x5b8   :  { %v1637_v59 = vadd.f32 %v7473_v42, %v1552_v56  ;;  %v1645_v61 = vadd.f32 %v1644_v57, %v8144_v55 }
 0x5ba   :  { %v8150_v62 = vadd.f32 %v1637_v59, %v8127_v25  ;;  %v1775_v59 = vld [vmem:[#allocation3 + $0xad8] sm:$0xff] }
 0x5bc   :  { %v1646_v16 = vadd.f32 %v1645_v61, %v8150_v62  ;;  %v1774_v61 = vld [vmem:[#allocation3 + $0xad0] sm:$0xff] }
 0x5be   :  { %v1647_v63 = vrot.slane %v1646_v16, 4 }
 0x5c0   :  { %v1648_v0 = vadd.f32 %v1647_v63, %v1646_v16 }
 0x5c2   :  { %v1649_v3 = vrot.slane %v1648_v0, 2 }
 0x5c4   :  { %v1650_v19 = vadd.f32 %v1649_v3, %v1648_v0  ;;  %v1773_v0 = vld [vmem:[#allocation3 + $0xac8] sm:$0xff] }
 0x5c6   :  { %v1651_v4 = vrot.slane %v1650_v19, 1 }
 0x5c8   :  { %v1652_v5 = vadd.f32 %v1651_v4, %v1650_v19  ;;  %v1772_v19 = vld [vmem:[#allocation3 + $0xac0] sm:$0xff] }
 0x5ca   :  { %v1653_v20 = vmul.f32 0.03125, %v1652_v5  ;;  %v1771_v5 = vld [vmem:[#allocation3 + $0xab8] sm:$0xff] }
 0x5cc   :  { %v1654_v6 = vsub.f32 %v8141_v54, %v1653_v20  ;;  %v1655_v7 = vsub.f32 %v8138_v51, %v1653_v20  ;;  %v1656_v8 = vsub.f32 %v8144_v55, %v1653_v20  ;;  %v1657_v9 = vsub.f32 %v8150_v62, %v1653_v20  ;;  %v1770_v20 = vld [vmem:[#allocation3 + $0xab0] sm:$0xff] }
 0x5ce   :  { %v1658_v10 = vmul.f32 %v1654_v6, %v1654_v6  ;;  %v1659_v25 = vmul.f32 %v1655_v7, %v1655_v7  ;;  %v1660_v11 = vmul.f32 %v1656_v8, %v1656_v8  ;;  %v1661_v13 = vmul.f32 %v1657_v9, %v1657_v9 }
 0x5d0   :  { %v1662_v12 = vadd.f32 %v1659_v25, %v1658_v10  ;;  %v1765_v10 = vld [vmem:[#allocation3 + $0xa88] sm:$0xff]  ;;  %v1764_v25 = vld [vmem:[#allocation3 + $0xa80] sm:$0xff] }
 0x5d2   :  { %v1663_v14 = vadd.f32 %v1662_v12, %v1660_v11 }
 0x5d4   :  { %v1664_v15 = vadd.f32 %v1663_v14, %v1661_v13  ;;  %v2151_v14 = vld [vmem:[#allocation3 + $0xbf8] sm:$0xff] }
 0x5d5   :  { %6312 = vmatprep.subr.mxu0 %v2151_v14  ;;  %v2153_v14 = vld [vmem:[#allocation3 + $0xc08] sm:$0xff] }
 0x5d6   :  { %v1665_v17 = vrot.slane %v1664_v15, 4 }
 0x5d8   :  { %v1666_v18 = vadd.f32 %v1665_v17, %v1664_v15  ;;  %v2135_v15 = vld [vmem:[#allocation3 + $0xb78] sm:$0xff] }
 0x5d9   :  { %v2183_v17 = vld [vmem:[#allocation3 + $0xcf8] sm:$0xff] }
 0x5da   :  { %v1667_v21 = vrot.slane %v1666_v18, 2 }
 0x5dc   :  { %v1668_v22 = vadd.f32 %v1667_v21, %v1666_v18  ;;  %v2150_v18 = vld [vmem:[#allocation3 + $0xbf0] sm:$0xff]  ;;  %v2167_v21 = vld [vmem:[#allocation3 + $0xc78] sm:$0xff] }
 0x5de   :  { %v1669_v23 = vrot.slane %v1668_v22, 1 }
 0x5e0   :  { %v1670_v24 = vadd.f32 %v1669_v23, %v1668_v22  ;;  %v2134_v22 = vld [vmem:[#allocation3 + $0xb70] sm:$0xff] }
 0x5e1   :  { %v2182_v23 = vld [vmem:[#allocation3 + $0xcf0] sm:$0xff] }
 0x5e2   :  { %v1671_v60 = vmul.f32 0.03125, %v1670_v24  ;;  %v2149_v24 = vld [vmem:[#allocation3 + $0xbe8] sm:$0xff] }
 0x5e4   :  { %v1672_v26 = vadd.f32 1e-05, %v1671_v60  ;;  %v2166_v60 = vld [vmem:[#allocation3 + $0xc70] sm:$0xff] }
 0x5e6   :  { %7901 = vrsqrt.f32 %v1672_v26  ;;  %v2133_v26 = vld [vmem:[#allocation3 + $0xb68] sm:$0xff] }
 0x5f3   :  { %v7902_v27 = vpop.eup %7901 }
 0x5f4   :  { %v1674_v58 = vmul.f32 %v7902_v27, %v1654_v6  ;;  %v1675_v29 = vmul.f32 %v7902_v27, %v1655_v7  ;;  %v1676_v30 = vmul.f32 %v7902_v27, %v1656_v8  ;;  %v1677_v31 = vmul.f32 %v7902_v27, %v1657_v9  ;;  %v1769_v6 = vld [vmem:[#allocation3 + $0xaa8] sm:$0xff]  ;;  %v1768_v7 = vld [vmem:[#allocation3 + $0xaa0] sm:$0xff]  ;;  %v1767_v8 = vld [vmem:[#allocation3 + $0xa98] sm:$0xff] }
 0x5f5   :  { %v1766_v9 = vld [vmem:[#allocation3 + $0xa90] sm:$0xff]  ;;  %v2181_v27 = vld [vmem:[#allocation3 + $0xce8] sm:$0xff] }
 0x5f6   :  { %v1683_v33 = vmul.f32 %v5812_v28, %v1674_v58  ;;  %v1684_v34 = vmul.f32 %v5812_v28, %v1675_v29  ;;  %v1685_v35 = vmul.f32 %v5812_v28, %v1676_v30  ;;  %v1686_v2 = vmul.f32 %v5812_v28, %v1677_v31  ;;  %v2148_v28 = vld [vmem:[#allocation3 + $0xbe0] sm:$0xff]  ;;  %v2165_v58 = vld [vmem:[#allocation3 + $0xc68] sm:$0xff]  ;;  %v2147_v31 = vld [vmem:[#allocation3 + $0xbd8] sm:$0xff] }
 0x5f7   :  { %v2132_v29 = vld [vmem:[#allocation3 + $0xb60] sm:$0xff] }
 0x5f8   :  { %v1692_v36 = vadd.f32 %v5813_v32, %v1683_v33  ;;  %v1693_v37 = vadd.f32 %v5813_v32, %v1684_v34  ;;  %v1694_v38 = vadd.f32 %v5813_v32, %v1685_v35  ;;  %v1695_v39 = vadd.f32 %v5813_v32, %v1686_v2  ;;  %v2180_v30 = vld [vmem:[#allocation3 + $0xce0] sm:$0xff]  ;;  %v2131_v33 = vld [vmem:[#allocation3 + $0xb58] sm:$0xff]  ;;  %v2146_v35 = vld [vmem:[#allocation3 + $0xbd0] sm:$0xff] }
 0x5f9   :  { %v2164_v32 = vld [vmem:[#allocation3 + $0xc60] sm:$0xff]  ;;  %v2179_v34 = vld [vmem:[#allocation3 + $0xcd8] sm:$0xff] }
 0x5fa   :  { %v1696_v40 = vmax.f32 %v1692_v36, 0.0  ;;  %v1697_v41 = vmax.f32 %v1693_v37, 0.0  ;;  %v1698_v42 = vmax.f32 %v1694_v38, 0.0  ;;  %v1699_v43 = vmax.f32 %v1695_v39, 0.0  ;;  %v2163_v2 = vld [vmem:[#allocation3 + $0xc58] sm:$0xff]  ;;  %v2130_v36 = vld [vmem:[#allocation3 + $0xb50] sm:$0xff] }
 0x5fb   :  { %v2178_v37 = vld [vmem:[#allocation3 + $0xcd0] sm:$0xff]  ;;  %v2145_v38 = vld [vmem:[#allocation3 + $0xbc8] sm:$0xff] }
 0x5fc   :  { %1780 = vst [vmem:[#allocation2 + $0x8] sm:$0xff] %v1696_v40  ;;  %1781 = vst [vmem:[#allocation2 + $0x10] sm:$0xff] %v1697_v41  ;;  %v2162_v39 = vld [vmem:[#allocation3 + $0xc50] sm:$0xff] }
 0x5fd   :  { %1782 = vst [vmem:[#allocation2 + $0x28] sm:$0xff] %v1698_v42  ;;  %1783 = vst [vmem:[#allocation2 + $0x30] sm:$0xff] %v1699_v43 }
 0x603   :  { %v1788_v44 = vld [vmem:[#allocation2 + $0x7] sm:$0xff]  ;;  %v1789_v48 = vld [vmem:[#allocation2 + $0xf] sm:$0xff] }
 0x604   :  { %v1796_v45 = vld [vmem:[#allocation2 + $0x9] sm:$0xff]  ;;  %1873 = vmatprep.mubr.f32.mxu1 %v1788_v44  ;;  %v1797_v49 = vld [vmem:[#allocation2 + $0x11] sm:$0xff]  ;;  %v2128_v44 = vld [vmem:[#allocation3 + $0xb40] sm:$0xff] }
 0x605   :  { %v1784_v46 = vld [vmem:[#allocation2 + $0x6] sm:$0xff]  ;;  %1958 = vmatprep.mubr.f32.mxu0 %v1796_v45  ;;  %v1785_v52 = vld [vmem:[#allocation2 + $0xe] sm:$0xff] }
 0x606   :  { %1874 = vmatmul.mubr.f32.vlgmr.msra.gmra.mxu1 %v1784_v46  ;;  %1959 = vmatmul.mubr.f32.vlgmr.msra.gmra.mxu0 %v1696_v40  ;;  %v1790_v56 = vld [vmem:[#allocation2 + $0x27] sm:$0xff]  ;;  %v1791_v16 = vld [vmem:[#allocation2 + $0x2f] sm:$0xff]  ;;  %v2143_v46 = vld [vmem:[#allocation3 + $0xbb8] sm:$0xff] }
 0x607   :  { %7475 = vmatpush3.msra.mxu1 %v8134_v1  ;;  %1878 = vmatprep.mubr.f32.mxu1 %v1789_v48  ;;  %v1798_v57 = vld [vmem:[#allocation2 + $0x29] sm:$0xff]  ;;  %v1799_v63 = vld [vmem:[#allocation2 + $0x31] sm:$0xff]  ;;  %v2176_v45 = vld [vmem:[#allocation3 + $0xcc0] sm:$0xff] }
 0x608   :  { %1963 = vmatprep.mubr.f32.mxu0 %v1797_v49  ;;  %7476 = vmatprep.subr.mxu1 %v1778_v47  ;;  %v1786_v1 = vld [vmem:[#allocation2 + $0x26] sm:$0xff]  ;;  %v1787_v3 = vld [vmem:[#allocation2 + $0x2e] sm:$0xff]  ;;  %v2127_v48 = vld [vmem:[#allocation3 + $0xb38] sm:$0xff] }
 0x609   :  { %7477 = vmatpush3.msra.mxu1 %v1778_v47  ;;  %v1800_v4 = vld [vmem:[#allocation2 + $0xa] sm:$0xff]  ;;  %v1801_v11 = vld [vmem:[#allocation2 + $0x12] sm:$0xff]  ;;  %6313 = vmatpush3.msra.mxu0 %v2135_v15  ;;  %v2160_v47 = vld [vmem:[#allocation3 + $0xc40] sm:$0xff] }
 0x60a   :  { %7478 = vmatprep.subr.mxu1 %v1777_v50  ;;  %1879 = vmatmul.mubr.f32.gmra.mxu1 %v1785_v52  ;;  %v1802_v12 = vld [vmem:[#allocation2 + $0x2a] sm:$0xff]  ;;  %v1803_v13 = vld [vmem:[#allocation2 + $0x32] sm:$0xff]  ;;  %v2120_v15 = vld [vmem:[#allocation3 + $0xb00] sm:$0xff] }
 0x60b   :  { %1964 = vmatmul.mubr.f32.gmra.mxu0 %v1697_v41  ;;  %7479 = vmatpush3.msra.mxu1 %v1777_v50  ;;  %v2129_v40 = vld [vmem:[#allocation3 + $0xb48] sm:$0xff]  ;;  %v2175_v49 = vld [vmem:[#allocation3 + $0xcb8] sm:$0xff]  ;;  %v2142_v50 = vld [vmem:[#allocation3 + $0xbb0] sm:$0xff] }
 0x60c   :  { %1883 = vmatprep.mubr.f32.mxu1 %v1790_v56  ;;  %1968 = vmatprep.mubr.f32.mxu0 %v1798_v57  ;;  %v2177_v41 = vld [vmem:[#allocation3 + $0xcc8] sm:$0xff]  ;;  %v2159_v52 = vld [vmem:[#allocation3 + $0xc38] sm:$0xff]  ;;  %v2174_v56 = vld [vmem:[#allocation3 + $0xcb0] sm:$0xff] }
 0x60d   :  { %7480 = vmatprep.subr.mxu1 %v1776_v53  ;;  %6314 = vmatprep.subr.mxu0 %v2150_v18  ;;  %v2141_v57 = vld [vmem:[#allocation3 + $0xba8] sm:$0xff]  ;;  %v2152_v18 = vld [vmem:[#allocation3 + $0xc00] sm:$0xff] }
 0x60e   :  { %7481 = vmatpush3.msra.mxu1 %v1776_v53  ;;  %6315 = vmatpush3.msra.mxu0 %v2134_v22  ;;  %v2126_v53 = vld [vmem:[#allocation3 + $0xb30] sm:$0xff] }
 0x60f   :  { %7482 = vmatprep.subr.mxu1 %v1775_v59  ;;  %1884 = vmatmul.mubr.f32.gmra.mxu1 %v1786_v1  ;;  %v2125_v1 = vld [vmem:[#allocation3 + $0xb28] sm:$0xff] }
 0x610   :  { %1969 = vmatmul.mubr.f32.gmra.mxu0 %v1698_v42  ;;  %7483 = vmatpush3.msra.mxu1 %v1775_v59  ;;  %v2144_v42 = vld [vmem:[#allocation3 + $0xbc0] sm:$0xff]  ;;  %v2158_v59 = vld [vmem:[#allocation3 + $0xc30] sm:$0xff] }
 0x611   :  { %1888 = vmatprep.mubr.f32.mxu1 %v1791_v16  ;;  %1973 = vmatprep.mubr.f32.mxu0 %v1799_v63  ;;  %v2140_v16 = vld [vmem:[#allocation3 + $0xba0] sm:$0xff]  ;;  %v2157_v63 = vld [vmem:[#allocation3 + $0xc28] sm:$0xff] }
 0x612   :  { %7484 = vmatprep.subr.mxu1 %v1774_v61  ;;  %6316 = vmatprep.subr.mxu0 %v2149_v24 }
 0x613   :  { %7485 = vmatpush3.msra.mxu1 %v1774_v61  ;;  %6317 = vmatpush3.msra.mxu0 %v2133_v26  ;;  %v2173_v61 = vld [vmem:[#allocation3 + $0xca8] sm:$0xff] }
 0x614   :  { %7486 = vmatprep.subr.mxu1 %v1773_v0  ;;  %1889 = vmatmul.mubr.f32.gmra.mxu1 %v1787_v3  ;;  %v2172_v3 = vld [vmem:[#allocation3 + $0xca0] sm:$0xff] }
 0x615   :  { %1974 = vmatmul.mubr.f32.gmra.mxu0 %v1699_v43  ;;  %7487 = vmatpush3.msra.mxu1 %v1773_v0  ;;  %v2161_v43 = vld [vmem:[#allocation3 + $0xc48] sm:$0xff]  ;;  %v2124_v0 = vld [vmem:[#allocation3 + $0xb20] sm:$0xff] }
 0x616   :  { %7488 = vmatprep.subr.mxu1 %v1772_v19  ;;  %7506 = vmatprep.mubr.f32.mxu1 %v1800_v4  ;;  %v2156_v4 = vld [vmem:[#allocation3 + $0xc20] sm:$0xff] }
 0x617   :  { %7489 = vmatpush3.msra.mxu1 %v1772_v19  ;;  %6318 = vmatprep.subr.mxu0 %v2148_v28  ;;  %v2139_v19 = vld [vmem:[#allocation3 + $0xb98] sm:$0xff] }
 0x618   :  { %7490 = vmatprep.subr.mxu1 %v1771_v5  ;;  %6319 = vmatpush3.msra.mxu0 %v2132_v29 }
 0x619   :  { %7491 = vmatpush3.msra.mxu1 %v1771_v5  ;;  %6320 = vmatprep.subr.mxu0 %v2147_v31  ;;  %v2123_v5 = vld [vmem:[#allocation3 + $0xb18] sm:$0xff] }
 0x61a   :  { %7492 = vmatprep.subr.mxu1 %v1770_v20  ;;  %6321 = vmatpush3.msra.mxu0 %v2131_v33 }
 0x61b   :  { %7493 = vmatpush3.msra.mxu1 %v1770_v20  ;;  %6322 = vmatprep.subr.mxu0 %v2146_v35  ;;  %v2171_v20 = vld [vmem:[#allocation3 + $0xc98] sm:$0xff] }
 0x61c   :  { %7494 = vmatprep.subr.mxu1 %v1769_v6  ;;  %6323 = vmatpush3.msra.mxu0 %v2130_v36 }
 0x61d   :  { %7495 = vmatpush3.msra.mxu1 %v1769_v6  ;;  %6324 = vmatprep.subr.mxu0 %v2145_v38  ;;  %v2138_v6 = vld [vmem:[#allocation3 + $0xb90] sm:$0xff] }
 0x61e   :  { %7496 = vmatprep.subr.mxu1 %v1768_v7  ;;  %6325 = vmatpush3.msra.mxu0 %v2129_v40 }
 0x61f   :  { %7497 = vmatpush3.msra.mxu1 %v1768_v7  ;;  %6326 = vmatprep.subr.mxu0 %v2144_v42  ;;  %v2155_v7 = vld [vmem:[#allocation3 + $0xc18] sm:$0xff] }
 0x620   :  { %7498 = vmatprep.subr.mxu1 %v1767_v8  ;;  %6327 = vmatpush3.msra.mxu0 %v2128_v44 }
 0x621   :  { %7499 = vmatpush3.msra.mxu1 %v1767_v8  ;;  %6328 = vmatprep.subr.mxu0 %v2143_v46  ;;  %v2122_v8 = vld [vmem:[#allocation3 + $0xb10] sm:$0xff] }
 0x622   :  { %7500 = vmatprep.subr.mxu1 %v1766_v9  ;;  %6329 = vmatpush3.msra.mxu0 %v2127_v48 }
 0x623   :  { %7501 = vmatpush3.msra.mxu1 %v1766_v9  ;;  %6330 = vmatprep.subr.mxu0 %v2142_v50  ;;  %v2170_v9 = vld [vmem:[#allocation3 + $0xc90] sm:$0xff] }
 0x624   :  { %7502 = vmatprep.subr.mxu1 %v1765_v10  ;;  %6331 = vmatpush3.msra.mxu0 %v2126_v53 }
 0x625   :  { %7503 = vmatpush3.msra.mxu1 %v1765_v10  ;;  %6332 = vmatprep.subr.mxu0 %v2141_v57  ;;  %v2137_v10 = vld [vmem:[#allocation3 + $0xb88] sm:$0xff] }
 0x626   :  { %7504 = vmatprep.subr.mxu1 %v1764_v25  ;;  %6333 = vmatpush3.msra.mxu0 %v2125_v1 }
 0x627   :  { %7505 = vmatpush3.msra.mxu1 %v1764_v25  ;;  %6334 = vmatprep.subr.mxu0 %v2140_v16  ;;  %v2154_v25 = vld [vmem:[#allocation3 + $0xc10] sm:$0xff] }
 0x628   :  { %7507 = vmatmul.mubr.f32.vlgmr.msra.gmra.mxu1 %v1801_v11  ;;  %6356 = vmatprep.subr.mxu1 %v2183_v17  ;;  %v2121_v11 = vld [vmem:[#allocation3 + $0xb08] sm:$0xff]  ;;  %v2168_v17 = vld [vmem:[#allocation3 + $0xc80] sm:$0xff] }
 0x629   :  { %7509 = vmatprep.mubr.f32.mxu1 %v1802_v12  ;;  %6357 = vmatpush3.msra.mxu1 %v2167_v21  ;;  %v2169_v12 = vld [vmem:[#allocation3 + $0xc88] sm:$0xff]  ;;  %v8158_v21 = vld [vmem:[#allocation3 + $0xd78] sm:$0xff] }
 0x62a   :  { %6358 = vmatprep.subr.mxu1 %v2182_v23  ;;  %6335 = vmatpush3.msra.mxu0 %v2124_v0 }
 0x62b   :  { %6359 = vmatpush3.msra.mxu1 %v2166_v60  ;;  %6336 = vmatprep.subr.mxu0 %v2139_v19 }
 0x62c   :  { %7510 = vmatmul.mubr.f32.gmra.mxu1 %v1803_v13  ;;  %6360 = vmatprep.subr.mxu1 %v2181_v27  ;;  %v2136_v13 = vld [vmem:[#allocation3 + $0xb80] sm:$0xff] }
 0x62d   :  { %6361 = vmatpush3.msra.mxu1 %v2165_v58  ;;  %6337 = vmatpush3.msra.mxu0 %v2123_v5 }
 0x62e   :  { %6362 = vmatprep.subr.mxu1 %v2180_v30  ;;  %6338 = vmatprep.subr.mxu0 %v2138_v6 }
 0x62f   :  { %6363 = vmatpush3.msra.mxu1 %v2164_v32  ;;  %6339 = vmatpush3.msra.mxu0 %v2122_v8 }
 0x630   :  { %6364 = vmatprep.subr.mxu1 %v2179_v34  ;;  %6340 = vmatprep.subr.mxu0 %v2137_v10  ;;  %v5814_v34 = vld [vmem:[#allocation5 + $0x5] ss:$0 sm:$0xff] }
 0x631   :  { %6365 = vmatpush3.msra.mxu1 %v2163_v2  ;;  %6341 = vmatpush3.msra.mxu0 %v2121_v11 }
 0x632   :  { %6366 = vmatprep.subr.mxu1 %v2178_v37  ;;  %6342 = vmatprep.subr.mxu0 %v2136_v13 }
 0x633   :  { %6367 = vmatpush3.msra.mxu1 %v2162_v39  ;;  %6343 = vmatpush3.msra.mxu0 %v2120_v15 }
 0x634   :  { %6368 = vmatprep.subr.mxu1 %v2177_v41  ;;  %7512 = vmatprep.subr.mxu0 %v8158_v21 }
 0x635   :  { %6369 = vmatpush3.msra.mxu1 %v2161_v43 }
 0x636   :  { %6370 = vmatprep.subr.mxu1 %v2176_v45 }
 0x637   :  { %6371 = vmatpush3.msra.mxu1 %v2160_v47 }
 0x638   :  { %6372 = vmatprep.subr.mxu1 %v2175_v49 }
 0x639   :  { %6373 = vmatpush3.msra.mxu1 %v2159_v52 }
 0x63a   :  { %6374 = vmatprep.subr.mxu1 %v2174_v56 }
 0x63b   :  { %6375 = vmatpush3.msra.mxu1 %v2158_v59 }
 0x63c   :  { %6376 = vmatprep.subr.mxu1 %v2173_v61 }
 0x63d   :  { %6377 = vmatpush3.msra.mxu1 %v2157_v63 }
 0x63e   :  { %6378 = vmatprep.subr.mxu1 %v2172_v3 }
 0x63f   :  { %6379 = vmatpush3.msra.mxu1 %v2156_v4 }
 0x640   :  { %6380 = vmatprep.subr.mxu1 %v2171_v20 }
 0x641   :  { %6381 = vmatpush3.msra.mxu1 %v2155_v7 }
 0x642   :  { %6382 = vmatprep.subr.mxu1 %v2170_v9 }
 0x643   :  { %6383 = vmatpush3.msra.mxu1 %v2154_v25 }
 0x644   :  { %6384 = vmatprep.subr.mxu1 %v2169_v12 }
 0x645   :  { %6385 = vmatpush3.msra.mxu1 %v2153_v14 }
 0x646   :  { %6386 = vmatprep.subr.mxu1 %v2168_v17 }
 0x647   :  { %6387 = vmatpush3.msra.mxu1 %v2152_v18 }
 0x6c6   :  { %v6236_v22 = vpop.f32.mrf.mxu1  ;;  %v6280_v24 = vpop.f32.mrf.mxu0 }
 0x6c8   :  { %v6237_v23 = vpop.f32.mrf.mxu1  ;;  %v6281_v26 = vpop.f32.mrf.mxu0 }
 0x6c9   :  { %v6238_v33 = vadd.f32 %v6237_v23, %v6236_v22  ;;  %v6282_v40 = vadd.f32 %v6281_v26, %v6280_v24 }
 0x6ca   :  { %v6239_v60 = vpop.f32.mrf.mxu1 }
 0x6cb   :  { %v6283_v28 = vpop.f32.mrf.mxu0  ;;  %v1876_v37 = vadd.f32 %v6238_v33, %v5814_v34  ;;  %v5815_v33 = vld [vmem:[#allocation7 + $0x5] ss:$0 sm:$0xff] }
 0x6cc   :  { %v6240_v27 = vpop.f32.mrf.mxu1 }
 0x6cd   :  { %v6284_v29 = vpop.f32.mrf.mxu0  ;;  %v6241_v2 = vadd.f32 %v6240_v27, %v6239_v60  ;;  %v1961_v46 = vadd.f32 %v6282_v40, %v1876_v37  ;;  %v5816_v37 = vld [vmem:[#allocation8 + $0x5] ss:$0 sm:$0xff] }
 0x6ce   :  { %v6285_v44 = vadd.f32 %v6284_v29, %v6283_v28 }
 0x6cf   :  { %v6242_v58 = vpop.f32.mrf.mxu1  ;;  %v1881_v41 = vadd.f32 %v6241_v2, %v5814_v34 }
 0x6d0   :  { %v6286_v31 = vpop.f32.mrf.mxu0 }
 0x6d1   :  { %v6243_v30 = vpop.f32.mrf.mxu1  ;;  %v1966_v52 = vadd.f32 %v6285_v44, %v1881_v41 }
 0x6d2   :  { %v6287_v35 = vpop.f32.mrf.mxu0  ;;  %v6244_v38 = vadd.f32 %v6243_v30, %v6242_v58 }
 0x6d3   :  { %v6288_v49 = vadd.f32 %v6287_v35, %v6286_v31 }
 0x6d4   :  { %v6245_v32 = vpop.f32.mrf.mxu1  ;;  %v1886_v45 = vadd.f32 %v6244_v38, %v5814_v34 }
 0x6d5   :  { %v6289_v39 = vpop.f32.mrf.mxu0 }
 0x6d6   :  { %v6246_v36 = vpop.f32.mrf.mxu1  ;;  %v1971_v1 = vadd.f32 %v6288_v49, %v1886_v45 }
 0x6d7   :  { %v6247_v42 = vadd.f32 %v6246_v36, %v6245_v32  ;;  %v6290_v47 = vpop.f32.mrf.mxu0 }
 0x6d8   :  { %v6291_v57 = vadd.f32 %v6290_v47, %v6289_v39 }
 0x6d9   :  { %v1891_v50 = vadd.f32 %v6247_v42, %v5814_v34 }
 0x6db   :  { %v1976_v63 = vadd.f32 %v6291_v57, %v1891_v50 }
 0x6e8   :  { %v7508_v43 = vpop.f32.mrf.mxu1 }
 0x6e9   :  { %v2051_v59 = vadd.f32 %v7508_v43, %v1966_v52 }
 0x6ea   :  { %v2045_v48 = vpop.f32.mrf.mxu1 }
 0x6eb   :  { %v2046_v53 = vadd.f32 %v2045_v48, %v1961_v46 }
 0x6ec   :  { %v7511_v56 = vpop.f32.mrf.mxu1 }
 0x6ed   :  { %v2064_v16 = vadd.f32 %v2051_v59, %v2046_v53  ;;  %v2061_v3 = vadd.f32 %v7511_v56, %v1976_v63  ;;  %v2198_v56 = vld [vmem:[#allocation3 + $0xd70] sm:$0xff] }
 0x6ee   :  { %v2055_v61 = vpop.f32.mrf.mxu1 }
 0x6ef   :  { %v2056_v0 = vadd.f32 %v2055_v61, %v1971_v1  ;;  %v2197_v1 = vld [vmem:[#allocation3 + $0xd68] sm:$0xff] }
 0x6f1   :  { %v2065_v19 = vadd.f32 %v2064_v16, %v2056_v0  ;;  %v2196_v16 = vld [vmem:[#allocation3 + $0xd60] sm:$0xff] }
 0x6f3   :  { %v2066_v4 = vadd.f32 %v2065_v19, %v2061_v3  ;;  %v2194_v19 = vld [vmem:[#allocation3 + $0xd50] sm:$0xff] }
 0x6f5   :  { %v2067_v5 = vrot.slane %v2066_v4, 4 }
 0x6f7   :  { %v2068_v20 = vadd.f32 %v2067_v5, %v2066_v4 }
 0x6f9   :  { %v2069_v6 = vrot.slane %v2068_v20, 2 }
 0x6fb   :  { %v2070_v7 = vadd.f32 %v2069_v6, %v2068_v20  ;;  %v2193_v20 = vld [vmem:[#allocation3 + $0xd48] sm:$0xff] }
 0x6fd   :  { %v2071_v8 = vrot.slane %v2070_v7, 1 }
 0x6ff   :  { %v2072_v9 = vadd.f32 %v2071_v8, %v2070_v7  ;;  %v2192_v7 = vld [vmem:[#allocation3 + $0xd40] sm:$0xff] }
 0x701   :  { %v2073_v10 = vmul.f32 0.03125, %v2072_v9  ;;  %v2191_v9 = vld [vmem:[#allocation3 + $0xd38] sm:$0xff] }
 0x703   :  { %v2074_v25 = vsub.f32 %v2046_v53, %v2073_v10  ;;  %v2075_v11 = vsub.f32 %v2051_v59, %v2073_v10  ;;  %v2076_v12 = vsub.f32 %v2056_v0, %v2073_v10  ;;  %v2077_v13 = vsub.f32 %v2061_v3, %v2073_v10  ;;  %v2195_v3 = vld [vmem:[#allocation3 + $0xd58] sm:$0xff]  ;;  %v2190_v10 = vld [vmem:[#allocation3 + $0xd30] sm:$0xff] }
 0x705   :  { %v2078_v14 = vmul.f32 %v2074_v25, %v2074_v25  ;;  %v2079_v15 = vmul.f32 %v2075_v11, %v2075_v11  ;;  %v2080_v17 = vmul.f32 %v2076_v12, %v2076_v12  ;;  %v2081_v22 = vmul.f32 %v2077_v13, %v2077_v13 }
 0x707   :  { %v2082_v18 = vadd.f32 %v2079_v15, %v2078_v14  ;;  %v2185_v14 = vld [vmem:[#allocation3 + $0xd08] sm:$0xff]  ;;  %v2184_v15 = vld [vmem:[#allocation3 + $0xd00] sm:$0xff] }
 0x709   :  { %v2083_v23 = vadd.f32 %v2082_v18, %v2080_v17 }
 0x70b   :  { %v2084_v24 = vadd.f32 %v2083_v23, %v2081_v22  ;;  %v2575_v23 = vld [vmem:[#allocation3 + $0xe78] sm:$0xff] }
 0x70c   :  { %6420 = vmatprep.subr.mxu1 %v2575_v23  ;;  %v2577_v23 = vld [vmem:[#allocation3 + $0xe88] sm:$0xff] }
 0x70d   :  { %v2085_v60 = vrot.slane %v2084_v24, 4 }
 0x70f   :  { %v2086_v26 = vadd.f32 %v2085_v60, %v2084_v24  ;;  %v2559_v24 = vld [vmem:[#allocation3 + $0xdf8] sm:$0xff] }
 0x710   :  { %v2607_v60 = vld [vmem:[#allocation3 + $0xf78] sm:$0xff] }
 0x711   :  { %v2087_v27 = vrot.slane %v2086_v26, 2 }
 0x713   :  { %v2088_v28 = vadd.f32 %v2087_v27, %v2086_v26  ;;  %v2574_v26 = vld [vmem:[#allocation3 + $0xe70] sm:$0xff]  ;;  %v2591_v27 = vld [vmem:[#allocation3 + $0xef8] sm:$0xff] }
 0x715   :  { %v2089_v58 = vrot.slane %v2088_v28, 1 }
 0x717   :  { %v2090_v29 = vadd.f32 %v2089_v58, %v2088_v28  ;;  %v2558_v28 = vld [vmem:[#allocation3 + $0xdf0] sm:$0xff] }
 0x718   :  { %v2606_v58 = vld [vmem:[#allocation3 + $0xf70] sm:$0xff] }
 0x719   :  { %v2091_v30 = vmul.f32 0.03125, %v2090_v29  ;;  %v2573_v29 = vld [vmem:[#allocation3 + $0xe68] sm:$0xff] }
 0x71b   :  { %v2092_v31 = vadd.f32 1e-05, %v2091_v30  ;;  %v2590_v30 = vld [vmem:[#allocation3 + $0xef0] sm:$0xff] }
 0x71d   :  { %7903 = vrsqrt.f32 %v2092_v31  ;;  %v2557_v31 = vld [vmem:[#allocation3 + $0xde8] sm:$0xff] }
 0x72a   :  { %v7904_v32 = vpop.eup %7903 }
 0x72b   :  { %v2094_v34 = vmul.f32 %v7904_v32, %v2074_v25  ;;  %v2095_v35 = vmul.f32 %v7904_v32, %v2075_v11  ;;  %v2096_v2 = vmul.f32 %v7904_v32, %v2076_v12  ;;  %v2097_v36 = vmul.f32 %v7904_v32, %v2077_v13  ;;  %v2189_v25 = vld [vmem:[#allocation3 + $0xd28] sm:$0xff]  ;;  %v2188_v11 = vld [vmem:[#allocation3 + $0xd20] sm:$0xff]  ;;  %v2187_v12 = vld [vmem:[#allocation3 + $0xd18] sm:$0xff] }
 0x72c   :  { %v2186_v13 = vld [vmem:[#allocation3 + $0xd10] sm:$0xff]  ;;  %v2605_v32 = vld [vmem:[#allocation3 + $0xf68] sm:$0xff] }
 0x72d   :  { %v2103_v38 = vmul.f32 %v5815_v33, %v2094_v34  ;;  %v2104_v39 = vmul.f32 %v5815_v33, %v2095_v35  ;;  %v2105_v40 = vmul.f32 %v5815_v33, %v2096_v2  ;;  %v2106_v41 = vmul.f32 %v5815_v33, %v2097_v36  ;;  %v2572_v33 = vld [vmem:[#allocation3 + $0xe60] sm:$0xff]  ;;  %v2589_v34 = vld [vmem:[#allocation3 + $0xee8] sm:$0xff]  ;;  %v2571_v36 = vld [vmem:[#allocation3 + $0xe58] sm:$0xff] }
 0x72e   :  { %v2556_v35 = vld [vmem:[#allocation3 + $0xde0] sm:$0xff] }
 0x72f   :  { %v2112_v42 = vadd.f32 %v5816_v37, %v2103_v38  ;;  %v2113_v43 = vadd.f32 %v5816_v37, %v2104_v39  ;;  %v2114_v44 = vadd.f32 %v5816_v37, %v2105_v40  ;;  %v2115_v45 = vadd.f32 %v5816_v37, %v2106_v41  ;;  %v2604_v2 = vld [vmem:[#allocation3 + $0xf60] sm:$0xff]  ;;  %v2555_v38 = vld [vmem:[#allocation3 + $0xdd8] sm:$0xff]  ;;  %v2570_v40 = vld [vmem:[#allocation3 + $0xe50] sm:$0xff] }
 0x730   :  { %v2588_v37 = vld [vmem:[#allocation3 + $0xee0] sm:$0xff]  ;;  %v2603_v39 = vld [vmem:[#allocation3 + $0xf58] sm:$0xff] }
 0x731   :  { %v2116_v46 = vmax.f32 %v2112_v42, 0.0  ;;  %v2117_v47 = vmax.f32 %v2113_v43, 0.0  ;;  %v2118_v48 = vmax.f32 %v2114_v44, 0.0  ;;  %v2119_v49 = vmax.f32 %v2115_v45, 0.0  ;;  %v2587_v41 = vld [vmem:[#allocation3 + $0xed8] sm:$0xff]  ;;  %v2554_v42 = vld [vmem:[#allocation3 + $0xdd0] sm:$0xff] }
 0x732   :  { %v2602_v43 = vld [vmem:[#allocation3 + $0xf50] sm:$0xff]  ;;  %v2569_v44 = vld [vmem:[#allocation3 + $0xe48] sm:$0xff] }
 0x733   :  { %2200 = vst [vmem:[#allocation2 + $0x8] sm:$0xff] %v2116_v46  ;;  %2201 = vst [vmem:[#allocation2 + $0x10] sm:$0xff] %v2117_v47  ;;  %v2586_v45 = vld [vmem:[#allocation3 + $0xed0] sm:$0xff] }
 0x734   :  { %2202 = vst [vmem:[#allocation2 + $0x28] sm:$0xff] %v2118_v48  ;;  %2203 = vst [vmem:[#allocation2 + $0x30] sm:$0xff] %v2119_v49 }
 0x73a   :  { %v2208_v50 = vld [vmem:[#allocation2 + $0x7] sm:$0xff]  ;;  %v2209_v57 = vld [vmem:[#allocation2 + $0xf] sm:$0xff] }
 0x73b   :  { %v2216_v52 = vld [vmem:[#allocation2 + $0x9] sm:$0xff]  ;;  %2293 = vmatprep.mubr.f32.mxu0 %v2208_v50  ;;  %v2217_v59 = vld [vmem:[#allocation2 + $0x11] sm:$0xff]  ;;  %v2552_v50 = vld [vmem:[#allocation3 + $0xdc0] sm:$0xff] }
 0x73c   :  { %v2204_v53 = vld [vmem:[#allocation2 + $0x6] sm:$0xff]  ;;  %2378 = vmatprep.mubr.f32.mxu1 %v2216_v52  ;;  %v2205_v61 = vld [vmem:[#allocation2 + $0xe] sm:$0xff] }
 0x73d   :  { %2294 = vmatmul.mubr.f32.vlgmr.msra.gmra.mxu0 %v2204_v53  ;;  %2379 = vmatmul.mubr.f32.vlgmr.msra.gmra.mxu1 %v2116_v46  ;;  %v2210_v63 = vld [vmem:[#allocation2 + $0x27] sm:$0xff]  ;;  %v2211_v4 = vld [vmem:[#allocation2 + $0x2f] sm:$0xff]  ;;  %v2567_v53 = vld [vmem:[#allocation3 + $0xe38] sm:$0xff] }
 0x73e   :  { %7513 = vmatpush3.msra.mxu0 %v8158_v21  ;;  %2298 = vmatprep.mubr.f32.mxu0 %v2209_v57  ;;  %v2218_v0 = vld [vmem:[#allocation2 + $0x29] sm:$0xff]  ;;  %v2219_v5 = vld [vmem:[#allocation2 + $0x31] sm:$0xff]  ;;  %v2600_v52 = vld [vmem:[#allocation3 + $0xf40] sm:$0xff] }
 0x73f   :  { %2383 = vmatprep.mubr.f32.mxu1 %v2217_v59  ;;  %7514 = vmatprep.subr.mxu0 %v2198_v56  ;;  %v2206_v21 = vld [vmem:[#allocation2 + $0x26] sm:$0xff]  ;;  %v2207_v6 = vld [vmem:[#allocation2 + $0x2e] sm:$0xff]  ;;  %v2551_v57 = vld [vmem:[#allocation3 + $0xdb8] sm:$0xff] }
 0x740   :  { %7515 = vmatpush3.msra.mxu0 %v2198_v56  ;;  %v2220_v8 = vld [vmem:[#allocation2 + $0xa] sm:$0xff]  ;;  %v2221_v17 = vld [vmem:[#allocation2 + $0x12] sm:$0xff]  ;;  %6421 = vmatpush3.msra.mxu1 %v2559_v24  ;;  %v2584_v56 = vld [vmem:[#allocation3 + $0xec0] sm:$0xff] }
 0x741   :  { %7516 = vmatprep.subr.mxu0 %v2197_v1  ;;  %2299 = vmatmul.mubr.f32.gmra.mxu0 %v2205_v61  ;;  %v2222_v18 = vld [vmem:[#allocation2 + $0x2a] sm:$0xff]  ;;  %v2223_v22 = vld [vmem:[#allocation2 + $0x32] sm:$0xff]  ;;  %v2544_v24 = vld [vmem:[#allocation3 + $0xd80] sm:$0xff] }
 0x742   :  { %2384 = vmatmul.mubr.f32.gmra.mxu1 %v2117_v47  ;;  %7517 = vmatpush3.msra.mxu0 %v2197_v1  ;;  %v2553_v46 = vld [vmem:[#allocation3 + $0xdc8] sm:$0xff]  ;;  %v2599_v59 = vld [vmem:[#allocation3 + $0xf38] sm:$0xff]  ;;  %v2566_v1 = vld [vmem:[#allocation3 + $0xe30] sm:$0xff] }
 0x743   :  { %2303 = vmatprep.mubr.f32.mxu0 %v2210_v63  ;;  %2388 = vmatprep.mubr.f32.mxu1 %v2218_v0  ;;  %v2601_v47 = vld [vmem:[#allocation3 + $0xf48] sm:$0xff]  ;;  %v2583_v61 = vld [vmem:[#allocation3 + $0xeb8] sm:$0xff]  ;;  %v2598_v63 = vld [vmem:[#allocation3 + $0xf30] sm:$0xff] }
 0x744   :  { %7518 = vmatprep.subr.mxu0 %v2196_v16  ;;  %6422 = vmatprep.subr.mxu1 %v2574_v26  ;;  %v2565_v0 = vld [vmem:[#allocation3 + $0xe28] sm:$0xff]  ;;  %v2576_v26 = vld [vmem:[#allocation3 + $0xe80] sm:$0xff] }
 0x745   :  { %7519 = vmatpush3.msra.mxu0 %v2196_v16  ;;  %6423 = vmatpush3.msra.mxu1 %v2558_v28  ;;  %v2550_v16 = vld [vmem:[#allocation3 + $0xdb0] sm:$0xff] }
 0x746   :  { %7520 = vmatprep.subr.mxu0 %v2195_v3  ;;  %2304 = vmatmul.mubr.f32.gmra.mxu0 %v2206_v21  ;;  %v2549_v21 = vld [vmem:[#allocation3 + $0xda8] sm:$0xff] }
 0x747   :  { %2389 = vmatmul.mubr.f32.gmra.mxu1 %v2118_v48  ;;  %7521 = vmatpush3.msra.mxu0 %v2195_v3  ;;  %v2568_v48 = vld [vmem:[#allocation3 + $0xe40] sm:$0xff]  ;;  %v2582_v3 = vld [vmem:[#allocation3 + $0xeb0] sm:$0xff] }
 0x748   :  { %2308 = vmatprep.mubr.f32.mxu0 %v2211_v4  ;;  %2393 = vmatprep.mubr.f32.mxu1 %v2219_v5  ;;  %v2564_v4 = vld [vmem:[#allocation3 + $0xe20] sm:$0xff]  ;;  %v2581_v5 = vld [vmem:[#allocation3 + $0xea8] sm:$0xff] }
 0x749   :  { %7522 = vmatprep.subr.mxu0 %v2194_v19  ;;  %6424 = vmatprep.subr.mxu1 %v2573_v29 }
 0x74a   :  { %7523 = vmatpush3.msra.mxu0 %v2194_v19  ;;  %6425 = vmatpush3.msra.mxu1 %v2557_v31  ;;  %v2597_v19 = vld [vmem:[#allocation3 + $0xf28] sm:$0xff] }
 0x74b   :  { %7524 = vmatprep.subr.mxu0 %v2193_v20  ;;  %2309 = vmatmul.mubr.f32.gmra.mxu0 %v2207_v6  ;;  %v2596_v6 = vld [vmem:[#allocation3 + $0xf20] sm:$0xff] }
 0x74c   :  { %2394 = vmatmul.mubr.f32.gmra.mxu1 %v2119_v49  ;;  %7525 = vmatpush3.msra.mxu0 %v2193_v20  ;;  %v2585_v49 = vld [vmem:[#allocation3 + $0xec8] sm:$0xff]  ;;  %v2548_v20 = vld [vmem:[#allocation3 + $0xda0] sm:$0xff] }
 0x74d   :  { %7526 = vmatprep.subr.mxu0 %v2192_v7  ;;  %7544 = vmatprep.mubr.f32.mxu0 %v2220_v8  ;;  %v2580_v8 = vld [vmem:[#allocation3 + $0xea0] sm:$0xff] }
 0x74e   :  { %7527 = vmatpush3.msra.mxu0 %v2192_v7  ;;  %6426 = vmatprep.subr.mxu1 %v2572_v33  ;;  %v2563_v7 = vld [vmem:[#allocation3 + $0xe18] sm:$0xff] }
 0x74f   :  { %7528 = vmatprep.subr.mxu0 %v2191_v9  ;;  %6427 = vmatpush3.msra.mxu1 %v2556_v35 }
 0x750   :  { %7529 = vmatpush3.msra.mxu0 %v2191_v9  ;;  %6428 = vmatprep.subr.mxu1 %v2571_v36  ;;  %v2547_v9 = vld [vmem:[#allocation3 + $0xd98] sm:$0xff] }
 0x751   :  { %7530 = vmatprep.subr.mxu0 %v2190_v10  ;;  %6429 = vmatpush3.msra.mxu1 %v2555_v38 }
 0x752   :  { %7531 = vmatpush3.msra.mxu0 %v2190_v10  ;;  %6430 = vmatprep.subr.mxu1 %v2570_v40  ;;  %v2595_v10 = vld [vmem:[#allocation3 + $0xf18] sm:$0xff] }
 0x753   :  { %7532 = vmatprep.subr.mxu0 %v2189_v25  ;;  %6431 = vmatpush3.msra.mxu1 %v2554_v42 }
 0x754   :  { %7533 = vmatpush3.msra.mxu0 %v2189_v25  ;;  %6432 = vmatprep.subr.mxu1 %v2569_v44  ;;  %v2562_v25 = vld [vmem:[#allocation3 + $0xe10] sm:$0xff] }
 0x755   :  { %7534 = vmatprep.subr.mxu0 %v2188_v11  ;;  %6433 = vmatpush3.msra.mxu1 %v2553_v46 }
 0x756   :  { %7535 = vmatpush3.msra.mxu0 %v2188_v11  ;;  %6434 = vmatprep.subr.mxu1 %v2568_v48  ;;  %v2579_v11 = vld [vmem:[#allocation3 + $0xe98] sm:$0xff] }
 0x757   :  { %7536 = vmatprep.subr.mxu0 %v2187_v12  ;;  %6435 = vmatpush3.msra.mxu1 %v2552_v50 }
 0x758   :  { %7537 = vmatpush3.msra.mxu0 %v2187_v12  ;;  %6436 = vmatprep.subr.mxu1 %v2567_v53  ;;  %v2546_v12 = vld [vmem:[#allocation3 + $0xd90] sm:$0xff] }
 0x759   :  { %7538 = vmatprep.subr.mxu0 %v2186_v13  ;;  %6437 = vmatpush3.msra.mxu1 %v2551_v57 }
 0x75a   :  { %7539 = vmatpush3.msra.mxu0 %v2186_v13  ;;  %6438 = vmatprep.subr.mxu1 %v2566_v1  ;;  %v2594_v13 = vld [vmem:[#allocation3 + $0xf10] sm:$0xff] }
 0x75b   :  { %7540 = vmatprep.subr.mxu0 %v2185_v14  ;;  %6439 = vmatpush3.msra.mxu1 %v2550_v16 }
 0x75c   :  { %7541 = vmatpush3.msra.mxu0 %v2185_v14  ;;  %6440 = vmatprep.subr.mxu1 %v2565_v0  ;;  %v2561_v14 = vld [vmem:[#allocation3 + $0xe08] sm:$0xff] }
 0x75d   :  { %7542 = vmatprep.subr.mxu0 %v2184_v15  ;;  %6441 = vmatpush3.msra.mxu1 %v2549_v21 }
 0x75e   :  { %7543 = vmatpush3.msra.mxu0 %v2184_v15  ;;  %6442 = vmatprep.subr.mxu1 %v2564_v4  ;;  %v2578_v15 = vld [vmem:[#allocation3 + $0xe90] sm:$0xff] }
 0x75f   :  { %7545 = vmatmul.mubr.f32.vlgmr.msra.gmra.mxu0 %v2221_v17  ;;  %6464 = vmatprep.subr.mxu0 %v2607_v60  ;;  %v2545_v17 = vld [vmem:[#allocation3 + $0xd88] sm:$0xff]  ;;  %v2592_v60 = vld [vmem:[#allocation3 + $0xf00] sm:$0xff] }
 0x760   :  { %7547 = vmatprep.mubr.f32.mxu0 %v2222_v18  ;;  %6465 = vmatpush3.msra.mxu0 %v2591_v27  ;;  %v2593_v18 = vld [vmem:[#allocation3 + $0xf08] sm:$0xff]  ;;  %v8162_v27 = vld [vmem:[#allocation3 + $0xff8] sm:$0xff] }
 0x761   :  { %6466 = vmatprep.subr.mxu0 %v2606_v58  ;;  %6443 = vmatpush3.msra.mxu1 %v2548_v20 }
 0x762   :  { %6467 = vmatpush3.msra.mxu0 %v2590_v30  ;;  %6444 = vmatprep.subr.mxu1 %v2563_v7 }
 0x763   :  { %7548 = vmatmul.mubr.f32.gmra.mxu0 %v2223_v22  ;;  %6468 = vmatprep.subr.mxu0 %v2605_v32  ;;  %v2560_v22 = vld [vmem:[#allocation3 + $0xe00] sm:$0xff] }
 0x764   :  { %6469 = vmatpush3.msra.mxu0 %v2589_v34  ;;  %6445 = vmatpush3.msra.mxu1 %v2547_v9 }
 0x765   :  { %6470 = vmatprep.subr.mxu0 %v2604_v2  ;;  %6446 = vmatprep.subr.mxu1 %v2562_v25 }
 0x766   :  { %6471 = vmatpush3.msra.mxu0 %v2588_v37  ;;  %6447 = vmatpush3.msra.mxu1 %v2546_v12 }
 0x767   :  { %6472 = vmatprep.subr.mxu0 %v2603_v39  ;;  %6448 = vmatprep.subr.mxu1 %v2561_v14 }
 0x768   :  { %6473 = vmatpush3.msra.mxu0 %v2587_v41  ;;  %6449 = vmatpush3.msra.mxu1 %v2545_v17  ;;  %v5817_v41 = vld [vmem:[#allocation5 + $0x6] ss:$0 sm:$0xff] }
 0x769   :  { %6474 = vmatprep.subr.mxu0 %v2602_v43  ;;  %6450 = vmatprep.subr.mxu1 %v2560_v22 }
 0x76a   :  { %6475 = vmatpush3.msra.mxu0 %v2586_v45  ;;  %6451 = vmatpush3.msra.mxu1 %v2544_v24 }
 0x76b   :  { %6476 = vmatprep.subr.mxu0 %v2601_v47  ;;  %7550 = vmatprep.subr.mxu1 %v8162_v27 }
 0x76c   :  { %6477 = vmatpush3.msra.mxu0 %v2585_v49 }
 0x76d   :  { %6478 = vmatprep.subr.mxu0 %v2600_v52 }
 0x76e   :  { %6479 = vmatpush3.msra.mxu0 %v2584_v56 }
 0x76f   :  { %6480 = vmatprep.subr.mxu0 %v2599_v59 }
 0x770   :  { %6481 = vmatpush3.msra.mxu0 %v2583_v61 }
 0x771   :  { %6482 = vmatprep.subr.mxu0 %v2598_v63 }
 0x772   :  { %6483 = vmatpush3.msra.mxu0 %v2582_v3 }
 0x773   :  { %6484 = vmatprep.subr.mxu0 %v2597_v19 }
 0x774   :  { %6485 = vmatpush3.msra.mxu0 %v2581_v5 }
 0x775   :  { %6486 = vmatprep.subr.mxu0 %v2596_v6 }
 0x776   :  { %6487 = vmatpush3.msra.mxu0 %v2580_v8 }
 0x777   :  { %6488 = vmatprep.subr.mxu0 %v2595_v10 }
 0x778   :  { %6489 = vmatpush3.msra.mxu0 %v2579_v11 }
 0x779   :  { %6490 = vmatprep.subr.mxu0 %v2594_v13 }
 0x77a   :  { %6491 = vmatpush3.msra.mxu0 %v2578_v15 }
 0x77b   :  { %6492 = vmatprep.subr.mxu0 %v2593_v18 }
 0x77c   :  { %6493 = vmatpush3.msra.mxu0 %v2577_v23 }
 0x77d   :  { %6494 = vmatprep.subr.mxu0 %v2592_v60 }
 0x77e   :  { %6495 = vmatpush3.msra.mxu0 %v2576_v26 }
 0x7fd   :  { %v6344_v28 = vpop.f32.mrf.mxu0  ;;  %v6388_v29 = vpop.f32.mrf.mxu1 }
 0x7ff   :  { %v6345_v58 = vpop.f32.mrf.mxu0  ;;  %v6389_v31 = vpop.f32.mrf.mxu1 }
 0x800   :  { %v6346_v39 = vadd.f32 %v6345_v58, %v6344_v28  ;;  %v6390_v48 = vadd.f32 %v6389_v31, %v6388_v29 }
 0x801   :  { %v6347_v30 = vpop.f32.mrf.mxu0 }
 0x802   :  { %v6391_v33 = vpop.f32.mrf.mxu1  ;;  %v2296_v44 = vadd.f32 %v6346_v39, %v5817_v41 }
 0x803   :  { %v6348_v32 = vpop.f32.mrf.mxu0 }
 0x804   :  { %v6392_v35 = vpop.f32.mrf.mxu1  ;;  %v6349_v40 = vadd.f32 %v6348_v32, %v6347_v30  ;;  %v2381_v59 = vadd.f32 %v6390_v48, %v2296_v44 }
 0x805   :  { %v6393_v49 = vadd.f32 %v6392_v35, %v6391_v33 }
 0x806   :  { %v6350_v34 = vpop.f32.mrf.mxu0  ;;  %v2301_v45 = vadd.f32 %v6349_v40, %v5817_v41 }
 0x807   :  { %v6394_v36 = vpop.f32.mrf.mxu1 }
 0x808   :  { %v6351_v2 = vpop.f32.mrf.mxu0  ;;  %v2386_v57 = vadd.f32 %v6393_v49, %v2301_v45 }
 0x809   :  { %v6395_v38 = vpop.f32.mrf.mxu1  ;;  %v6352_v46 = vadd.f32 %v6351_v2, %v6350_v34 }
 0x80a   :  { %v6396_v61 = vadd.f32 %v6395_v38, %v6394_v36  ;;  %v5818_v38 = vld [vmem:[#allocation7 + $0x6] ss:$0 sm:$0xff] }
 0x80b   :  { %v6353_v37 = vpop.f32.mrf.mxu0  ;;  %v2306_v53 = vadd.f32 %v6352_v46, %v5817_v41 }
 0x80c   :  { %v6397_v43 = vpop.f32.mrf.mxu1 }
 0x80d   :  { %v6354_v42 = vpop.f32.mrf.mxu0  ;;  %v2391_v4 = vadd.f32 %v6396_v61, %v2306_v53 }
 0x80e   :  { %v6355_v47 = vadd.f32 %v6354_v42, %v6353_v37  ;;  %v6398_v50 = vpop.f32.mrf.mxu1 }
 0x80f   :  { %v6399_v16 = vadd.f32 %v6398_v50, %v6397_v43  ;;  %v5819_v43 = vld [vmem:[#allocation8 + $0x6] ss:$0 sm:$0xff] }
 0x810   :  { %v2311_v56 = vadd.f32 %v6355_v47, %v5817_v41 }
 0x812   :  { %v2396_v19 = vadd.f32 %v6399_v16, %v2311_v56 }
 0x81f   :  { %v7546_v52 = vpop.f32.mrf.mxu0 }
 0x820   :  { %v2471_v63 = vadd.f32 %v7546_v52, %v2386_v57 }
 0x821   :  { %v2465_v1 = vpop.f32.mrf.mxu0 }
 0x822   :  { %v2466_v0 = vadd.f32 %v2465_v1, %v2381_v59  ;;  %v8169_v20 = vadd.f32 %v2471_v63, %v8138_v51  ;;  %v2622_v63 = vld [vmem:[#allocation3 + $0xff0] sm:$0xff] }
 0x823   :  { %v7549_v3 = vpop.f32.mrf.mxu0 }
 0x824   :  { %v8166_v21 = vadd.f32 %v2466_v0, %v8141_v54  ;;  %v2481_v6 = vadd.f32 %v7549_v3, %v2396_v19  ;;  %v2621_v19 = vld [vmem:[#allocation3 + $0xfe8] sm:$0xff] }
 0x825   :  { %v2475_v5 = vpop.f32.mrf.mxu0 }
 0x826   :  { %v2476_v7 = vadd.f32 %v2475_v5, %v2391_v4  ;;  %v2488_v8 = vadd.f32 %v8169_v20, %v8166_v21  ;;  %v8177_v10 = vadd.f32 %v2481_v6, %v8150_v62  ;;  %v2620_v5 = vld [vmem:[#allocation3 + $0xfe0] sm:$0xff] }
 0x828   :  { %v8174_v9 = vadd.f32 %v2476_v7, %v8144_v55 }
 0x82a   :  { %v2489_v54 = vadd.f32 %v2488_v8, %v8174_v9  ;;  %v2619_v8 = vld [vmem:[#allocation3 + $0xfd8] sm:$0xff] }
 0x82c   :  { %v2490_v25 = vadd.f32 %v2489_v54, %v8177_v10  ;;  %v2618_v54 = vld [vmem:[#allocation3 + $0xfd0] sm:$0xff] }
 0x82e   :  { %v2491_v11 = vrot.slane %v2490_v25, 4 }
 0x830   :  { %v2492_v12 = vadd.f32 %v2491_v11, %v2490_v25 }
 0x832   :  { %v2493_v13 = vrot.slane %v2492_v12, 2 }
 0x834   :  { %v2494_v51 = vadd.f32 %v2493_v13, %v2492_v12  ;;  %v2617_v12 = vld [vmem:[#allocation3 + $0xfc8] sm:$0xff] }
 0x836   :  { %v2495_v14 = vrot.slane %v2494_v51, 1 }
 0x838   :  { %v2496_v15 = vadd.f32 %v2495_v14, %v2494_v51  ;;  %v2616_v51 = vld [vmem:[#allocation3 + $0xfc0] sm:$0xff] }
 0x83a   :  { %v2497_v17 = vmul.f32 0.03125, %v2496_v15  ;;  %v2615_v15 = vld [vmem:[#allocation3 + $0xfb8] sm:$0xff] }
 0x83c   :  { %v2498_v18 = vsub.f32 %v8166_v21, %v2497_v17  ;;  %v2499_v22 = vsub.f32 %v8169_v20, %v2497_v17  ;;  %v2500_v55 = vsub.f32 %v8174_v9, %v2497_v17  ;;  %v2501_v62 = vsub.f32 %v8177_v10, %v2497_v17  ;;  %v2614_v17 = vld [vmem:[#allocation3 + $0xfb0] sm:$0xff] }
 0x83e   :  { %v2502_v23 = vmul.f32 %v2498_v18, %v2498_v18  ;;  %v2503_v24 = vmul.f32 %v2499_v22, %v2499_v22  ;;  %v2504_v60 = vmul.f32 %v2500_v55, %v2500_v55  ;;  %v2505_v28 = vmul.f32 %v2501_v62, %v2501_v62 }
 0x840   :  { %v2506_v26 = vadd.f32 %v2503_v24, %v2502_v23  ;;  %v2609_v23 = vld [vmem:[#allocation3 + $0xf88] sm:$0xff]  ;;  %v2608_v24 = vld [vmem:[#allocation3 + $0xf80] sm:$0xff] }
 0x842   :  { %v2507_v58 = vadd.f32 %v2506_v26, %v2504_v60 }
 0x844   :  { %v2508_v29 = vadd.f32 %v2507_v58, %v2505_v28  ;;  %v2995_v58 = vld [vmem:[#allocation3 + $0x10f8] sm:$0xff] }
 0x845   :  { %6528 = vmatprep.subr.mxu0 %v2995_v58  ;;  %v2997_v58 = vld [vmem:[#allocation3 + $0x1108] sm:$0xff] }
 0x846   :  { %v2509_v30 = vrot.slane %v2508_v29, 4 }
 0x848   :  { %v2510_v31 = vadd.f32 %v2509_v30, %v2508_v29  ;;  %v2979_v29 = vld [vmem:[#allocation3 + $0x1078] sm:$0xff] }
 0x849   :  { %v3027_v30 = vld [vmem:[#allocation3 + $0x11f8] sm:$0xff] }
 0x84a   :  { %v2511_v32 = vrot.slane %v2510_v31, 2 }
 0x84c   :  { %v2512_v33 = vadd.f32 %v2511_v32, %v2510_v31  ;;  %v2994_v31 = vld [vmem:[#allocation3 + $0x10f0] sm:$0xff]  ;;  %v3011_v32 = vld [vmem:[#allocation3 + $0x1178] sm:$0xff] }
 0x84e   :  { %v2513_v34 = vrot.slane %v2512_v33, 1 }
 0x850   :  { %v2514_v35 = vadd.f32 %v2513_v34, %v2512_v33  ;;  %v2978_v33 = vld [vmem:[#allocation3 + $0x1070] sm:$0xff] }
 0x851   :  { %v3026_v34 = vld [vmem:[#allocation3 + $0x11f0] sm:$0xff] }
 0x852   :  { %v2515_v2 = vmul.f32 0.03125, %v2514_v35  ;;  %v2993_v35 = vld [vmem:[#allocation3 + $0x10e8] sm:$0xff] }
 0x854   :  { %v2516_v36 = vadd.f32 1e-05, %v2515_v2  ;;  %v3010_v2 = vld [vmem:[#allocation3 + $0x1170] sm:$0xff] }
 0x856   :  { %7905 = vrsqrt.f32 %v2516_v36  ;;  %v2977_v36 = vld [vmem:[#allocation3 + $0x1068] sm:$0xff] }
 0x863   :  { %v7906_v37 = vpop.eup %7905 }
 0x864   :  { %v2518_v39 = vmul.f32 %v7906_v37, %v2498_v18  ;;  %v2519_v40 = vmul.f32 %v7906_v37, %v2499_v22  ;;  %v2520_v41 = vmul.f32 %v7906_v37, %v2500_v55  ;;  %v2521_v42 = vmul.f32 %v7906_v37, %v2501_v62  ;;  %v2613_v18 = vld [vmem:[#allocation3 + $0xfa8] sm:$0xff]  ;;  %v2612_v22 = vld [vmem:[#allocation3 + $0xfa0] sm:$0xff]  ;;  %v2611_v55 = vld [vmem:[#allocation3 + $0xf98] sm:$0xff] }
 0x865   :  { %v2610_v62 = vld [vmem:[#allocation3 + $0xf90] sm:$0xff]  ;;  %v3025_v37 = vld [vmem:[#allocation3 + $0x11e8] sm:$0xff] }
 0x866   :  { %v2527_v44 = vmul.f32 %v5818_v38, %v2518_v39  ;;  %v2528_v45 = vmul.f32 %v5818_v38, %v2519_v40  ;;  %v2529_v46 = vmul.f32 %v5818_v38, %v2520_v41  ;;  %v2530_v47 = vmul.f32 %v5818_v38, %v2521_v42  ;;  %v2992_v38 = vld [vmem:[#allocation3 + $0x10e0] sm:$0xff]  ;;  %v3009_v39 = vld [vmem:[#allocation3 + $0x1168] sm:$0xff]  ;;  %v2991_v42 = vld [vmem:[#allocation3 + $0x10d8] sm:$0xff] }
 0x867   :  { %v2976_v40 = vld [vmem:[#allocation3 + $0x1060] sm:$0xff] }
 0x868   :  { %v2536_v48 = vadd.f32 %v5819_v43, %v2527_v44  ;;  %v2537_v49 = vadd.f32 %v5819_v43, %v2528_v45  ;;  %v2538_v50 = vadd.f32 %v5819_v43, %v2529_v46  ;;  %v2539_v52 = vadd.f32 %v5819_v43, %v2530_v47  ;;  %v3024_v41 = vld [vmem:[#allocation3 + $0x11e0] sm:$0xff]  ;;  %v2975_v44 = vld [vmem:[#allocation3 + $0x1058] sm:$0xff]  ;;  %v2990_v46 = vld [vmem:[#allocation3 + $0x10d0] sm:$0xff] }
 0x869   :  { %v3008_v43 = vld [vmem:[#allocation3 + $0x1160] sm:$0xff]  ;;  %v3023_v45 = vld [vmem:[#allocation3 + $0x11d8] sm:$0xff] }
 0x86a   :  { %v2540_v53 = vmax.f32 %v2536_v48, 0.0  ;;  %v2541_v56 = vmax.f32 %v2537_v49, 0.0  ;;  %v2542_v57 = vmax.f32 %v2538_v50, 0.0  ;;  %v2543_v59 = vmax.f32 %v2539_v52, 0.0  ;;  %v3007_v47 = vld [vmem:[#allocation3 + $0x1158] sm:$0xff]  ;;  %v2974_v48 = vld [vmem:[#allocation3 + $0x1050] sm:$0xff] }
 0x86b   :  { %v3022_v49 = vld [vmem:[#allocation3 + $0x11d0] sm:$0xff]  ;;  %v2989_v50 = vld [vmem:[#allocation3 + $0x10c8] sm:$0xff] }
 0x86c   :  { %2624 = vst [vmem:[#allocation2 + $0x8] sm:$0xff] %v2540_v53  ;;  %2625 = vst [vmem:[#allocation2 + $0x10] sm:$0xff] %v2541_v56  ;;  %v3006_v52 = vld [vmem:[#allocation3 + $0x1150] sm:$0xff] }
 0x86d   :  { %2626 = vst [vmem:[#allocation2 + $0x28] sm:$0xff] %v2542_v57  ;;  %2627 = vst [vmem:[#allocation2 + $0x30] sm:$0xff] %v2543_v59 }
 0x873   :  { %v2632_v1 = vld [vmem:[#allocation2 + $0x7] sm:$0xff]  ;;  %v2633_v0 = vld [vmem:[#allocation2 + $0xf] sm:$0xff] }
 0x874   :  { %v2640_v61 = vld [vmem:[#allocation2 + $0x9] sm:$0xff]  ;;  %2717 = vmatprep.mubr.f32.mxu1 %v2632_v1  ;;  %v2641_v3 = vld [vmem:[#allocation2 + $0x11] sm:$0xff]  ;;  %v2972_v1 = vld [vmem:[#allocation3 + $0x1040] sm:$0xff] }
 0x875   :  { %v2628_v16 = vld [vmem:[#allocation2 + $0x6] sm:$0xff]  ;;  %2802 = vmatprep.mubr.f32.mxu0 %v2640_v61  ;;  %v2629_v4 = vld [vmem:[#allocation2 + $0xe] sm:$0xff] }
 0x876   :  { %2718 = vmatmul.mubr.f32.vlgmr.msra.gmra.mxu1 %v2628_v16  ;;  %2803 = vmatmul.mubr.f32.vlgmr.msra.gmra.mxu0 %v2540_v53  ;;  %v2634_v6 = vld [vmem:[#allocation2 + $0x27] sm:$0xff]  ;;  %v2635_v25 = vld [vmem:[#allocation2 + $0x2f] sm:$0xff]  ;;  %v2987_v16 = vld [vmem:[#allocation3 + $0x10b8] sm:$0xff] }
 0x877   :  { %7551 = vmatpush3.msra.mxu1 %v8162_v27  ;;  %2722 = vmatprep.mubr.f32.mxu1 %v2633_v0  ;;  %v2642_v7 = vld [vmem:[#allocation2 + $0x29] sm:$0xff]  ;;  %v2643_v11 = vld [vmem:[#allocation2 + $0x31] sm:$0xff]  ;;  %v3020_v61 = vld [vmem:[#allocation3 + $0x11c0] sm:$0xff] }
 0x878   :  { %2807 = vmatprep.mubr.f32.mxu0 %v2641_v3  ;;  %7552 = vmatprep.subr.mxu1 %v2622_v63  ;;  %v2630_v27 = vld [vmem:[#allocation2 + $0x26] sm:$0xff]  ;;  %v2631_v13 = vld [vmem:[#allocation2 + $0x2e] sm:$0xff]  ;;  %v2971_v0 = vld [vmem:[#allocation3 + $0x1038] sm:$0xff] }
 0x879   :  { %7553 = vmatpush3.msra.mxu1 %v2622_v63  ;;  %v2644_v14 = vld [vmem:[#allocation2 + $0xa] sm:$0xff]  ;;  %v2645_v60 = vld [vmem:[#allocation2 + $0x12] sm:$0xff]  ;;  %6529 = vmatpush3.msra.mxu0 %v2979_v29  ;;  %v3004_v63 = vld [vmem:[#allocation3 + $0x1140] sm:$0xff] }
 0x87a   :  { %7554 = vmatprep.subr.mxu1 %v2621_v19  ;;  %2723 = vmatmul.mubr.f32.gmra.mxu1 %v2629_v4  ;;  %v2646_v26 = vld [vmem:[#allocation2 + $0x2a] sm:$0xff]  ;;  %v2647_v28 = vld [vmem:[#allocation2 + $0x32] sm:$0xff]  ;;  %v2964_v29 = vld [vmem:[#allocation3 + $0x1000] sm:$0xff] }
 0x87b   :  { %2808 = vmatmul.mubr.f32.gmra.mxu0 %v2541_v56  ;;  %7555 = vmatpush3.msra.mxu1 %v2621_v19  ;;  %v2973_v53 = vld [vmem:[#allocation3 + $0x1048] sm:$0xff]  ;;  %v3019_v3 = vld [vmem:[#allocation3 + $0x11b8] sm:$0xff]  ;;  %v2986_v19 = vld [vmem:[#allocation3 + $0x10b0] sm:$0xff] }
 0x87c   :  { %2727 = vmatprep.mubr.f32.mxu1 %v2634_v6  ;;  %2812 = vmatprep.mubr.f32.mxu0 %v2642_v7  ;;  %v3021_v56 = vld [vmem:[#allocation3 + $0x11c8] sm:$0xff]  ;;  %v3003_v4 = vld [vmem:[#allocation3 + $0x1138] sm:$0xff]  ;;  %v3018_v6 = vld [vmem:[#allocation3 + $0x11b0] sm:$0xff] }
 0x87d   :  { %7556 = vmatprep.subr.mxu1 %v2620_v5  ;;  %6530 = vmatprep.subr.mxu0 %v2994_v31  ;;  %v2985_v7 = vld [vmem:[#allocation3 + $0x10a8] sm:$0xff]  ;;  %v2996_v31 = vld [vmem:[#allocation3 + $0x1100] sm:$0xff] }
 0x87e   :  { %7557 = vmatpush3.msra.mxu1 %v2620_v5  ;;  %6531 = vmatpush3.msra.mxu0 %v2978_v33  ;;  %v2970_v5 = vld [vmem:[#allocation3 + $0x1030] sm:$0xff] }
 0x87f   :  { %7558 = vmatprep.subr.mxu1 %v2619_v8  ;;  %2728 = vmatmul.mubr.f32.gmra.mxu1 %v2630_v27  ;;  %v2969_v27 = vld [vmem:[#allocation3 + $0x1028] sm:$0xff] }
 0x880   :  { %2813 = vmatmul.mubr.f32.gmra.mxu0 %v2542_v57  ;;  %7559 = vmatpush3.msra.mxu1 %v2619_v8  ;;  %v2988_v57 = vld [vmem:[#allocation3 + $0x10c0] sm:$0xff]  ;;  %v3002_v8 = vld [vmem:[#allocation3 + $0x1130] sm:$0xff] }
 0x881   :  { %2732 = vmatprep.mubr.f32.mxu1 %v2635_v25  ;;  %2817 = vmatprep.mubr.f32.mxu0 %v2643_v11  ;;  %v2984_v25 = vld [vmem:[#allocation3 + $0x10a0] sm:$0xff]  ;;  %v3001_v11 = vld [vmem:[#allocation3 + $0x1128] sm:$0xff] }
 0x882   :  { %7560 = vmatprep.subr.mxu1 %v2618_v54  ;;  %6532 = vmatprep.subr.mxu0 %v2993_v35 }
 0x883   :  { %7561 = vmatpush3.msra.mxu1 %v2618_v54  ;;  %6533 = vmatpush3.msra.mxu0 %v2977_v36  ;;  %v3017_v54 = vld [vmem:[#allocation3 + $0x11a8] sm:$0xff] }
 0x884   :  { %7562 = vmatprep.subr.mxu1 %v2617_v12  ;;  %2733 = vmatmul.mubr.f32.gmra.mxu1 %v2631_v13  ;;  %v3016_v13 = vld [vmem:[#allocation3 + $0x11a0] sm:$0xff] }
 0x885   :  { %2818 = vmatmul.mubr.f32.gmra.mxu0 %v2543_v59  ;;  %7563 = vmatpush3.msra.mxu1 %v2617_v12  ;;  %v3005_v59 = vld [vmem:[#allocation3 + $0x1148] sm:$0xff]  ;;  %v2968_v12 = vld [vmem:[#allocation3 + $0x1020] sm:$0xff] }
 0x886   :  { %7564 = vmatprep.subr.mxu1 %v2616_v51  ;;  %7582 = vmatprep.mubr.f32.mxu1 %v2644_v14  ;;  %v3000_v14 = vld [vmem:[#allocation3 + $0x1120] sm:$0xff] }
 0x887   :  { %7565 = vmatpush3.msra.mxu1 %v2616_v51  ;;  %6534 = vmatprep.subr.mxu0 %v2992_v38  ;;  %v2983_v51 = vld [vmem:[#allocation3 + $0x1098] sm:$0xff] }
 0x888   :  { %7566 = vmatprep.subr.mxu1 %v2615_v15  ;;  %6535 = vmatpush3.msra.mxu0 %v2976_v40 }
 0x889   :  { %7567 = vmatpush3.msra.mxu1 %v2615_v15  ;;  %6536 = vmatprep.subr.mxu0 %v2991_v42  ;;  %v2967_v15 = vld [vmem:[#allocation3 + $0x1018] sm:$0xff] }
 0x88a   :  { %7568 = vmatprep.subr.mxu1 %v2614_v17  ;;  %6537 = vmatpush3.msra.mxu0 %v2975_v44 }
 0x88b   :  { %7569 = vmatpush3.msra.mxu1 %v2614_v17  ;;  %6538 = vmatprep.subr.mxu0 %v2990_v46  ;;  %v3015_v17 = vld [vmem:[#allocation3 + $0x1198] sm:$0xff] }
 0x88c   :  { %7570 = vmatprep.subr.mxu1 %v2613_v18  ;;  %6539 = vmatpush3.msra.mxu0 %v2974_v48 }
 0x88d   :  { %7571 = vmatpush3.msra.mxu1 %v2613_v18  ;;  %6540 = vmatprep.subr.mxu0 %v2989_v50  ;;  %v2982_v18 = vld [vmem:[#allocation3 + $0x1090] sm:$0xff] }
 0x88e   :  { %7572 = vmatprep.subr.mxu1 %v2612_v22  ;;  %6541 = vmatpush3.msra.mxu0 %v2973_v53 }
 0x88f   :  { %7573 = vmatpush3.msra.mxu1 %v2612_v22  ;;  %6542 = vmatprep.subr.mxu0 %v2988_v57  ;;  %v2999_v22 = vld [vmem:[#allocation3 + $0x1118] sm:$0xff] }
 0x890   :  { %7574 = vmatprep.subr.mxu1 %v2611_v55  ;;  %6543 = vmatpush3.msra.mxu0 %v2972_v1 }
 0x891   :  { %7575 = vmatpush3.msra.mxu1 %v2611_v55  ;;  %6544 = vmatprep.subr.mxu0 %v2987_v16  ;;  %v2966_v55 = vld [vmem:[#allocation3 + $0x1010] sm:$0xff] }
 0x892   :  { %7576 = vmatprep.subr.mxu1 %v2610_v62  ;;  %6545 = vmatpush3.msra.mxu0 %v2971_v0 }
 0x893   :  { %7577 = vmatpush3.msra.mxu1 %v2610_v62  ;;  %6546 = vmatprep.subr.mxu0 %v2986_v19  ;;  %v3014_v62 = vld [vmem:[#allocation3 + $0x1190] sm:$0xff] }
 0x894   :  { %7578 = vmatprep.subr.mxu1 %v2609_v23  ;;  %6547 = vmatpush3.msra.mxu0 %v2970_v5 }
 0x895   :  { %7579 = vmatpush3.msra.mxu1 %v2609_v23  ;;  %6548 = vmatprep.subr.mxu0 %v2985_v7  ;;  %v2981_v23 = vld [vmem:[#allocation3 + $0x1088] sm:$0xff] }
 0x896   :  { %7580 = vmatprep.subr.mxu1 %v2608_v24  ;;  %6549 = vmatpush3.msra.mxu0 %v2969_v27 }
 0x897   :  { %7581 = vmatpush3.msra.mxu1 %v2608_v24  ;;  %6550 = vmatprep.subr.mxu0 %v2984_v25  ;;  %v2998_v24 = vld [vmem:[#allocation3 + $0x1110] sm:$0xff] }
 0x898   :  { %7583 = vmatmul.mubr.f32.vlgmr.msra.gmra.mxu1 %v2645_v60  ;;  %6572 = vmatprep.subr.mxu1 %v3027_v30  ;;  %v2965_v60 = vld [vmem:[#allocation3 + $0x1008] sm:$0xff]  ;;  %v3012_v30 = vld [vmem:[#allocation3 + $0x1180] sm:$0xff] }
 0x899   :  { %7585 = vmatprep.mubr.f32.mxu1 %v2646_v26  ;;  %6573 = vmatpush3.msra.mxu1 %v3011_v32  ;;  %v3013_v26 = vld [vmem:[#allocation3 + $0x1188] sm:$0xff]  ;;  %v8186_v32 = vld [vmem:[#allocation3 + $0x1278] sm:$0xff] }
 0x89a   :  { %6574 = vmatprep.subr.mxu1 %v3026_v34  ;;  %6551 = vmatpush3.msra.mxu0 %v2968_v12 }
 0x89b   :  { %6575 = vmatpush3.msra.mxu1 %v3010_v2  ;;  %6552 = vmatprep.subr.mxu0 %v2983_v51 }
 0x89c   :  { %7586 = vmatmul.mubr.f32.gmra.mxu1 %v2647_v28  ;;  %6576 = vmatprep.subr.mxu1 %v3025_v37  ;;  %v2980_v28 = vld [vmem:[#allocation3 + $0x1080] sm:$0xff] }
 0x89d   :  { %6577 = vmatpush3.msra.mxu1 %v3009_v39  ;;  %6553 = vmatpush3.msra.mxu0 %v2967_v15 }
 0x89e   :  { %6578 = vmatprep.subr.mxu1 %v3024_v41  ;;  %6554 = vmatprep.subr.mxu0 %v2982_v18 }
 0x89f   :  { %6579 = vmatpush3.msra.mxu1 %v3008_v43  ;;  %6555 = vmatpush3.msra.mxu0 %v2966_v55 }
 0x8a0   :  { %6580 = vmatprep.subr.mxu1 %v3023_v45  ;;  %6556 = vmatprep.subr.mxu0 %v2981_v23  ;;  %v5820_v45 = vld [vmem:[#allocation5 + $0x7] ss:$0 sm:$0xff] }
 0x8a1   :  { %6581 = vmatpush3.msra.mxu1 %v3007_v47  ;;  %6557 = vmatpush3.msra.mxu0 %v2965_v60 }
 0x8a2   :  { %6582 = vmatprep.subr.mxu1 %v3022_v49  ;;  %6558 = vmatprep.subr.mxu0 %v2980_v28 }
 0x8a3   :  { %6583 = vmatpush3.msra.mxu1 %v3006_v52  ;;  %6559 = vmatpush3.msra.mxu0 %v2964_v29 }
 0x8a4   :  { %6584 = vmatprep.subr.mxu1 %v3021_v56  ;;  %7588 = vmatprep.subr.mxu0 %v8186_v32 }
 0x8a5   :  { %6585 = vmatpush3.msra.mxu1 %v3005_v59 }
 0x8a6   :  { %6586 = vmatprep.subr.mxu1 %v3020_v61 }
 0x8a7   :  { %6587 = vmatpush3.msra.mxu1 %v3004_v63 }
 0x8a8   :  { %6588 = vmatprep.subr.mxu1 %v3019_v3 }
 0x8a9   :  { %6589 = vmatpush3.msra.mxu1 %v3003_v4 }
 0x8aa   :  { %6590 = vmatprep.subr.mxu1 %v3018_v6 }
 0x8ab   :  { %6591 = vmatpush3.msra.mxu1 %v3002_v8 }
 0x8ac   :  { %6592 = vmatprep.subr.mxu1 %v3017_v54 }
 0x8ad   :  { %6593 = vmatpush3.msra.mxu1 %v3001_v11 }
 0x8ae   :  { %6594 = vmatprep.subr.mxu1 %v3016_v13 }
 0x8af   :  { %6595 = vmatpush3.msra.mxu1 %v3000_v14 }
 0x8b0   :  { %6596 = vmatprep.subr.mxu1 %v3015_v17 }
 0x8b1   :  { %6597 = vmatpush3.msra.mxu1 %v2999_v22 }
 0x8b2   :  { %6598 = vmatprep.subr.mxu1 %v3014_v62 }
 0x8b3   :  { %6599 = vmatpush3.msra.mxu1 %v2998_v24 }
 0x8b4   :  { %6600 = vmatprep.subr.mxu1 %v3013_v26 }
 0x8b5   :  { %6601 = vmatpush3.msra.mxu1 %v2997_v58 }
 0x8b6   :  { %6602 = vmatprep.subr.mxu1 %v3012_v30 }
 0x8b7   :  { %6603 = vmatpush3.msra.mxu1 %v2996_v31 }
 0x936   :  { %v6452_v33 = vpop.f32.mrf.mxu1  ;;  %v6496_v35 = vpop.f32.mrf.mxu0 }
 0x938   :  { %v6453_v34 = vpop.f32.mrf.mxu1  ;;  %v6497_v36 = vpop.f32.mrf.mxu0 }
 0x939   :  { %v6454_v44 = vadd.f32 %v6453_v34, %v6452_v33  ;;  %v6498_v53 = vadd.f32 %v6497_v36, %v6496_v35 }
 0x93a   :  { %v6455_v2 = vpop.f32.mrf.mxu1 }
 0x93b   :  { %v6499_v38 = vpop.f32.mrf.mxu0  ;;  %v2720_v49 = vadd.f32 %v6454_v44, %v5820_v45  ;;  %v5821_v44 = vld [vmem:[#allocation7 + $0x7] ss:$0 sm:$0xff] }
 0x93c   :  { %v6456_v37 = vpop.f32.mrf.mxu1 }
 0x93d   :  { %v6500_v40 = vpop.f32.mrf.mxu0  ;;  %v6457_v47 = vadd.f32 %v6456_v37, %v6455_v2  ;;  %v2805_v16 = vadd.f32 %v6498_v53, %v2720_v49  ;;  %v5822_v49 = vld [vmem:[#allocation8 + $0x7] ss:$0 sm:$0xff] }
 0x93e   :  { %v6501_v1 = vadd.f32 %v6500_v40, %v6499_v38 }
 0x93f   :  { %v6458_v39 = vpop.f32.mrf.mxu1  ;;  %v2725_v56 = vadd.f32 %v6457_v47, %v5820_v45 }
 0x940   :  { %v6502_v42 = vpop.f32.mrf.mxu0 }
 0x941   :  { %v6459_v41 = vpop.f32.mrf.mxu1  ;;  %v2810_v4 = vadd.f32 %v6501_v1, %v2725_v56 }
 0x942   :  { %v6503_v46 = vpop.f32.mrf.mxu0  ;;  %v6460_v50 = vadd.f32 %v6459_v41, %v6458_v39 }
 0x943   :  { %v6504_v3 = vadd.f32 %v6503_v46, %v6502_v42 }
 0x944   :  { %v6461_v43 = vpop.f32.mrf.mxu1  ;;  %v2730_v61 = vadd.f32 %v6460_v50, %v5820_v45 }
 0x945   :  { %v6505_v52 = vpop.f32.mrf.mxu0 }
 0x946   :  { %v6462_v48 = vpop.f32.mrf.mxu1  ;;  %v2815_v27 = vadd.f32 %v6504_v3, %v2730_v61 }
 0x947   :  { %v6463_v57 = vadd.f32 %v6462_v48, %v6461_v43  ;;  %v6506_v63 = vpop.f32.mrf.mxu0 }
 0x948   :  { %v6507_v7 = vadd.f32 %v6506_v63, %v6505_v52 }
 0x949   :  { %v2735_v19 = vadd.f32 %v6463_v57, %v5820_v45 }
 0x94b   :  { %v2820_v11 = vadd.f32 %v6507_v7, %v2735_v19 }
 0x958   :  { %v7584_v59 = vpop.f32.mrf.mxu1 }
 0x959   :  { %v2895_v8 = vadd.f32 %v7584_v59, %v2810_v4 }
 0x95a   :  { %v2889_v0 = vpop.f32.mrf.mxu1 }
 0x95b   :  { %v2890_v5 = vadd.f32 %v2889_v0, %v2805_v16 }
 0x95c   :  { %v7587_v6 = vpop.f32.mrf.mxu1 }
 0x95d   :  { %v2908_v25 = vadd.f32 %v2895_v8, %v2890_v5  ;;  %v2905_v13 = vadd.f32 %v7587_v6, %v2820_v11  ;;  %v3042_v6 = vld [vmem:[#allocation3 + $0x1270] sm:$0xff] }
 0x95e   :  { %v2899_v54 = vpop.f32.mrf.mxu1 }
 0x95f   :  { %v2900_v12 = vadd.f32 %v2899_v54, %v2815_v27  ;;  %v3041_v27 = vld [vmem:[#allocation3 + $0x1268] sm:$0xff] }
 0x961   :  { %v2909_v51 = vadd.f32 %v2908_v25, %v2900_v12  ;;  %v3040_v25 = vld [vmem:[#allocation3 + $0x1260] sm:$0xff] }
 0x963   :  { %v2910_v14 = vadd.f32 %v2909_v51, %v2905_v13  ;;  %v3038_v51 = vld [vmem:[#allocation3 + $0x1250] sm:$0xff] }
 0x965   :  { %v2911_v15 = vrot.slane %v2910_v14, 4 }
 0x967   :  { %v2912_v17 = vadd.f32 %v2911_v15, %v2910_v14 }
 0x969   :  { %v2913_v18 = vrot.slane %v2912_v17, 2 }
 0x96b   :  { %v2914_v22 = vadd.f32 %v2913_v18, %v2912_v17  ;;  %v3037_v17 = vld [vmem:[#allocation3 + $0x1248] sm:$0xff] }
 0x96d   :  { %v2915_v55 = vrot.slane %v2914_v22, 1 }
 0x96f   :  { %v2916_v62 = vadd.f32 %v2915_v55, %v2914_v22  ;;  %v3036_v22 = vld [vmem:[#allocation3 + $0x1240] sm:$0xff] }
 0x971   :  { %v2917_v23 = vmul.f32 0.03125, %v2916_v62  ;;  %v3035_v62 = vld [vmem:[#allocation3 + $0x1238] sm:$0xff] }
 0x973   :  { %v2918_v24 = vsub.f32 %v2890_v5, %v2917_v23  ;;  %v2919_v60 = vsub.f32 %v2895_v8, %v2917_v23  ;;  %v2920_v26 = vsub.f32 %v2900_v12, %v2917_v23  ;;  %v2921_v28 = vsub.f32 %v2905_v13, %v2917_v23  ;;  %v3039_v13 = vld [vmem:[#allocation3 + $0x1258] sm:$0xff]  ;;  %v3034_v23 = vld [vmem:[#allocation3 + $0x1230] sm:$0xff] }
 0x975   :  { %v2922_v58 = vmul.f32 %v2918_v24, %v2918_v24  ;;  %v2923_v29 = vmul.f32 %v2919_v60, %v2919_v60  ;;  %v2924_v30 = vmul.f32 %v2920_v26, %v2920_v26  ;;  %v2925_v33 = vmul.f32 %v2921_v28, %v2921_v28 }
 0x977   :  { %v2926_v31 = vadd.f32 %v2923_v29, %v2922_v58  ;;  %v3029_v58 = vld [vmem:[#allocation3 + $0x1208] sm:$0xff]  ;;  %v3028_v29 = vld [vmem:[#allocation3 + $0x1200] sm:$0xff] }
 0x979   :  { %v2927_v34 = vadd.f32 %v2926_v31, %v2924_v30 }
 0x97b   :  { %v2928_v35 = vadd.f32 %v2927_v34, %v2925_v33  ;;  %v3451_v34 = vld [vmem:[#allocation3 + $0x1478] sm:$0xff] }
 0x97d   :  { %v2929_v2 = vrot.slane %v2928_v35, 4 }
 0x97f   :  { %v2930_v36 = vadd.f32 %v2929_v2, %v2928_v35  ;;  %v3419_v35 = vld [vmem:[#allocation3 + $0x1378] sm:$0xff] }
 0x980   :  { %v3435_v2 = vld [vmem:[#allocation3 + $0x13f8] sm:$0xff]  ;;  %6636 = vmatprep.subr.mxu1 %v3419_v35  ;;  %v3404_v35 = vld [vmem:[#allocation3 + $0x1300] sm:$0xff] }
 0x981   :  { %v2931_v37 = vrot.slane %v2930_v36, 2 }
 0x983   :  { %v2932_v38 = vadd.f32 %v2931_v37, %v2930_v36  ;;  %v3403_v36 = vld [vmem:[#allocation3 + $0x12f8] sm:$0xff]  ;;  %v3450_v37 = vld [vmem:[#allocation3 + $0x1470] sm:$0xff] }
 0x985   :  { %v2933_v39 = vrot.slane %v2932_v38, 1 }
 0x987   :  { %v2934_v40 = vadd.f32 %v2933_v39, %v2932_v38  ;;  %v3418_v38 = vld [vmem:[#allocation3 + $0x1370] sm:$0xff] }
 0x988   :  { %v3434_v39 = vld [vmem:[#allocation3 + $0x13f0] sm:$0xff] }
 0x989   :  { %v2935_v41 = vmul.f32 0.03125, %v2934_v40  ;;  %v3402_v40 = vld [vmem:[#allocation3 + $0x12f0] sm:$0xff] }
 0x98b   :  { %v2936_v42 = vadd.f32 1e-05, %v2935_v41  ;;  %v3449_v41 = vld [vmem:[#allocation3 + $0x1468] sm:$0xff] }
 0x98d   :  { %7907 = vrsqrt.f32 %v2936_v42  ;;  %v3417_v42 = vld [vmem:[#allocation3 + $0x1368] sm:$0xff] }
 0x99a   :  { %v7908_v43 = vpop.eup %7907 }
 0x99b   :  { %v2938_v45 = vmul.f32 %v7908_v43, %v2918_v24  ;;  %v2939_v46 = vmul.f32 %v7908_v43, %v2919_v60  ;;  %v2940_v47 = vmul.f32 %v7908_v43, %v2920_v26  ;;  %v2941_v48 = vmul.f32 %v7908_v43, %v2921_v28  ;;  %v3033_v24 = vld [vmem:[#allocation3 + $0x1228] sm:$0xff]  ;;  %v3032_v60 = vld [vmem:[#allocation3 + $0x1220] sm:$0xff]  ;;  %v3031_v26 = vld [vmem:[#allocation3 + $0x1218] sm:$0xff] }
 0x99c   :  { %v3030_v28 = vld [vmem:[#allocation3 + $0x1210] sm:$0xff]  ;;  %v3433_v43 = vld [vmem:[#allocation3 + $0x13e8] sm:$0xff] }
 0x99d   :  { %v2947_v50 = vmul.f32 %v5821_v44, %v2938_v45  ;;  %v2948_v52 = vmul.f32 %v5821_v44, %v2939_v46  ;;  %v2949_v53 = vmul.f32 %v5821_v44, %v2940_v47  ;;  %v2950_v56 = vmul.f32 %v5821_v44, %v2941_v48  ;;  %v3401_v44 = vld [vmem:[#allocation3 + $0x12e8] sm:$0xff]  ;;  %v3448_v45 = vld [vmem:[#allocation3 + $0x1460] sm:$0xff] }
 0x99e   :  { %v3416_v46 = vld [vmem:[#allocation3 + $0x1360] sm:$0xff] }
 0x99f   :  { %v2956_v57 = vadd.f32 %v5822_v49, %v2947_v50  ;;  %v2957_v59 = vadd.f32 %v5822_v49, %v2948_v52  ;;  %v2958_v1 = vadd.f32 %v5822_v49, %v2949_v53  ;;  %v2959_v61 = vadd.f32 %v5822_v49, %v2950_v56  ;;  %v3432_v47 = vld [vmem:[#allocation3 + $0x13e0] sm:$0xff]  ;;  %v3447_v49 = vld [vmem:[#allocation3 + $0x1458] sm:$0xff]  ;;  %v3446_v56 = vld [vmem:[#allocation3 + $0x1450] sm:$0xff] }
 0x9a0   :  { %v3400_v48 = vld [vmem:[#allocation3 + $0x12e0] sm:$0xff]  ;;  %v3415_v50 = vld [vmem:[#allocation3 + $0x1358] sm:$0xff] }
 0x9a1   :  { %v2960_v16 = vmax.f32 %v2956_v57, 0.0  ;;  %v2961_v63 = vmax.f32 %v2957_v59, 0.0  ;;  %v2962_v0 = vmax.f32 %v2958_v1, 0.0  ;;  %v2963_v3 = vmax.f32 %v2959_v61, 0.0  ;;  %v3431_v52 = vld [vmem:[#allocation3 + $0x13d8] sm:$0xff]  ;;  %v3414_v57 = vld [vmem:[#allocation3 + $0x1350] sm:$0xff] }
 0x9a2   :  { %v3399_v53 = vld [vmem:[#allocation3 + $0x12d8] sm:$0xff]  ;;  %v3430_v59 = vld [vmem:[#allocation3 + $0x13d0] sm:$0xff]  ;;  %v3445_v61 = vld [vmem:[#allocation3 + $0x1448] sm:$0xff] }
 0x9a3   :  { %3044 = vst [vmem:[#allocation2 + $0x8] sm:$0xff] %v2960_v16  ;;  %3045 = vst [vmem:[#allocation2 + $0x10] sm:$0xff] %v2961_v63  ;;  %v3398_v1 = vld [vmem:[#allocation3 + $0x12d0] sm:$0xff] }
 0x9a4   :  { %3046 = vst [vmem:[#allocation2 + $0x28] sm:$0xff] %v2962_v0  ;;  %3047 = vst [vmem:[#allocation2 + $0x30] sm:$0xff] %v2963_v3 }
 0x9aa   :  { %v3052_v19 = vld [vmem:[#allocation2 + $0x7] sm:$0xff]  ;;  %v3053_v7 = vld [vmem:[#allocation2 + $0xf] sm:$0xff] }
 0x9ab   :  { %v3060_v4 = vld [vmem:[#allocation2 + $0x9] sm:$0xff]  ;;  %3137 = vmatprep.mubr.f32.mxu0 %v3052_v19  ;;  %v3061_v8 = vld [vmem:[#allocation2 + $0x11] sm:$0xff]  ;;  %v3412_v19 = vld [vmem:[#allocation3 + $0x1340] sm:$0xff] }
 0x9ac   :  { %v3048_v5 = vld [vmem:[#allocation2 + $0x6] sm:$0xff]  ;;  %3222 = vmatprep.mubr.f32.mxu1 %v3060_v4  ;;  %v3049_v54 = vld [vmem:[#allocation2 + $0xe] sm:$0xff] }
 0x9ad   :  { %3138 = vmatmul.mubr.f32.vlgmr.msra.gmra.mxu0 %v3048_v5  ;;  %3223 = vmatmul.mubr.f32.vlgmr.msra.gmra.mxu1 %v2960_v16  ;;  %v3054_v11 = vld [vmem:[#allocation2 + $0x27] sm:$0xff]  ;;  %v3055_v14 = vld [vmem:[#allocation2 + $0x2f] sm:$0xff] }
 0x9ae   :  { %7589 = vmatpush3.msra.mxu0 %v8186_v32  ;;  %3142 = vmatprep.mubr.f32.mxu0 %v3053_v7  ;;  %v3062_v12 = vld [vmem:[#allocation2 + $0x29] sm:$0xff]  ;;  %v3063_v15 = vld [vmem:[#allocation2 + $0x31] sm:$0xff]  ;;  %v3428_v4 = vld [vmem:[#allocation3 + $0x13c0] sm:$0xff] }
 0x9af   :  { %3227 = vmatprep.mubr.f32.mxu1 %v3061_v8  ;;  %7590 = vmatprep.subr.mxu0 %v3042_v6  ;;  %v3050_v32 = vld [vmem:[#allocation2 + $0x26] sm:$0xff]  ;;  %v3051_v18 = vld [vmem:[#allocation2 + $0x2e] sm:$0xff]  ;;  %v3411_v7 = vld [vmem:[#allocation3 + $0x1338] sm:$0xff] }
 0x9b0   :  { %7591 = vmatpush3.msra.mxu0 %v3042_v6  ;;  %v3064_v55 = vld [vmem:[#allocation2 + $0xa] sm:$0xff]  ;;  %v3065_v30 = vld [vmem:[#allocation2 + $0x12] sm:$0xff]  ;;  %6637 = vmatpush3.msra.mxu1 %v3403_v36  ;;  %v3396_v5 = vld [vmem:[#allocation3 + $0x12c0] sm:$0xff] }
 0x9b1   :  { %7592 = vmatprep.subr.mxu0 %v3041_v27  ;;  %3143 = vmatmul.mubr.f32.gmra.mxu0 %v3049_v54  ;;  %v3066_v31 = vld [vmem:[#allocation2 + $0x2a] sm:$0xff]  ;;  %v3067_v33 = vld [vmem:[#allocation2 + $0x32] sm:$0xff]  ;;  %v3388_v36 = vld [vmem:[#allocation3 + $0x1280] sm:$0xff] }
 0x9b2   :  { %3228 = vmatmul.mubr.f32.gmra.mxu1 %v2961_v63  ;;  %7593 = vmatpush3.msra.mxu0 %v3041_v27  ;;  %v3413_v16 = vld [vmem:[#allocation3 + $0x1348] sm:$0xff]  ;;  %v3443_v6 = vld [vmem:[#allocation3 + $0x1438] sm:$0xff]  ;;  %v3442_v54 = vld [vmem:[#allocation3 + $0x1430] sm:$0xff] }
 0x9b3   :  { %3147 = vmatprep.mubr.f32.mxu0 %v3054_v11  ;;  %3232 = vmatprep.mubr.f32.mxu1 %v3062_v12  ;;  %v3429_v63 = vld [vmem:[#allocation3 + $0x13c8] sm:$0xff]  ;;  %v3427_v8 = vld [vmem:[#allocation3 + $0x13b8] sm:$0xff]  ;;  %v3426_v11 = vld [vmem:[#allocation3 + $0x13b0] sm:$0xff] }
 0x9b4   :  { %7594 = vmatprep.subr.mxu0 %v3040_v25  ;;  %6638 = vmatprep.subr.mxu1 %v3418_v38  ;;  %v3395_v27 = vld [vmem:[#allocation3 + $0x12b8] sm:$0xff]  ;;  %v3394_v12 = vld [vmem:[#allocation3 + $0x12b0] sm:$0xff] }
 0x9b5   :  { %7595 = vmatpush3.msra.mxu0 %v3040_v25  ;;  %6639 = vmatpush3.msra.mxu1 %v3402_v40  ;;  %v3410_v25 = vld [vmem:[#allocation3 + $0x1330] sm:$0xff]  ;;  %v8190_v38 = vld [vmem:[#allocation3 + $0x15f8] sm:$0xff] }
 0x9b6   :  { %7596 = vmatprep.subr.mxu0 %v3039_v13  ;;  %3148 = vmatmul.mubr.f32.gmra.mxu0 %v3050_v32  ;;  %v3409_v32 = vld [vmem:[#allocation3 + $0x1328] sm:$0xff] }
 0x9b7   :  { %3233 = vmatmul.mubr.f32.gmra.mxu1 %v2962_v0  ;;  %7597 = vmatpush3.msra.mxu0 %v3039_v13  ;;  %v3397_v0 = vld [vmem:[#allocation3 + $0x12c8] sm:$0xff] }
 0x9b8   :  { %3152 = vmatprep.mubr.f32.mxu0 %v3055_v14  ;;  %3237 = vmatprep.mubr.f32.mxu1 %v3063_v15  ;;  %v3441_v13 = vld [vmem:[#allocation3 + $0x1428] sm:$0xff]  ;;  %v3440_v15 = vld [vmem:[#allocation3 + $0x1420] sm:$0xff] }
 0x9b9   :  { %7598 = vmatprep.subr.mxu0 %v3038_v51  ;;  %6640 = vmatprep.subr.mxu1 %v3417_v42  ;;  %v3393_v14 = vld [vmem:[#allocation3 + $0x12a8] sm:$0xff] }
 0x9ba   :  { %7599 = vmatpush3.msra.mxu0 %v3038_v51  ;;  %6641 = vmatpush3.msra.mxu1 %v3401_v44  ;;  %v3425_v51 = vld [vmem:[#allocation3 + $0x13a8] sm:$0xff] }
 0x9bb   :  { %7600 = vmatprep.subr.mxu0 %v3037_v17  ;;  %3153 = vmatmul.mubr.f32.gmra.mxu0 %v3051_v18  ;;  %v3424_v18 = vld [vmem:[#allocation3 + $0x13a0] sm:$0xff] }
 0x9bc   :  { %3238 = vmatmul.mubr.f32.gmra.mxu1 %v2963_v3  ;;  %7601 = vmatpush3.msra.mxu0 %v3037_v17  ;;  %v3444_v3 = vld [vmem:[#allocation3 + $0x1440] sm:$0xff] }
 0x9bd   :  { %7602 = vmatprep.subr.mxu0 %v3036_v22  ;;  %7620 = vmatprep.mubr.f32.mxu0 %v3064_v55  ;;  %v3408_v17 = vld [vmem:[#allocation3 + $0x1320] sm:$0xff]  ;;  %v3407_v55 = vld [vmem:[#allocation3 + $0x1318] sm:$0xff] }
 0x9be   :  { %7603 = vmatpush3.msra.mxu0 %v3036_v22  ;;  %6642 = vmatprep.subr.mxu1 %v3416_v46  ;;  %v3392_v22 = vld [vmem:[#allocation3 + $0x12a0] sm:$0xff] }
 0x9bf   :  { %7604 = vmatprep.subr.mxu0 %v3035_v62  ;;  %6643 = vmatpush3.msra.mxu1 %v3400_v48 }
 0x9c0   :  { %7605 = vmatpush3.msra.mxu0 %v3035_v62  ;;  %6644 = vmatprep.subr.mxu1 %v3415_v50  ;;  %v3439_v62 = vld [vmem:[#allocation3 + $0x1418] sm:$0xff] }
 0x9c1   :  { %7606 = vmatprep.subr.mxu0 %v3034_v23  ;;  %6645 = vmatpush3.msra.mxu1 %v3399_v53 }
 0x9c2   :  { %7607 = vmatpush3.msra.mxu0 %v3034_v23  ;;  %6646 = vmatprep.subr.mxu1 %v3414_v57  ;;  %v3391_v23 = vld [vmem:[#allocation3 + $0x1298] sm:$0xff]  ;;  %v5823_v57 = vld [vmem:[#allocation5 + $0x8] ss:$0 sm:$0xff] }
 0x9c3   :  { %7608 = vmatprep.subr.mxu0 %v3033_v24  ;;  %6647 = vmatpush3.msra.mxu1 %v3398_v1 }
 0x9c4   :  { %7609 = vmatpush3.msra.mxu0 %v3033_v24  ;;  %6648 = vmatprep.subr.mxu1 %v3413_v16  ;;  %v3423_v24 = vld [vmem:[#allocation3 + $0x1398] sm:$0xff] }
 0x9c5   :  { %7610 = vmatprep.subr.mxu0 %v3032_v60  ;;  %6649 = vmatpush3.msra.mxu1 %v3397_v0 }
 0x9c6   :  { %7611 = vmatpush3.msra.mxu0 %v3032_v60  ;;  %6650 = vmatprep.subr.mxu1 %v3412_v19  ;;  %v3406_v60 = vld [vmem:[#allocation3 + $0x1310] sm:$0xff] }
 0x9c7   :  { %7612 = vmatprep.subr.mxu0 %v3031_v26  ;;  %6651 = vmatpush3.msra.mxu1 %v3396_v5 }
 0x9c8   :  { %7613 = vmatpush3.msra.mxu0 %v3031_v26  ;;  %6652 = vmatprep.subr.mxu1 %v3411_v7  ;;  %v3438_v26 = vld [vmem:[#allocation3 + $0x1410] sm:$0xff] }
 0x9c9   :  { %7614 = vmatprep.subr.mxu0 %v3030_v28  ;;  %6653 = vmatpush3.msra.mxu1 %v3395_v27 }
 0x9ca   :  { %7615 = vmatpush3.msra.mxu0 %v3030_v28  ;;  %6654 = vmatprep.subr.mxu1 %v3410_v25  ;;  %v3390_v28 = vld [vmem:[#allocation3 + $0x1290] sm:$0xff] }
 0x9cb   :  { %7616 = vmatprep.subr.mxu0 %v3029_v58  ;;  %6655 = vmatpush3.msra.mxu1 %v3394_v12 }
 0x9cc   :  { %7617 = vmatpush3.msra.mxu0 %v3029_v58  ;;  %6656 = vmatprep.subr.mxu1 %v3409_v32  ;;  %v3422_v58 = vld [vmem:[#allocation3 + $0x1390] sm:$0xff] }
 0x9cd   :  { %7618 = vmatprep.subr.mxu0 %v3028_v29  ;;  %6657 = vmatpush3.msra.mxu1 %v3393_v14 }
 0x9ce   :  { %7619 = vmatpush3.msra.mxu0 %v3028_v29  ;;  %6658 = vmatprep.subr.mxu1 %v3408_v17  ;;  %v3405_v29 = vld [vmem:[#allocation3 + $0x1308] sm:$0xff] }
 0x9cf   :  { %7621 = vmatmul.mubr.f32.vlgmr.msra.gmra.mxu0 %v3065_v30  ;;  %6680 = vmatprep.subr.mxu0 %v3451_v34  ;;  %v3437_v30 = vld [vmem:[#allocation3 + $0x1408] sm:$0xff]  ;;  %v3436_v34 = vld [vmem:[#allocation3 + $0x1400] sm:$0xff] }
 0x9d0   :  { %7623 = vmatprep.mubr.f32.mxu0 %v3066_v31  ;;  %6681 = vmatpush3.msra.mxu0 %v3435_v2  ;;  %v3389_v31 = vld [vmem:[#allocation3 + $0x1288] sm:$0xff]  ;;  %v3420_v2 = vld [vmem:[#allocation3 + $0x1380] sm:$0xff] }
 0x9d1   :  { %6682 = vmatprep.subr.mxu0 %v3450_v37  ;;  %6659 = vmatpush3.msra.mxu1 %v3392_v22  ;;  %v3483_v37 = vld [vmem:[#allocation3 + $0x1578] sm:$0xff] }
 0x9d2   :  { %6683 = vmatpush3.msra.mxu0 %v3434_v39  ;;  %6660 = vmatprep.subr.mxu1 %v3407_v55 }
 0x9d3   :  { %7624 = vmatmul.mubr.f32.gmra.mxu0 %v3067_v33  ;;  %6684 = vmatprep.subr.mxu0 %v3449_v41  ;;  %v3421_v33 = vld [vmem:[#allocation3 + $0x1388] sm:$0xff] }
 0x9d4   :  { %6685 = vmatpush3.msra.mxu0 %v3433_v43  ;;  %6661 = vmatpush3.msra.mxu1 %v3391_v23 }
 0x9d5   :  { %6686 = vmatprep.subr.mxu0 %v3448_v45  ;;  %6662 = vmatprep.subr.mxu1 %v3406_v60 }
 0x9d6   :  { %6687 = vmatpush3.msra.mxu0 %v3432_v47  ;;  %6663 = vmatpush3.msra.mxu1 %v3390_v28 }
 0x9d7   :  { %6688 = vmatprep.subr.mxu0 %v3447_v49  ;;  %6664 = vmatprep.subr.mxu1 %v3405_v29 }
 0x9d8   :  { %6689 = vmatpush3.msra.mxu0 %v3431_v52  ;;  %6665 = vmatpush3.msra.mxu1 %v3389_v31 }
 0x9d9   :  { %6690 = vmatprep.subr.mxu0 %v3446_v56  ;;  %6666 = vmatprep.subr.mxu1 %v3404_v35 }
 0x9da   :  { %6691 = vmatpush3.msra.mxu0 %v3430_v59  ;;  %6667 = vmatpush3.msra.mxu1 %v3388_v36 }
 0x9db   :  { %6692 = vmatprep.subr.mxu0 %v3445_v61  ;;  %6724 = vmatprep.subr.mxu1 %v3483_v37 }
 0x9dc   :  { %6693 = vmatpush3.msra.mxu0 %v3429_v63 }
 0x9dd   :  { %6694 = vmatprep.subr.mxu0 %v3444_v3 }
 0x9de   :  { %6695 = vmatpush3.msra.mxu0 %v3428_v4 }
 0x9df   :  { %6696 = vmatprep.subr.mxu0 %v3443_v6 }
 0x9e0   :  { %6697 = vmatpush3.msra.mxu0 %v3427_v8 }
 0x9e1   :  { %6698 = vmatprep.subr.mxu0 %v3442_v54 }
 0x9e2   :  { %6699 = vmatpush3.msra.mxu0 %v3426_v11 }
 0x9e3   :  { %6700 = vmatprep.subr.mxu0 %v3441_v13 }
 0x9e4   :  { %6701 = vmatpush3.msra.mxu0 %v3425_v51 }
 0x9e5   :  { %6702 = vmatprep.subr.mxu0 %v3440_v15 }
 0x9e6   :  { %6703 = vmatpush3.msra.mxu0 %v3424_v18 }
 0x9e7   :  { %6704 = vmatprep.subr.mxu0 %v3439_v62 }
 0x9e8   :  { %6705 = vmatpush3.msra.mxu0 %v3423_v24 }
 0x9e9   :  { %6706 = vmatprep.subr.mxu0 %v3438_v26 }
 0x9ea   :  { %6707 = vmatpush3.msra.mxu0 %v3422_v58 }
 0x9eb   :  { %6708 = vmatprep.subr.mxu0 %v3437_v30 }
 0x9ec   :  { %6709 = vmatpush3.msra.mxu0 %v3421_v33 }
 0x9ed   :  { %6710 = vmatprep.subr.mxu0 %v3436_v34 }
 0x9ee   :  { %6711 = vmatpush3.msra.mxu0 %v3420_v2 }
 0x9ef   :  { %7626 = vmatprep.subr.mxu0 %v8190_v38 }
 0xa6d   :  { %v6560_v39 = vpop.f32.mrf.mxu0  ;;  %v6604_v41 = vpop.f32.mrf.mxu1 }
 0xa6f   :  { %v6561_v40 = vpop.f32.mrf.mxu0  ;;  %v6605_v43 = vpop.f32.mrf.mxu1 }
 0xa70   :  { %v6562_v53 = vadd.f32 %v6561_v40, %v6560_v39  ;;  %v6606_v3 = vadd.f32 %v6605_v43, %v6604_v41 }
 0xa71   :  { %v6563_v42 = vpop.f32.mrf.mxu0 }
 0xa72   :  { %v6607_v45 = vpop.f32.mrf.mxu1  ;;  %v3140_v61 = vadd.f32 %v6562_v53, %v5823_v57 }
 0xa73   :  { %v6564_v44 = vpop.f32.mrf.mxu0 }
 0xa74   :  { %v6608_v47 = vpop.f32.mrf.mxu1  ;;  %v6565_v56 = vadd.f32 %v6564_v44, %v6563_v42  ;;  %v3225_v27 = vadd.f32 %v6606_v3, %v3140_v61 }
 0xa75   :  { %v6609_v19 = vadd.f32 %v6608_v47, %v6607_v45 }
 0xa76   :  { %v6566_v46 = vpop.f32.mrf.mxu0  ;;  %v3145_v16 = vadd.f32 %v6565_v56, %v5823_v57 }
 0xa77   :  { %v6610_v49 = vpop.f32.mrf.mxu1 }
 0xa78   :  { %v6567_v48 = vpop.f32.mrf.mxu0  ;;  %v3230_v8 = vadd.f32 %v6609_v19, %v3145_v16 }
 0xa79   :  { %v6611_v52 = vpop.f32.mrf.mxu1  ;;  %v6568_v63 = vadd.f32 %v6567_v48, %v6566_v46 }
 0xa7a   :  { %v6612_v25 = vadd.f32 %v6611_v52, %v6610_v49  ;;  %v5824_v52 = vld [vmem:[#allocation7 + $0x8] ss:$0 sm:$0xff] }
 0xa7b   :  { %v6569_v50 = vpop.f32.mrf.mxu0  ;;  %v3150_v6 = vadd.f32 %v6568_v63, %v5823_v57 }
 0xa7c   :  { %v6613_v1 = vpop.f32.mrf.mxu1 }
 0xa7d   :  { %v6570_v59 = vpop.f32.mrf.mxu0  ;;  %v3235_v15 = vadd.f32 %v6612_v25, %v3150_v6 }
 0xa7e   :  { %v6571_v0 = vadd.f32 %v6570_v59, %v6569_v50  ;;  %v6614_v4 = vpop.f32.mrf.mxu1 }
 0xa7f   :  { %v6615_v11 = vadd.f32 %v6614_v4, %v6613_v1  ;;  %v5825_v1 = vld [vmem:[#allocation8 + $0x8] ss:$0 sm:$0xff] }
 0xa80   :  { %v3155_v7 = vadd.f32 %v6571_v0, %v5823_v57 }
 0xa82   :  { %v3240_v14 = vadd.f32 %v6615_v11, %v3155_v7 }
 0xa8f   :  { %v7622_v5 = vpop.f32.mrf.mxu0 }
 0xa90   :  { %v3315_v12 = vadd.f32 %v7622_v5, %v3230_v8 }
 0xa91   :  { %v3309_v54 = vpop.f32.mrf.mxu0 }
 0xa92   :  { %v3310_v13 = vadd.f32 %v3309_v54, %v3225_v27  ;;  %v8197_v18 = vadd.f32 %v3315_v12, %v8169_v20  ;;  %v3467_v54 = vld [vmem:[#allocation3 + $0x14f8] sm:$0xff] }
 0xa93   :  { %v7625_v32 = vpop.f32.mrf.mxu0 }
 0xa94   :  { %v8194_v51 = vadd.f32 %v3310_v13, %v8166_v21  ;;  %v3325_v22 = vadd.f32 %v7625_v32, %v3240_v14  ;;  %v3482_v13 = vld [vmem:[#allocation3 + $0x1570] sm:$0xff] }
 0xa95   :  { %v3319_v17 = vpop.f32.mrf.mxu0  ;;  %v3498_v14 = vld [vmem:[#allocation3 + $0x15f0] sm:$0xff] }
 0xa96   :  { %v3320_v55 = vadd.f32 %v3319_v17, %v3235_v15  ;;  %v3332_v62 = vadd.f32 %v8197_v18, %v8194_v51  ;;  %v8205_v24 = vadd.f32 %v3325_v22, %v8177_v10  ;;  %v3466_v15 = vld [vmem:[#allocation3 + $0x14f0] sm:$0xff]  ;;  %v3481_v17 = vld [vmem:[#allocation3 + $0x1568] sm:$0xff] }
 0xa97   :  { %v3497_v22 = vld [vmem:[#allocation3 + $0x15e8] sm:$0xff] }
 0xa98   :  { %v8202_v23 = vadd.f32 %v3320_v55, %v8174_v9  ;;  %v3465_v55 = vld [vmem:[#allocation3 + $0x14e8] sm:$0xff] }
 0xa9a   :  { %v3333_v21 = vadd.f32 %v3332_v62, %v8202_v23 }
 0xa9c   :  { %v3334_v60 = vadd.f32 %v3333_v21, %v8205_v24 }
 0xa9e   :  { %v3335_v26 = vrot.slane %v3334_v60, 4 }
 0xaa0   :  { %v3336_v28 = vadd.f32 %v3335_v26, %v3334_v60  ;;  %v3480_v60 = vld [vmem:[#allocation3 + $0x1560] sm:$0xff] }
 0xaa1   :  { %v3496_v26 = vld [vmem:[#allocation3 + $0x15e0] sm:$0xff] }
 0xaa2   :  { %v3337_v58 = vrot.slane %v3336_v28, 2 }
 0xaa4   :  { %v3338_v20 = vadd.f32 %v3337_v58, %v3336_v28  ;;  %v3464_v28 = vld [vmem:[#allocation3 + $0x14e0] sm:$0xff]  ;;  %v3479_v58 = vld [vmem:[#allocation3 + $0x1558] sm:$0xff] }
 0xaa6   :  { %v3339_v29 = vrot.slane %v3338_v20, 1 }
 0xaa8   :  { %v3340_v30 = vadd.f32 %v3339_v29, %v3338_v20  ;;  %v3495_v20 = vld [vmem:[#allocation3 + $0x15d8] sm:$0xff] }
 0xaa9   :  { %v3463_v29 = vld [vmem:[#allocation3 + $0x14d8] sm:$0xff] }
 0xaaa   :  { %v3341_v31 = vmul.f32 0.03125, %v3340_v30 }
 0xaac   :  { %v3342_v33 = vsub.f32 %v8194_v51, %v3341_v31  ;;  %v3343_v34 = vsub.f32 %v8197_v18, %v3341_v31  ;;  %v3344_v9 = vsub.f32 %v8202_v23, %v3341_v31  ;;  %v3345_v10 = vsub.f32 %v8205_v24, %v3341_v31 }
 0xaae   :  { %v3346_v35 = vmul.f32 %v3342_v33, %v3342_v33  ;;  %v3347_v2 = vmul.f32 %v3343_v34, %v3343_v34  ;;  %v3348_v36 = vmul.f32 %v3344_v9, %v3344_v9  ;;  %v3349_v39 = vmul.f32 %v3345_v10, %v3345_v10 }
 0xab0   :  { %v3350_v37 = vadd.f32 %v3347_v2, %v3346_v35  ;;  %v3477_v35 = vld [vmem:[#allocation3 + $0x1548] sm:$0xff] }
 0xab1   :  { %v3493_v2 = vld [vmem:[#allocation3 + $0x15c8] sm:$0xff] }
 0xab2   :  { %v3351_v40 = vadd.f32 %v3350_v37, %v3348_v36  ;;  %v3461_v36 = vld [vmem:[#allocation3 + $0x14c8] sm:$0xff] }
 0xab4   :  { %v3352_v41 = vadd.f32 %v3351_v40, %v3349_v39  ;;  %v3476_v39 = vld [vmem:[#allocation3 + $0x1540] sm:$0xff] }
 0xab6   :  { %v3353_v42 = vrot.slane %v3352_v41, 4 }
 0xab8   :  { %v3354_v43 = vadd.f32 %v3353_v42, %v3352_v41  ;;  %v3492_v41 = vld [vmem:[#allocation3 + $0x15c0] sm:$0xff] }
 0xab9   :  { %v3460_v42 = vld [vmem:[#allocation3 + $0x14c0] sm:$0xff] }
 0xaba   :  { %v3355_v44 = vrot.slane %v3354_v43, 2 }
 0xabc   :  { %v3356_v45 = vadd.f32 %v3355_v44, %v3354_v43  ;;  %v3475_v44 = vld [vmem:[#allocation3 + $0x1538] sm:$0xff] }
 0xabe   :  { %v3357_v46 = vrot.slane %v3356_v45, 1 }
 0xac0   :  { %v3358_v47 = vadd.f32 %v3357_v46, %v3356_v45  ;;  %v3491_v46 = vld [vmem:[#allocation3 + $0x15b8] sm:$0xff] }
 0xac2   :  { %v3359_v48 = vmul.f32 0.03125, %v3358_v47  ;;  %v3459_v47 = vld [vmem:[#allocation3 + $0x14b8] sm:$0xff] }
 0xac4   :  { %v3360_v49 = vadd.f32 1e-05, %v3359_v48  ;;  %v3474_v48 = vld [vmem:[#allocation3 + $0x1530] sm:$0xff] }
 0xac6   :  { %7909 = vrsqrt.f32 %v3360_v49  ;;  %v3490_v49 = vld [vmem:[#allocation3 + $0x15b0] sm:$0xff] }
 0xad3   :  { %v7910_v50 = vpop.eup %7909 }
 0xad4   :  { %v3362_v53 = vmul.f32 %v7910_v50, %v3342_v33  ;;  %v3363_v56 = vmul.f32 %v7910_v50, %v3343_v34  ;;  %v3364_v57 = vmul.f32 %v7910_v50, %v3344_v9  ;;  %v3365_v59 = vmul.f32 %v7910_v50, %v3345_v10  ;;  %v3478_v33 = vld [vmem:[#allocation3 + $0x1550] sm:$0xff] }
 0xad5   :  { %v3494_v9 = vld [vmem:[#allocation3 + $0x15d0] sm:$0xff] }
 0xad6   :  { %v3371_v61 = vmul.f32 %v5824_v52, %v3362_v53  ;;  %v3372_v16 = vmul.f32 %v5824_v52, %v3363_v56  ;;  %v3373_v63 = vmul.f32 %v5824_v52, %v3364_v57  ;;  %v3374_v0 = vmul.f32 %v5824_v52, %v3365_v59  ;;  %v3462_v10 = vld [vmem:[#allocation3 + $0x14d0] sm:$0xff]  ;;  %v3473_v52 = vld [vmem:[#allocation3 + $0x1528] sm:$0xff]  ;;  %v3472_v57 = vld [vmem:[#allocation3 + $0x1520] sm:$0xff] }
 0xad7   :  { %v3458_v50 = vld [vmem:[#allocation3 + $0x14b0] sm:$0xff]  ;;  %v3489_v53 = vld [vmem:[#allocation3 + $0x15a8] sm:$0xff]  ;;  %v3488_v59 = vld [vmem:[#allocation3 + $0x15a0] sm:$0xff] }
 0xad8   :  { %v3380_v3 = vadd.f32 %v5825_v1, %v3371_v61  ;;  %v3381_v19 = vadd.f32 %v5825_v1, %v3372_v16  ;;  %v3382_v4 = vadd.f32 %v5825_v1, %v3373_v63  ;;  %v8213_v5 = vadd.f32 %v5825_v1, %v3374_v0  ;;  %v3457_v56 = vld [vmem:[#allocation3 + $0x14a8] sm:$0xff]  ;;  %v3456_v1 = vld [vmem:[#allocation3 + $0x14a0] sm:$0xff]  ;;  %v3471_v61 = vld [vmem:[#allocation3 + $0x1518] sm:$0xff] }
 0xad9   :  { %v3487_v16 = vld [vmem:[#allocation3 + $0x1598] sm:$0xff]  ;;  %v3470_v0 = vld [vmem:[#allocation3 + $0x1510] sm:$0xff] }
 0xada   :  { %v3384_v6 = vmax.f32 %v3380_v3, 0.0  ;;  %v3385_v7 = vmax.f32 %v3381_v19, 0.0  ;;  %v3386_v8 = vmax.f32 %v3382_v4, 0.0  ;;  %v3387_v27 = vmax.f32 %v8213_v5, 0.0  ;;  %v3455_v63 = vld [vmem:[#allocation3 + $0x1498] sm:$0xff]  ;;  %v3486_v3 = vld [vmem:[#allocation3 + $0x1590] sm:$0xff] }
 0xadb   :  { %v3454_v19 = vld [vmem:[#allocation3 + $0x1490] sm:$0xff]  ;;  %v3469_v4 = vld [vmem:[#allocation3 + $0x1508] sm:$0xff] }
 0xadc   :  { %3500 = vst [vmem:[#allocation2 + $0x8] sm:$0xff] %v3384_v6  ;;  %3501 = vst [vmem:[#allocation2 + $0x10] sm:$0xff] %v3385_v7  ;;  %3686 = vmatprep.mubr.f32.mxu0 %v3384_v6  ;;  %v3485_v5 = vld [vmem:[#allocation3 + $0x1588] sm:$0xff] }
 0xadd   :  { %3502 = vst [vmem:[#allocation2 + $0x28] sm:$0xff] %v3386_v8  ;;  %3503 = vst [vmem:[#allocation2 + $0x30] sm:$0xff] %v3387_v27  ;;  %v3453_v6 = vld [vmem:[#allocation3 + $0x1488] sm:$0xff] }
 0xae3   :  { %v3508_v25 = vld [vmem:[#allocation2 + $0x6] sm:$0xff]  ;;  %v3509_v32 = vld [vmem:[#allocation2 + $0xe] sm:$0xff] }
 0xae4   :  { %v3504_v11 = vld [vmem:[#allocation2 + $0x5] sm:$0xff]  ;;  %3601 = vmatprep.mubr.f32.mxu1 %v3508_v25  ;;  %v3505_v62 = vld [vmem:[#allocation2 + $0xd] sm:$0xff] }
 0xae5   :  { %v3512_v12 = vld [vmem:[#allocation2 + $0x7] sm:$0xff]  ;;  %3602 = vmatmul.mubr.f32.vlgmr.msra.gmra.mxu1 %v3504_v11  ;;  %v3513_v21 = vld [vmem:[#allocation2 + $0xf] sm:$0xff] }
 0xae6   :  { %3687 = vmatmul.mubr.f32.vlgmr.msra.gmra.mxu0 %v3512_v12  ;;  %6725 = vmatpush3.msra.mxu1 %v3467_v54  ;;  %v3506_v30 = vld [vmem:[#allocation2 + $0x25] sm:$0xff]  ;;  %v3511_v34 = vld [vmem:[#allocation2 + $0x2e] sm:$0xff] }
 0xae7   :  { %7627 = vmatpush3.msra.mxu0 %v8190_v38  ;;  %3606 = vmatprep.mubr.f32.mxu1 %v3509_v32  ;;  %v3510_v38 = vld [vmem:[#allocation2 + $0x26] sm:$0xff]  ;;  %v3515_v40 = vld [vmem:[#allocation2 + $0x2f] sm:$0xff] }
 0xae8   :  { %3691 = vmatprep.mubr.f32.mxu0 %v3385_v7  ;;  %6726 = vmatprep.subr.mxu1 %v3482_v13  ;;  %v3514_v31 = vld [vmem:[#allocation2 + $0x27] sm:$0xff]  ;;  %v3529_v25 = vld [vmem:[#allocation2 + $0x13] sm:$0xff] }
 0xae9   :  { %7628 = vmatprep.subr.mxu0 %v3498_v14  ;;  %6727 = vmatpush3.msra.mxu1 %v3466_v15  ;;  %v3507_v37 = vld [vmem:[#allocation2 + $0x2d] sm:$0xff]  ;;  %v3468_v7 = vld [vmem:[#allocation3 + $0x1500] sm:$0xff] }
 0xaea   :  { %7629 = vmatpush3.msra.mxu0 %v3498_v14  ;;  %6728 = vmatprep.subr.mxu1 %v3481_v17  ;;  %v3524_v43 = vld [vmem:[#allocation2 + $0xa] sm:$0xff]  ;;  %v3525_v11 = vld [vmem:[#allocation2 + $0x12] sm:$0xff] }
 0xaeb   :  { %7630 = vmatprep.subr.mxu0 %v3497_v22  ;;  %3607 = vmatmul.mubr.f32.gmra.mxu1 %v3505_v62  ;;  %v3528_v45 = vld [vmem:[#allocation2 + $0xb] sm:$0xff]  ;;  %v3531_v32 = vld [vmem:[#allocation2 + $0x33] sm:$0xff] }
 0xaec   :  { %3692 = vmatmul.mubr.f32.gmra.mxu0 %v3513_v21  ;;  %6729 = vmatpush3.msra.mxu1 %v3465_v55  ;;  %v3520_v54 = vld [vmem:[#allocation2 + $0x9] sm:$0xff]  ;;  %v3521_v13 = vld [vmem:[#allocation2 + $0x11] sm:$0xff] }
 0xaed   :  { %7631 = vmatpush3.msra.mxu0 %v3497_v22  ;;  %3611 = vmatprep.mubr.f32.mxu1 %v3510_v38  ;;  %v3530_v12 = vld [vmem:[#allocation2 + $0x2b] sm:$0xff]  ;;  %v3996_v55 = vld [vmem:[#allocation3 + $0x17f8] sm:$0xff] }
 0xaee   :  { %3696 = vmatprep.mubr.f32.mxu0 %v3386_v8  ;;  %6730 = vmatprep.subr.mxu1 %v3480_v60  ;;  %v3484_v8 = vld [vmem:[#allocation3 + $0x1580] sm:$0xff]  ;;  %v3526_v14 = vld [vmem:[#allocation2 + $0x2a] sm:$0xff]  ;;  %v3527_v17 = vld [vmem:[#allocation2 + $0x32] sm:$0xff] }
 0xaef   :  { %7632 = vmatprep.subr.mxu0 %v3496_v26  ;;  %6731 = vmatpush3.msra.mxu1 %v3464_v28  ;;  %v3522_v15 = vld [vmem:[#allocation2 + $0x29] sm:$0xff]  ;;  %v3523_v22 = vld [vmem:[#allocation2 + $0x31] sm:$0xff] }
 0xaf0   :  { %7633 = vmatpush3.msra.mxu0 %v3496_v26  ;;  %6732 = vmatprep.subr.mxu1 %v3479_v58  ;;  %v3964_v62 = vld [vmem:[#allocation3 + $0x16f8] sm:$0xff]  ;;  %v3995_v38 = vld [vmem:[#allocation3 + $0x17f0] sm:$0xff] }
 0xaf1   :  { %7634 = vmatprep.subr.mxu0 %v3495_v20  ;;  %3612 = vmatmul.mubr.f32.gmra.mxu1 %v3506_v30  ;;  %v3980_v21 = vld [vmem:[#allocation3 + $0x1778] sm:$0xff]  ;;  %v3963_v26 = vld [vmem:[#allocation3 + $0x16f0] sm:$0xff]  ;;  %v3978_v30 = vld [vmem:[#allocation3 + $0x1768] sm:$0xff] }
 0xaf2   :  { %3697 = vmatmul.mubr.f32.gmra.mxu0 %v3514_v31  ;;  %6733 = vmatpush3.msra.mxu1 %v3463_v29  ;;  %v3948_v60 = vld [vmem:[#allocation3 + $0x1678] sm:$0xff]  ;;  %v3979_v28 = vld [vmem:[#allocation3 + $0x1770] sm:$0xff]  ;;  %v3962_v29 = vld [vmem:[#allocation3 + $0x16e8] sm:$0xff] }
 0xaf3   :  { %7635 = vmatpush3.msra.mxu0 %v3495_v20  ;;  %3616 = vmatprep.mubr.f32.mxu1 %v3511_v34  ;;  %v3947_v58 = vld [vmem:[#allocation3 + $0x1670] sm:$0xff]  ;;  %v3994_v20 = vld [vmem:[#allocation3 + $0x17e8] sm:$0xff]  ;;  %v3961_v34 = vld [vmem:[#allocation3 + $0x16e0] sm:$0xff] }
 0xaf4   :  { %3701 = vmatprep.mubr.f32.mxu0 %v3387_v27  ;;  %6734 = vmatprep.subr.mxu1 %v3478_v33  ;;  %v3452_v27 = vld [vmem:[#allocation3 + $0x1480] sm:$0xff]  ;;  %v3946_v31 = vld [vmem:[#allocation3 + $0x1668] sm:$0xff] }
 0xaf5   :  { %7636 = vmatprep.subr.mxu0 %v3494_v9  ;;  %6735 = vmatpush3.msra.mxu1 %v3462_v10  ;;  %v3993_v33 = vld [vmem:[#allocation3 + $0x17e0] sm:$0xff] }
 0xaf6   :  { %7637 = vmatpush3.msra.mxu0 %v3494_v9  ;;  %6736 = vmatprep.subr.mxu1 %v3477_v35  ;;  %v3977_v9 = vld [vmem:[#allocation3 + $0x1760] sm:$0xff]  ;;  %v3992_v35 = vld [vmem:[#allocation3 + $0x17d8] sm:$0xff] }
 0xaf7   :  { %7638 = vmatprep.subr.mxu0 %v3493_v2  ;;  %3617 = vmatmul.mubr.f32.gmra.mxu1 %v3507_v37  ;;  %v3945_v10 = vld [vmem:[#allocation3 + $0x1660] sm:$0xff]  ;;  %v3944_v37 = vld [vmem:[#allocation3 + $0x1658] sm:$0xff] }
 0xaf8   :  { %3702 = vmatmul.mubr.f32.gmra.mxu0 %v3515_v40  ;;  %6737 = vmatpush3.msra.mxu1 %v3461_v36  ;;  %v3976_v36 = vld [vmem:[#allocation3 + $0x1758] sm:$0xff]  ;;  %v3959_v40 = vld [vmem:[#allocation3 + $0x16d0] sm:$0xff] }
 0xaf9   :  { %7639 = vmatpush3.msra.mxu0 %v3493_v2  ;;  %6738 = vmatprep.subr.mxu1 %v3476_v39  ;;  %v3960_v2 = vld [vmem:[#allocation3 + $0x16d8] sm:$0xff]  ;;  %v3991_v39 = vld [vmem:[#allocation3 + $0x17d0] sm:$0xff] }
 0xafa   :  { %3771 = vmatprep.mubr.f32.mxu1 %v3524_v43  ;;  %7640 = vmatprep.subr.mxu0 %v3492_v41  ;;  %v3990_v43 = vld [vmem:[#allocation3 + $0x17c8] sm:$0xff] }
 0xafb   :  { %7658 = vmatprep.mubr.f32.mxu0 %v3528_v45  ;;  %6739 = vmatpush3.msra.mxu1 %v3460_v42  ;;  %v3943_v42 = vld [vmem:[#allocation3 + $0x1650] sm:$0xff]  ;;  %v3974_v45 = vld [vmem:[#allocation3 + $0x1748] sm:$0xff] }
 0xafc   :  { %7641 = vmatpush3.msra.mxu0 %v3492_v41  ;;  %6740 = vmatprep.subr.mxu1 %v3475_v44  ;;  %v3975_v41 = vld [vmem:[#allocation3 + $0x1750] sm:$0xff]  ;;  %v3958_v44 = vld [vmem:[#allocation3 + $0x16c8] sm:$0xff] }
 0xafd   :  { %7642 = vmatprep.subr.mxu0 %v3491_v46  ;;  %6741 = vmatpush3.msra.mxu1 %v3459_v47  ;;  %v3989_v47 = vld [vmem:[#allocation3 + $0x17c0] sm:$0xff] }
 0xafe   :  { %7643 = vmatpush3.msra.mxu0 %v3491_v46  ;;  %6742 = vmatprep.subr.mxu1 %v3474_v48  ;;  %v3942_v46 = vld [vmem:[#allocation3 + $0x1648] sm:$0xff]  ;;  %v3957_v48 = vld [vmem:[#allocation3 + $0x16c0] sm:$0xff] }
 0xaff   :  { %7644 = vmatprep.subr.mxu0 %v3490_v49  ;;  %6743 = vmatpush3.msra.mxu1 %v3458_v50  ;;  %v3941_v50 = vld [vmem:[#allocation3 + $0x1640] sm:$0xff] }
 0xb00   :  { %7645 = vmatpush3.msra.mxu0 %v3490_v49  ;;  %6744 = vmatprep.subr.mxu1 %v3473_v52  ;;  %v3973_v49 = vld [vmem:[#allocation3 + $0x1740] sm:$0xff]  ;;  %v3988_v52 = vld [vmem:[#allocation3 + $0x17b8] sm:$0xff] }
 0xb01   :  { %7646 = vmatprep.subr.mxu0 %v3489_v53  ;;  %6745 = vmatpush3.msra.mxu1 %v3457_v56  ;;  %v3972_v56 = vld [vmem:[#allocation3 + $0x1738] sm:$0xff] }
 0xb02   :  { %7647 = vmatpush3.msra.mxu0 %v3489_v53  ;;  %6746 = vmatprep.subr.mxu1 %v3472_v57  ;;  %v3956_v53 = vld [vmem:[#allocation3 + $0x16b8] sm:$0xff] }
 0xb03   :  { %7648 = vmatprep.subr.mxu0 %v3488_v59  ;;  %6747 = vmatpush3.msra.mxu1 %v3456_v1  ;;  %v3940_v57 = vld [vmem:[#allocation3 + $0x1638] sm:$0xff]  ;;  %v3955_v1 = vld [vmem:[#allocation3 + $0x16b0] sm:$0xff] }
 0xb04   :  { %7649 = vmatpush3.msra.mxu0 %v3488_v59  ;;  %6748 = vmatprep.subr.mxu1 %v3471_v61  ;;  %v3987_v59 = vld [vmem:[#allocation3 + $0x17b0] sm:$0xff] }
 0xb05   :  { %7650 = vmatprep.subr.mxu0 %v3487_v16  ;;  %6749 = vmatpush3.msra.mxu1 %v3455_v63  ;;  %v3971_v61 = vld [vmem:[#allocation3 + $0x1730] sm:$0xff]  ;;  %v3986_v63 = vld [vmem:[#allocation3 + $0x17a8] sm:$0xff] }
 0xb06   :  { %7651 = vmatpush3.msra.mxu0 %v3487_v16  ;;  %6750 = vmatprep.subr.mxu1 %v3470_v0  ;;  %v3939_v16 = vld [vmem:[#allocation3 + $0x1630] sm:$0xff]  ;;  %v3954_v0 = vld [vmem:[#allocation3 + $0x16a8] sm:$0xff] }
 0xb07   :  { %7652 = vmatprep.subr.mxu0 %v3486_v3  ;;  %6751 = vmatpush3.msra.mxu1 %v3454_v19  ;;  %v3938_v19 = vld [vmem:[#allocation3 + $0x1628] sm:$0xff] }
 0xb08   :  { %7653 = vmatpush3.msra.mxu0 %v3486_v3  ;;  %6752 = vmatprep.subr.mxu1 %v3469_v4  ;;  %v3970_v3 = vld [vmem:[#allocation3 + $0x1728] sm:$0xff]  ;;  %v3985_v4 = vld [vmem:[#allocation3 + $0x17a0] sm:$0xff] }
 0xb09   :  { %7654 = vmatprep.subr.mxu0 %v3485_v5  ;;  %6753 = vmatpush3.msra.mxu1 %v3453_v6  ;;  %v3969_v6 = vld [vmem:[#allocation3 + $0x1720] sm:$0xff] }
 0xb0a   :  { %7655 = vmatpush3.msra.mxu0 %v3485_v5  ;;  %6754 = vmatprep.subr.mxu1 %v3468_v7  ;;  %v3953_v5 = vld [vmem:[#allocation3 + $0x16a0] sm:$0xff] }
 0xb0b   :  { %7656 = vmatprep.subr.mxu0 %v3484_v8  ;;  %6755 = vmatpush3.msra.mxu1 %v3452_v27  ;;  %v3937_v7 = vld [vmem:[#allocation3 + $0x1620] sm:$0xff]  ;;  %v3984_v27 = vld [vmem:[#allocation3 + $0x1798] sm:$0xff] }
 0xb0c   :  { %7657 = vmatpush3.msra.mxu0 %v3484_v8  ;;  %3772 = vmatmul.mubr.f32.vlgmr.msra.gmra.mxu1 %v3520_v54  ;;  %v3952_v8 = vld [vmem:[#allocation3 + $0x1698] sm:$0xff] }
 0xb0d   :  { %7659 = vmatmul.mubr.f32.vlgmr.msra.gmra.mxu0 %v3529_v25  ;;  %3776 = vmatprep.mubr.f32.mxu1 %v3525_v11  ;;  %v3936_v54 = vld [vmem:[#allocation3 + $0x1618] sm:$0xff]  ;;  %v3951_v11 = vld [vmem:[#allocation3 + $0x1690] sm:$0xff] }
 0xb0e   :  { %7661 = vmatprep.mubr.f32.mxu0 %v3530_v12  ;;  %6832 = vmatprep.subr.mxu0 %v3996_v55  ;;  %v3968_v25 = vld [vmem:[#allocation3 + $0x1718] sm:$0xff]  ;;  %v3983_v12 = vld [vmem:[#allocation3 + $0x1790] sm:$0xff]  ;;  %v3981_v55 = vld [vmem:[#allocation3 + $0x1780] sm:$0xff] }
 0xb0f   :  { %6788 = vmatprep.subr.mxu1 %v3964_v62  ;;  %6833 = vmatpush3.msra.mxu0 %v3980_v21  ;;  %v3949_v62 = vld [vmem:[#allocation3 + $0x1680] sm:$0xff] }
 0xb10   :  { %3777 = vmatmul.mubr.f32.gmra.mxu1 %v3521_v13  ;;  %6834 = vmatprep.subr.mxu0 %v3995_v38  ;;  %v3935_v13 = vld [vmem:[#allocation3 + $0x1610] sm:$0xff]  ;;  %v3965_v21 = vld [vmem:[#allocation3 + $0x1700] sm:$0xff]  ;;  %v4028_v38 = vld [vmem:[#allocation3 + $0x18f8] sm:$0xff] }
 0xb11   :  { %7662 = vmatmul.mubr.f32.gmra.mxu0 %v3531_v32  ;;  %3781 = vmatprep.mubr.f32.mxu1 %v3526_v14  ;;  %v3967_v32 = vld [vmem:[#allocation3 + $0x1710] sm:$0xff]  ;;  %v3950_v14 = vld [vmem:[#allocation3 + $0x1688] sm:$0xff] }
 0xb12   :  { %6789 = vmatpush3.msra.mxu1 %v3948_v60  ;;  %6835 = vmatpush3.msra.mxu0 %v3979_v28  ;;  %v3933_v60 = vld [vmem:[#allocation3 + $0x1600] sm:$0xff] }
 0xb13   :  { %6790 = vmatprep.subr.mxu1 %v3963_v26  ;;  %6836 = vmatprep.subr.mxu0 %v3994_v20  ;;  %v8217_v26 = vld [vmem:[#allocation3 + $0x1978] sm:$0xff] }
 0xb14   :  { %3782 = vmatmul.mubr.f32.gmra.mxu1 %v3522_v15  ;;  %6837 = vmatpush3.msra.mxu0 %v3978_v30  ;;  %v3982_v15 = vld [vmem:[#allocation3 + $0x1788] sm:$0xff] }
 0xb15   :  { %3786 = vmatprep.mubr.f32.mxu1 %v3527_v17  ;;  %6791 = vmatpush3.msra.mxu1 %v3947_v58  ;;  %v3934_v17 = vld [vmem:[#allocation3 + $0x1608] sm:$0xff] }
 0xb16   :  { %6792 = vmatprep.subr.mxu1 %v3962_v29  ;;  %6838 = vmatprep.subr.mxu0 %v3993_v33 }
 0xb17   :  { %6793 = vmatpush3.msra.mxu1 %v3946_v31  ;;  %6839 = vmatpush3.msra.mxu0 %v3977_v9 }
 0xb18   :  { %3787 = vmatmul.mubr.f32.gmra.mxu1 %v3523_v22  ;;  %6794 = vmatprep.subr.mxu1 %v3961_v34  ;;  %v3966_v22 = vld [vmem:[#allocation3 + $0x1708] sm:$0xff] }
 0xb19   :  { %6795 = vmatpush3.msra.mxu1 %v3945_v10  ;;  %6840 = vmatprep.subr.mxu0 %v3992_v35 }
 0xb1a   :  { %6796 = vmatprep.subr.mxu1 %v3960_v2  ;;  %6841 = vmatpush3.msra.mxu0 %v3976_v36 }
 0xb1b   :  { %6797 = vmatpush3.msra.mxu1 %v3944_v37  ;;  %6842 = vmatprep.subr.mxu0 %v3991_v39 }
 0xb1c   :  { %6798 = vmatprep.subr.mxu1 %v3959_v40  ;;  %6843 = vmatpush3.msra.mxu0 %v3975_v41 }
 0xb1d   :  { %6799 = vmatpush3.msra.mxu1 %v3943_v42  ;;  %6844 = vmatprep.subr.mxu0 %v3990_v43  ;;  %v5826_v43 = vld [vmem:[#allocation5 + $0x9] ss:$0 sm:$0xff] }
 0xb1e   :  { %6800 = vmatprep.subr.mxu1 %v3958_v44  ;;  %6845 = vmatpush3.msra.mxu0 %v3974_v45 }
 0xb1f   :  { %6801 = vmatpush3.msra.mxu1 %v3942_v46  ;;  %6846 = vmatprep.subr.mxu0 %v3989_v47 }
 0xb20   :  { %6802 = vmatprep.subr.mxu1 %v3957_v48  ;;  %6847 = vmatpush3.msra.mxu0 %v3973_v49 }
 0xb21   :  { %6803 = vmatpush3.msra.mxu1 %v3941_v50  ;;  %6848 = vmatprep.subr.mxu0 %v3988_v52 }
 0xb22   :  { %6804 = vmatprep.subr.mxu1 %v3956_v53  ;;  %6849 = vmatpush3.msra.mxu0 %v3972_v56 }
 0xb23   :  { %6805 = vmatpush3.msra.mxu1 %v3940_v57  ;;  %6850 = vmatprep.subr.mxu0 %v3987_v59 }
 0xb24   :  { %6806 = vmatprep.subr.mxu1 %v3955_v1  ;;  %6851 = vmatpush3.msra.mxu0 %v3971_v61 }
 0xb25   :  { %6807 = vmatpush3.msra.mxu1 %v3939_v16  ;;  %6852 = vmatprep.subr.mxu0 %v3986_v63 }
 0xb26   :  { %6808 = vmatprep.subr.mxu1 %v3954_v0  ;;  %6853 = vmatpush3.msra.mxu0 %v3970_v3 }
 0xb27   :  { %6809 = vmatpush3.msra.mxu1 %v3938_v19  ;;  %6854 = vmatprep.subr.mxu0 %v3985_v4 }
 0xb28   :  { %6810 = vmatprep.subr.mxu1 %v3953_v5  ;;  %6855 = vmatpush3.msra.mxu0 %v3969_v6 }
 0xb29   :  { %6811 = vmatpush3.msra.mxu1 %v3937_v7  ;;  %6856 = vmatprep.subr.mxu0 %v3984_v27 }
 0xb2a   :  { %6812 = vmatprep.subr.mxu1 %v3952_v8  ;;  %6857 = vmatpush3.msra.mxu0 %v3968_v25 }
 0xb2b   :  { %6813 = vmatpush3.msra.mxu1 %v3936_v54  ;;  %6858 = vmatprep.subr.mxu0 %v3983_v12 }
 0xb2c   :  { %6814 = vmatprep.subr.mxu1 %v3951_v11  ;;  %6859 = vmatpush3.msra.mxu0 %v3967_v32 }
 0xb2d   :  { %6815 = vmatpush3.msra.mxu1 %v3935_v13  ;;  %6860 = vmatprep.subr.mxu0 %v3982_v15 }
 0xb2e   :  { %6816 = vmatprep.subr.mxu1 %v3950_v14  ;;  %6861 = vmatpush3.msra.mxu0 %v3966_v22 }
 0xb2f   :  { %6817 = vmatpush3.msra.mxu1 %v3934_v17  ;;  %6862 = vmatprep.subr.mxu0 %v3981_v55 }
 0xb30   :  { %6818 = vmatprep.subr.mxu1 %v3949_v62  ;;  %6863 = vmatpush3.msra.mxu0 %v3965_v21 }
 0xb31   :  { %6819 = vmatpush3.msra.mxu1 %v3933_v60  ;;  %7664 = vmatprep.subr.mxu0 %v8217_v26 }
 0xb32   :  { %6876 = vmatprep.subr.mxu1 %v4028_v38 }
 0xba5   :  { %v6668_v28 = vpop.f32.mrf.mxu1 }
 0xba6   :  { %v6712_v58 = vpop.f32.mrf.mxu0 }
 0xba7   :  { %v6669_v20 = vpop.f32.mrf.mxu1 }
 0xba8   :  { %v6713_v29 = vpop.f32.mrf.mxu0  ;;  %v6670_v44 = vadd.f32 %v6669_v20, %v6668_v28 }
 0xba9   :  { %v6714_v53 = vadd.f32 %v6713_v29, %v6712_v58 }
 0xbaa   :  { %v3604_v52 = vadd.f32 %v6670_v44, %v5826_v43 }
 0xbab   :  { %v6671_v30 = vpop.f32.mrf.mxu1 }
 0xbac   :  { %v6715_v31 = vpop.f32.mrf.mxu0  ;;  %v3689_v3 = vadd.f32 %v6714_v53, %v3604_v52 }
 0xbad   :  { %v6672_v33 = vpop.f32.mrf.mxu1 }
 0xbae   :  { %v6716_v34 = vpop.f32.mrf.mxu0  ;;  %v6673_v39 = vadd.f32 %v6672_v33, %v6671_v30 }
 0xbaf   :  { %v6717_v49 = vadd.f32 %v6716_v34, %v6715_v31 }
 0xbb0   :  { %v3609_v45 = vadd.f32 %v6673_v39, %v5826_v43 }
 0xbb1   :  { %v6674_v9 = vpop.f32.mrf.mxu1 }
 0xbb2   :  { %v6718_v10 = vpop.f32.mrf.mxu0  ;;  %v3694_v56 = vadd.f32 %v6717_v49, %v3609_v45 }
 0xbb3   :  { %v6675_v35 = vpop.f32.mrf.mxu1 }
 0xbb4   :  { %v6719_v2 = vpop.f32.mrf.mxu0  ;;  %v6676_v48 = vadd.f32 %v6675_v35, %v6674_v9 }
 0xbb5   :  { %v6720_v19 = vadd.f32 %v6719_v2, %v6718_v10 }
 0xbb6   :  { %v3614_v1 = vadd.f32 %v6676_v48, %v5826_v43 }
 0xbb7   :  { %v6677_v36 = vpop.f32.mrf.mxu1 }
 0xbb8   :  { %v6721_v37 = vpop.f32.mrf.mxu0  ;;  %v3699_v7 = vadd.f32 %v6720_v19, %v3614_v1 }
 0xbb9   :  { %v6678_v40 = vpop.f32.mrf.mxu1 }
 0xbba   :  { %v6722_v41 = vpop.f32.mrf.mxu0  ;;  %v6679_v61 = vadd.f32 %v6678_v40, %v6677_v36 }
 0xbbb   :  { %v6723_v11 = vadd.f32 %v6722_v41, %v6721_v37 }
 0xbbc   :  { %v3619_v8 = vadd.f32 %v6679_v61, %v5826_v43 }
 0xbbe   :  { %v3704_v15 = vadd.f32 %v6723_v11, %v3619_v8  ;;  %v4012_v11 = vld [vmem:[#allocation3 + $0x1878] sm:$0xff] }
 0xbcc   :  { %v6756_v42 = vpop.f32.mrf.mxu1 }
 0xbcd   :  { %v7660_v46 = vpop.f32.mrf.mxu0 }
 0xbce   :  { %v6757_v47 = vpop.f32.mrf.mxu1 }
 0xbcf   :  { %v3858_v57 = vpop.f32.mrf.mxu0  ;;  %v6758_v16 = vadd.f32 %v6757_v47, %v6756_v42 }
 0xbd0   :  { %v6759_v50 = vpop.f32.mrf.mxu1 }
 0xbd1   :  { %v7663_v5 = vpop.f32.mrf.mxu0  ;;  %v3774_v27 = vadd.f32 %v6758_v16, %v3689_v3  ;;  %v5828_v16 = vld [vmem:[#allocation8 + $0x9] ss:$0 sm:$0xff] }
 0xbd2   :  { %v6760_v59 = vpop.f32.mrf.mxu1 }
 0xbd3   :  { %v6761_v63 = vadd.f32 %v6760_v59, %v6759_v50  ;;  %v3868_v32 = vpop.f32.mrf.mxu0  ;;  %v3859_v17 = vadd.f32 %v3858_v57, %v3774_v27 }
 0xbd4   :  { %v6762_v0 = vpop.f32.mrf.mxu1 }
 0xbd5   :  { %v3779_v4 = vadd.f32 %v6761_v63, %v3694_v56  ;;  %v5827_v56 = vld [vmem:[#allocation7 + $0x9] ss:$0 sm:$0xff] }
 0xbd6   :  { %v6763_v6 = vpop.f32.mrf.mxu1 }
 0xbd7   :  { %v6764_v54 = vadd.f32 %v6763_v6, %v6762_v0  ;;  %v3864_v12 = vadd.f32 %v7660_v46, %v3779_v4 }
 0xbd8   :  { %v6765_v25 = vpop.f32.mrf.mxu1 }
 0xbd9   :  { %v3784_v13 = vadd.f32 %v6764_v54, %v3699_v7  ;;  %v3877_v62 = vadd.f32 %v3864_v12, %v3859_v17 }
 0xbda   :  { %v6766_v14 = vpop.f32.mrf.mxu1 }
 0xbdb   :  { %v3869_v22 = vadd.f32 %v3868_v32, %v3784_v13  ;;  %v6767_v55 = vadd.f32 %v6766_v14, %v6765_v25  ;;  %v4027_v14 = vld [vmem:[#allocation3 + $0x18f0] sm:$0xff] }
 0xbdd   :  { %v3789_v21 = vadd.f32 %v6767_v55, %v3704_v15  ;;  %v3878_v60 = vadd.f32 %v3877_v62, %v3869_v22  ;;  %v4026_v55 = vld [vmem:[#allocation3 + $0x18e8] sm:$0xff] }
 0xbde   :  { %v4042_v62 = vld [vmem:[#allocation3 + $0x1968] sm:$0xff] }
 0xbdf   :  { %v3874_v38 = vadd.f32 %v7663_v5, %v3789_v21  ;;  %v4010_v21 = vld [vmem:[#allocation3 + $0x1868] sm:$0xff] }
 0xbe1   :  { %v3879_v28 = vadd.f32 %v3878_v60, %v3874_v38 }
 0xbe3   :  { %v3880_v58 = vrot.slane %v3879_v28, 4 }
 0xbe5   :  { %v3881_v20 = vadd.f32 %v3880_v58, %v3879_v28  ;;  %v4025_v28 = vld [vmem:[#allocation3 + $0x18e0] sm:$0xff] }
 0xbe6   :  { %v4041_v58 = vld [vmem:[#allocation3 + $0x1960] sm:$0xff] }
 0xbe7   :  { %v3882_v29 = vrot.slane %v3881_v20, 2 }
 0xbe9   :  { %v3883_v30 = vadd.f32 %v3882_v29, %v3881_v20  ;;  %v4009_v20 = vld [vmem:[#allocation3 + $0x1860] sm:$0xff]  ;;  %v4024_v29 = vld [vmem:[#allocation3 + $0x18d8] sm:$0xff] }
 0xbeb   :  { %v3884_v31 = vrot.slane %v3883_v30, 1 }
 0xbed   :  { %v3885_v33 = vadd.f32 %v3884_v31, %v3883_v30  ;;  %v4040_v30 = vld [vmem:[#allocation3 + $0x1958] sm:$0xff] }
 0xbee   :  { %v4008_v31 = vld [vmem:[#allocation3 + $0x1858] sm:$0xff] }
 0xbef   :  { %v3886_v34 = vmul.f32 0.03125, %v3885_v33 }
 0xbf1   :  { %v3887_v9 = vsub.f32 %v3859_v17, %v3886_v34  ;;  %v3888_v10 = vsub.f32 %v3864_v12, %v3886_v34  ;;  %v3889_v35 = vsub.f32 %v3869_v22, %v3886_v34  ;;  %v3890_v2 = vsub.f32 %v3874_v38, %v3886_v34  ;;  %v4043_v17 = vld [vmem:[#allocation3 + $0x1970] sm:$0xff] }
 0xbf2   :  { %v4011_v22 = vld [vmem:[#allocation3 + $0x1870] sm:$0xff] }
 0xbf3   :  { %v3891_v36 = vmul.f32 %v3887_v9, %v3887_v9  ;;  %v3892_v37 = vmul.f32 %v3888_v10, %v3888_v10  ;;  %v3893_v39 = vmul.f32 %v3889_v35, %v3889_v35  ;;  %v3894_v41 = vmul.f32 %v3890_v2, %v3890_v2 }
 0xbf5   :  { %v3895_v40 = vadd.f32 %v3892_v37, %v3891_v36  ;;  %v4022_v36 = vld [vmem:[#allocation3 + $0x18c8] sm:$0xff] }
 0xbf6   :  { %v4038_v37 = vld [vmem:[#allocation3 + $0x1948] sm:$0xff] }
 0xbf7   :  { %v3896_v42 = vadd.f32 %v3895_v40, %v3893_v39  ;;  %v4006_v39 = vld [vmem:[#allocation3 + $0x1848] sm:$0xff] }
 0xbf9   :  { %v3897_v43 = vadd.f32 %v3896_v42, %v3894_v41  ;;  %v4021_v41 = vld [vmem:[#allocation3 + $0x18c0] sm:$0xff] }
 0xbfb   :  { %v3898_v44 = vrot.slane %v3897_v43, 4 }
 0xbfd   :  { %v3899_v45 = vadd.f32 %v3898_v44, %v3897_v43  ;;  %v4037_v43 = vld [vmem:[#allocation3 + $0x1940] sm:$0xff] }
 0xbfe   :  { %v4005_v44 = vld [vmem:[#allocation3 + $0x1840] sm:$0xff] }
 0xbff   :  { %v3900_v46 = vrot.slane %v3899_v45, 2 }
 0xc01   :  { %v3901_v47 = vadd.f32 %v3900_v46, %v3899_v45  ;;  %v4020_v46 = vld [vmem:[#allocation3 + $0x18b8] sm:$0xff] }
 0xc03   :  { %v3902_v48 = vrot.slane %v3901_v47, 1 }
 0xc05   :  { %v3903_v49 = vadd.f32 %v3902_v48, %v3901_v47  ;;  %v4036_v48 = vld [vmem:[#allocation3 + $0x1938] sm:$0xff] }
 0xc07   :  { %v3904_v50 = vmul.f32 0.03125, %v3903_v49  ;;  %v4004_v49 = vld [vmem:[#allocation3 + $0x1838] sm:$0xff] }
 0xc09   :  { %v3905_v52 = vadd.f32 1e-05, %v3904_v50  ;;  %v4019_v50 = vld [vmem:[#allocation3 + $0x18b0] sm:$0xff] }
 0xc0b   :  { %7911 = vrsqrt.f32 %v3905_v52  ;;  %v4035_v52 = vld [vmem:[#allocation3 + $0x1930] sm:$0xff] }
 0xc18   :  { %v7912_v53 = vpop.eup %7911 }
 0xc19   :  { %v3907_v57 = vmul.f32 %v7912_v53, %v3887_v9  ;;  %v3908_v59 = vmul.f32 %v7912_v53, %v3888_v10  ;;  %v3909_v1 = vmul.f32 %v7912_v53, %v3889_v35  ;;  %v3910_v61 = vmul.f32 %v7912_v53, %v3890_v2  ;;  %v4023_v9 = vld [vmem:[#allocation3 + $0x18d0] sm:$0xff] }
 0xc1a   :  { %v4039_v35 = vld [vmem:[#allocation3 + $0x1950] sm:$0xff] }
 0xc1b   :  { %v3916_v63 = vmul.f32 %v5827_v56, %v3907_v57  ;;  %v3917_v0 = vmul.f32 %v5827_v56, %v3908_v59  ;;  %v3918_v3 = vmul.f32 %v5827_v56, %v3909_v1  ;;  %v3919_v19 = vmul.f32 %v5827_v56, %v3910_v61  ;;  %v4007_v2 = vld [vmem:[#allocation3 + $0x1850] sm:$0xff]  ;;  %v4018_v56 = vld [vmem:[#allocation3 + $0x18a8] sm:$0xff]  ;;  %v4017_v1 = vld [vmem:[#allocation3 + $0x18a0] sm:$0xff] }
 0xc1c   :  { %v4003_v53 = vld [vmem:[#allocation3 + $0x1830] sm:$0xff]  ;;  %v4034_v57 = vld [vmem:[#allocation3 + $0x1928] sm:$0xff]  ;;  %v4033_v61 = vld [vmem:[#allocation3 + $0x1920] sm:$0xff] }
 0xc1d   :  { %v3925_v4 = vadd.f32 %v5828_v16, %v3916_v63  ;;  %v3926_v5 = vadd.f32 %v5828_v16, %v3917_v0  ;;  %v3927_v6 = vadd.f32 %v5828_v16, %v3918_v3  ;;  %v8220_v7 = vadd.f32 %v5828_v16, %v3919_v19  ;;  %v4002_v59 = vld [vmem:[#allocation3 + $0x1828] sm:$0xff]  ;;  %v4001_v16 = vld [vmem:[#allocation3 + $0x1820] sm:$0xff]  ;;  %v4016_v63 = vld [vmem:[#allocation3 + $0x1898] sm:$0xff] }
 0xc1e   :  { %v4032_v0 = vld [vmem:[#allocation3 + $0x1918] sm:$0xff]  ;;  %v4015_v19 = vld [vmem:[#allocation3 + $0x1890] sm:$0xff] }
 0xc1f   :  { %v3929_v8 = vmax.f32 %v3925_v4, 0.0  ;;  %v3930_v27 = vmax.f32 %v3926_v5, 0.0  ;;  %v3931_v54 = vmax.f32 %v3927_v6, 0.0  ;;  %v3932_v25 = vmax.f32 %v8220_v7, 0.0  ;;  %v4000_v3 = vld [vmem:[#allocation3 + $0x1818] sm:$0xff]  ;;  %v4031_v4 = vld [vmem:[#allocation3 + $0x1910] sm:$0xff] }
 0xc20   :  { %v3999_v5 = vld [vmem:[#allocation3 + $0x1810] sm:$0xff]  ;;  %v4014_v6 = vld [vmem:[#allocation3 + $0x1888] sm:$0xff] }
 0xc21   :  { %4045 = vst [vmem:[#allocation2 + $0x8] sm:$0xff] %v3929_v8  ;;  %4046 = vst [vmem:[#allocation2 + $0x10] sm:$0xff] %v3930_v27  ;;  %4231 = vmatprep.mubr.f32.mxu0 %v3929_v8  ;;  %v4030_v7 = vld [vmem:[#allocation3 + $0x1908] sm:$0xff] }
 0xc22   :  { %4047 = vst [vmem:[#allocation2 + $0x28] sm:$0xff] %v3931_v54  ;;  %4048 = vst [vmem:[#allocation2 + $0x30] sm:$0xff] %v3932_v25  ;;  %v3998_v8 = vld [vmem:[#allocation3 + $0x1808] sm:$0xff] }
 0xc28   :  { %v4053_v12 = vld [vmem:[#allocation2 + $0x6] sm:$0xff]  ;;  %v4054_v15 = vld [vmem:[#allocation2 + $0xe] sm:$0xff] }
 0xc29   :  { %v4049_v13 = vld [vmem:[#allocation2 + $0x5] sm:$0xff]  ;;  %4146 = vmatprep.mubr.f32.mxu1 %v4053_v12  ;;  %v4050_v60 = vld [vmem:[#allocation2 + $0xd] sm:$0xff] }
 0xc2a   :  { %v4057_v32 = vld [vmem:[#allocation2 + $0x7] sm:$0xff]  ;;  %4147 = vmatmul.mubr.f32.vlgmr.msra.gmra.mxu1 %v4049_v13  ;;  %v4058_v38 = vld [vmem:[#allocation2 + $0xf] sm:$0xff] }
 0xc2b   :  { %4232 = vmatmul.mubr.f32.vlgmr.msra.gmra.mxu0 %v4057_v32  ;;  %6877 = vmatpush3.msra.mxu1 %v4012_v11  ;;  %v4051_v33 = vld [vmem:[#allocation2 + $0x25] sm:$0xff]  ;;  %v4056_v10 = vld [vmem:[#allocation2 + $0x2e] sm:$0xff] }
 0xc2c   :  { %7665 = vmatpush3.msra.mxu0 %v8217_v26  ;;  %4151 = vmatprep.mubr.f32.mxu1 %v4054_v15  ;;  %v4055_v26 = vld [vmem:[#allocation2 + $0x26] sm:$0xff]  ;;  %v4060_v42 = vld [vmem:[#allocation2 + $0x2f] sm:$0xff] }
 0xc2d   :  { %4236 = vmatprep.mubr.f32.mxu0 %v3930_v27  ;;  %6878 = vmatprep.subr.mxu1 %v4027_v14  ;;  %v4059_v34 = vld [vmem:[#allocation2 + $0x27] sm:$0xff]  ;;  %v4074_v12 = vld [vmem:[#allocation2 + $0x13] sm:$0xff] }
 0xc2e   :  { %7666 = vmatprep.subr.mxu0 %v4043_v17  ;;  %6879 = vmatpush3.msra.mxu1 %v4011_v22  ;;  %v4052_v40 = vld [vmem:[#allocation2 + $0x2d] sm:$0xff]  ;;  %v4013_v27 = vld [vmem:[#allocation3 + $0x1880] sm:$0xff] }
 0xc2f   :  { %7667 = vmatpush3.msra.mxu0 %v4043_v17  ;;  %6880 = vmatprep.subr.mxu1 %v4026_v55  ;;  %v4069_v45 = vld [vmem:[#allocation2 + $0xa] sm:$0xff]  ;;  %v4070_v13 = vld [vmem:[#allocation2 + $0x12] sm:$0xff] }
 0xc30   :  { %7668 = vmatprep.subr.mxu0 %v4042_v62  ;;  %4152 = vmatmul.mubr.f32.gmra.mxu1 %v4050_v60  ;;  %v4073_v47 = vld [vmem:[#allocation2 + $0xb] sm:$0xff]  ;;  %v4076_v15 = vld [vmem:[#allocation2 + $0x33] sm:$0xff] }
 0xc31   :  { %4237 = vmatmul.mubr.f32.gmra.mxu0 %v4058_v38  ;;  %6881 = vmatpush3.msra.mxu1 %v4010_v21  ;;  %v4065_v11 = vld [vmem:[#allocation2 + $0x9] sm:$0xff]  ;;  %v4066_v14 = vld [vmem:[#allocation2 + $0x11] sm:$0xff] }
 0xc32   :  { %7669 = vmatpush3.msra.mxu0 %v4042_v62  ;;  %4156 = vmatprep.mubr.f32.mxu1 %v4055_v26  ;;  %v4075_v32 = vld [vmem:[#allocation2 + $0x2b] sm:$0xff]  ;;  %v4545_v21 = vld [vmem:[#allocation3 + $0x1b78] sm:$0xff] }
 0xc33   :  { %4241 = vmatprep.mubr.f32.mxu0 %v3931_v54  ;;  %6882 = vmatprep.subr.mxu1 %v4025_v28  ;;  %v4029_v54 = vld [vmem:[#allocation3 + $0x1900] sm:$0xff]  ;;  %v4071_v17 = vld [vmem:[#allocation2 + $0x2a] sm:$0xff]  ;;  %v4072_v55 = vld [vmem:[#allocation2 + $0x32] sm:$0xff] }
 0xc34   :  { %7670 = vmatprep.subr.mxu0 %v4041_v58  ;;  %6883 = vmatpush3.msra.mxu1 %v4009_v20  ;;  %v4067_v22 = vld [vmem:[#allocation2 + $0x29] sm:$0xff]  ;;  %v4068_v62 = vld [vmem:[#allocation2 + $0x31] sm:$0xff] }
 0xc35   :  { %7671 = vmatpush3.msra.mxu0 %v4041_v58  ;;  %6884 = vmatprep.subr.mxu1 %v4024_v29  ;;  %v4513_v60 = vld [vmem:[#allocation3 + $0x1a78] sm:$0xff]  ;;  %v4544_v26 = vld [vmem:[#allocation3 + $0x1b70] sm:$0xff] }
 0xc36   :  { %7672 = vmatprep.subr.mxu0 %v4040_v30  ;;  %4157 = vmatmul.mubr.f32.gmra.mxu1 %v4051_v33  ;;  %v4529_v38 = vld [vmem:[#allocation3 + $0x1af8] sm:$0xff]  ;;  %v4512_v58 = vld [vmem:[#allocation3 + $0x1a70] sm:$0xff]  ;;  %v4527_v33 = vld [vmem:[#allocation3 + $0x1ae8] sm:$0xff] }
 0xc37   :  { %4242 = vmatmul.mubr.f32.gmra.mxu0 %v4059_v34  ;;  %6885 = vmatpush3.msra.mxu1 %v4008_v31  ;;  %v4497_v28 = vld [vmem:[#allocation3 + $0x19f8] sm:$0xff]  ;;  %v4528_v20 = vld [vmem:[#allocation3 + $0x1af0] sm:$0xff]  ;;  %v4511_v31 = vld [vmem:[#allocation3 + $0x1a68] sm:$0xff] }
 0xc38   :  { %7673 = vmatpush3.msra.mxu0 %v4040_v30  ;;  %4161 = vmatprep.mubr.f32.mxu1 %v4056_v10  ;;  %v4496_v29 = vld [vmem:[#allocation3 + $0x19f0] sm:$0xff]  ;;  %v4543_v30 = vld [vmem:[#allocation3 + $0x1b68] sm:$0xff]  ;;  %v4510_v10 = vld [vmem:[#allocation3 + $0x1a60] sm:$0xff] }
 0xc39   :  { %4246 = vmatprep.mubr.f32.mxu0 %v3932_v25  ;;  %6886 = vmatprep.subr.mxu1 %v4023_v9  ;;  %v3997_v25 = vld [vmem:[#allocation3 + $0x1800] sm:$0xff]  ;;  %v4495_v34 = vld [vmem:[#allocation3 + $0x19e8] sm:$0xff] }
 0xc3a   :  { %7674 = vmatprep.subr.mxu0 %v4039_v35  ;;  %6887 = vmatpush3.msra.mxu1 %v4007_v2  ;;  %v4542_v9 = vld [vmem:[#allocation3 + $0x1b60] sm:$0xff] }
 0xc3b   :  { %7675 = vmatpush3.msra.mxu0 %v4039_v35  ;;  %6888 = vmatprep.subr.mxu1 %v4022_v36  ;;  %v4526_v35 = vld [vmem:[#allocation3 + $0x1ae0] sm:$0xff]  ;;  %v4541_v36 = vld [vmem:[#allocation3 + $0x1b58] sm:$0xff] }
 0xc3c   :  { %7676 = vmatprep.subr.mxu0 %v4038_v37  ;;  %4162 = vmatmul.mubr.f32.gmra.mxu1 %v4052_v40  ;;  %v4494_v2 = vld [vmem:[#allocation3 + $0x19e0] sm:$0xff]  ;;  %v4493_v40 = vld [vmem:[#allocation3 + $0x19d8] sm:$0xff] }
 0xc3d   :  { %4247 = vmatmul.mubr.f32.gmra.mxu0 %v4060_v42  ;;  %6889 = vmatpush3.msra.mxu1 %v4006_v39  ;;  %v4525_v39 = vld [vmem:[#allocation3 + $0x1ad8] sm:$0xff]  ;;  %v4508_v42 = vld [vmem:[#allocation3 + $0x1a50] sm:$0xff] }
 0xc3e   :  { %7677 = vmatpush3.msra.mxu0 %v4038_v37  ;;  %6890 = vmatprep.subr.mxu1 %v4021_v41  ;;  %v4509_v37 = vld [vmem:[#allocation3 + $0x1a58] sm:$0xff]  ;;  %v4540_v41 = vld [vmem:[#allocation3 + $0x1b50] sm:$0xff] }
 0xc3f   :  { %4316 = vmatprep.mubr.f32.mxu1 %v4069_v45  ;;  %7678 = vmatprep.subr.mxu0 %v4037_v43  ;;  %v4539_v45 = vld [vmem:[#allocation3 + $0x1b48] sm:$0xff] }
 0xc40   :  { %7696 = vmatprep.mubr.f32.mxu0 %v4073_v47  ;;  %6891 = vmatpush3.msra.mxu1 %v4005_v44  ;;  %v4492_v44 = vld [vmem:[#allocation3 + $0x19d0] sm:$0xff]  ;;  %v4523_v47 = vld [vmem:[#allocation3 + $0x1ac8] sm:$0xff] }
 0xc41   :  { %7679 = vmatpush3.msra.mxu0 %v4037_v43  ;;  %6892 = vmatprep.subr.mxu1 %v4020_v46  ;;  %v4524_v43 = vld [vmem:[#allocation3 + $0x1ad0] sm:$0xff]  ;;  %v4507_v46 = vld [vmem:[#allocation3 + $0x1a48] sm:$0xff] }
 0xc42   :  { %7680 = vmatprep.subr.mxu0 %v4036_v48  ;;  %6893 = vmatpush3.msra.mxu1 %v4004_v49  ;;  %v4538_v49 = vld [vmem:[#allocation3 + $0x1b40] sm:$0xff] }
 0xc43   :  { %7681 = vmatpush3.msra.mxu0 %v4036_v48  ;;  %6894 = vmatprep.subr.mxu1 %v4019_v50  ;;  %v4491_v48 = vld [vmem:[#allocation3 + $0x19c8] sm:$0xff]  ;;  %v4506_v50 = vld [vmem:[#allocation3 + $0x1a40] sm:$0xff] }
 0xc44   :  { %7682 = vmatprep.subr.mxu0 %v4035_v52  ;;  %6895 = vmatpush3.msra.mxu1 %v4003_v53  ;;  %v4490_v53 = vld [vmem:[#allocation3 + $0x19c0] sm:$0xff] }
 0xc45   :  { %7683 = vmatpush3.msra.mxu0 %v4035_v52  ;;  %6896 = vmatprep.subr.mxu1 %v4018_v56  ;;  %v4522_v52 = vld [vmem:[#allocation3 + $0x1ac0] sm:$0xff]  ;;  %v4537_v56 = vld [vmem:[#allocation3 + $0x1b38] sm:$0xff] }
 0xc46   :  { %7684 = vmatprep.subr.mxu0 %v4034_v57  ;;  %6897 = vmatpush3.msra.mxu1 %v4002_v59  ;;  %v4521_v59 = vld [vmem:[#allocation3 + $0x1ab8] sm:$0xff] }
 0xc47   :  { %7685 = vmatpush3.msra.mxu0 %v4034_v57  ;;  %6898 = vmatprep.subr.mxu1 %v4017_v1  ;;  %v4505_v57 = vld [vmem:[#allocation3 + $0x1a38] sm:$0xff] }
 0xc48   :  { %7686 = vmatprep.subr.mxu0 %v4033_v61  ;;  %6899 = vmatpush3.msra.mxu1 %v4001_v16  ;;  %v4489_v1 = vld [vmem:[#allocation3 + $0x19b8] sm:$0xff]  ;;  %v4504_v16 = vld [vmem:[#allocation3 + $0x1a30] sm:$0xff] }
 0xc49   :  { %7687 = vmatpush3.msra.mxu0 %v4033_v61  ;;  %6900 = vmatprep.subr.mxu1 %v4016_v63  ;;  %v4536_v61 = vld [vmem:[#allocation3 + $0x1b30] sm:$0xff] }
 0xc4a   :  { %7688 = vmatprep.subr.mxu0 %v4032_v0  ;;  %6901 = vmatpush3.msra.mxu1 %v4000_v3  ;;  %v4520_v63 = vld [vmem:[#allocation3 + $0x1ab0] sm:$0xff]  ;;  %v4535_v3 = vld [vmem:[#allocation3 + $0x1b28] sm:$0xff] }
 0xc4b   :  { %7689 = vmatpush3.msra.mxu0 %v4032_v0  ;;  %6902 = vmatprep.subr.mxu1 %v4015_v19  ;;  %v4488_v0 = vld [vmem:[#allocation3 + $0x19b0] sm:$0xff]  ;;  %v4503_v19 = vld [vmem:[#allocation3 + $0x1a28] sm:$0xff] }
 0xc4c   :  { %7690 = vmatprep.subr.mxu0 %v4031_v4  ;;  %6903 = vmatpush3.msra.mxu1 %v3999_v5  ;;  %v4487_v5 = vld [vmem:[#allocation3 + $0x19a8] sm:$0xff] }
 0xc4d   :  { %7691 = vmatpush3.msra.mxu0 %v4031_v4  ;;  %6904 = vmatprep.subr.mxu1 %v4014_v6  ;;  %v4519_v4 = vld [vmem:[#allocation3 + $0x1aa8] sm:$0xff]  ;;  %v4534_v6 = vld [vmem:[#allocation3 + $0x1b20] sm:$0xff] }
 0xc4e   :  { %7692 = vmatprep.subr.mxu0 %v4030_v7  ;;  %6905 = vmatpush3.msra.mxu1 %v3998_v8  ;;  %v4518_v8 = vld [vmem:[#allocation3 + $0x1aa0] sm:$0xff] }
 0xc4f   :  { %7693 = vmatpush3.msra.mxu0 %v4030_v7  ;;  %6906 = vmatprep.subr.mxu1 %v4013_v27  ;;  %v4502_v7 = vld [vmem:[#allocation3 + $0x1a20] sm:$0xff] }
 0xc50   :  { %7694 = vmatprep.subr.mxu0 %v4029_v54  ;;  %6907 = vmatpush3.msra.mxu1 %v3997_v25  ;;  %v4486_v27 = vld [vmem:[#allocation3 + $0x19a0] sm:$0xff]  ;;  %v4533_v25 = vld [vmem:[#allocation3 + $0x1b18] sm:$0xff] }
 0xc51   :  { %7695 = vmatpush3.msra.mxu0 %v4029_v54  ;;  %4317 = vmatmul.mubr.f32.vlgmr.msra.gmra.mxu1 %v4065_v11  ;;  %v4501_v54 = vld [vmem:[#allocation3 + $0x1a18] sm:$0xff] }
 0xc52   :  { %7697 = vmatmul.mubr.f32.vlgmr.msra.gmra.mxu0 %v4074_v12  ;;  %4321 = vmatprep.mubr.f32.mxu1 %v4070_v13  ;;  %v4485_v11 = vld [vmem:[#allocation3 + $0x1998] sm:$0xff]  ;;  %v4500_v13 = vld [vmem:[#allocation3 + $0x1a10] sm:$0xff] }
 0xc53   :  { %7699 = vmatprep.mubr.f32.mxu0 %v4075_v32  ;;  %6984 = vmatprep.subr.mxu0 %v4545_v21  ;;  %v4517_v12 = vld [vmem:[#allocation3 + $0x1a98] sm:$0xff]  ;;  %v4532_v32 = vld [vmem:[#allocation3 + $0x1b10] sm:$0xff]  ;;  %v4530_v21 = vld [vmem:[#allocation3 + $0x1b00] sm:$0xff] }
 0xc54   :  { %6940 = vmatprep.subr.mxu1 %v4513_v60  ;;  %6985 = vmatpush3.msra.mxu0 %v4529_v38  ;;  %v4498_v60 = vld [vmem:[#allocation3 + $0x1a00] sm:$0xff] }
 0xc55   :  { %4322 = vmatmul.mubr.f32.gmra.mxu1 %v4066_v14  ;;  %6986 = vmatprep.subr.mxu0 %v4544_v26  ;;  %v4484_v14 = vld [vmem:[#allocation3 + $0x1990] sm:$0xff]  ;;  %v4514_v38 = vld [vmem:[#allocation3 + $0x1a80] sm:$0xff]  ;;  %v4577_v26 = vld [vmem:[#allocation3 + $0x1c78] sm:$0xff] }
 0xc56   :  { %7700 = vmatmul.mubr.f32.gmra.mxu0 %v4076_v15  ;;  %4326 = vmatprep.mubr.f32.mxu1 %v4071_v17  ;;  %v4516_v15 = vld [vmem:[#allocation3 + $0x1a90] sm:$0xff]  ;;  %v4499_v17 = vld [vmem:[#allocation3 + $0x1a08] sm:$0xff] }
 0xc57   :  { %6941 = vmatpush3.msra.mxu1 %v4497_v28  ;;  %6987 = vmatpush3.msra.mxu0 %v4528_v20  ;;  %v4482_v28 = vld [vmem:[#allocation3 + $0x1980] sm:$0xff] }
 0xc58   :  { %6942 = vmatprep.subr.mxu1 %v4512_v58  ;;  %6988 = vmatprep.subr.mxu0 %v4543_v30  ;;  %v8224_v58 = vld [vmem:[#allocation3 + $0x1cf8] sm:$0xff] }
 0xc59   :  { %4327 = vmatmul.mubr.f32.gmra.mxu1 %v4067_v22  ;;  %6989 = vmatpush3.msra.mxu0 %v4527_v33  ;;  %v4531_v22 = vld [vmem:[#allocation3 + $0x1b08] sm:$0xff] }
 0xc5a   :  { %4331 = vmatprep.mubr.f32.mxu1 %v4072_v55  ;;  %6943 = vmatpush3.msra.mxu1 %v4496_v29  ;;  %v4483_v55 = vld [vmem:[#allocation3 + $0x1988] sm:$0xff] }
 0xc5b   :  { %6944 = vmatprep.subr.mxu1 %v4511_v31  ;;  %6990 = vmatprep.subr.mxu0 %v4542_v9 }
 0xc5c   :  { %6945 = vmatpush3.msra.mxu1 %v4495_v34  ;;  %6991 = vmatpush3.msra.mxu0 %v4526_v35 }
 0xc5d   :  { %4332 = vmatmul.mubr.f32.gmra.mxu1 %v4068_v62  ;;  %6946 = vmatprep.subr.mxu1 %v4510_v10  ;;  %v4515_v62 = vld [vmem:[#allocation3 + $0x1a88] sm:$0xff] }
 0xc5e   :  { %6947 = vmatpush3.msra.mxu1 %v4494_v2  ;;  %6992 = vmatprep.subr.mxu0 %v4541_v36 }
 0xc5f   :  { %6948 = vmatprep.subr.mxu1 %v4509_v37  ;;  %6993 = vmatpush3.msra.mxu0 %v4525_v39 }
 0xc60   :  { %6949 = vmatpush3.msra.mxu1 %v4493_v40  ;;  %6994 = vmatprep.subr.mxu0 %v4540_v41 }
 0xc61   :  { %6950 = vmatprep.subr.mxu1 %v4508_v42  ;;  %6995 = vmatpush3.msra.mxu0 %v4524_v43  ;;  %v5829_v43 = vld [vmem:[#allocation5 + $0xa] ss:$0 sm:$0xff] }
 0xc62   :  { %6951 = vmatpush3.msra.mxu1 %v4492_v44  ;;  %6996 = vmatprep.subr.mxu0 %v4539_v45 }
 0xc63   :  { %6952 = vmatprep.subr.mxu1 %v4507_v46  ;;  %6997 = vmatpush3.msra.mxu0 %v4523_v47 }
 0xc64   :  { %6953 = vmatpush3.msra.mxu1 %v4491_v48  ;;  %6998 = vmatprep.subr.mxu0 %v4538_v49 }
 0xc65   :  { %6954 = vmatprep.subr.mxu1 %v4506_v50  ;;  %6999 = vmatpush3.msra.mxu0 %v4522_v52 }
 0xc66   :  { %6955 = vmatpush3.msra.mxu1 %v4490_v53  ;;  %7000 = vmatprep.subr.mxu0 %v4537_v56 }
 0xc67   :  { %6956 = vmatprep.subr.mxu1 %v4505_v57  ;;  %7001 = vmatpush3.msra.mxu0 %v4521_v59 }
 0xc68   :  { %6957 = vmatpush3.msra.mxu1 %v4489_v1  ;;  %7002 = vmatprep.subr.mxu0 %v4536_v61 }
 0xc69   :  { %6958 = vmatprep.subr.mxu1 %v4504_v16  ;;  %7003 = vmatpush3.msra.mxu0 %v4520_v63 }
 0xc6a   :  { %6959 = vmatpush3.msra.mxu1 %v4488_v0  ;;  %7004 = vmatprep.subr.mxu0 %v4535_v3 }
 0xc6b   :  { %6960 = vmatprep.subr.mxu1 %v4503_v19  ;;  %7005 = vmatpush3.msra.mxu0 %v4519_v4 }
 0xc6c   :  { %6961 = vmatpush3.msra.mxu1 %v4487_v5  ;;  %7006 = vmatprep.subr.mxu0 %v4534_v6 }
 0xc6d   :  { %6962 = vmatprep.subr.mxu1 %v4502_v7  ;;  %7007 = vmatpush3.msra.mxu0 %v4518_v8 }
 0xc6e   :  { %6963 = vmatpush3.msra.mxu1 %v4486_v27  ;;  %7008 = vmatprep.subr.mxu0 %v4533_v25 }
 0xc6f   :  { %6964 = vmatprep.subr.mxu1 %v4501_v54  ;;  %7009 = vmatpush3.msra.mxu0 %v4517_v12 }
 0xc70   :  { %6965 = vmatpush3.msra.mxu1 %v4485_v11  ;;  %7010 = vmatprep.subr.mxu0 %v4532_v32 }
 0xc71   :  { %6966 = vmatprep.subr.mxu1 %v4500_v13  ;;  %7011 = vmatpush3.msra.mxu0 %v4516_v15 }
 0xc72   :  { %6967 = vmatpush3.msra.mxu1 %v4484_v14  ;;  %7012 = vmatprep.subr.mxu0 %v4531_v22 }
 0xc73   :  { %6968 = vmatprep.subr.mxu1 %v4499_v17  ;;  %7013 = vmatpush3.msra.mxu0 %v4515_v62 }
 0xc74   :  { %6969 = vmatpush3.msra.mxu1 %v4483_v55  ;;  %7014 = vmatprep.subr.mxu0 %v4530_v21 }
 0xc75   :  { %6970 = vmatprep.subr.mxu1 %v4498_v60  ;;  %7015 = vmatpush3.msra.mxu0 %v4514_v38 }
 0xc76   :  { %6971 = vmatpush3.msra.mxu1 %v4482_v28  ;;  %7702 = vmatprep.subr.mxu0 %v8224_v58 }
 0xc77   :  { %7028 = vmatprep.subr.mxu1 %v4577_v26 }
 0xcea   :  { %v6820_v20 = vpop.f32.mrf.mxu1 }
 0xceb   :  { %v6864_v29 = vpop.f32.mrf.mxu0 }
 0xcec   :  { %v6821_v30 = vpop.f32.mrf.mxu1 }
 0xced   :  { %v6865_v31 = vpop.f32.mrf.mxu0  ;;  %v6822_v41 = vadd.f32 %v6821_v30, %v6820_v20 }
 0xcee   :  { %v6866_v53 = vadd.f32 %v6865_v31, %v6864_v29 }
 0xcef   :  { %v4149_v47 = vadd.f32 %v6822_v41, %v5829_v43 }
 0xcf0   :  { %v6823_v33 = vpop.f32.mrf.mxu1 }
 0xcf1   :  { %v6867_v34 = vpop.f32.mrf.mxu0  ;;  %v4234_v1 = vadd.f32 %v6866_v53, %v4149_v47 }
 0xcf2   :  { %v6824_v9 = vpop.f32.mrf.mxu1 }
 0xcf3   :  { %v6868_v10 = vpop.f32.mrf.mxu0  ;;  %v6825_v44 = vadd.f32 %v6824_v9, %v6823_v33 }
 0xcf4   :  { %v6869_v57 = vadd.f32 %v6868_v10, %v6867_v34 }
 0xcf5   :  { %v4154_v50 = vadd.f32 %v6825_v44, %v5829_v43 }
 0xcf6   :  { %v6826_v35 = vpop.f32.mrf.mxu1 }
 0xcf7   :  { %v6870_v2 = vpop.f32.mrf.mxu0  ;;  %v4239_v63 = vadd.f32 %v6869_v57, %v4154_v50 }
 0xcf8   :  { %v6827_v36 = vpop.f32.mrf.mxu1 }
 0xcf9   :  { %v6871_v37 = vpop.f32.mrf.mxu0  ;;  %v6828_v52 = vadd.f32 %v6827_v36, %v6826_v35 }
 0xcfa   :  { %v6872_v5 = vadd.f32 %v6871_v37, %v6870_v2 }
 0xcfb   :  { %v4159_v0 = vadd.f32 %v6828_v52, %v5829_v43 }
 0xcfc   :  { %v6829_v39 = vpop.f32.mrf.mxu1 }
 0xcfd   :  { %v6873_v40 = vpop.f32.mrf.mxu0  ;;  %v4244_v54 = vadd.f32 %v6872_v5, %v4159_v0  ;;  %v5831_v0 = vld [vmem:[#allocation8 + $0xa] ss:$0 sm:$0xff] }
 0xcfe   :  { %v6830_v42 = vpop.f32.mrf.mxu1 }
 0xcff   :  { %v6874_v45 = vpop.f32.mrf.mxu0  ;;  %v6831_v3 = vadd.f32 %v6830_v42, %v6829_v39 }
 0xd00   :  { %v6875_v32 = vadd.f32 %v6874_v45, %v6873_v40 }
 0xd01   :  { %v4164_v25 = vadd.f32 %v6831_v3, %v5829_v43 }
 0xd03   :  { %v4249_v55 = vadd.f32 %v6875_v32, %v4164_v25 }
 0xd11   :  { %v6908_v46 = vpop.f32.mrf.mxu1 }
 0xd12   :  { %v7698_v48 = vpop.f32.mrf.mxu0 }
 0xd13   :  { %v6909_v49 = vpop.f32.mrf.mxu1 }
 0xd14   :  { %v6910_v59 = vadd.f32 %v6909_v49, %v6908_v46  ;;  %v4403_v61 = vpop.f32.mrf.mxu0 }
 0xd15   :  { %v6911_v56 = vpop.f32.mrf.mxu1 }
 0xd16   :  { %v4319_v6 = vadd.f32 %v6910_v59, %v4234_v1  ;;  %v7701_v8 = vpop.f32.mrf.mxu0  ;;  %v5830_v59 = vld [vmem:[#allocation7 + $0xa] ss:$0 sm:$0xff] }
 0xd17   :  { %v6912_v16 = vpop.f32.mrf.mxu1 }
 0xd18   :  { %v6913_v19 = vadd.f32 %v6912_v16, %v6911_v56  ;;  %v4404_v14 = vadd.f32 %v4403_v61, %v4319_v6  ;;  %v4413_v17 = vpop.f32.mrf.mxu0 }
 0xd19   :  { %v6914_v4 = vpop.f32.mrf.mxu1 }
 0xd1a   :  { %v4324_v7 = vadd.f32 %v6913_v19, %v4239_v63  ;;  %v8231_v38 = vadd.f32 %v4404_v14, %v8194_v51 }
 0xd1b   :  { %v6915_v27 = vpop.f32.mrf.mxu1 }
 0xd1c   :  { %v4409_v11 = vadd.f32 %v7698_v48, %v4324_v7  ;;  %v6916_v12 = vadd.f32 %v6915_v27, %v6914_v4 }
 0xd1d   :  { %v6917_v13 = vpop.f32.mrf.mxu1 }
 0xd1e   :  { %v4329_v15 = vadd.f32 %v6916_v12, %v4244_v54  ;;  %v8228_v62 = vadd.f32 %v4409_v11, %v8197_v18 }
 0xd1f   :  { %v6918_v22 = vpop.f32.mrf.mxu1 }
 0xd20   :  { %v4414_v21 = vadd.f32 %v4413_v17, %v4329_v15  ;;  %v6919_v60 = vadd.f32 %v6918_v22, %v6917_v13  ;;  %v4426_v20 = vadd.f32 %v8228_v62, %v8231_v38  ;;  %v4561_v13 = vld [vmem:[#allocation3 + $0x1bf8] sm:$0xff]  ;;  %v4576_v17 = vld [vmem:[#allocation3 + $0x1c70] sm:$0xff] }
 0xd22   :  { %v8234_v28 = vadd.f32 %v4414_v21, %v8202_v23  ;;  %v4334_v26 = vadd.f32 %v6919_v60, %v4249_v55  ;;  %v4592_v55 = vld [vmem:[#allocation3 + $0x1cf0] sm:$0xff]  ;;  %v4575_v60 = vld [vmem:[#allocation3 + $0x1c68] sm:$0xff] }
 0xd23   :  { %v4560_v21 = vld [vmem:[#allocation3 + $0x1bf0] sm:$0xff] }
 0xd24   :  { %v4419_v29 = vadd.f32 %v7701_v8, %v4334_v26  ;;  %v4427_v30 = vadd.f32 %v4426_v20, %v8234_v28  ;;  %v4591_v26 = vld [vmem:[#allocation3 + $0x1ce8] sm:$0xff] }
 0xd25   :  { %v4559_v20 = vld [vmem:[#allocation3 + $0x1be8] sm:$0xff] }
 0xd26   :  { %v8240_v31 = vadd.f32 %v4419_v29, %v8205_v24 }
 0xd28   :  { %v4428_v18 = vadd.f32 %v4427_v30, %v8240_v31 }
 0xd2a   :  { %v4429_v33 = vrot.slane %v4428_v18, 4 }
 0xd2c   :  { %v4430_v34 = vadd.f32 %v4429_v33, %v4428_v18  ;;  %v4574_v18 = vld [vmem:[#allocation3 + $0x1c60] sm:$0xff] }
 0xd2d   :  { %v4590_v33 = vld [vmem:[#allocation3 + $0x1ce0] sm:$0xff] }
 0xd2e   :  { %v4431_v9 = vrot.slane %v4430_v34, 2 }
 0xd30   :  { %v4432_v51 = vadd.f32 %v4431_v9, %v4430_v34  ;;  %v4558_v34 = vld [vmem:[#allocation3 + $0x1be0] sm:$0xff]  ;;  %v4573_v9 = vld [vmem:[#allocation3 + $0x1c58] sm:$0xff] }
 0xd32   :  { %v4433_v10 = vrot.slane %v4432_v51, 1 }
 0xd34   :  { %v4434_v35 = vadd.f32 %v4433_v10, %v4432_v51  ;;  %v4589_v51 = vld [vmem:[#allocation3 + $0x1cd8] sm:$0xff] }
 0xd35   :  { %v4557_v10 = vld [vmem:[#allocation3 + $0x1bd8] sm:$0xff] }
 0xd36   :  { %v4435_v23 = vmul.f32 0.03125, %v4434_v35 }
 0xd38   :  { %v4436_v2 = vsub.f32 %v8231_v38, %v4435_v23  ;;  %v4437_v36 = vsub.f32 %v8228_v62, %v4435_v23  ;;  %v4438_v37 = vsub.f32 %v8234_v28, %v4435_v23  ;;  %v4439_v39 = vsub.f32 %v8240_v31, %v4435_v23 }
 0xd3a   :  { %v4440_v40 = vmul.f32 %v4436_v2, %v4436_v2  ;;  %v4441_v24 = vmul.f32 %v4437_v36, %v4437_v36  ;;  %v4442_v41 = vmul.f32 %v4438_v37, %v4438_v37  ;;  %v4443_v43 = vmul.f32 %v4439_v39, %v4439_v39 }
 0xd3c   :  { %v4444_v42 = vadd.f32 %v4441_v24, %v4440_v40  ;;  %v4571_v40 = vld [vmem:[#allocation3 + $0x1c48] sm:$0xff] }
 0xd3d   :  { %v4587_v24 = vld [vmem:[#allocation3 + $0x1cc8] sm:$0xff] }
 0xd3e   :  { %v4445_v44 = vadd.f32 %v4444_v42, %v4442_v41  ;;  %v4555_v41 = vld [vmem:[#allocation3 + $0x1bc8] sm:$0xff] }
 0xd40   :  { %v4446_v45 = vadd.f32 %v4445_v44, %v4443_v43  ;;  %v4570_v43 = vld [vmem:[#allocation3 + $0x1c40] sm:$0xff] }
 0xd42   :  { %v4447_v46 = vrot.slane %v4446_v45, 4 }
 0xd44   :  { %v4448_v47 = vadd.f32 %v4447_v46, %v4446_v45  ;;  %v4586_v45 = vld [vmem:[#allocation3 + $0x1cc0] sm:$0xff] }
 0xd45   :  { %v4554_v46 = vld [vmem:[#allocation3 + $0x1bc0] sm:$0xff] }
 0xd46   :  { %v4449_v48 = vrot.slane %v4448_v47, 2 }
 0xd48   :  { %v4450_v49 = vadd.f32 %v4449_v48, %v4448_v47  ;;  %v4569_v48 = vld [vmem:[#allocation3 + $0x1c38] sm:$0xff] }
 0xd4a   :  { %v4451_v50 = vrot.slane %v4450_v49, 1 }
 0xd4c   :  { %v4452_v52 = vadd.f32 %v4451_v50, %v4450_v49  ;;  %v4585_v50 = vld [vmem:[#allocation3 + $0x1cb8] sm:$0xff] }
 0xd4e   :  { %v4453_v53 = vmul.f32 0.03125, %v4452_v52  ;;  %v4553_v52 = vld [vmem:[#allocation3 + $0x1bb8] sm:$0xff] }
 0xd50   :  { %v4454_v56 = vadd.f32 1e-05, %v4453_v53  ;;  %v4568_v53 = vld [vmem:[#allocation3 + $0x1c30] sm:$0xff] }
 0xd52   :  { %7913 = vrsqrt.f32 %v4454_v56  ;;  %v4584_v56 = vld [vmem:[#allocation3 + $0x1cb0] sm:$0xff] }
 0xd5f   :  { %v7914_v57 = vpop.eup %7913 }
 0xd60   :  { %v4456_v1 = vmul.f32 %v7914_v57, %v4436_v2  ;;  %v4457_v61 = vmul.f32 %v7914_v57, %v4437_v36  ;;  %v4458_v16 = vmul.f32 %v7914_v57, %v4438_v37  ;;  %v4459_v63 = vmul.f32 %v7914_v57, %v4439_v39  ;;  %v4572_v2 = vld [vmem:[#allocation3 + $0x1c50] sm:$0xff] }
 0xd61   :  { %v4588_v37 = vld [vmem:[#allocation3 + $0x1cd0] sm:$0xff] }
 0xd62   :  { %v4465_v3 = vmul.f32 %v5830_v59, %v4456_v1  ;;  %v4466_v19 = vmul.f32 %v5830_v59, %v4457_v61  ;;  %v4467_v4 = vmul.f32 %v5830_v59, %v4458_v16  ;;  %v4468_v5 = vmul.f32 %v5830_v59, %v4459_v63  ;;  %v4556_v39 = vld [vmem:[#allocation3 + $0x1bd0] sm:$0xff]  ;;  %v4567_v59 = vld [vmem:[#allocation3 + $0x1c28] sm:$0xff]  ;;  %v4566_v16 = vld [vmem:[#allocation3 + $0x1c20] sm:$0xff] }
 0xd63   :  { %v4552_v57 = vld [vmem:[#allocation3 + $0x1bb0] sm:$0xff]  ;;  %v4583_v1 = vld [vmem:[#allocation3 + $0x1ca8] sm:$0xff]  ;;  %v4582_v63 = vld [vmem:[#allocation3 + $0x1ca0] sm:$0xff] }
 0xd64   :  { %v4474_v6 = vadd.f32 %v5831_v0, %v4465_v3  ;;  %v4475_v7 = vadd.f32 %v5831_v0, %v4466_v19  ;;  %v4476_v8 = vadd.f32 %v5831_v0, %v4467_v4  ;;  %v8247_v27 = vadd.f32 %v5831_v0, %v4468_v5  ;;  %v4551_v61 = vld [vmem:[#allocation3 + $0x1ba8] sm:$0xff]  ;;  %v4550_v0 = vld [vmem:[#allocation3 + $0x1ba0] sm:$0xff]  ;;  %v4565_v3 = vld [vmem:[#allocation3 + $0x1c18] sm:$0xff] }
 0xd65   :  { %v4581_v19 = vld [vmem:[#allocation3 + $0x1c98] sm:$0xff]  ;;  %v4564_v5 = vld [vmem:[#allocation3 + $0x1c10] sm:$0xff] }
 0xd66   :  { %v4478_v54 = vmax.f32 %v4474_v6, 0.0  ;;  %v4479_v25 = vmax.f32 %v4475_v7, 0.0  ;;  %v4480_v11 = vmax.f32 %v4476_v8, 0.0  ;;  %v4481_v12 = vmax.f32 %v8247_v27, 0.0  ;;  %v4549_v4 = vld [vmem:[#allocation3 + $0x1b98] sm:$0xff]  ;;  %v4580_v6 = vld [vmem:[#allocation3 + $0x1c90] sm:$0xff] }
 0xd67   :  { %v4548_v7 = vld [vmem:[#allocation3 + $0x1b90] sm:$0xff]  ;;  %v4563_v8 = vld [vmem:[#allocation3 + $0x1c08] sm:$0xff] }
 0xd68   :  { %4594 = vst [vmem:[#allocation2 + $0x8] sm:$0xff] %v4478_v54  ;;  %4595 = vst [vmem:[#allocation2 + $0x10] sm:$0xff] %v4479_v25  ;;  %4780 = vmatprep.mubr.f32.mxu0 %v4478_v54  ;;  %v4579_v27 = vld [vmem:[#allocation3 + $0x1c88] sm:$0xff] }
 0xd69   :  { %4596 = vst [vmem:[#allocation2 + $0x28] sm:$0xff] %v4480_v11  ;;  %4597 = vst [vmem:[#allocation2 + $0x30] sm:$0xff] %v4481_v12  ;;  %v4547_v54 = vld [vmem:[#allocation3 + $0x1b88] sm:$0xff] }
 0xd6f   :  { %v4602_v32 = vld [vmem:[#allocation2 + $0x6] sm:$0xff]  ;;  %v4603_v22 = vld [vmem:[#allocation2 + $0xe] sm:$0xff] }
 0xd70   :  { %v4598_v14 = vld [vmem:[#allocation2 + $0x5] sm:$0xff]  ;;  %4695 = vmatprep.mubr.f32.mxu1 %v4602_v32  ;;  %v4599_v29 = vld [vmem:[#allocation2 + $0xd] sm:$0xff] }
 0xd71   :  { %v4606_v15 = vld [vmem:[#allocation2 + $0x7] sm:$0xff]  ;;  %4696 = vmatmul.mubr.f32.vlgmr.msra.gmra.mxu1 %v4598_v14  ;;  %v4607_v30 = vld [vmem:[#allocation2 + $0xf] sm:$0xff] }
 0xd72   :  { %4781 = vmatmul.mubr.f32.vlgmr.msra.gmra.mxu0 %v4606_v15  ;;  %7029 = vmatpush3.msra.mxu1 %v4561_v13  ;;  %v4600_v35 = vld [vmem:[#allocation2 + $0x25] sm:$0xff]  ;;  %v4605_v36 = vld [vmem:[#allocation2 + $0x2e] sm:$0xff] }
 0xd73   :  { %7703 = vmatpush3.msra.mxu0 %v8224_v58  ;;  %4700 = vmatprep.mubr.f32.mxu1 %v4603_v22  ;;  %v4604_v58 = vld [vmem:[#allocation2 + $0x26] sm:$0xff]  ;;  %v4609_v44 = vld [vmem:[#allocation2 + $0x2f] sm:$0xff] }
 0xd74   :  { %4785 = vmatprep.mubr.f32.mxu0 %v4479_v25  ;;  %7030 = vmatprep.subr.mxu1 %v4576_v17  ;;  %v4608_v23 = vld [vmem:[#allocation2 + $0x27] sm:$0xff]  ;;  %v4623_v32 = vld [vmem:[#allocation2 + $0x13] sm:$0xff] }
 0xd75   :  { %7704 = vmatprep.subr.mxu0 %v4592_v55  ;;  %7031 = vmatpush3.msra.mxu1 %v4560_v21  ;;  %v4601_v42 = vld [vmem:[#allocation2 + $0x2d] sm:$0xff]  ;;  %v4562_v25 = vld [vmem:[#allocation3 + $0x1c00] sm:$0xff] }
 0xd76   :  { %7705 = vmatpush3.msra.mxu0 %v4592_v55  ;;  %7032 = vmatprep.subr.mxu1 %v4575_v60  ;;  %v4618_v47 = vld [vmem:[#allocation2 + $0xa] sm:$0xff]  ;;  %v4619_v14 = vld [vmem:[#allocation2 + $0x12] sm:$0xff] }
 0xd77   :  { %7706 = vmatprep.subr.mxu0 %v4591_v26  ;;  %4701 = vmatmul.mubr.f32.gmra.mxu1 %v4599_v29  ;;  %v4622_v49 = vld [vmem:[#allocation2 + $0xb] sm:$0xff]  ;;  %v4625_v22 = vld [vmem:[#allocation2 + $0x33] sm:$0xff] }
 0xd78   :  { %4786 = vmatmul.mubr.f32.gmra.mxu0 %v4607_v30  ;;  %7033 = vmatpush3.msra.mxu1 %v4559_v20  ;;  %v4614_v13 = vld [vmem:[#allocation2 + $0x9] sm:$0xff]  ;;  %v4615_v17 = vld [vmem:[#allocation2 + $0x11] sm:$0xff] }
 0xd79   :  { %7707 = vmatpush3.msra.mxu0 %v4591_v26  ;;  %4705 = vmatprep.mubr.f32.mxu1 %v4604_v58  ;;  %v4624_v15 = vld [vmem:[#allocation2 + $0x2b] sm:$0xff]  ;;  %v5090_v20 = vld [vmem:[#allocation3 + $0x1ef8] sm:$0xff] }
 0xd7a   :  { %4790 = vmatprep.mubr.f32.mxu0 %v4480_v11  ;;  %7034 = vmatprep.subr.mxu1 %v4574_v18  ;;  %v4578_v11 = vld [vmem:[#allocation3 + $0x1c80] sm:$0xff]  ;;  %v4620_v55 = vld [vmem:[#allocation2 + $0x2a] sm:$0xff]  ;;  %v4621_v60 = vld [vmem:[#allocation2 + $0x32] sm:$0xff] }
 0xd7b   :  { %7708 = vmatprep.subr.mxu0 %v4590_v33  ;;  %7035 = vmatpush3.msra.mxu1 %v4558_v34  ;;  %v4616_v21 = vld [vmem:[#allocation2 + $0x29] sm:$0xff]  ;;  %v4617_v26 = vld [vmem:[#allocation2 + $0x31] sm:$0xff] }
 0xd7c   :  { %7709 = vmatpush3.msra.mxu0 %v4590_v33  ;;  %7036 = vmatprep.subr.mxu1 %v4573_v9  ;;  %v5058_v29 = vld [vmem:[#allocation3 + $0x1df8] sm:$0xff]  ;;  %v5089_v58 = vld [vmem:[#allocation3 + $0x1ef0] sm:$0xff] }
 0xd7d   :  { %7710 = vmatprep.subr.mxu0 %v4589_v51  ;;  %4706 = vmatmul.mubr.f32.gmra.mxu1 %v4600_v35  ;;  %v5074_v30 = vld [vmem:[#allocation3 + $0x1e78] sm:$0xff]  ;;  %v5057_v33 = vld [vmem:[#allocation3 + $0x1df0] sm:$0xff]  ;;  %v5072_v35 = vld [vmem:[#allocation3 + $0x1e68] sm:$0xff] }
 0xd7e   :  { %4791 = vmatmul.mubr.f32.gmra.mxu0 %v4608_v23  ;;  %7037 = vmatpush3.msra.mxu1 %v4557_v10  ;;  %v5042_v18 = vld [vmem:[#allocation3 + $0x1d78] sm:$0xff]  ;;  %v5073_v34 = vld [vmem:[#allocation3 + $0x1e70] sm:$0xff]  ;;  %v5056_v10 = vld [vmem:[#allocation3 + $0x1de8] sm:$0xff] }
 0xd7f   :  { %7711 = vmatpush3.msra.mxu0 %v4589_v51  ;;  %4710 = vmatprep.mubr.f32.mxu1 %v4605_v36  ;;  %v5041_v9 = vld [vmem:[#allocation3 + $0x1d70] sm:$0xff]  ;;  %v5088_v51 = vld [vmem:[#allocation3 + $0x1ee8] sm:$0xff]  ;;  %v5055_v36 = vld [vmem:[#allocation3 + $0x1de0] sm:$0xff] }
 0xd80   :  { %4795 = vmatprep.mubr.f32.mxu0 %v4481_v12  ;;  %7038 = vmatprep.subr.mxu1 %v4572_v2  ;;  %v4546_v12 = vld [vmem:[#allocation3 + $0x1b80] sm:$0xff]  ;;  %v5040_v23 = vld [vmem:[#allocation3 + $0x1d68] sm:$0xff] }
 0xd81   :  { %7712 = vmatprep.subr.mxu0 %v4588_v37  ;;  %7039 = vmatpush3.msra.mxu1 %v4556_v39  ;;  %v5087_v2 = vld [vmem:[#allocation3 + $0x1ee0] sm:$0xff] }
 0xd82   :  { %7713 = vmatpush3.msra.mxu0 %v4588_v37  ;;  %7040 = vmatprep.subr.mxu1 %v4571_v40  ;;  %v5071_v37 = vld [vmem:[#allocation3 + $0x1e60] sm:$0xff]  ;;  %v5086_v40 = vld [vmem:[#allocation3 + $0x1ed8] sm:$0xff] }
 0xd83   :  { %7714 = vmatprep.subr.mxu0 %v4587_v24  ;;  %4711 = vmatmul.mubr.f32.gmra.mxu1 %v4601_v42  ;;  %v5039_v39 = vld [vmem:[#allocation3 + $0x1d60] sm:$0xff]  ;;  %v5038_v42 = vld [vmem:[#allocation3 + $0x1d58] sm:$0xff] }
 0xd84   :  { %4796 = vmatmul.mubr.f32.gmra.mxu0 %v4609_v44  ;;  %7041 = vmatpush3.msra.mxu1 %v4555_v41  ;;  %v5070_v41 = vld [vmem:[#allocation3 + $0x1e58] sm:$0xff]  ;;  %v5053_v44 = vld [vmem:[#allocation3 + $0x1dd0] sm:$0xff] }
 0xd85   :  { %7715 = vmatpush3.msra.mxu0 %v4587_v24  ;;  %7042 = vmatprep.subr.mxu1 %v4570_v43  ;;  %v5054_v24 = vld [vmem:[#allocation3 + $0x1dd8] sm:$0xff]  ;;  %v5085_v43 = vld [vmem:[#allocation3 + $0x1ed0] sm:$0xff] }
 0xd86   :  { %4865 = vmatprep.mubr.f32.mxu1 %v4618_v47  ;;  %7716 = vmatprep.subr.mxu0 %v4586_v45  ;;  %v5084_v47 = vld [vmem:[#allocation3 + $0x1ec8] sm:$0xff] }
 0xd87   :  { %7734 = vmatprep.mubr.f32.mxu0 %v4622_v49  ;;  %7043 = vmatpush3.msra.mxu1 %v4554_v46  ;;  %v5037_v46 = vld [vmem:[#allocation3 + $0x1d50] sm:$0xff]  ;;  %v5068_v49 = vld [vmem:[#allocation3 + $0x1e48] sm:$0xff] }
 0xd88   :  { %7717 = vmatpush3.msra.mxu0 %v4586_v45  ;;  %7044 = vmatprep.subr.mxu1 %v4569_v48  ;;  %v5069_v45 = vld [vmem:[#allocation3 + $0x1e50] sm:$0xff]  ;;  %v5052_v48 = vld [vmem:[#allocation3 + $0x1dc8] sm:$0xff] }
 0xd89   :  { %7718 = vmatprep.subr.mxu0 %v4585_v50  ;;  %7045 = vmatpush3.msra.mxu1 %v4553_v52  ;;  %v5083_v52 = vld [vmem:[#allocation3 + $0x1ec0] sm:$0xff] }
 0xd8a   :  { %7719 = vmatpush3.msra.mxu0 %v4585_v50  ;;  %7046 = vmatprep.subr.mxu1 %v4568_v53  ;;  %v5036_v50 = vld [vmem:[#allocation3 + $0x1d48] sm:$0xff]  ;;  %v5051_v53 = vld [vmem:[#allocation3 + $0x1dc0] sm:$0xff] }
 0xd8b   :  { %7720 = vmatprep.subr.mxu0 %v4584_v56  ;;  %7047 = vmatpush3.msra.mxu1 %v4552_v57  ;;  %v5035_v57 = vld [vmem:[#allocation3 + $0x1d40] sm:$0xff] }
 0xd8c   :  { %7721 = vmatpush3.msra.mxu0 %v4584_v56  ;;  %7048 = vmatprep.subr.mxu1 %v4567_v59  ;;  %v5067_v56 = vld [vmem:[#allocation3 + $0x1e40] sm:$0xff]  ;;  %v5082_v59 = vld [vmem:[#allocation3 + $0x1eb8] sm:$0xff] }
 0xd8d   :  { %7722 = vmatprep.subr.mxu0 %v4583_v1  ;;  %7049 = vmatpush3.msra.mxu1 %v4551_v61  ;;  %v5066_v61 = vld [vmem:[#allocation3 + $0x1e38] sm:$0xff] }
 0xd8e   :  { %7723 = vmatpush3.msra.mxu0 %v4583_v1  ;;  %7050 = vmatprep.subr.mxu1 %v4566_v16  ;;  %v5050_v1 = vld [vmem:[#allocation3 + $0x1db8] sm:$0xff] }
 0xd8f   :  { %7724 = vmatprep.subr.mxu0 %v4582_v63  ;;  %7051 = vmatpush3.msra.mxu1 %v4550_v0  ;;  %v5034_v16 = vld [vmem:[#allocation3 + $0x1d38] sm:$0xff]  ;;  %v5049_v0 = vld [vmem:[#allocation3 + $0x1db0] sm:$0xff] }
 0xd90   :  { %7725 = vmatpush3.msra.mxu0 %v4582_v63  ;;  %7052 = vmatprep.subr.mxu1 %v4565_v3  ;;  %v5081_v63 = vld [vmem:[#allocation3 + $0x1eb0] sm:$0xff] }
 0xd91   :  { %7726 = vmatprep.subr.mxu0 %v4581_v19  ;;  %7053 = vmatpush3.msra.mxu1 %v4549_v4  ;;  %v5065_v3 = vld [vmem:[#allocation3 + $0x1e30] sm:$0xff]  ;;  %v5080_v4 = vld [vmem:[#allocation3 + $0x1ea8] sm:$0xff] }
 0xd92   :  { %7727 = vmatpush3.msra.mxu0 %v4581_v19  ;;  %7054 = vmatprep.subr.mxu1 %v4564_v5  ;;  %v5033_v19 = vld [vmem:[#allocation3 + $0x1d30] sm:$0xff]  ;;  %v5048_v5 = vld [vmem:[#allocation3 + $0x1da8] sm:$0xff] }
 0xd93   :  { %7728 = vmatprep.subr.mxu0 %v4580_v6  ;;  %7055 = vmatpush3.msra.mxu1 %v4548_v7  ;;  %v5032_v7 = vld [vmem:[#allocation3 + $0x1d28] sm:$0xff] }
 0xd94   :  { %7729 = vmatpush3.msra.mxu0 %v4580_v6  ;;  %7056 = vmatprep.subr.mxu1 %v4563_v8  ;;  %v5064_v6 = vld [vmem:[#allocation3 + $0x1e28] sm:$0xff]  ;;  %v5079_v8 = vld [vmem:[#allocation3 + $0x1ea0] sm:$0xff] }
 0xd95   :  { %7730 = vmatprep.subr.mxu0 %v4579_v27  ;;  %7057 = vmatpush3.msra.mxu1 %v4547_v54  ;;  %v5063_v54 = vld [vmem:[#allocation3 + $0x1e20] sm:$0xff] }
 0xd96   :  { %7731 = vmatpush3.msra.mxu0 %v4579_v27  ;;  %7058 = vmatprep.subr.mxu1 %v4562_v25  ;;  %v5047_v27 = vld [vmem:[#allocation3 + $0x1da0] sm:$0xff] }
 0xd97   :  { %7732 = vmatprep.subr.mxu0 %v4578_v11  ;;  %7059 = vmatpush3.msra.mxu1 %v4546_v12  ;;  %v5031_v25 = vld [vmem:[#allocation3 + $0x1d20] sm:$0xff]  ;;  %v5078_v12 = vld [vmem:[#allocation3 + $0x1e98] sm:$0xff] }
 0xd98   :  { %7733 = vmatpush3.msra.mxu0 %v4578_v11  ;;  %4866 = vmatmul.mubr.f32.vlgmr.msra.gmra.mxu1 %v4614_v13  ;;  %v5046_v11 = vld [vmem:[#allocation3 + $0x1d98] sm:$0xff] }
 0xd99   :  { %7735 = vmatmul.mubr.f32.vlgmr.msra.gmra.mxu0 %v4623_v32  ;;  %4870 = vmatprep.mubr.f32.mxu1 %v4619_v14  ;;  %v5030_v13 = vld [vmem:[#allocation3 + $0x1d18] sm:$0xff]  ;;  %v5045_v14 = vld [vmem:[#allocation3 + $0x1d90] sm:$0xff] }
 0xd9a   :  { %7737 = vmatprep.mubr.f32.mxu0 %v4624_v15  ;;  %7136 = vmatprep.subr.mxu0 %v5090_v20  ;;  %v5062_v32 = vld [vmem:[#allocation3 + $0x1e18] sm:$0xff]  ;;  %v5077_v15 = vld [vmem:[#allocation3 + $0x1e90] sm:$0xff]  ;;  %v5075_v20 = vld [vmem:[#allocation3 + $0x1e80] sm:$0xff] }
 0xd9b   :  { %7092 = vmatprep.subr.mxu1 %v5058_v29  ;;  %7137 = vmatpush3.msra.mxu0 %v5074_v30  ;;  %v5043_v29 = vld [vmem:[#allocation3 + $0x1d80] sm:$0xff] }
 0xd9c   :  { %4871 = vmatmul.mubr.f32.gmra.mxu1 %v4615_v17  ;;  %7138 = vmatprep.subr.mxu0 %v5089_v58  ;;  %v5029_v17 = vld [vmem:[#allocation3 + $0x1d10] sm:$0xff]  ;;  %v5059_v30 = vld [vmem:[#allocation3 + $0x1e00] sm:$0xff]  ;;  %v5122_v58 = vld [vmem:[#allocation3 + $0x1ff8] sm:$0xff] }
 0xd9d   :  { %7738 = vmatmul.mubr.f32.gmra.mxu0 %v4625_v22  ;;  %4875 = vmatprep.mubr.f32.mxu1 %v4620_v55  ;;  %v5061_v22 = vld [vmem:[#allocation3 + $0x1e10] sm:$0xff]  ;;  %v5044_v55 = vld [vmem:[#allocation3 + $0x1d88] sm:$0xff] }
 0xd9e   :  { %7093 = vmatpush3.msra.mxu1 %v5042_v18  ;;  %7139 = vmatpush3.msra.mxu0 %v5073_v34  ;;  %v5027_v18 = vld [vmem:[#allocation3 + $0x1d00] sm:$0xff] }
 0xd9f   :  { %7094 = vmatprep.subr.mxu1 %v5057_v33  ;;  %7140 = vmatprep.subr.mxu0 %v5088_v51  ;;  %v8251_v33 = vld [vmem:[#allocation3 + $0x2078] sm:$0xff] }
 0xda0   :  { %4876 = vmatmul.mubr.f32.gmra.mxu1 %v4616_v21  ;;  %7141 = vmatpush3.msra.mxu0 %v5072_v35  ;;  %v5076_v21 = vld [vmem:[#allocation3 + $0x1e88] sm:$0xff] }
 0xda1   :  { %4880 = vmatprep.mubr.f32.mxu1 %v4621_v60  ;;  %7095 = vmatpush3.msra.mxu1 %v5041_v9  ;;  %v5028_v60 = vld [vmem:[#allocation3 + $0x1d08] sm:$0xff] }
 0xda2   :  { %7096 = vmatprep.subr.mxu1 %v5056_v10  ;;  %7142 = vmatprep.subr.mxu0 %v5087_v2 }
 0xda3   :  { %7097 = vmatpush3.msra.mxu1 %v5040_v23  ;;  %7143 = vmatpush3.msra.mxu0 %v5071_v37 }
 0xda4   :  { %4881 = vmatmul.mubr.f32.gmra.mxu1 %v4617_v26  ;;  %7098 = vmatprep.subr.mxu1 %v5055_v36  ;;  %v5060_v26 = vld [vmem:[#allocation3 + $0x1e08] sm:$0xff] }
 0xda5   :  { %7099 = vmatpush3.msra.mxu1 %v5039_v39  ;;  %7144 = vmatprep.subr.mxu0 %v5086_v40 }
 0xda6   :  { %7100 = vmatprep.subr.mxu1 %v5054_v24  ;;  %7145 = vmatpush3.msra.mxu0 %v5070_v41 }
 0xda7   :  { %7101 = vmatpush3.msra.mxu1 %v5038_v42  ;;  %7146 = vmatprep.subr.mxu0 %v5085_v43 }
 0xda8   :  { %7102 = vmatprep.subr.mxu1 %v5053_v44  ;;  %7147 = vmatpush3.msra.mxu0 %v5069_v45 }
 0xda9   :  { %7103 = vmatpush3.msra.mxu1 %v5037_v46  ;;  %7148 = vmatprep.subr.mxu0 %v5084_v47  ;;  %v5832_v47 = vld [vmem:[#allocation5 + $0xb] ss:$0 sm:$0xff] }
 0xdaa   :  { %7104 = vmatprep.subr.mxu1 %v5052_v48  ;;  %7149 = vmatpush3.msra.mxu0 %v5068_v49 }
 0xdab   :  { %7105 = vmatpush3.msra.mxu1 %v5036_v50  ;;  %7150 = vmatprep.subr.mxu0 %v5083_v52 }
 0xdac   :  { %7106 = vmatprep.subr.mxu1 %v5051_v53  ;;  %7151 = vmatpush3.msra.mxu0 %v5067_v56 }
 0xdad   :  { %7107 = vmatpush3.msra.mxu1 %v5035_v57  ;;  %7152 = vmatprep.subr.mxu0 %v5082_v59 }
 0xdae   :  { %7108 = vmatprep.subr.mxu1 %v5050_v1  ;;  %7153 = vmatpush3.msra.mxu0 %v5066_v61 }
 0xdaf   :  { %7109 = vmatpush3.msra.mxu1 %v5034_v16  ;;  %7154 = vmatprep.subr.mxu0 %v5081_v63 }
 0xdb0   :  { %7110 = vmatprep.subr.mxu1 %v5049_v0  ;;  %7155 = vmatpush3.msra.mxu0 %v5065_v3 }
 0xdb1   :  { %7111 = vmatpush3.msra.mxu1 %v5033_v19  ;;  %7156 = vmatprep.subr.mxu0 %v5080_v4 }
 0xdb2   :  { %7112 = vmatprep.subr.mxu1 %v5048_v5  ;;  %7157 = vmatpush3.msra.mxu0 %v5064_v6 }
 0xdb3   :  { %7113 = vmatpush3.msra.mxu1 %v5032_v7  ;;  %7158 = vmatprep.subr.mxu0 %v5079_v8 }
 0xdb4   :  { %7114 = vmatprep.subr.mxu1 %v5047_v27  ;;  %7159 = vmatpush3.msra.mxu0 %v5063_v54 }
 0xdb5   :  { %7115 = vmatpush3.msra.mxu1 %v5031_v25  ;;  %7160 = vmatprep.subr.mxu0 %v5078_v12 }
 0xdb6   :  { %7116 = vmatprep.subr.mxu1 %v5046_v11  ;;  %7161 = vmatpush3.msra.mxu0 %v5062_v32 }
 0xdb7   :  { %7117 = vmatpush3.msra.mxu1 %v5030_v13  ;;  %7162 = vmatprep.subr.mxu0 %v5077_v15 }
 0xdb8   :  { %7118 = vmatprep.subr.mxu1 %v5045_v14  ;;  %7163 = vmatpush3.msra.mxu0 %v5061_v22 }
 0xdb9   :  { %7119 = vmatpush3.msra.mxu1 %v5029_v17  ;;  %7164 = vmatprep.subr.mxu0 %v5076_v21 }
 0xdba   :  { %7120 = vmatprep.subr.mxu1 %v5044_v55  ;;  %7165 = vmatpush3.msra.mxu0 %v5060_v26 }
 0xdbb   :  { %7121 = vmatpush3.msra.mxu1 %v5028_v60  ;;  %7166 = vmatprep.subr.mxu0 %v5075_v20 }
 0xdbc   :  { %7122 = vmatprep.subr.mxu1 %v5043_v29  ;;  %7167 = vmatpush3.msra.mxu0 %v5059_v30 }
 0xdbd   :  { %7123 = vmatpush3.msra.mxu1 %v5027_v18  ;;  %7740 = vmatprep.subr.mxu0 %v8251_v33 }
 0xdbe   :  { %7180 = vmatprep.subr.mxu1 %v5122_v58 }
 0xe31   :  { %v6972_v34 = vpop.f32.mrf.mxu1 }
 0xe32   :  { %v7016_v9 = vpop.f32.mrf.mxu0 }
 0xe33   :  { %v6973_v51 = vpop.f32.mrf.mxu1 }
 0xe34   :  { %v7017_v10 = vpop.f32.mrf.mxu0  ;;  %v6974_v48 = vadd.f32 %v6973_v51, %v6972_v34 }
 0xe35   :  { %v7018_v1 = vadd.f32 %v7017_v10, %v7016_v9 }
 0xe36   :  { %v4698_v59 = vadd.f32 %v6974_v48, %v5832_v47 }
 0xe37   :  { %v6975_v35 = vpop.f32.mrf.mxu1 }
 0xe38   :  { %v7019_v23 = vpop.f32.mrf.mxu0  ;;  %v4783_v6 = vadd.f32 %v7018_v1, %v4698_v59 }
 0xe39   :  { %v6976_v2 = vpop.f32.mrf.mxu1 }
 0xe3a   :  { %v7020_v36 = vpop.f32.mrf.mxu0  ;;  %v6977_v43 = vadd.f32 %v6976_v2, %v6975_v35 }
 0xe3b   :  { %v7021_v56 = vadd.f32 %v7020_v36, %v7019_v23 }
 0xe3c   :  { %v4703_v49 = vadd.f32 %v6977_v43, %v5832_v47 }
 0xe3d   :  { %v6978_v37 = vpop.f32.mrf.mxu1 }
 0xe3e   :  { %v7022_v39 = vpop.f32.mrf.mxu0  ;;  %v4788_v61 = vadd.f32 %v7021_v56, %v4703_v49 }
 0xe3f   :  { %v6979_v40 = vpop.f32.mrf.mxu1 }
 0xe40   :  { %v7023_v24 = vpop.f32.mrf.mxu0  ;;  %v6980_v53 = vadd.f32 %v6979_v40, %v6978_v37 }
 0xe41   :  { %v7024_v7 = vadd.f32 %v7023_v24, %v7022_v39 }
 0xe42   :  { %v4708_v0 = vadd.f32 %v6980_v53, %v5832_v47 }
 0xe43   :  { %v6981_v41 = vpop.f32.mrf.mxu1 }
 0xe44   :  { %v7025_v42 = vpop.f32.mrf.mxu0  ;;  %v4793_v25 = vadd.f32 %v7024_v7, %v4708_v0 }
 0xe45   :  { %v6982_v44 = vpop.f32.mrf.mxu1 }
 0xe46   :  { %v7026_v45 = vpop.f32.mrf.mxu0  ;;  %v6983_v3 = vadd.f32 %v6982_v44, %v6981_v41 }
 0xe47   :  { %v7027_v14 = vadd.f32 %v7026_v45, %v7025_v42 }
 0xe48   :  { %v4713_v11 = vadd.f32 %v6983_v3, %v5832_v47 }
 0xe4a   :  { %v4798_v21 = vadd.f32 %v7027_v14, %v4713_v11  ;;  %v5106_v14 = vld [vmem:[#allocation3 + $0x1f78] sm:$0xff] }
 0xe58   :  { %v7060_v46 = vpop.f32.mrf.mxu1 }
 0xe59   :  { %v7736_v50 = vpop.f32.mrf.mxu0 }
 0xe5a   :  { %v7061_v52 = vpop.f32.mrf.mxu1 }
 0xe5b   :  { %v4952_v16 = vpop.f32.mrf.mxu0  ;;  %v7062_v19 = vadd.f32 %v7061_v52, %v7060_v46 }
 0xe5c   :  { %v7063_v57 = vpop.f32.mrf.mxu1 }
 0xe5d   :  { %v7739_v27 = vpop.f32.mrf.mxu0  ;;  %v4868_v12 = vadd.f32 %v7062_v19, %v4783_v6  ;;  %v5834_v19 = vld [vmem:[#allocation8 + $0xb] ss:$0 sm:$0xff] }
 0xe5e   :  { %v7064_v63 = vpop.f32.mrf.mxu1 }
 0xe5f   :  { %v7065_v4 = vadd.f32 %v7064_v63, %v7063_v57  ;;  %v4962_v22 = vpop.f32.mrf.mxu0  ;;  %v4953_v60 = vadd.f32 %v4952_v16, %v4868_v12 }
 0xe60   :  { %v7066_v5 = vpop.f32.mrf.mxu1 }
 0xe61   :  { %v4873_v8 = vadd.f32 %v7065_v4, %v4788_v61  ;;  %v5833_v61 = vld [vmem:[#allocation7 + $0xb] ss:$0 sm:$0xff] }
 0xe62   :  { %v7067_v54 = vpop.f32.mrf.mxu1 }
 0xe63   :  { %v7068_v13 = vadd.f32 %v7067_v54, %v7066_v5  ;;  %v4958_v15 = vadd.f32 %v7736_v50, %v4873_v8 }
 0xe64   :  { %v7069_v32 = vpop.f32.mrf.mxu1 }
 0xe65   :  { %v4878_v17 = vadd.f32 %v7068_v13, %v4793_v25  ;;  %v4971_v29 = vadd.f32 %v4958_v15, %v4953_v60 }
 0xe66   :  { %v7070_v55 = vpop.f32.mrf.mxu1 }
 0xe67   :  { %v4963_v26 = vadd.f32 %v4962_v22, %v4878_v17  ;;  %v7071_v20 = vadd.f32 %v7070_v55, %v7069_v32  ;;  %v5121_v55 = vld [vmem:[#allocation3 + $0x1ff0] sm:$0xff] }
 0xe69   :  { %v4883_v30 = vadd.f32 %v7071_v20, %v4798_v21  ;;  %v4972_v18 = vadd.f32 %v4971_v29, %v4963_v26  ;;  %v5120_v20 = vld [vmem:[#allocation3 + $0x1fe8] sm:$0xff] }
 0xe6a   :  { %v5136_v29 = vld [vmem:[#allocation3 + $0x2068] sm:$0xff] }
 0xe6b   :  { %v4968_v58 = vadd.f32 %v7739_v27, %v4883_v30  ;;  %v5104_v30 = vld [vmem:[#allocation3 + $0x1f68] sm:$0xff] }
 0xe6d   :  { %v4973_v34 = vadd.f32 %v4972_v18, %v4968_v58 }
 0xe6f   :  { %v4974_v9 = vrot.slane %v4973_v34, 4 }
 0xe71   :  { %v4975_v51 = vadd.f32 %v4974_v9, %v4973_v34  ;;  %v5119_v34 = vld [vmem:[#allocation3 + $0x1fe0] sm:$0xff] }
 0xe72   :  { %v5135_v9 = vld [vmem:[#allocation3 + $0x2060] sm:$0xff] }
 0xe73   :  { %v4976_v10 = vrot.slane %v4975_v51, 2 }
 0xe75   :  { %v4977_v35 = vadd.f32 %v4976_v10, %v4975_v51  ;;  %v5103_v51 = vld [vmem:[#allocation3 + $0x1f60] sm:$0xff]  ;;  %v5118_v10 = vld [vmem:[#allocation3 + $0x1fd8] sm:$0xff] }
 0xe77   :  { %v4978_v23 = vrot.slane %v4977_v35, 1 }
 0xe79   :  { %v4979_v2 = vadd.f32 %v4978_v23, %v4977_v35  ;;  %v5134_v35 = vld [vmem:[#allocation3 + $0x2058] sm:$0xff] }
 0xe7a   :  { %v5102_v23 = vld [vmem:[#allocation3 + $0x1f58] sm:$0xff] }
 0xe7b   :  { %v4980_v36 = vmul.f32 0.03125, %v4979_v2 }
 0xe7d   :  { %v4981_v37 = vsub.f32 %v4953_v60, %v4980_v36  ;;  %v4982_v39 = vsub.f32 %v4958_v15, %v4980_v36  ;;  %v4983_v40 = vsub.f32 %v4963_v26, %v4980_v36  ;;  %v4984_v24 = vsub.f32 %v4968_v58, %v4980_v36  ;;  %v5137_v60 = vld [vmem:[#allocation3 + $0x2070] sm:$0xff] }
 0xe7e   :  { %v5105_v26 = vld [vmem:[#allocation3 + $0x1f70] sm:$0xff] }
 0xe7f   :  { %v4985_v41 = vmul.f32 %v4981_v37, %v4981_v37  ;;  %v4986_v42 = vmul.f32 %v4982_v39, %v4982_v39  ;;  %v4987_v43 = vmul.f32 %v4983_v40, %v4983_v40  ;;  %v4988_v45 = vmul.f32 %v4984_v24, %v4984_v24 }
 0xe81   :  { %v4989_v44 = vadd.f32 %v4986_v42, %v4985_v41  ;;  %v5116_v41 = vld [vmem:[#allocation3 + $0x1fc8] sm:$0xff] }
 0xe82   :  { %v5132_v42 = vld [vmem:[#allocation3 + $0x2048] sm:$0xff] }
 0xe83   :  { %v4990_v46 = vadd.f32 %v4989_v44, %v4987_v43  ;;  %v5100_v43 = vld [vmem:[#allocation3 + $0x1f48] sm:$0xff] }
 0xe85   :  { %v4991_v47 = vadd.f32 %v4990_v46, %v4988_v45  ;;  %v5115_v45 = vld [vmem:[#allocation3 + $0x1fc0] sm:$0xff] }
 0xe87   :  { %v4992_v48 = vrot.slane %v4991_v47, 4 }
 0xe89   :  { %v4993_v49 = vadd.f32 %v4992_v48, %v4991_v47  ;;  %v5131_v47 = vld [vmem:[#allocation3 + $0x2040] sm:$0xff] }
 0xe8a   :  { %v5099_v48 = vld [vmem:[#allocation3 + $0x1f40] sm:$0xff] }
 0xe8b   :  { %v4994_v50 = vrot.slane %v4993_v49, 2 }
 0xe8d   :  { %v4995_v52 = vadd.f32 %v4994_v50, %v4993_v49  ;;  %v5114_v50 = vld [vmem:[#allocation3 + $0x1fb8] sm:$0xff] }
 0xe8f   :  { %v4996_v53 = vrot.slane %v4995_v52, 1 }
 0xe91   :  { %v4997_v56 = vadd.f32 %v4996_v53, %v4995_v52  ;;  %v5130_v53 = vld [vmem:[#allocation3 + $0x2038] sm:$0xff] }
 0xe93   :  { %v4998_v57 = vmul.f32 0.03125, %v4997_v56  ;;  %v5098_v56 = vld [vmem:[#allocation3 + $0x1f38] sm:$0xff] }
 0xe95   :  { %v4999_v59 = vadd.f32 1e-05, %v4998_v57  ;;  %v5113_v57 = vld [vmem:[#allocation3 + $0x1fb0] sm:$0xff] }
 0xe97   :  { %7915 = vrsqrt.f32 %v4999_v59  ;;  %v5129_v59 = vld [vmem:[#allocation3 + $0x2030] sm:$0xff] }
 0xea4   :  { %v7916_v1 = vpop.eup %7915 }
 0xea5   :  { %v5001_v16 = vmul.f32 %v7916_v1, %v4981_v37  ;;  %v5002_v63 = vmul.f32 %v7916_v1, %v4982_v39  ;;  %v5003_v0 = vmul.f32 %v7916_v1, %v4983_v40  ;;  %v5004_v3 = vmul.f32 %v7916_v1, %v4984_v24  ;;  %v5117_v37 = vld [vmem:[#allocation3 + $0x1fd0] sm:$0xff] }
 0xea6   :  { %v5133_v40 = vld [vmem:[#allocation3 + $0x2050] sm:$0xff] }
 0xea7   :  { %v5010_v4 = vmul.f32 %v5833_v61, %v5001_v16  ;;  %v5011_v5 = vmul.f32 %v5833_v61, %v5002_v63  ;;  %v5012_v6 = vmul.f32 %v5833_v61, %v5003_v0  ;;  %v5013_v7 = vmul.f32 %v5833_v61, %v5004_v3  ;;  %v5101_v24 = vld [vmem:[#allocation3 + $0x1f50] sm:$0xff]  ;;  %v5112_v61 = vld [vmem:[#allocation3 + $0x1fa8] sm:$0xff]  ;;  %v5111_v0 = vld [vmem:[#allocation3 + $0x1fa0] sm:$0xff] }
 0xea8   :  { %v5097_v1 = vld [vmem:[#allocation3 + $0x1f30] sm:$0xff]  ;;  %v5128_v16 = vld [vmem:[#allocation3 + $0x2028] sm:$0xff]  ;;  %v5127_v3 = vld [vmem:[#allocation3 + $0x2020] sm:$0xff] }
 0xea9   :  { %v5019_v8 = vadd.f32 %v5834_v19, %v5010_v4  ;;  %v5020_v27 = vadd.f32 %v5834_v19, %v5011_v5  ;;  %v5021_v54 = vadd.f32 %v5834_v19, %v5012_v6  ;;  %v8254_v25 = vadd.f32 %v5834_v19, %v5013_v7  ;;  %v5096_v63 = vld [vmem:[#allocation3 + $0x1f28] sm:$0xff]  ;;  %v5095_v19 = vld [vmem:[#allocation3 + $0x1f20] sm:$0xff]  ;;  %v5110_v4 = vld [vmem:[#allocation3 + $0x1f98] sm:$0xff] }
 0xeaa   :  { %v5126_v5 = vld [vmem:[#allocation3 + $0x2018] sm:$0xff]  ;;  %v5109_v7 = vld [vmem:[#allocation3 + $0x1f90] sm:$0xff] }
 0xeab   :  { %v5023_v11 = vmax.f32 %v5019_v8, 0.0  ;;  %v5024_v12 = vmax.f32 %v5020_v27, 0.0  ;;  %v5025_v13 = vmax.f32 %v5021_v54, 0.0  ;;  %v5026_v32 = vmax.f32 %v8254_v25, 0.0  ;;  %v5094_v6 = vld [vmem:[#allocation3 + $0x1f18] sm:$0xff]  ;;  %v5125_v8 = vld [vmem:[#allocation3 + $0x2010] sm:$0xff] }
 0xeac   :  { %v5093_v27 = vld [vmem:[#allocation3 + $0x1f10] sm:$0xff]  ;;  %v5108_v54 = vld [vmem:[#allocation3 + $0x1f88] sm:$0xff] }
 0xead   :  { %5139 = vst [vmem:[#allocation2 + $0x8] sm:$0xff] %v5023_v11  ;;  %5140 = vst [vmem:[#allocation2 + $0x10] sm:$0xff] %v5024_v12  ;;  %5325 = vmatprep.mubr.f32.mxu0 %v5023_v11  ;;  %v5124_v25 = vld [vmem:[#allocation3 + $0x2008] sm:$0xff] }
 0xeae   :  { %5141 = vst [vmem:[#allocation2 + $0x28] sm:$0xff] %v5025_v13  ;;  %5142 = vst [vmem:[#allocation2 + $0x30] sm:$0xff] %v5026_v32  ;;  %v5092_v11 = vld [vmem:[#allocation3 + $0x1f08] sm:$0xff] }
 0xeb4   :  { %v5147_v15 = vld [vmem:[#allocation2 + $0x6] sm:$0xff]  ;;  %v5148_v21 = vld [vmem:[#allocation2 + $0xe] sm:$0xff] }
 0xeb5   :  { %v5143_v17 = vld [vmem:[#allocation2 + $0x5] sm:$0xff]  ;;  %5240 = vmatprep.mubr.f32.mxu1 %v5147_v15  ;;  %v5144_v18 = vld [vmem:[#allocation2 + $0xd] sm:$0xff] }
 0xeb6   :  { %v5151_v22 = vld [vmem:[#allocation2 + $0x7] sm:$0xff]  ;;  %5241 = vmatmul.mubr.f32.vlgmr.msra.gmra.mxu1 %v5143_v17  ;;  %v5152_v58 = vld [vmem:[#allocation2 + $0xf] sm:$0xff] }
 0xeb7   :  { %5326 = vmatmul.mubr.f32.vlgmr.msra.gmra.mxu0 %v5151_v22  ;;  %7181 = vmatpush3.msra.mxu1 %v5106_v14  ;;  %v5145_v2 = vld [vmem:[#allocation2 + $0x25] sm:$0xff]  ;;  %v5150_v39 = vld [vmem:[#allocation2 + $0x2e] sm:$0xff] }
 0xeb8   :  { %7741 = vmatpush3.msra.mxu0 %v8251_v33  ;;  %5245 = vmatprep.mubr.f32.mxu1 %v5148_v21  ;;  %v5149_v33 = vld [vmem:[#allocation2 + $0x26] sm:$0xff]  ;;  %v5154_v46 = vld [vmem:[#allocation2 + $0x2f] sm:$0xff] }
 0xeb9   :  { %5330 = vmatprep.mubr.f32.mxu0 %v5024_v12  ;;  %7182 = vmatprep.subr.mxu1 %v5121_v55  ;;  %v5153_v36 = vld [vmem:[#allocation2 + $0x27] sm:$0xff]  ;;  %v5168_v15 = vld [vmem:[#allocation2 + $0x13] sm:$0xff] }
 0xeba   :  { %7742 = vmatprep.subr.mxu0 %v5137_v60  ;;  %7183 = vmatpush3.msra.mxu1 %v5105_v26  ;;  %v5146_v44 = vld [vmem:[#allocation2 + $0x2d] sm:$0xff]  ;;  %v5107_v12 = vld [vmem:[#allocation3 + $0x1f80] sm:$0xff] }
 0xebb   :  { %7743 = vmatpush3.msra.mxu0 %v5137_v60  ;;  %7184 = vmatprep.subr.mxu1 %v5120_v20  ;;  %v5163_v49 = vld [vmem:[#allocation2 + $0xa] sm:$0xff]  ;;  %v5164_v17 = vld [vmem:[#allocation2 + $0x12] sm:$0xff] }
 0xebc   :  { %7744 = vmatprep.subr.mxu0 %v5136_v29  ;;  %5246 = vmatmul.mubr.f32.gmra.mxu1 %v5144_v18  ;;  %v5167_v52 = vld [vmem:[#allocation2 + $0xb] sm:$0xff]  ;;  %v5170_v21 = vld [vmem:[#allocation2 + $0x33] sm:$0xff] }
 0xebd   :  { %5331 = vmatmul.mubr.f32.gmra.mxu0 %v5152_v58  ;;  %7185 = vmatpush3.msra.mxu1 %v5104_v30  ;;  %v5159_v14 = vld [vmem:[#allocation2 + $0x9] sm:$0xff]  ;;  %v5160_v55 = vld [vmem:[#allocation2 + $0x11] sm:$0xff] }
 0xebe   :  { %7745 = vmatpush3.msra.mxu0 %v5136_v29  ;;  %5250 = vmatprep.mubr.f32.mxu1 %v5149_v33  ;;  %v5169_v22 = vld [vmem:[#allocation2 + $0x2b] sm:$0xff]  ;;  %v5535_v30 = vld [vmem:[#allocation3 + $0x20f8] sm:$0xff] }
 0xebf   :  { %5335 = vmatprep.mubr.f32.mxu0 %v5025_v13  ;;  %7186 = vmatprep.subr.mxu1 %v5119_v34  ;;  %v5123_v13 = vld [vmem:[#allocation3 + $0x2000] sm:$0xff]  ;;  %v5165_v60 = vld [vmem:[#allocation2 + $0x2a] sm:$0xff]  ;;  %v5166_v20 = vld [vmem:[#allocation2 + $0x32] sm:$0xff] }
 0xec0   :  { %7746 = vmatprep.subr.mxu0 %v5135_v9  ;;  %7187 = vmatpush3.msra.mxu1 %v5103_v51  ;;  %v5161_v26 = vld [vmem:[#allocation2 + $0x29] sm:$0xff]  ;;  %v5162_v29 = vld [vmem:[#allocation2 + $0x31] sm:$0xff]  ;;  %v5532_v34 = vld [vmem:[#allocation3 + $0x20e0] sm:$0xff] }
 0xec1   :  { %7747 = vmatpush3.msra.mxu0 %v5135_v9  ;;  %7188 = vmatprep.subr.mxu1 %v5118_v10  ;;  %v5534_v18 = vld [vmem:[#allocation3 + $0x20f0] sm:$0xff]  ;;  %v5533_v58 = vld [vmem:[#allocation3 + $0x20e8] sm:$0xff]  ;;  %v5531_v33 = vld [vmem:[#allocation3 + $0x20d8] sm:$0xff] }
 0xec2   :  { %7748 = vmatprep.subr.mxu0 %v5134_v35  ;;  %5251 = vmatmul.mubr.f32.gmra.mxu1 %v5145_v2  ;;  %v5530_v9 = vld [vmem:[#allocation3 + $0x20d0] sm:$0xff]  ;;  %v5529_v51 = vld [vmem:[#allocation3 + $0x20c8] sm:$0xff]  ;;  %v5528_v10 = vld [vmem:[#allocation3 + $0x20c0] sm:$0xff] }
 0xec3   :  { %5336 = vmatmul.mubr.f32.gmra.mxu0 %v5153_v36  ;;  %7189 = vmatpush3.msra.mxu1 %v5102_v23  ;;  %v5526_v23 = vld [vmem:[#allocation3 + $0x20b0] sm:$0xff]  ;;  %v5525_v2 = vld [vmem:[#allocation3 + $0x20a8] sm:$0xff]  ;;  %v5524_v36 = vld [vmem:[#allocation3 + $0x20a0] sm:$0xff] }
 0xec4   :  { %7749 = vmatpush3.msra.mxu0 %v5134_v35  ;;  %5255 = vmatprep.mubr.f32.mxu1 %v5150_v39  ;;  %v5527_v35 = vld [vmem:[#allocation3 + $0x20b8] sm:$0xff]  ;;  %v5522_v39 = vld [vmem:[#allocation3 + $0x2090] sm:$0xff] }
 0xec5   :  { %5340 = vmatprep.mubr.f32.mxu0 %v5026_v32  ;;  %7190 = vmatprep.subr.mxu1 %v5117_v37  ;;  %v5091_v32 = vld [vmem:[#allocation3 + $0x1f00] sm:$0xff]  ;;  %v5523_v37 = vld [vmem:[#allocation3 + $0x2098] sm:$0xff] }
 0xec6   :  { %7750 = vmatprep.subr.mxu0 %v5133_v40  ;;  %7191 = vmatpush3.msra.mxu1 %v5101_v24  ;;  %v5520_v24 = vld [vmem:[#allocation3 + $0x2080] sm:$0xff] }
 0xec7   :  { %7751 = vmatpush3.msra.mxu0 %v5133_v40  ;;  %7192 = vmatprep.subr.mxu1 %v5116_v41  ;;  %v5521_v40 = vld [vmem:[#allocation3 + $0x2088] sm:$0xff] }
 0xec8   :  { %7752 = vmatprep.subr.mxu0 %v5132_v42  ;;  %5256 = vmatmul.mubr.f32.gmra.mxu1 %v5146_v44 }
 0xec9   :  { %5341 = vmatmul.mubr.f32.gmra.mxu0 %v5154_v46  ;;  %7193 = vmatpush3.msra.mxu1 %v5100_v43 }
 0xeca   :  { %7753 = vmatpush3.msra.mxu0 %v5132_v42  ;;  %7194 = vmatprep.subr.mxu1 %v5115_v45 }
 0xecb   :  { %5410 = vmatprep.mubr.f32.mxu1 %v5163_v49  ;;  %7754 = vmatprep.subr.mxu0 %v5131_v47 }
 0xecc   :  { %7772 = vmatprep.mubr.f32.mxu0 %v5167_v52  ;;  %7195 = vmatpush3.msra.mxu1 %v5099_v48 }
 0xecd   :  { %7755 = vmatpush3.msra.mxu0 %v5131_v47  ;;  %7196 = vmatprep.subr.mxu1 %v5114_v50 }
 0xece   :  { %7756 = vmatprep.subr.mxu0 %v5130_v53  ;;  %7197 = vmatpush3.msra.mxu1 %v5098_v56 }
 0xecf   :  { %7757 = vmatpush3.msra.mxu0 %v5130_v53  ;;  %7198 = vmatprep.subr.mxu1 %v5113_v57 }
 0xed0   :  { %7758 = vmatprep.subr.mxu0 %v5129_v59  ;;  %7199 = vmatpush3.msra.mxu1 %v5097_v1 }
 0xed1   :  { %7759 = vmatpush3.msra.mxu0 %v5129_v59  ;;  %7200 = vmatprep.subr.mxu1 %v5112_v61  ;;  %v5835_v59 = vld [vmem:[#allocation5 + $0xc] ss:$0 sm:$0xff] }
 0xed2   :  { %7760 = vmatprep.subr.mxu0 %v5128_v16  ;;  %7201 = vmatpush3.msra.mxu1 %v5096_v63 }
 0xed3   :  { %7761 = vmatpush3.msra.mxu0 %v5128_v16  ;;  %7202 = vmatprep.subr.mxu1 %v5111_v0 }
 0xed4   :  { %7762 = vmatprep.subr.mxu0 %v5127_v3  ;;  %7203 = vmatpush3.msra.mxu1 %v5095_v19 }
 0xed5   :  { %7763 = vmatpush3.msra.mxu0 %v5127_v3  ;;  %7204 = vmatprep.subr.mxu1 %v5110_v4 }
 0xed6   :  { %7764 = vmatprep.subr.mxu0 %v5126_v5  ;;  %7205 = vmatpush3.msra.mxu1 %v5094_v6 }
 0xed7   :  { %7765 = vmatpush3.msra.mxu0 %v5126_v5  ;;  %7206 = vmatprep.subr.mxu1 %v5109_v7 }
 0xed8   :  { %7766 = vmatprep.subr.mxu0 %v5125_v8  ;;  %7207 = vmatpush3.msra.mxu1 %v5093_v27 }
 0xed9   :  { %7767 = vmatpush3.msra.mxu0 %v5125_v8  ;;  %7208 = vmatprep.subr.mxu1 %v5108_v54 }
 0xeda   :  { %7768 = vmatprep.subr.mxu0 %v5124_v25  ;;  %7209 = vmatpush3.msra.mxu1 %v5092_v11 }
 0xedb   :  { %7769 = vmatpush3.msra.mxu0 %v5124_v25  ;;  %7210 = vmatprep.subr.mxu1 %v5107_v12 }
 0xedc   :  { %7770 = vmatprep.subr.mxu0 %v5123_v13  ;;  %7211 = vmatpush3.msra.mxu1 %v5091_v32 }
 0xedd   :  { %7771 = vmatpush3.msra.mxu0 %v5123_v13  ;;  %5411 = vmatmul.mubr.f32.vlgmr.msra.gmra.mxu1 %v5159_v14 }
 0xede   :  { %7773 = vmatmul.mubr.f32.vlgmr.msra.gmra.mxu0 %v5168_v15  ;;  %5415 = vmatprep.mubr.f32.mxu1 %v5164_v17 }
 0xedf   :  { %7775 = vmatprep.mubr.f32.mxu0 %v5169_v22  ;;  %7778 = vmatprep.subr.mxu1 %v5535_v30 }
 0xee0   :  { %7779 = vmatpush3.msra.mxu1 %v5535_v30 }
 0xee1   :  { %5416 = vmatmul.mubr.f32.gmra.mxu1 %v5160_v55  ;;  %7780 = vmatprep.subr.mxu1 %v5534_v18 }
 0xee2   :  { %7776 = vmatmul.mubr.f32.gmra.mxu0 %v5170_v21  ;;  %5420 = vmatprep.mubr.f32.mxu1 %v5165_v60 }
 0xee3   :  { %7781 = vmatpush3.msra.mxu1 %v5534_v18 }
 0xee4   :  { %7782 = vmatprep.subr.mxu1 %v5533_v58 }
 0xee5   :  { %5421 = vmatmul.mubr.f32.gmra.mxu1 %v5161_v26 }
 0xee6   :  { %5425 = vmatprep.mubr.f32.mxu1 %v5166_v20  ;;  %7783 = vmatpush3.msra.mxu1 %v5533_v58 }
 0xee7   :  { %7784 = vmatprep.subr.mxu1 %v5532_v34 }
 0xee8   :  { %7785 = vmatpush3.msra.mxu1 %v5532_v34 }
 0xee9   :  { %5426 = vmatmul.mubr.f32.gmra.mxu1 %v5162_v29  ;;  %7786 = vmatprep.subr.mxu1 %v5531_v33 }
 0xeea   :  { %7787 = vmatpush3.msra.mxu1 %v5531_v33 }
 0xeeb   :  { %7788 = vmatprep.subr.mxu1 %v5530_v9 }
 0xeec   :  { %7789 = vmatpush3.msra.mxu1 %v5530_v9 }
 0xeed   :  { %7790 = vmatprep.subr.mxu1 %v5529_v51 }
 0xeee   :  { %7791 = vmatpush3.msra.mxu1 %v5529_v51 }
 0xeef   :  { %7792 = vmatprep.subr.mxu1 %v5528_v10 }
 0xef0   :  { %7793 = vmatpush3.msra.mxu1 %v5528_v10 }
 0xef1   :  { %7794 = vmatprep.subr.mxu1 %v5527_v35 }
 0xef2   :  { %7795 = vmatpush3.msra.mxu1 %v5527_v35 }
 0xef3   :  { %7796 = vmatprep.subr.mxu1 %v5526_v23 }
 0xef4   :  { %7797 = vmatpush3.msra.mxu1 %v5526_v23 }
 0xef5   :  { %7798 = vmatprep.subr.mxu1 %v5525_v2 }
 0xef6   :  { %7799 = vmatpush3.msra.mxu1 %v5525_v2 }
 0xef7   :  { %7800 = vmatprep.subr.mxu1 %v5524_v36 }
 0xef8   :  { %7801 = vmatpush3.msra.mxu1 %v5524_v36 }
 0xef9   :  { %7802 = vmatprep.subr.mxu1 %v5523_v37 }
 0xefa   :  { %7803 = vmatpush3.msra.mxu1 %v5523_v37 }
 0xefb   :  { %7804 = vmatprep.subr.mxu1 %v5522_v39 }
 0xefc   :  { %7805 = vmatpush3.msra.mxu1 %v5522_v39 }
 0xefd   :  { %7806 = vmatprep.subr.mxu1 %v5521_v40 }
 0xefe   :  { %7807 = vmatpush3.msra.mxu1 %v5521_v40 }
 0xeff   :  { %7808 = vmatprep.subr.mxu1 %v5520_v24 }
 0xf00   :  { %7809 = vmatpush3.msra.mxu1 %v5520_v24 }
 0xf76   :  { %v7124_v41 = vpop.f32.mrf.mxu1 }
 0xf77   :  { %v7168_v42 = vpop.f32.mrf.mxu0 }
 0xf78   :  { %v7125_v43 = vpop.f32.mrf.mxu1 }
 0xf79   :  { %v7169_v44 = vpop.f32.mrf.mxu0  ;;  %v7126_v57 = vadd.f32 %v7125_v43, %v7124_v41  ;;  %v5697_v41 = vld [vmem:[#allocation3 + $0x2178] sm:$0xff]  ;;  %v5692_v43 = vld [vmem:[#allocation3 + $0x2150] sm:$0xff] }
 0xf7a   :  { %v7170_v19 = vadd.f32 %v7169_v44, %v7168_v42  ;;  %7816 = vmatprep.subr.mxu0 %v5697_v41  ;;  %7854 = vmatprep.subr.mxu1 %v5697_v41  ;;  %v5695_v42 = vld [vmem:[#allocation3 + $0x2168] sm:$0xff] }
 0xf7b   :  { %v5243_v63 = vadd.f32 %v7126_v57, %v5835_v59  ;;  %7817 = vmatpush3.msra.mxu0 %v5697_v41  ;;  %v5691_v44 = vld [vmem:[#allocation3 + $0x2148] sm:$0xff] }
 0xf7c   :  { %v7127_v45 = vpop.f32.mrf.mxu1 }
 0xf7d   :  { %v7171_v46 = vpop.f32.mrf.mxu0  ;;  %v5328_v7 = vadd.f32 %v7170_v19, %v5243_v63 }
 0xf7e   :  { %v7128_v47 = vpop.f32.mrf.mxu1 }
 0xf7f   :  { %v7172_v48 = vpop.f32.mrf.mxu0  ;;  %v7129_v61 = vadd.f32 %v7128_v47, %v7127_v45  ;;  %v5690_v45 = vld [vmem:[#allocation3 + $0x2140] sm:$0xff]  ;;  %v5688_v47 = vld [vmem:[#allocation3 + $0x2130] sm:$0xff] }
 0xf80   :  { %v7173_v54 = vadd.f32 %v7172_v48, %v7171_v46  ;;  %v5689_v46 = vld [vmem:[#allocation3 + $0x2138] sm:$0xff]  ;;  %v5687_v48 = vld [vmem:[#allocation3 + $0x2128] sm:$0xff] }
 0xf81   :  { %v5248_v4 = vadd.f32 %v7129_v61, %v5835_v59 }
 0xf82   :  { %v7130_v49 = vpop.f32.mrf.mxu1 }
 0xf83   :  { %v7174_v50 = vpop.f32.mrf.mxu0  ;;  %v5333_v12 = vadd.f32 %v7173_v54, %v5248_v4 }
 0xf84   :  { %v7131_v52 = vpop.f32.mrf.mxu1 }
 0xf85   :  { %v7175_v53 = vpop.f32.mrf.mxu0  ;;  %v7132_v8 = vadd.f32 %v7131_v52, %v7130_v49  ;;  %v5686_v49 = vld [vmem:[#allocation3 + $0x2120] sm:$0xff]  ;;  %v5684_v52 = vld [vmem:[#allocation3 + $0x2110] sm:$0xff] }
 0xf86   :  { %v7176_v21 = vadd.f32 %v7175_v53, %v7174_v50  ;;  %v5685_v50 = vld [vmem:[#allocation3 + $0x2118] sm:$0xff]  ;;  %v5683_v53 = vld [vmem:[#allocation3 + $0x2108] sm:$0xff] }
 0xf87   :  { %v5253_v14 = vadd.f32 %v7132_v8, %v5835_v59 }
 0xf88   :  { %v7133_v56 = vpop.f32.mrf.mxu1 }
 0xf89   :  { %v7177_v1 = vpop.f32.mrf.mxu0  ;;  %v5338_v30 = vadd.f32 %v7176_v21, %v5253_v14 }
 0xf8a   :  { %v7134_v16 = vpop.f32.mrf.mxu1 }
 0xf8b   :  { %v7178_v0 = vpop.f32.mrf.mxu0  ;;  %v7135_v15 = vadd.f32 %v7134_v16, %v7133_v56  ;;  %v5682_v56 = vld [vmem:[#allocation3 + $0x2100] sm:$0xff] }
 0xf8c   :  { %v7179_v9 = vadd.f32 %v7178_v0, %v7177_v1  ;;  %v5836_v1 = vld [vmem:[#allocation5 + $0xd] ss:$0 sm:$0xff] }
 0xf8d   :  { %v5258_v18 = vadd.f32 %v7135_v15, %v5835_v59 }
 0xf8f   :  { %v5343_v2 = vadd.f32 %v7179_v9, %v5258_v18 }
 0xf9d   :  { %v7212_v3 = vpop.f32.mrf.mxu1 }
 0xf9e   :  { %v7774_v5 = vpop.f32.mrf.mxu0 }
 0xf9f   :  { %v7213_v6 = vpop.f32.mrf.mxu1 }
 0xfa0   :  { %v7214_v27 = vadd.f32 %v7213_v6, %v7212_v3  ;;  %v5497_v13 = vpop.f32.mrf.mxu0 }
 0xfa1   :  { %v7215_v25 = vpop.f32.mrf.mxu1 }
 0xfa2   :  { %v5413_v11 = vadd.f32 %v7214_v27, %v5328_v7  ;;  %v7777_v20 = vpop.f32.mrf.mxu0 }
 0xfa3   :  { %v7216_v32 = vpop.f32.mrf.mxu1 }
 0xfa4   :  { %v5498_v17 = vadd.f32 %v5497_v13, %v5413_v11  ;;  %v7217_v22 = vadd.f32 %v7216_v32, %v7215_v25  ;;  %v5507_v35 = vpop.f32.mrf.mxu0 }
 0xfa5   :  { %v7218_v55 = vpop.f32.mrf.mxu1 }
 0xfa6   :  { %v5516_v60 = vadd.f32 %v5498_v17, %v8231_v38  ;;  %v5418_v26 = vadd.f32 %v7217_v22, %v5333_v12 }
 0xfa7   :  { %v7219_v29 = vpop.f32.mrf.mxu1 }
 0xfa8   :  { %v5503_v58 = vadd.f32 %v7774_v5, %v5418_v26  ;;  %v7220_v34 = vadd.f32 %v7219_v29, %v7218_v55  ;;  %7810 = vmatprep.mubr.f32.mxu1 %v5516_v60 }
 0xfa9   :  { %v7221_v33 = vpop.f32.mrf.mxu1 }
 0xfaa   :  { %v5517_v51 = vadd.f32 %v5503_v58, %v8228_v62  ;;  %v5423_v10 = vadd.f32 %v7220_v34, %v5338_v30  ;;  %v5696_v62 = vld [vmem:[#allocation3 + $0x2170] sm:$0xff] }
 0xfab   :  { %v7222_v23 = vpop.f32.mrf.mxu1  ;;  %7818 = vmatprep.subr.mxu0 %v5696_v62 }
 0xfac   :  { %v5508_v36 = vadd.f32 %v5507_v35, %v5423_v10  ;;  %v7223_v37 = vadd.f32 %v7222_v23, %v7221_v33  ;;  %7811 = vmatmul.mubr.f32.vlgmr.msra.gmra.mxu1 %v5517_v51  ;;  %7819 = vmatpush3.msra.mxu0 %v5696_v62  ;;  %v5837_v35 = vld [vmem:[#allocation7 + $0xc] ss:$0 sm:$0xff] }
 0xfad   :  { %7870 = vmatpush3.msra.mxu1 %v5697_v41  ;;  %7820 = vmatprep.subr.mxu0 %v5695_v42 }
 0xfae   :  { %v5428_v38 = vadd.f32 %v7223_v37, %v5343_v2  ;;  %v5518_v39 = vadd.f32 %v5508_v36, %v8234_v28  ;;  %7855 = vmatprep.subr.mxu1 %v5696_v62  ;;  %7821 = vmatpush3.msra.mxu0 %v5695_v42  ;;  %v5694_v28 = vld [vmem:[#allocation3 + $0x2160] sm:$0xff] }
 0xfaf   :  { %7871 = vmatpush3.msra.mxu1 %v5696_v62  ;;  %7822 = vmatprep.subr.mxu0 %v5694_v28 }
 0xfb0   :  { %v5513_v40 = vadd.f32 %v7777_v20, %v5428_v38  ;;  %7813 = vmatprep.mubr.f32.mxu1 %v5518_v39  ;;  %7856 = vmatprep.subr.mxu1 %v5695_v42  ;;  %v5838_v38 = vld [vmem:[#allocation8 + $0xc] ss:$0 sm:$0xff] }
 0xfb1   :  { %7872 = vmatpush3.msra.mxu1 %v5695_v42  ;;  %7823 = vmatpush3.msra.mxu0 %v5694_v28 }
 0xfb2   :  { %v5519_v24 = vadd.f32 %v5513_v40, %v8240_v31  ;;  %7857 = vmatprep.subr.mxu1 %v5694_v28  ;;  %v5693_v31 = vld [vmem:[#allocation3 + $0x2158] sm:$0xff] }
 0xfb3   :  { %7873 = vmatpush3.msra.mxu1 %v5694_v28  ;;  %7824 = vmatprep.subr.mxu0 %v5693_v31 }
 0xfb4   :  { %7814 = vmatmul.mubr.f32.gmra.mxu1 %v5519_v24  ;;  %7858 = vmatprep.subr.mxu1 %v5693_v31 }
 0xfb5   :  { %7825 = vmatpush3.msra.mxu0 %v5693_v31  ;;  %7874 = vmatpush3.msra.mxu1 %v5693_v31 }
 0xfb6   :  { %7826 = vmatprep.subr.mxu0 %v5692_v43  ;;  %7859 = vmatprep.subr.mxu1 %v5692_v43 }
 0xfb7   :  { %7827 = vmatpush3.msra.mxu0 %v5692_v43  ;;  %7875 = vmatpush3.msra.mxu1 %v5692_v43 }
 0xfb8   :  { %7828 = vmatprep.subr.mxu0 %v5691_v44  ;;  %7860 = vmatprep.subr.mxu1 %v5691_v44 }
 0xfb9   :  { %7829 = vmatpush3.msra.mxu0 %v5691_v44  ;;  %7876 = vmatpush3.msra.mxu1 %v5691_v44 }
 0xfba   :  { %7830 = vmatprep.subr.mxu0 %v5690_v45  ;;  %7861 = vmatprep.subr.mxu1 %v5690_v45 }
 0xfbb   :  { %7831 = vmatpush3.msra.mxu0 %v5690_v45  ;;  %7877 = vmatpush3.msra.mxu1 %v5690_v45 }
 0xfbc   :  { %7832 = vmatprep.subr.mxu0 %v5689_v46  ;;  %7862 = vmatprep.subr.mxu1 %v5689_v46 }
 0xfbd   :  { %7833 = vmatpush3.msra.mxu0 %v5689_v46  ;;  %7878 = vmatpush3.msra.mxu1 %v5689_v46 }
 0xfbe   :  { %7834 = vmatprep.subr.mxu0 %v5688_v47  ;;  %7863 = vmatprep.subr.mxu1 %v5688_v47 }
 0xfbf   :  { %7835 = vmatpush3.msra.mxu0 %v5688_v47  ;;  %7879 = vmatpush3.msra.mxu1 %v5688_v47  ;;  %v5839_v47 = vld [vmem:[#allocation5 + $0xe] ss:$0 sm:$0xff] }
 0xfc0   :  { %7836 = vmatprep.subr.mxu0 %v5687_v48  ;;  %7864 = vmatprep.subr.mxu1 %v5687_v48 }
 0xfc1   :  { %7837 = vmatpush3.msra.mxu0 %v5687_v48  ;;  %7880 = vmatpush3.msra.mxu1 %v5687_v48 }
 0xfc2   :  { %7838 = vmatprep.subr.mxu0 %v5686_v49  ;;  %7865 = vmatprep.subr.mxu1 %v5686_v49 }
 0xfc3   :  { %7839 = vmatpush3.msra.mxu0 %v5686_v49  ;;  %7881 = vmatpush3.msra.mxu1 %v5686_v49 }
 0xfc4   :  { %7840 = vmatprep.subr.mxu0 %v5685_v50  ;;  %7866 = vmatprep.subr.mxu1 %v5685_v50 }
 0xfc5   :  { %7841 = vmatpush3.msra.mxu0 %v5685_v50  ;;  %7882 = vmatpush3.msra.mxu1 %v5685_v50 }
 0xfc6   :  { %7842 = vmatprep.subr.mxu0 %v5684_v52  ;;  %7867 = vmatprep.subr.mxu1 %v5684_v52 }
 0xfc7   :  { %7843 = vmatpush3.msra.mxu0 %v5684_v52  ;;  %7883 = vmatpush3.msra.mxu1 %v5684_v52 }
 0xfc8   :  { %7844 = vmatprep.subr.mxu0 %v5683_v53  ;;  %7868 = vmatprep.subr.mxu1 %v5683_v53 }
 0xfc9   :  { %7845 = vmatpush3.msra.mxu0 %v5683_v53  ;;  %7884 = vmatpush3.msra.mxu1 %v5683_v53 }
 0xfca   :  { %7846 = vmatprep.subr.mxu0 %v5682_v56  ;;  %7869 = vmatprep.subr.mxu1 %v5682_v56 }
 0xfcb   :  { %7847 = vmatpush3.msra.mxu0 %v5682_v56  ;;  %7885 = vmatpush3.msra.mxu1 %v5682_v56 }
0x106c   :  { %v7812_v57 = vpop.f32.mrf.mxu1 }
0x106d   :  { %v5613_v63 = vadd.f32 %v7812_v57, %v5836_v1 }
0x106e   :  { %v5607_v59 = vpop.f32.mrf.mxu1 }
0x106f   :  { %v5608_v61 = vadd.f32 %v5836_v1, %v5607_v59 }
0x1071   :  { %v5626_v3 = vadd.f32 %v5613_v63, %v5608_v61 }
0x1074   :  { %v7815_v16 = vpop.f32.mrf.mxu1 }
0x1075   :  { %v5623_v4 = vadd.f32 %v7815_v16, %v5836_v1 }
0x1076   :  { %v5617_v0 = vpop.f32.mrf.mxu1 }
0x1077   :  { %v5618_v19 = vadd.f32 %v5836_v1, %v5617_v0 }
0x1079   :  { %v5627_v5 = vadd.f32 %v5626_v3, %v5618_v19 }
0x107b   :  { %v5628_v6 = vadd.f32 %v5627_v5, %v5623_v4 }
0x107d   :  { %v5629_v7 = vrot.slane %v5628_v6, 4 }
0x107f   :  { %v5630_v8 = vadd.f32 %v5629_v7, %v5628_v6 }
0x1081   :  { %v5631_v27 = vrot.slane %v5630_v8, 2 }
0x1083   :  { %v5632_v54 = vadd.f32 %v5631_v27, %v5630_v8 }
0x1085   :  { %v5633_v25 = vrot.slane %v5632_v54, 1 }
0x1087   :  { %v5634_v11 = vadd.f32 %v5633_v25, %v5632_v54 }
0x1089   :  { %v5635_v12 = vmul.f32 0.03125, %v5634_v11 }
0x108b   :  { %v5636_v13 = vsub.f32 %v5608_v61, %v5635_v12  ;;  %v5637_v32 = vsub.f32 %v5613_v63, %v5635_v12  ;;  %v5638_v14 = vsub.f32 %v5618_v19, %v5635_v12  ;;  %v5639_v15 = vsub.f32 %v5623_v4, %v5635_v12 }
0x108d   :  { %v5640_v17 = vmul.f32 %v5636_v13, %v5636_v13  ;;  %v5641_v22 = vmul.f32 %v5637_v32, %v5637_v32  ;;  %v5642_v55 = vmul.f32 %v5638_v14, %v5638_v14  ;;  %v5643_v60 = vmul.f32 %v5639_v15, %v5639_v15 }
0x108f   :  { %v5644_v21 = vadd.f32 %v5641_v22, %v5640_v17 }
0x1091   :  { %v5645_v26 = vadd.f32 %v5644_v21, %v5642_v55 }
0x1093   :  { %v5646_v20 = vadd.f32 %v5645_v26, %v5643_v60 }
0x1095   :  { %v5647_v29 = vrot.slane %v5646_v20, 4 }
0x1097   :  { %v5648_v30 = vadd.f32 %v5647_v29, %v5646_v20 }
0x1099   :  { %v5649_v18 = vrot.slane %v5648_v30, 2 }
0x109b   :  { %v5650_v58 = vadd.f32 %v5649_v18, %v5648_v30 }
0x109d   :  { %v5651_v34 = vrot.slane %v5650_v58, 1 }
0x109f   :  { %v5652_v33 = vadd.f32 %v5651_v34, %v5650_v58 }
0x10a1   :  { %v5653_v9 = vmul.f32 0.03125, %v5652_v33 }
0x10a3   :  { %v5654_v51 = vadd.f32 1e-05, %v5653_v9 }
0x10a5   :  { %7917 = vrsqrt.f32 %v5654_v51 }
0x10b2   :  { %v7918_v10 = vpop.eup %7917 }
0x10b3   :  { %v5657_v23 = vmul.f32 %v7918_v10, %v5637_v32  ;;  %v5658_v2 = vmul.f32 %v7918_v10, %v5638_v14  ;;  %v5659_v36 = vmul.f32 %v7918_v10, %v5639_v15  ;;  %v5656_v37 = vmul.f32 %v7918_v10, %v5636_v13 }
0x10b5   :  { %v5665_v39 = vmul.f32 %v5837_v35, %v5656_v37  ;;  %v5666_v40 = vmul.f32 %v5837_v35, %v5657_v23  ;;  %v5668_v24 = vmul.f32 %v5837_v35, %v5659_v36  ;;  %v5667_v41 = vmul.f32 %v5837_v35, %v5658_v2 }
0x10b7   :  { %v5674_v62 = vadd.f32 %v5838_v38, %v5665_v39  ;;  %v5675_v42 = vadd.f32 %v5838_v38, %v5666_v40  ;;  %v5677_v28 = vadd.f32 %v5838_v38, %v5668_v24  ;;  %v5676_v31 = vadd.f32 %v5838_v38, %v5667_v41 }
0x10b9   :  { %v5678_v43 = vmax.f32 %v5674_v62, 0.0  ;;  %v5679_v44 = vmax.f32 %v5675_v42, 0.0  ;;  %v5681_v45 = vmax.f32 %v5677_v28, 0.0  ;;  %v5680_v46 = vmax.f32 %v5676_v31, 0.0 }
0x10bb   :  { %7848 = vmatprep.mubr.f32.mxu0 %v5678_v43  ;;  %7851 = vmatprep.mubr.f32.mxu1 %v5680_v46 }
0x10bc   :  { %7849 = vmatmul.mubr.f32.vlgmr.msra.gmra.mxu0 %v5679_v44  ;;  %7852 = vmatmul.mubr.f32.vlgmr.msra.gmra.mxu1 %v5681_v45 }
0x117c   :  { %v7850_v48 = vpop.f32.mrf.mxu0  ;;  %v7853_v49 = vpop.f32.mrf.mxu1 }
0x117d   :  { %v5775_v50 = vadd.f32 %v7850_v48, %v5839_v47  ;;  %v5785_v52 = vadd.f32 %v7853_v49, %v5839_v47 }
0x117e   :  { %v5769_v53 = vpop.f32.mrf.mxu0  ;;  %v5779_v56 = vpop.f32.mrf.mxu1 }
0x117f   :  { %5789 = vst [vmem:[%s8279_s5 + $0x8] sm:$0xff] %v5775_v50  ;;  %5791 = vst [vmem:[%s8279_s5 + $0x18] sm:$0xff] %v5785_v52  ;;  %v5770_v57 = vadd.f32 %v5839_v47, %v5769_v53  ;;  %v5780_v59 = vadd.f32 %v5839_v47, %v5779_v56 }
0x1181   :  { %5788 = vst [vmem:[%s8279_s5] sm:$0xff] %v5770_v57  ;;  %5790 = vst [vmem:[%s8279_s5 + $0x10] sm:$0xff] %v5780_v59 }
0x1182   :  { %5796 = vsyncpa [#allocation4], 1 }
0x1183   :  { %5797 = vsyncpa [#allocation6], 1 }
0x1184   :  { %5798 = vsyncpa [#allocation9], 1 }

</bundles_post_ra>
